<compile_context>
chip_gen: v7x
topology: tpu7x:2x2x1
jax: 0.10.0
libtpu: 0.0.40
codegen_flags: <defaults>
</compile_context>

<pallas_src>
import functools
import math

import jax
import jax.numpy as jnp
from jax.experimental import pallas as pl
from jax.experimental.pallas import tpu as pltpu


def _bytes(*arrs):
    return sum(int(a.size) * a.dtype.itemsize for a in arrs)


# ----------------------------------------------------------------------------
# Fused stride-1 BasicRFB kernel (one grid step per batch element)
# ----------------------------------------------------------------------------
def _rfb_fused_kernel(x_ref, we0_ref, be0_ref, we1_ref, be1_ref, we2_ref, be2_ref,
                      w11_ref, b11_ref, w21_ref, b21_ref, w22_ref, b22_ref,
                      w01_ref, w12_ref, w23_ref, ws_ref, bt_ref,
                      o_ref,
                      p0, p1a, p1b, p2a, p2b, p2c,
                      *, H, W, ip, c21, d0, d1, d2, out_planes):
    rows = H * W
    bf = jnp.bfloat16
    two_ip = 2 * ip
    Cin = x_ref.shape[-1]

    # Zero the padded halo buffers (borders == conv zero padding).
    for buf in (p0, p1a, p1b, p2a, p2b, p2c):
        buf[...] = jnp.zeros_like(buf)

    xv = x_ref[0].reshape(rows, Cin)                       # bf16, read once

    # ---- branch-entry 1x1 convs (+BN+ReLU) ----------------------------------
    def conv1x1_relu(w_ref, b_ref):
        acc = jnp.dot(xv, w_ref[...], preferred_element_type=jnp.float32)
        return jnp.maximum(acc + b_ref[...], 0.0)          # f32 (rows, C)

    p0[0, d0:d0 + H, d0:d0 + W, :] = conv1x1_relu(we0_ref, be0_ref).reshape(H, W, two_ip)
    p1a[0, 1:1 + H, 1:1 + W, :] = conv1x1_relu(we1_ref, be1_ref).reshape(H, W, ip)
    p2a[0, 1:1 + H, 1:1 + W, :] = conv1x1_relu(we2_ref, be2_ref).reshape(H, W, ip)

    # ---- 3x3 (dilated) conv over a padded f32 VMEM buffer -------------------
    def conv3x3(p_ref, w_ref, dil, cout):
        cin = p_ref.shape[-1]
        acc = jnp.zeros((rows, cout), jnp.float32)
        for i in range(3):
            for j in range(3):
                win = p_ref[0, i * dil:i * dil + H, j * dil:j * dil + W, :]
                acc = acc + jnp.dot(win.astype(bf).reshape(rows, cin), w_ref[i, j],
                                    preferred_element_type=jnp.float32)
        return acc

    # ---- branch-middle 3x3 convs (+BN+ReLU): intermediates stay in VMEM -----
    x1b = jnp.maximum(conv3x3(p1a, w11_ref, 1, two_ip) + b11_ref[...], 0.0)
    p1b[0, d1:d1 + H, d1:d1 + W, :] = x1b.reshape(H, W, two_ip)

    x2b = jnp.maximum(conv3x3(p2a, w21_ref, 1, c21) + b21_ref[...], 0.0)
    p2b[0, 1:1 + H, 1:1 + W, :] = x2b.reshape(H, W, c21)

    x2c = jnp.maximum(conv3x3(p2b, w22_ref, 1, two_ip) + b22_ref[...], 0.0)
    p2c[0, d2:d2 + H, d2:d2 + W, :] = x2c.reshape(H, W, two_ip)

    # ---- tail: branch-final dilated convs (ConvLinear*scale folded into the
    #      weights), shortcut 1x1, single f32 accumulator, bias, ReLU ---------
    acc = conv3x3(p0, w01_ref, d0, out_planes)
    acc = acc + conv3x3(p1b, w12_ref, d1, out_planes)
    acc = acc + conv3x3(p2c, w23_ref, d2, out_planes)
    acc = acc + jnp.dot(xv, ws_ref[...], preferred_element_type=jnp.float32)
    acc = jnp.maximum(acc + bt_ref[...], 0.0)
    o_ref[...] = acc.reshape(1, H, W, out_planes)


# ----------------------------------------------------------------------------
# Generic matmul(+bias,+relu) kernel -- used only by the stride>1 fallback
# ----------------------------------------------------------------------------
def _mm_bias_kernel(x_ref, w_ref, b_ref, o_ref, *, relu):
    acc = jnp.dot(x_ref[...], w_ref[...], preferred_element_type=jnp.float32)
    acc = acc + b_ref[...]
    if relu:
        acc = jnp.maximum(acc, 0.0)
    o_ref[...] = acc.astype(o_ref.dtype)


def _pick_bm(Mp):
    """Largest row block (divisor of Mp, multiple of 8) keeping >= 2 grid steps
    when possible (both v7x TensorCores busy); fewest steps otherwise (grid
    steps are pure overhead on single-TC v5e/v6e)."""
    divs = [d for d in range(8, min(Mp, 4096) + 1, 8) if Mp % d == 0]
    if not divs:
        return Mp
    multi = [d for d in divs if Mp // d >= 2]
    return max(multi) if multi else max(divs)


def _matmul_bias(x2d, w2d, bias, *, relu, out_dtype):
    M, K = x2d.shape
    Mp = ((M + 7) // 8) * 8
    if Mp != M:
        x2d = jnp.pad(x2d, ((0, Mp - M), (0, 0)))
    Cout = w2d.shape[1]
    bm = _pick_bm(Mp)
    out = pl.pallas_call(
        functools.partial(_mm_bias_kernel, relu=relu),
        out_shape=jax.ShapeDtypeStruct((Mp, Cout), out_dtype),
        grid_spec=pltpu.PrefetchScalarGridSpec(
            num_scalar_prefetch=0,
            grid=(Mp // bm,),
            in_specs=[pl.BlockSpec((bm, K), lambda i: (i, 0)),
                      pl.BlockSpec((K, Cout), lambda i: (0, 0)),
                      pl.BlockSpec((1, Cout), lambda i: (0, 0))],
            out_specs=pl.BlockSpec((bm, Cout), lambda i: (i, 0))),
        compiler_params=pltpu.CompilerParams(dimension_semantics=("parallel",)),
        cost_estimate=pl.CostEstimate(
            flops=2 * Mp * K * Cout, transcendentals=0,
            bytes_accessed=_bytes(x2d, w2d, bias) + Mp * Cout * 4),
    )(x2d, w2d, bias)
    return out[:M]


def _conv_bn_fallback(x, wf, b, *, stride, padding, dilation, relu, out_dtype):
    """Generic BasicConv (conv+BN+ReLU) for the stride>1 path: XLA im2col +
    one Pallas matmul.  Never reached by the default stride==1 config."""
    N, H, W, Cin = x.shape
    kh, kw, _, Cout = wf.shape
    if kh == 1 and kw == 1:
        xs = x[:, ::stride, ::stride, :]
        Ho, Wo = xs.shape[1], xs.shape[2]
        y = _matmul_bias(xs.reshape(-1, Cin), wf.reshape(Cin, Cout).astype(jnp.bfloat16),
                         b, relu=relu, out_dtype=out_dtype)
        return y.reshape(N, Ho, Wo, Cout)
    xp = jnp.pad(x, ((0, 0), (padding, padding), (padding, padding), (0, 0)))
    Ho = (H + 2 * padding - dilation * (kh - 1) - 1) // stride + 1
    Wo = (W + 2 * padding - dilation * (kw - 1) - 1) // stride + 1
    cols = []
    for i in range(kh):
        for j in range(kw):
            hi, wj = i * dilation, j * dilation
            cols.append(xp[:, hi:hi + (Ho - 1) * stride + 1:stride,
                              wj:wj + (Wo - 1) * stride + 1:stride, :])
    patches = jnp.concatenate(cols, axis=-1).reshape(N * Ho * Wo, kh * kw * Cin)
    y = _matmul_bias(patches, wf.reshape(kh * kw * Cin, Cout).astype(jnp.bfloat16),
                     b, relu=relu, out_dtype=out_dtype)
    return y.reshape(N, Ho, Wo, Cout)


def _rfb_forward_general(xb, fold, stride, scale, visual):
    # TODO(synk): stride>1 path is a straightforward (less fused) transcription
    # using XLA im2col + one Pallas matmul per BasicConv; the default BasicRFB
    # config (stride=1) never reaches it.
    def conv(x, key, s, pad, dil, relu, out_dtype=jnp.bfloat16):
        wf, b = fold[key]
        return _conv_bn_fallback(x, wf, b, stride=s, padding=pad, dilation=dil,
                                 relu=relu, out_dtype=out_dtype)

    x0 = conv(xb, "b0_0", stride, 0, 1, True)
    x0 = conv(x0, "b0_1", 1, visual, visual, False)
    x1 = conv(xb, "b1_0", 1, 0, 1, True)
    x1 = conv(x1, "b1_1", stride, 1, 1, True)
    x1 = conv(x1, "b1_2", 1, visual + 1, visual + 1, False)
    x2 = conv(xb, "b2_0", 1, 0, 1, True)
    x2 = conv(x2, "b2_1", 1, 1, 1, True)
    x2 = conv(x2, "b2_2", stride, 1, 1, True)
    x2 = conv(x2, "b2_3", 1, 2 * visual + 1, 2 * visual + 1, False)
    cat = jnp.concatenate([x0, x1, x2], axis=-1)
    out = conv(cat, "linear", 1, 0, 1, False, jnp.float32)
    short = conv(xb, "short", stride, 0, 1, False, jnp.float32)
    return jnp.maximum(out * scale + short, 0.0)


# ----------------------------------------------------------------------------
# Glue: BN folding + BasicRFB forward
# ----------------------------------------------------------------------------
def _fold_bn(params, eps=1e-5):
    """Fold eval-mode BN into (f32 weight*scale, f32 bias)."""
    w, gamma, beta, mean, var = params
    s = gamma / jnp.sqrt(var + eps)
    return (w * s).astype(jnp.float32), (beta - mean * s).reshape(1, -1).astype(jnp.float32)


def basic_rfb_forward(x, p, stride=1, scale=0.1, visual=1):
    N, H, W, Cin = x.shape
    bf = jnp.bfloat16
    xb = x.astype(bf)
    fold = {k: _fold_bn(v) for k, v in p.items()}
    if stride != 1:
        return _rfb_forward_general(xb, fold, stride, scale, visual)

    (w00, b00), (w01, b01) = fold["b0_0"], fold["b0_1"]
    (w10, b10), (w11, b11), (w12, b12) = fold["b1_0"], fold["b1_1"], fold["b1_2"]
    (w20, b20), (w21, b21) = fold["b2_0"], fold["b2_1"]
    (w22, b22), (w23, b23) = fold["b2_2"], fold["b2_3"]
    (wl, bl), (ws, bs) = fold["linear"], fold["short"]

    two_ip = w00.shape[-1]
    ip = w10.shape[-1]
    c21 = w21.shape[-1]
    out_planes = wl.shape[-1]
    d0, d1, d2 = visual, visual + 1, 2 * visual + 1        # padding == dilation

    # --- branch-entry 1x1 weights (bf16, BN folded) --------------------------
    we0 = w00.reshape(Cin, two_ip).astype(bf)
    we1 = w10.reshape(Cin, ip).astype(bf)
    we2 = w20.reshape(Cin, ip).astype(bf)

    # --- ConvLinear (+BN) and the output scale folded into the branch-final
    #     3x3 weights (exact: relu=False between them) ------------------------
    wl2d = wl.reshape(3 * two_ip, out_planes) * scale
    wl_0, wl_1, wl_2 = wl2d[:two_ip], wl2d[two_ip:2 * two_ip], wl2d[2 * two_ip:]
    w01f = jnp.einsum("hwio,op->hwip", w01, wl_0).astype(bf)
    w12f = jnp.einsum("hwio,op->hwip", w12, wl_1).astype(bf)
    w23f = jnp.einsum("hwio,op->hwip", w23, wl_2).astype(bf)
    bt = b01 @ wl_0 + b12 @ wl_1 + b23 @ wl_2 + bl * scale + bs   # (1, out)
    wsm = ws.reshape(Cin, out_planes).astype(bf)

    args = (xb, we0, b00, we1, b10, we2, b20,
            w11.astype(bf), b11, w21.astype(bf), b21, w22.astype(bf), b22,
            w01f, w12f, w23f, wsm, bt)

    def const_spec(a):
        nd = a.ndim
        return pl.BlockSpec(a.shape, lambda n, _nd=nd: (0,) * _nd)

    in_specs = [pl.BlockSpec((1, H, W, Cin), lambda n: (n, 0, 0, 0))]
    in_specs += [const_spec(a) for a in args[1:]]

    scratch = [
        pltpu.VMEM((1, H + 2 * d0, W + 2 * d0, two_ip), jnp.float32),   # p0
        pltpu.VMEM((1, H + 2, W + 2, ip), jnp.float32),                 # p1a
        pltpu.VMEM((1, H + 2 * d1, W + 2 * d1, two_ip), jnp.float32),   # p1b
        pltpu.VMEM((1, H + 2, W + 2, ip), jnp.float32),                 # p2a
        pltpu.VMEM((1, H + 2, W + 2, c21), jnp.float32),                # p2b
        pltpu.VMEM((1, H + 2 * d2, W + 2 * d2, two_ip), jnp.float32),   # p2c
    ]

    flops = 2 * N * H * W * (
        Cin * (two_ip + 2 * ip)
        + 9 * (ip * two_ip + ip * c21 + c21 * two_ip)
        + 9 * 3 * two_ip * out_planes
        + Cin * out_planes)
    bytes_acc = _bytes(*args) + N * H * W * out_planes * 4

    out = pl.pallas_call(
        functools.partial(_rfb_fused_kernel, H=H, W=W, ip=ip, c21=c21,
                          d0=d0, d1=d1, d2=d2, out_planes=out_planes),
        out_shape=jax.ShapeDtypeStruct((N, H, W, out_planes), jnp.float32),
        grid_spec=pltpu.PrefetchScalarGridSpec(
            num_scalar_prefetch=0,
            grid=(N,),
            in_specs=in_specs,
            out_specs=pl.BlockSpec((1, H, W, out_planes), lambda n: (n, 0, 0, 0)),
            scratch_shapes=scratch),
        compiler_params=pltpu.CompilerParams(dimension_semantics=("parallel",)),
        cost_estimate=pl.CostEstimate(flops=flops, transcendentals=0,
                                      bytes_accessed=bytes_acc),
    )(*args)
    return out


# ----------------------------------------------------------------------------
# Pure-JAX reference (mirrors the bf16-input / f32-accumulate precision policy)
# ----------------------------------------------------------------------------
def ref_forward(x, p, stride=1, scale=0.1, visual=1):
    def conv(x, params, stride, padding, dilation, relu):
        w, gamma, beta, mean, var = params
        y = jax.lax.conv_general_dilated(
            x.astype(jnp.bfloat16), w.astype(jnp.bfloat16),
            window_strides=(stride, stride),
            padding=((padding, padding), (padding, padding)),
            rhs_dilation=(dilation, dilation),
            dimension_numbers=("NHWC", "HWIO", "NHWC"),
            preferred_element_type=jnp.float32)
        s = gamma / jnp.sqrt(var + 1e-5)
        y = y * s + (beta - mean * s)
        return jnp.maximum(y, 0.0) if relu else y

    x0 = conv(x, p["b0_0"], stride, 0, 1, True)
    x0 = conv(x0, p["b0_1"], 1, visual, visual, False)
    x1 = conv(x, p["b1_0"], 1, 0, 1, True)
    x1 = conv(x1, p["b1_1"], stride, 1, 1, True)
    x1 = conv(x1, p["b1_2"], 1, visual + 1, visual + 1, False)
    x2 = conv(x, p["b2_0"], 1, 0, 1, True)
    x2 = conv(x2, p["b2_1"], 1, 1, 1, True)
    x2 = conv(x2, p["b2_2"], stride, 1, 1, True)
    x2 = conv(x2, p["b2_3"], 1, 2 * visual + 1, 2 * visual + 1, False)
    cat = jnp.concatenate([x0, x1, x2], axis=-1)
    out = conv(cat, p["linear"], 1, 0, 1, False)
    short = conv(x, p["short"], stride, 0, 1, False)
    return jnp.maximum(out * scale + short, 0.0)


# ----------------------------------------------------------------------------
# Deterministic parameter init (HWIO weights, BN params)
# ----------------------------------------------------------------------------
def _make_conv_params(key, kh, kw, cin, cout):
    k1, k2, k3, k4, k5 = jax.random.split(key, 5)
    w = jax.random.normal(k1, (kh, kw, cin, cout), jnp.float32) / math.sqrt(kh * kw * cin)
    gamma = jax.random.uniform(k2, (cout,), jnp.float32, 0.5, 1.5)
    beta = 0.1 * jax.random.normal(k3, (cout,), jnp.float32)
    mean = 0.1 * jax.random.normal(k4, (cout,), jnp.float32)
    var = jax.random.uniform(k5, (cout,), jnp.float32, 0.5, 1.5)
    return (w, gamma, beta, mean, var)


def make_basic_rfb_params(key, in_planes, out_planes, visual=1):
    ip = in_planes // 8
    keys = jax.random.split(key, 11)
    return {
        "b0_0": _make_conv_params(keys[0], 1, 1, in_planes, 2 * ip),
        "b0_1": _make_conv_params(keys[1], 3, 3, 2 * ip, 2 * ip),
        "b1_0": _make_conv_params(keys[2], 1, 1, in_planes, ip),
        "b1_1": _make_conv_params(keys[3], 3, 3, ip, 2 * ip),
        "b1_2": _make_conv_params(keys[4], 3, 3, 2 * ip, 2 * ip),
        "b2_0": _make_conv_params(keys[5], 1, 1, in_planes, ip),
        "b2_1": _make_conv_params(keys[6], 3, 3, ip, ip // 2 * 3),
        "b2_2": _make_conv_params(keys[7], 3, 3, ip // 2 * 3, 2 * ip),
        "b2_3": _make_conv_params(keys[8], 3, 3, 2 * ip, 2 * ip),
        "linear": _make_conv_params(keys[9], 1, 1, 6 * ip, out_planes),
        "short": _make_conv_params(keys[10], 1, 1, in_planes, out_planes),
    }


# ----------------------------------------------------------------------------
if __name__ == "__main__":
    key = jax.random.PRNGKey(0)
    kx, kp = jax.random.split(key)

    N, H, W = 2, 16, 16
    in_planes, out_planes = 32, 32
    stride, scale, visual = 1, 0.1, 1

    # PyTorch input would be NCHW (2, 32, 16, 16); NHWC is used internally.
    x = jax.random.normal(kx, (N, H, W, in_planes), jnp.float32)
    params = make_basic_rfb_params(kp, in_planes, out_planes, visual)

    fwd = jax.jit(functools.partial(basic_rfb_forward,
                                    stride=stride, scale=scale, visual=visual))
    out = jax.block_until_ready(fwd(x, params))
    ref = jax.block_until_ready(ref_forward(x, params, stride, scale, visual))

    assert out.shape == (N, H, W, out_planes), out.shape
    err = float(jnp.max(jnp.abs(out - ref)))
    assert jnp.allclose(out, ref, atol=1e-1, rtol=5e-2), err

    print("KERNEL_OK")
</pallas_src>

<mosaic_0001>
module attributes {stable_mosaic.version = 11 : i64} {
  func.func @_rfb_fused_kernel(%arg0: i32, %arg1: memref<1x16x16x32xbf16, #tpu.memory_space<vmem>>, %arg2: memref<32x8xbf16, #tpu.memory_space<vmem>>, %arg3: memref<1x8xf32, #tpu.memory_space<vmem>>, %arg4: memref<32x4xbf16, #tpu.memory_space<vmem>>, %arg5: memref<1x4xf32, #tpu.memory_space<vmem>>, %arg6: memref<32x4xbf16, #tpu.memory_space<vmem>>, %arg7: memref<1x4xf32, #tpu.memory_space<vmem>>, %arg8: memref<3x3x4x8xbf16, #tpu.memory_space<vmem>>, %arg9: memref<1x8xf32, #tpu.memory_space<vmem>>, %arg10: memref<3x3x4x6xbf16, #tpu.memory_space<vmem>>, %arg11: memref<1x6xf32, #tpu.memory_space<vmem>>, %arg12: memref<3x3x6x8xbf16, #tpu.memory_space<vmem>>, %arg13: memref<1x8xf32, #tpu.memory_space<vmem>>, %arg14: memref<3x3x8x32xbf16, #tpu.memory_space<vmem>>, %arg15: memref<3x3x8x32xbf16, #tpu.memory_space<vmem>>, %arg16: memref<3x3x8x32xbf16, #tpu.memory_space<vmem>>, %arg17: memref<32x32xbf16, #tpu.memory_space<vmem>>, %arg18: memref<1x32xf32, #tpu.memory_space<vmem>>, %arg19: memref<1x16x16x32xf32, #tpu.memory_space<vmem>>, %arg20: memref<1x18x18x8xf32, #tpu.memory_space<vmem>>, %arg21: memref<1x18x18x4xf32, #tpu.memory_space<vmem>>, %arg22: memref<1x20x20x8xf32, #tpu.memory_space<vmem>>, %arg23: memref<1x18x18x4xf32, #tpu.memory_space<vmem>>, %arg24: memref<1x18x18x6xf32, #tpu.memory_space<vmem>>, %arg25: memref<1x22x22x8xf32, #tpu.memory_space<vmem>>) attributes {dimension_semantics = [#tpu.dimension_semantics<parallel>], iteration_bounds = array<i64: 2>, scalar_prefetch = 0 : i64, scratch_operands = 6 : i64, tpu.core_type = #tpu.core_type<tc>, window_params = [{transform_indices = @transform_0, window_bounds = array<i64: 1, 16, 16, 32>}, {pipeline_mode = #tpu.pipeline_mode<synchronous>, transform_indices = @transform_1, window_bounds = array<i64: 32, 8>}, {pipeline_mode = #tpu.pipeline_mode<synchronous>, transform_indices = @transform_2, window_bounds = array<i64: 1, 8>}, {pipeline_mode = #tpu.pipeline_mode<synchronous>, transform_indices = @transform_3, window_bounds = array<i64: 32, 4>}, {pipeline_mode = #tpu.pipeline_mode<synchronous>, transform_indices = @transform_4, window_bounds = array<i64: 1, 4>}, {pipeline_mode = #tpu.pipeline_mode<synchronous>, transform_indices = @transform_5, window_bounds = array<i64: 32, 4>}, {pipeline_mode = #tpu.pipeline_mode<synchronous>, transform_indices = @transform_6, window_bounds = array<i64: 1, 4>}, {pipeline_mode = #tpu.pipeline_mode<synchronous>, transform_indices = @transform_7, window_bounds = array<i64: 3, 3, 4, 8>}, {pipeline_mode = #tpu.pipeline_mode<synchronous>, transform_indices = @transform_8, window_bounds = array<i64: 1, 8>}, {pipeline_mode = #tpu.pipeline_mode<synchronous>, transform_indices = @transform_9, window_bounds = array<i64: 3, 3, 4, 6>}, {pipeline_mode = #tpu.pipeline_mode<synchronous>, transform_indices = @transform_10, window_bounds = array<i64: 1, 6>}, {pipeline_mode = #tpu.pipeline_mode<synchronous>, transform_indices = @transform_11, window_bounds = array<i64: 3, 3, 6, 8>}, {pipeline_mode = #tpu.pipeline_mode<synchronous>, transform_indices = @transform_12, window_bounds = array<i64: 1, 8>}, {pipeline_mode = #tpu.pipeline_mode<synchronous>, transform_indices = @transform_13, window_bounds = array<i64: 3, 3, 8, 32>}, {pipeline_mode = #tpu.pipeline_mode<synchronous>, transform_indices = @transform_14, window_bounds = array<i64: 3, 3, 8, 32>}, {pipeline_mode = #tpu.pipeline_mode<synchronous>, transform_indices = @transform_15, window_bounds = array<i64: 3, 3, 8, 32>}, {pipeline_mode = #tpu.pipeline_mode<synchronous>, transform_indices = @transform_16, window_bounds = array<i64: 32, 32>}, {pipeline_mode = #tpu.pipeline_mode<synchronous>, transform_indices = @transform_17, window_bounds = array<i64: 1, 32>}, {transform_indices = @transform_18, window_bounds = array<i64: 1, 16, 16, 32>}]} {
    %cst = arith.constant 0.000000e+00 : f32
    %0 = vector.broadcast %cst : f32 to vector<1x18x18x8xf32>
    %c0 = arith.constant 0 : index
    %c0_0 = arith.constant 0 : index
    %c0_1 = arith.constant 0 : index
    %c0_2 = arith.constant 0 : index
    %1 = vector.load %arg20[%c0, %c0_0, %c0_1, %c0_2] : memref<1x18x18x8xf32, #tpu.memory_space<vmem>>, vector<1x18x18x8xf32>
    tpu.vector_store %arg20[%c0, %c0_0, %c0_1, %c0_2], %0 {strides = array<i32>} : memref<1x18x18x8xf32, #tpu.memory_space<vmem>>, vector<1x18x18x8xf32>,
    %cst_3 = arith.constant 0.000000e+00 : f32
    %2 = vector.broadcast %cst_3 : f32 to vector<1x18x18x4xf32>
    %c0_4 = arith.constant 0 : index
    %c0_5 = arith.constant 0 : index
    %c0_6 = arith.constant 0 : index
    %c0_7 = arith.constant 0 : index
    %3 = vector.load %arg21[%c0_4, %c0_5, %c0_6, %c0_7] : memref<1x18x18x4xf32, #tpu.memory_space<vmem>>, vector<1x18x18x4xf32>
    tpu.vector_store %arg21[%c0_4, %c0_5, %c0_6, %c0_7], %2 {strides = array<i32>} : memref<1x18x18x4xf32, #tpu.memory_space<vmem>>, vector<1x18x18x4xf32>,
    %cst_8 = arith.constant 0.000000e+00 : f32
    %4 = vector.broadcast %cst_8 : f32 to vector<1x20x20x8xf32>
    %c0_9 = arith.constant 0 : index
    %c0_10 = arith.constant 0 : index
    %c0_11 = arith.constant 0 : index
    %c0_12 = arith.constant 0 : index
    %5 = vector.load %arg22[%c0_9, %c0_10, %c0_11, %c0_12] : memref<1x20x20x8xf32, #tpu.memory_space<vmem>>, vector<1x20x20x8xf32>
    tpu.vector_store %arg22[%c0_9, %c0_10, %c0_11, %c0_12], %4 {strides = array<i32>} : memref<1x20x20x8xf32, #tpu.memory_space<vmem>>, vector<1x20x20x8xf32>,
    %cst_13 = arith.constant 0.000000e+00 : f32
    %6 = vector.broadcast %cst_13 : f32 to vector<1x18x18x4xf32>
    %c0_14 = arith.constant 0 : index
    %c0_15 = arith.constant 0 : index
    %c0_16 = arith.constant 0 : index
    %c0_17 = arith.constant 0 : index
    %7 = vector.load %arg23[%c0_14, %c0_15, %c0_16, %c0_17] : memref<1x18x18x4xf32, #tpu.memory_space<vmem>>, vector<1x18x18x4xf32>
    tpu.vector_store %arg23[%c0_14, %c0_15, %c0_16, %c0_17], %6 {strides = array<i32>} : memref<1x18x18x4xf32, #tpu.memory_space<vmem>>, vector<1x18x18x4xf32>,
    %cst_18 = arith.constant 0.000000e+00 : f32
    %8 = vector.broadcast %cst_18 : f32 to vector<1x18x18x6xf32>
    %c0_19 = arith.constant 0 : index
    %c0_20 = arith.constant 0 : index
    %c0_21 = arith.constant 0 : index
    %c0_22 = arith.constant 0 : index
    %9 = vector.load %arg24[%c0_19, %c0_20, %c0_21, %c0_22] : memref<1x18x18x6xf32, #tpu.memory_space<vmem>>, vector<1x18x18x6xf32>
    tpu.vector_store %arg24[%c0_19, %c0_20, %c0_21, %c0_22], %8 {strides = array<i32>} : memref<1x18x18x6xf32, #tpu.memory_space<vmem>>, vector<1x18x18x6xf32>,
    %cst_23 = arith.constant 0.000000e+00 : f32
    %10 = vector.broadcast %cst_23 : f32 to vector<1x22x22x8xf32>
    %c0_24 = arith.constant 0 : index
    %c0_25 = arith.constant 0 : index
    %c0_26 = arith.constant 0 : index
    %c0_27 = arith.constant 0 : index
    %11 = vector.load %arg25[%c0_24, %c0_25, %c0_26, %c0_27] : memref<1x22x22x8xf32, #tpu.memory_space<vmem>>, vector<1x22x22x8xf32>
    tpu.vector_store %arg25[%c0_24, %c0_25, %c0_26, %c0_27], %10 {strides = array<i32>} : memref<1x22x22x8xf32, #tpu.memory_space<vmem>>, vector<1x22x22x8xf32>,
    %c0_28 = arith.constant 0 : index
    %c0_29 = arith.constant 0 : index
    %c0_30 = arith.constant 0 : index
    %c0_31 = arith.constant 0 : index
    %12 = vector.load %arg1[%c0_28, %c0_29, %c0_30, %c0_31] : memref<1x16x16x32xbf16, #tpu.memory_space<vmem>>, vector<1x16x16x32xbf16>
    %13 = vector.shape_cast %12 : vector<1x16x16x32xbf16> to vector<16x16x32xbf16>
    %14 = vector.shape_cast %13 : vector<16x16x32xbf16> to vector<256x32xbf16>
    %c0_32 = arith.constant 0 : index
    %c0_33 = arith.constant 0 : index
    %15 = vector.load %arg2[%c0_32, %c0_33] : memref<32x8xbf16, #tpu.memory_space<vmem>>, vector<32x8xbf16>
    %cst_34 = arith.constant dense<0.000000e+00> : vector<256x8xf32>
    %16 = tpu.matmul %14, %15, %cst_34 {dimension_numbers = #tpu.dot_dimension_numbers<[1], [0], [0], [1], [0, 0, 1, 1], [], []>} : vector<256x32xbf16>, vector<32x8xbf16>, vector<256x8xf32> -> vector<256x8xf32>
    %c0_35 = arith.constant 0 : index
    %c0_36 = arith.constant 0 : index
    %17 = vector.load %arg3[%c0_35, %c0_36] : memref<1x8xf32, #tpu.memory_space<vmem>>, vector<1x8xf32>
    %18 = vector.broadcast %17 : vector<1x8xf32> to vector<256x8xf32>
    %19 = arith.addf %16, %18 : vector<256x8xf32>
    %cst_37 = arith.constant 0.000000e+00 : f32
    %20 = vector.broadcast %cst_37 : f32 to vector<256x8xf32>
    %21 = arith.maximumf %19, %20 : vector<256x8xf32>
    %22 = vector.shape_cast %21 : vector<256x8xf32> to vector<16x16x8xf32>
    %c0_38 = arith.constant 0 : index
    %c1 = arith.constant 1 : index
    %c1_39 = arith.constant 1 : index
    %c0_40 = arith.constant 0 : index
    %23 = vector.load %arg20[%c0_38, %c1, %c1_39, %c0_40] : memref<1x18x18x8xf32, #tpu.memory_space<vmem>>, vector<1x16x16x8xf32>
    %24 = vector.shape_cast %23 : vector<1x16x16x8xf32> to vector<16x16x8xf32>
    %25 = vector.shape_cast %22 : vector<16x16x8xf32> to vector<1x16x16x8xf32>
    tpu.vector_store %arg20[%c0_38, %c1, %c1_39, %c0_40], %25 {strides = array<i32>} : memref<1x18x18x8xf32, #tpu.memory_space<vmem>>, vector<1x16x16x8xf32>,
    %c0_41 = arith.constant 0 : index
    %c0_42 = arith.constant 0 : index
    %26 = vector.load %arg4[%c0_41, %c0_42] : memref<32x4xbf16, #tpu.memory_space<vmem>>, vector<32x4xbf16>
    %cst_43 = arith.constant dense<0.000000e+00> : vector<256x4xf32>
    %27 = tpu.matmul %14, %26, %cst_43 {dimension_numbers = #tpu.dot_dimension_numbers<[1], [0], [0], [1], [0, 0, 1, 1], [], []>} : vector<256x32xbf16>, vector<32x4xbf16>, vector<256x4xf32> -> vector<256x4xf32>
    %c0_44 = arith.constant 0 : index
    %c0_45 = arith.constant 0 : index
    %28 = vector.load %arg5[%c0_44, %c0_45] : memref<1x4xf32, #tpu.memory_space<vmem>>, vector<1x4xf32>
    %29 = vector.broadcast %28 : vector<1x4xf32> to vector<256x4xf32>
    %30 = arith.addf %27, %29 : vector<256x4xf32>
    %cst_46 = arith.constant 0.000000e+00 : f32
    %31 = vector.broadcast %cst_46 : f32 to vector<256x4xf32>
    %32 = arith.maximumf %30, %31 : vector<256x4xf32>
    %33 = vector.shape_cast %32 : vector<256x4xf32> to vector<16x16x4xf32>
    %c0_47 = arith.constant 0 : index
    %c1_48 = arith.constant 1 : index
    %c1_49 = arith.constant 1 : index
    %c0_50 = arith.constant 0 : index
    %34 = vector.load %arg21[%c0_47, %c1_48, %c1_49, %c0_50] : memref<1x18x18x4xf32, #tpu.memory_space<vmem>>, vector<1x16x16x4xf32>
    %35 = vector.shape_cast %34 : vector<1x16x16x4xf32> to vector<16x16x4xf32>
    %36 = vector.shape_cast %33 : vector<16x16x4xf32> to vector<1x16x16x4xf32>
    tpu.vector_store %arg21[%c0_47, %c1_48, %c1_49, %c0_50], %36 {strides = array<i32>} : memref<1x18x18x4xf32, #tpu.memory_space<vmem>>, vector<1x16x16x4xf32>,
    %c0_51 = arith.constant 0 : index
    %c0_52 = arith.constant 0 : index
    %37 = vector.load %arg6[%c0_51, %c0_52] : memref<32x4xbf16, #tpu.memory_space<vmem>>, vector<32x4xbf16>
    %cst_53 = arith.constant dense<0.000000e+00> : vector<256x4xf32>
    %38 = tpu.matmul %14, %37, %cst_53 {dimension_numbers = #tpu.dot_dimension_numbers<[1], [0], [0], [1], [0, 0, 1, 1], [], []>} : vector<256x32xbf16>, vector<32x4xbf16>, vector<256x4xf32> -> vector<256x4xf32>
    %c0_54 = arith.constant 0 : index
    %c0_55 = arith.constant 0 : index
    %39 = vector.load %arg7[%c0_54, %c0_55] : memref<1x4xf32, #tpu.memory_space<vmem>>, vector<1x4xf32>
    %40 = vector.broadcast %39 : vector<1x4xf32> to vector<256x4xf32>
    %41 = arith.addf %38, %40 : vector<256x4xf32>
    %cst_56 = arith.constant 0.000000e+00 : f32
    %42 = vector.broadcast %cst_56 : f32 to vector<256x4xf32>
    %43 = arith.maximumf %41, %42 : vector<256x4xf32>
    %44 = vector.shape_cast %43 : vector<256x4xf32> to vector<16x16x4xf32>
    %c0_57 = arith.constant 0 : index
    %c1_58 = arith.constant 1 : index
    %c1_59 = arith.constant 1 : index
    %c0_60 = arith.constant 0 : index
    %45 = vector.load %arg23[%c0_57, %c1_58, %c1_59, %c0_60] : memref<1x18x18x4xf32, #tpu.memory_space<vmem>>, vector<1x16x16x4xf32>
    %46 = vector.shape_cast %45 : vector<1x16x16x4xf32> to vector<16x16x4xf32>
    %47 = vector.shape_cast %44 : vector<16x16x4xf32> to vector<1x16x16x4xf32>
    tpu.vector_store %arg23[%c0_57, %c1_58, %c1_59, %c0_60], %47 {strides = array<i32>} : memref<1x18x18x4xf32, #tpu.memory_space<vmem>>, vector<1x16x16x4xf32>,
    %cst_61 = arith.constant 0.000000e+00 : f32
    %48 = vector.broadcast %cst_61 : f32 to vector<256x8xf32>
    %c0_62 = arith.constant 0 : index
    %c0_63 = arith.constant 0 : index
    %c0_64 = arith.constant 0 : index
    %c0_65 = arith.constant 0 : index
    %49 = vector.load %arg21[%c0_62, %c0_63, %c0_64, %c0_65] : memref<1x18x18x4xf32, #tpu.memory_space<vmem>>, vector<1x16x16x4xf32>
    %50 = vector.shape_cast %49 : vector<1x16x16x4xf32> to vector<16x16x4xf32>
    %51 = arith.truncf %50 : vector<16x16x4xf32> to vector<16x16x4xbf16>
    %52 = vector.shape_cast %51 : vector<16x16x4xbf16> to vector<256x4xbf16>
    %c0_66 = arith.constant 0 : index
    %c0_67 = arith.constant 0 : index
    %c0_68 = arith.constant 0 : index
    %c0_69 = arith.constant 0 : index
    %53 = vector.load %arg8[%c0_66, %c0_67, %c0_68, %c0_69] : memref<3x3x4x8xbf16, #tpu.memory_space<vmem>>, vector<1x1x4x8xbf16>
    %54 = vector.shape_cast %53 : vector<1x1x4x8xbf16> to vector<4x8xbf16>
    %cst_70 = arith.constant dense<0.000000e+00> : vector<256x8xf32>
    %55 = tpu.matmul %52, %54, %cst_70 {dimension_numbers = #tpu.dot_dimension_numbers<[1], [0], [0], [1], [0, 0, 1, 1], [], []>} : vector<256x4xbf16>, vector<4x8xbf16>, vector<256x8xf32> -> vector<256x8xf32>
    %56 = arith.addf %48, %55 : vector<256x8xf32>
    %c0_71 = arith.constant 0 : index
    %c0_72 = arith.constant 0 : index
    %c1_73 = arith.constant 1 : index
    %c0_74 = arith.constant 0 : index
    %57 = vector.load %arg21[%c0_71, %c0_72, %c1_73, %c0_74] : memref<1x18x18x4xf32, #tpu.memory_space<vmem>>, vector<1x16x16x4xf32>
    %58 = vector.shape_cast %57 : vector<1x16x16x4xf32> to vector<16x16x4xf32>
    %59 = arith.truncf %58 : vector<16x16x4xf32> to vector<16x16x4xbf16>
    %60 = vector.shape_cast %59 : vector<16x16x4xbf16> to vector<256x4xbf16>
    %c0_75 = arith.constant 0 : index
    %c1_76 = arith.constant 1 : index
    %c0_77 = arith.constant 0 : index
    %c0_78 = arith.constant 0 : index
    %61 = vector.load %arg8[%c0_75, %c1_76, %c0_77, %c0_78] : memref<3x3x4x8xbf16, #tpu.memory_space<vmem>>, vector<1x1x4x8xbf16>
    %62 = vector.shape_cast %61 : vector<1x1x4x8xbf16> to vector<4x8xbf16>
    %cst_79 = arith.constant dense<0.000000e+00> : vector<256x8xf32>
    %63 = tpu.matmul %60, %62, %cst_79 {dimension_numbers = #tpu.dot_dimension_numbers<[1], [0], [0], [1], [0, 0, 1, 1], [], []>} : vector<256x4xbf16>, vector<4x8xbf16>, vector<256x8xf32> -> vector<256x8xf32>
    %64 = arith.addf %56, %63 : vector<256x8xf32>
    %c0_80 = arith.constant 0 : index
    %c0_81 = arith.constant 0 : index
    %c2 = arith.constant 2 : index
    %c0_82 = arith.constant 0 : index
    %65 = vector.load %arg21[%c0_80, %c0_81, %c2, %c0_82] : memref<1x18x18x4xf32, #tpu.memory_space<vmem>>, vector<1x16x16x4xf32>
    %66 = vector.shape_cast %65 : vector<1x16x16x4xf32> to vector<16x16x4xf32>
    %67 = arith.truncf %66 : vector<16x16x4xf32> to vector<16x16x4xbf16>
    %68 = vector.shape_cast %67 : vector<16x16x4xbf16> to vector<256x4xbf16>
    %c0_83 = arith.constant 0 : index
    %c2_84 = arith.constant 2 : index
    %c0_85 = arith.constant 0 : index
    %c0_86 = arith.constant 0 : index
    %69 = vector.load %arg8[%c0_83, %c2_84, %c0_85, %c0_86] : memref<3x3x4x8xbf16, #tpu.memory_space<vmem>>, vector<1x1x4x8xbf16>
    %70 = vector.shape_cast %69 : vector<1x1x4x8xbf16> to vector<4x8xbf16>
    %cst_87 = arith.constant dense<0.000000e+00> : vector<256x8xf32>
    %71 = tpu.matmul %68, %70, %cst_87 {dimension_numbers = #tpu.dot_dimension_numbers<[1], [0], [0], [1], [0, 0, 1, 1], [], []>} : vector<256x4xbf16>, vector<4x8xbf16>, vector<256x8xf32> -> vector<256x8xf32>
    %72 = arith.addf %64, %71 : vector<256x8xf32>
    %c0_88 = arith.constant 0 : index
    %c1_89 = arith.constant 1 : index
    %c0_90 = arith.constant 0 : index
    %c0_91 = arith.constant 0 : index
    %73 = vector.load %arg21[%c0_88, %c1_89, %c0_90, %c0_91] : memref<1x18x18x4xf32, #tpu.memory_space<vmem>>, vector<1x16x16x4xf32>
    %74 = vector.shape_cast %73 : vector<1x16x16x4xf32> to vector<16x16x4xf32>
    %75 = arith.truncf %74 : vector<16x16x4xf32> to vector<16x16x4xbf16>
    %76 = vector.shape_cast %75 : vector<16x16x4xbf16> to vector<256x4xbf16>
    %c1_92 = arith.constant 1 : index
    %c0_93 = arith.constant 0 : index
    %c0_94 = arith.constant 0 : index
    %c0_95 = arith.constant 0 : index
    %77 = vector.load %arg8[%c1_92, %c0_93, %c0_94, %c0_95] : memref<3x3x4x8xbf16, #tpu.memory_space<vmem>>, vector<1x1x4x8xbf16>
    %78 = vector.shape_cast %77 : vector<1x1x4x8xbf16> to vector<4x8xbf16>
    %cst_96 = arith.constant dense<0.000000e+00> : vector<256x8xf32>
    %79 = tpu.matmul %76, %78, %cst_96 {dimension_numbers = #tpu.dot_dimension_numbers<[1], [0], [0], [1], [0, 0, 1, 1], [], []>} : vector<256x4xbf16>, vector<4x8xbf16>, vector<256x8xf32> -> vector<256x8xf32>
    %80 = arith.addf %72, %79 : vector<256x8xf32>
    %c0_97 = arith.constant 0 : index
    %c1_98 = arith.constant 1 : index
    %c1_99 = arith.constant 1 : index
    %c0_100 = arith.constant 0 : index
    %81 = vector.load %arg21[%c0_97, %c1_98, %c1_99, %c0_100] : memref<1x18x18x4xf32, #tpu.memory_space<vmem>>, vector<1x16x16x4xf32>
    %82 = vector.shape_cast %81 : vector<1x16x16x4xf32> to vector<16x16x4xf32>
    %83 = arith.truncf %82 : vector<16x16x4xf32> to vector<16x16x4xbf16>
    %84 = vector.shape_cast %83 : vector<16x16x4xbf16> to vector<256x4xbf16>
    %c1_101 = arith.constant 1 : index
    %c1_102 = arith.constant 1 : index
    %c0_103 = arith.constant 0 : index
    %c0_104 = arith.constant 0 : index
    %85 = vector.load %arg8[%c1_101, %c1_102, %c0_103, %c0_104] : memref<3x3x4x8xbf16, #tpu.memory_space<vmem>>, vector<1x1x4x8xbf16>
    %86 = vector.shape_cast %85 : vector<1x1x4x8xbf16> to vector<4x8xbf16>
    %cst_105 = arith.constant dense<0.000000e+00> : vector<256x8xf32>
    %87 = tpu.matmul %84, %86, %cst_105 {dimension_numbers = #tpu.dot_dimension_numbers<[1], [0], [0], [1], [0, 0, 1, 1], [], []>} : vector<256x4xbf16>, vector<4x8xbf16>, vector<256x8xf32> -> vector<256x8xf32>
    %88 = arith.addf %80, %87 : vector<256x8xf32>
    %c0_106 = arith.constant 0 : index
    %c1_107 = arith.constant 1 : index
    %c2_108 = arith.constant 2 : index
    %c0_109 = arith.constant 0 : index
    %89 = vector.load %arg21[%c0_106, %c1_107, %c2_108, %c0_109] : memref<1x18x18x4xf32, #tpu.memory_space<vmem>>, vector<1x16x16x4xf32>
    %90 = vector.shape_cast %89 : vector<1x16x16x4xf32> to vector<16x16x4xf32>
    %91 = arith.truncf %90 : vector<16x16x4xf32> to vector<16x16x4xbf16>
    %92 = vector.shape_cast %91 : vector<16x16x4xbf16> to vector<256x4xbf16>
    %c1_110 = arith.constant 1 : index
    %c2_111 = arith.constant 2 : index
    %c0_112 = arith.constant 0 : index
    %c0_113 = arith.constant 0 : index
    %93 = vector.load %arg8[%c1_110, %c2_111, %c0_112, %c0_113] : memref<3x3x4x8xbf16, #tpu.memory_space<vmem>>, vector<1x1x4x8xbf16>
    %94 = vector.shape_cast %93 : vector<1x1x4x8xbf16> to vector<4x8xbf16>
    %cst_114 = arith.constant dense<0.000000e+00> : vector<256x8xf32>
    %95 = tpu.matmul %92, %94, %cst_114 {dimension_numbers = #tpu.dot_dimension_numbers<[1], [0], [0], [1], [0, 0, 1, 1], [], []>} : vector<256x4xbf16>, vector<4x8xbf16>, vector<256x8xf32> -> vector<256x8xf32>
    %96 = arith.addf %88, %95 : vector<256x8xf32>
    %c0_115 = arith.constant 0 : index
    %c2_116 = arith.constant 2 : index
    %c0_117 = arith.constant 0 : index
    %c0_118 = arith.constant 0 : index
    %97 = vector.load %arg21[%c0_115, %c2_116, %c0_117, %c0_118] : memref<1x18x18x4xf32, #tpu.memory_space<vmem>>, vector<1x16x16x4xf32>
    %98 = vector.shape_cast %97 : vector<1x16x16x4xf32> to vector<16x16x4xf32>
    %99 = arith.truncf %98 : vector<16x16x4xf32> to vector<16x16x4xbf16>
    %100 = vector.shape_cast %99 : vector<16x16x4xbf16> to vector<256x4xbf16>
    %c2_119 = arith.constant 2 : index
    %c0_120 = arith.constant 0 : index
    %c0_121 = arith.constant 0 : index
    %c0_122 = arith.constant 0 : index
    %101 = vector.load %arg8[%c2_119, %c0_120, %c0_121, %c0_122] : memref<3x3x4x8xbf16, #tpu.memory_space<vmem>>, vector<1x1x4x8xbf16>
    %102 = vector.shape_cast %101 : vector<1x1x4x8xbf16> to vector<4x8xbf16>
    %cst_123 = arith.constant dense<0.000000e+00> : vector<256x8xf32>
    %103 = tpu.matmul %100, %102, %cst_123 {dimension_numbers = #tpu.dot_dimension_numbers<[1], [0], [0], [1], [0, 0, 1, 1], [], []>} : vector<256x4xbf16>, vector<4x8xbf16>, vector<256x8xf32> -> vector<256x8xf32>
    %104 = arith.addf %96, %103 : vector<256x8xf32>
    %c0_124 = arith.constant 0 : index
    %c2_125 = arith.constant 2 : index
    %c1_126 = arith.constant 1 : index
    %c0_127 = arith.constant 0 : index
    %105 = vector.load %arg21[%c0_124, %c2_125, %c1_126, %c0_127] : memref<1x18x18x4xf32, #tpu.memory_space<vmem>>, vector<1x16x16x4xf32>
    %106 = vector.shape_cast %105 : vector<1x16x16x4xf32> to vector<16x16x4xf32>
    %107 = arith.truncf %106 : vector<16x16x4xf32> to vector<16x16x4xbf16>
    %108 = vector.shape_cast %107 : vector<16x16x4xbf16> to vector<256x4xbf16>
    %c2_128 = arith.constant 2 : index
    %c1_129 = arith.constant 1 : index
    %c0_130 = arith.constant 0 : index
    %c0_131 = arith.constant 0 : index
    %109 = vector.load %arg8[%c2_128, %c1_129, %c0_130, %c0_131] : memref<3x3x4x8xbf16, #tpu.memory_space<vmem>>, vector<1x1x4x8xbf16>
    %110 = vector.shape_cast %109 : vector<1x1x4x8xbf16> to vector<4x8xbf16>
    %cst_132 = arith.constant dense<0.000000e+00> : vector<256x8xf32>
    %111 = tpu.matmul %108, %110, %cst_132 {dimension_numbers = #tpu.dot_dimension_numbers<[1], [0], [0], [1], [0, 0, 1, 1], [], []>} : vector<256x4xbf16>, vector<4x8xbf16>, vector<256x8xf32> -> vector<256x8xf32>
    %112 = arith.addf %104, %111 : vector<256x8xf32>
    %c0_133 = arith.constant 0 : index
    %c2_134 = arith.constant 2 : index
    %c2_135 = arith.constant 2 : index
    %c0_136 = arith.constant 0 : index
    %113 = vector.load %arg21[%c0_133, %c2_134, %c2_135, %c0_136] : memref<1x18x18x4xf32, #tpu.memory_space<vmem>>, vector<1x16x16x4xf32>
    %114 = vector.shape_cast %113 : vector<1x16x16x4xf32> to vector<16x16x4xf32>
    %115 = arith.truncf %114 : vector<16x16x4xf32> to vector<16x16x4xbf16>
    %116 = vector.shape_cast %115 : vector<16x16x4xbf16> to vector<256x4xbf16>
    %c2_137 = arith.constant 2 : index
    %c2_138 = arith.constant 2 : index
    %c0_139 = arith.constant 0 : index
    %c0_140 = arith.constant 0 : index
    %117 = vector.load %arg8[%c2_137, %c2_138, %c0_139, %c0_140] : memref<3x3x4x8xbf16, #tpu.memory_space<vmem>>, vector<1x1x4x8xbf16>
    %118 = vector.shape_cast %117 : vector<1x1x4x8xbf16> to vector<4x8xbf16>
    %cst_141 = arith.constant dense<0.000000e+00> : vector<256x8xf32>
    %119 = tpu.matmul %116, %118, %cst_141 {dimension_numbers = #tpu.dot_dimension_numbers<[1], [0], [0], [1], [0, 0, 1, 1], [], []>} : vector<256x4xbf16>, vector<4x8xbf16>, vector<256x8xf32> -> vector<256x8xf32>
    %120 = arith.addf %112, %119 : vector<256x8xf32>
    %c0_142 = arith.constant 0 : index
    %c0_143 = arith.constant 0 : index
    %121 = vector.load %arg9[%c0_142, %c0_143] : memref<1x8xf32, #tpu.memory_space<vmem>>, vector<1x8xf32>
    %122 = vector.broadcast %121 : vector<1x8xf32> to vector<256x8xf32>
    %123 = arith.addf %120, %122 : vector<256x8xf32>
    %cst_144 = arith.constant 0.000000e+00 : f32
    %124 = vector.broadcast %cst_144 : f32 to vector<256x8xf32>
    %125 = arith.maximumf %123, %124 : vector<256x8xf32>
    %126 = vector.shape_cast %125 : vector<256x8xf32> to vector<16x16x8xf32>
    %c0_145 = arith.constant 0 : index
    %c2_146 = arith.constant 2 : index
    %c2_147 = arith.constant 2 : index
    %c0_148 = arith.constant 0 : index
    %127 = vector.load %arg22[%c0_145, %c2_146, %c2_147, %c0_148] : memref<1x20x20x8xf32, #tpu.memory_space<vmem>>, vector<1x16x16x8xf32>
    %128 = vector.shape_cast %127 : vector<1x16x16x8xf32> to vector<16x16x8xf32>
    %129 = vector.shape_cast %126 : vector<16x16x8xf32> to vector<1x16x16x8xf32>
    tpu.vector_store %arg22[%c0_145, %c2_146, %c2_147, %c0_148], %129 {strides = array<i32>} : memref<1x20x20x8xf32, #tpu.memory_space<vmem>>, vector<1x16x16x8xf32>,
    %cst_149 = arith.constant 0.000000e+00 : f32
    %130 = vector.broadcast %cst_149 : f32 to vector<256x6xf32>
    %c0_150 = arith.constant 0 : index
    %c0_151 = arith.constant 0 : index
    %c0_152 = arith.constant 0 : index
    %c0_153 = arith.constant 0 : index
    %131 = vector.load %arg23[%c0_150, %c0_151, %c0_152, %c0_153] : memref<1x18x18x4xf32, #tpu.memory_space<vmem>>, vector<1x16x16x4xf32>
    %132 = vector.shape_cast %131 : vector<1x16x16x4xf32> to vector<16x16x4xf32>
    %133 = arith.truncf %132 : vector<16x16x4xf32> to vector<16x16x4xbf16>
    %134 = vector.shape_cast %133 : vector<16x16x4xbf16> to vector<256x4xbf16>
    %c0_154 = arith.constant 0 : index
    %c0_155 = arith.constant 0 : index
    %c0_156 = arith.constant 0 : index
    %c0_157 = arith.constant 0 : index
    %135 = vector.load %arg10[%c0_154, %c0_155, %c0_156, %c0_157] : memref<3x3x4x6xbf16, #tpu.memory_space<vmem>>, vector<1x1x4x6xbf16>
    %136 = vector.shape_cast %135 : vector<1x1x4x6xbf16> to vector<4x6xbf16>
    %cst_158 = arith.constant dense<0.000000e+00> : vector<256x6xf32>
    %137 = tpu.matmul %134, %136, %cst_158 {dimension_numbers = #tpu.dot_dimension_numbers<[1], [0], [0], [1], [0, 0, 1, 1], [], []>} : vector<256x4xbf16>, vector<4x6xbf16>, vector<256x6xf32> -> vector<256x6xf32>
    %138 = arith.addf %130, %137 : vector<256x6xf32>
    %c0_159 = arith.constant 0 : index
    %c0_160 = arith.constant 0 : index
    %c1_161 = arith.constant 1 : index
    %c0_162 = arith.constant 0 : index
    %139 = vector.load %arg23[%c0_159, %c0_160, %c1_161, %c0_162] : memref<1x18x18x4xf32, #tpu.memory_space<vmem>>, vector<1x16x16x4xf32>
    %140 = vector.shape_cast %139 : vector<1x16x16x4xf32> to vector<16x16x4xf32>
    %141 = arith.truncf %140 : vector<16x16x4xf32> to vector<16x16x4xbf16>
    %142 = vector.shape_cast %141 : vector<16x16x4xbf16> to vector<256x4xbf16>
    %c0_163 = arith.constant 0 : index
    %c1_164 = arith.constant 1 : index
    %c0_165 = arith.constant 0 : index
    %c0_166 = arith.constant 0 : index
    %143 = vector.load %arg10[%c0_163, %c1_164, %c0_165, %c0_166] : memref<3x3x4x6xbf16, #tpu.memory_space<vmem>>, vector<1x1x4x6xbf16>
    %144 = vector.shape_cast %143 : vector<1x1x4x6xbf16> to vector<4x6xbf16>
    %cst_167 = arith.constant dense<0.000000e+00> : vector<256x6xf32>
    %145 = tpu.matmul %142, %144, %cst_167 {dimension_numbers = #tpu.dot_dimension_numbers<[1], [0], [0], [1], [0, 0, 1, 1], [], []>} : vector<256x4xbf16>, vector<4x6xbf16>, vector<256x6xf32> -> vector<256x6xf32>
    %146 = arith.addf %138, %145 : vector<256x6xf32>
    %c0_168 = arith.constant 0 : index
    %c0_169 = arith.constant 0 : index
    %c2_170 = arith.constant 2 : index
    %c0_171 = arith.constant 0 : index
    %147 = vector.load %arg23[%c0_168, %c0_169, %c2_170, %c0_171] : memref<1x18x18x4xf32, #tpu.memory_space<vmem>>, vector<1x16x16x4xf32>
    %148 = vector.shape_cast %147 : vector<1x16x16x4xf32> to vector<16x16x4xf32>
    %149 = arith.truncf %148 : vector<16x16x4xf32> to vector<16x16x4xbf16>
    %150 = vector.shape_cast %149 : vector<16x16x4xbf16> to vector<256x4xbf16>
    %c0_172 = arith.constant 0 : index
    %c2_173 = arith.constant 2 : index
    %c0_174 = arith.constant 0 : index
    %c0_175 = arith.constant 0 : index
    %151 = vector.load %arg10[%c0_172, %c2_173, %c0_174, %c0_175] : memref<3x3x4x6xbf16, #tpu.memory_space<vmem>>, vector<1x1x4x6xbf16>
    %152 = vector.shape_cast %151 : vector<1x1x4x6xbf16> to vector<4x6xbf16>
    %cst_176 = arith.constant dense<0.000000e+00> : vector<256x6xf32>
    %153 = tpu.matmul %150, %152, %cst_176 {dimension_numbers = #tpu.dot_dimension_numbers<[1], [0], [0], [1], [0, 0, 1, 1], [], []>} : vector<256x4xbf16>, vector<4x6xbf16>, vector<256x6xf32> -> vector<256x6xf32>
    %154 = arith.addf %146, %153 : vector<256x6xf32>
    %c0_177 = arith.constant 0 : index
    %c1_178 = arith.constant 1 : index
    %c0_179 = arith.constant 0 : index
    %c0_180 = arith.constant 0 : index
    %155 = vector.load %arg23[%c0_177, %c1_178, %c0_179, %c0_180] : memref<1x18x18x4xf32, #tpu.memory_space<vmem>>, vector<1x16x16x4xf32>
    %156 = vector.shape_cast %155 : vector<1x16x16x4xf32> to vector<16x16x4xf32>
    %157 = arith.truncf %156 : vector<16x16x4xf32> to vector<16x16x4xbf16>
    %158 = vector.shape_cast %157 : vector<16x16x4xbf16> to vector<256x4xbf16>
    %c1_181 = arith.constant 1 : index
    %c0_182 = arith.constant 0 : index
    %c0_183 = arith.constant 0 : index
    %c0_184 = arith.constant 0 : index
    %159 = vector.load %arg10[%c1_181, %c0_182, %c0_183, %c0_184] : memref<3x3x4x6xbf16, #tpu.memory_space<vmem>>, vector<1x1x4x6xbf16>
    %160 = vector.shape_cast %159 : vector<1x1x4x6xbf16> to vector<4x6xbf16>
    %cst_185 = arith.constant dense<0.000000e+00> : vector<256x6xf32>
    %161 = tpu.matmul %158, %160, %cst_185 {dimension_numbers = #tpu.dot_dimension_numbers<[1], [0], [0], [1], [0, 0, 1, 1], [], []>} : vector<256x4xbf16>, vector<4x6xbf16>, vector<256x6xf32> -> vector<256x6xf32>
    %162 = arith.addf %154, %161 : vector<256x6xf32>
    %c0_186 = arith.constant 0 : index
    %c1_187 = arith.constant 1 : index
    %c1_188 = arith.constant 1 : index
    %c0_189 = arith.constant 0 : index
    %163 = vector.load %arg23[%c0_186, %c1_187, %c1_188, %c0_189] : memref<1x18x18x4xf32, #tpu.memory_space<vmem>>, vector<1x16x16x4xf32>
    %164 = vector.shape_cast %163 : vector<1x16x16x4xf32> to vector<16x16x4xf32>
    %165 = arith.truncf %164 : vector<16x16x4xf32> to vector<16x16x4xbf16>
    %166 = vector.shape_cast %165 : vector<16x16x4xbf16> to vector<256x4xbf16>
    %c1_190 = arith.constant 1 : index
    %c1_191 = arith.constant 1 : index
    %c0_192 = arith.constant 0 : index
    %c0_193 = arith.constant 0 : index
    %167 = vector.load %arg10[%c1_190, %c1_191, %c0_192, %c0_193] : memref<3x3x4x6xbf16, #tpu.memory_space<vmem>>, vector<1x1x4x6xbf16>
    %168 = vector.shape_cast %167 : vector<1x1x4x6xbf16> to vector<4x6xbf16>
    %cst_194 = arith.constant dense<0.000000e+00> : vector<256x6xf32>
    %169 = tpu.matmul %166, %168, %cst_194 {dimension_numbers = #tpu.dot_dimension_numbers<[1], [0], [0], [1], [0, 0, 1, 1], [], []>} : vector<256x4xbf16>, vector<4x6xbf16>, vector<256x6xf32> -> vector<256x6xf32>
    %170 = arith.addf %162, %169 : vector<256x6xf32>
    %c0_195 = arith.constant 0 : index
    %c1_196 = arith.constant 1 : index
    %c2_197 = arith.constant 2 : index
    %c0_198 = arith.constant 0 : index
    %171 = vector.load %arg23[%c0_195, %c1_196, %c2_197, %c0_198] : memref<1x18x18x4xf32, #tpu.memory_space<vmem>>, vector<1x16x16x4xf32>
    %172 = vector.shape_cast %171 : vector<1x16x16x4xf32> to vector<16x16x4xf32>
    %173 = arith.truncf %172 : vector<16x16x4xf32> to vector<16x16x4xbf16>
    %174 = vector.shape_cast %173 : vector<16x16x4xbf16> to vector<256x4xbf16>
    %c1_199 = arith.constant 1 : index
    %c2_200 = arith.constant 2 : index
    %c0_201 = arith.constant 0 : index
    %c0_202 = arith.constant 0 : index
    %175 = vector.load %arg10[%c1_199, %c2_200, %c0_201, %c0_202] : memref<3x3x4x6xbf16, #tpu.memory_space<vmem>>, vector<1x1x4x6xbf16>
    %176 = vector.shape_cast %175 : vector<1x1x4x6xbf16> to vector<4x6xbf16>
    %cst_203 = arith.constant dense<0.000000e+00> : vector<256x6xf32>
    %177 = tpu.matmul %174, %176, %cst_203 {dimension_numbers = #tpu.dot_dimension_numbers<[1], [0], [0], [1], [0, 0, 1, 1], [], []>} : vector<256x4xbf16>, vector<4x6xbf16>, vector<256x6xf32> -> vector<256x6xf32>
    %178 = arith.addf %170, %177 : vector<256x6xf32>
    %c0_204 = arith.constant 0 : index
    %c2_205 = arith.constant 2 : index
    %c0_206 = arith.constant 0 : index
    %c0_207 = arith.constant 0 : index
    %179 = vector.load %arg23[%c0_204, %c2_205, %c0_206, %c0_207] : memref<1x18x18x4xf32, #tpu.memory_space<vmem>>, vector<1x16x16x4xf32>
    %180 = vector.shape_cast %179 : vector<1x16x16x4xf32> to vector<16x16x4xf32>
    %181 = arith.truncf %180 : vector<16x16x4xf32> to vector<16x16x4xbf16>
    %182 = vector.shape_cast %181 : vector<16x16x4xbf16> to vector<256x4xbf16>
    %c2_208 = arith.constant 2 : index
    %c0_209 = arith.constant 0 : index
    %c0_210 = arith.constant 0 : index
    %c0_211 = arith.constant 0 : index
    %183 = vector.load %arg10[%c2_208, %c0_209, %c0_210, %c0_211] : memref<3x3x4x6xbf16, #tpu.memory_space<vmem>>, vector<1x1x4x6xbf16>
    %184 = vector.shape_cast %183 : vector<1x1x4x6xbf16> to vector<4x6xbf16>
    %cst_212 = arith.constant dense<0.000000e+00> : vector<256x6xf32>
    %185 = tpu.matmul %182, %184, %cst_212 {dimension_numbers = #tpu.dot_dimension_numbers<[1], [0], [0], [1], [0, 0, 1, 1], [], []>} : vector<256x4xbf16>, vector<4x6xbf16>, vector<256x6xf32> -> vector<256x6xf32>
    %186 = arith.addf %178, %185 : vector<256x6xf32>
    %c0_213 = arith.constant 0 : index
    %c2_214 = arith.constant 2 : index
    %c1_215 = arith.constant 1 : index
    %c0_216 = arith.constant 0 : index
    %187 = vector.load %arg23[%c0_213, %c2_214, %c1_215, %c0_216] : memref<1x18x18x4xf32, #tpu.memory_space<vmem>>, vector<1x16x16x4xf32>
    %188 = vector.shape_cast %187 : vector<1x16x16x4xf32> to vector<16x16x4xf32>
    %189 = arith.truncf %188 : vector<16x16x4xf32> to vector<16x16x4xbf16>
    %190 = vector.shape_cast %189 : vector<16x16x4xbf16> to vector<256x4xbf16>
    %c2_217 = arith.constant 2 : index
    %c1_218 = arith.constant 1 : index
    %c0_219 = arith.constant 0 : index
    %c0_220 = arith.constant 0 : index
    %191 = vector.load %arg10[%c2_217, %c1_218, %c0_219, %c0_220] : memref<3x3x4x6xbf16, #tpu.memory_space<vmem>>, vector<1x1x4x6xbf16>
    %192 = vector.shape_cast %191 : vector<1x1x4x6xbf16> to vector<4x6xbf16>
    %cst_221 = arith.constant dense<0.000000e+00> : vector<256x6xf32>
    %193 = tpu.matmul %190, %192, %cst_221 {dimension_numbers = #tpu.dot_dimension_numbers<[1], [0], [0], [1], [0, 0, 1, 1], [], []>} : vector<256x4xbf16>, vector<4x6xbf16>, vector<256x6xf32> -> vector<256x6xf32>
    %194 = arith.addf %186, %193 : vector<256x6xf32>
    %c0_222 = arith.constant 0 : index
    %c2_223 = arith.constant 2 : index
    %c2_224 = arith.constant 2 : index
    %c0_225 = arith.constant 0 : index
    %195 = vector.load %arg23[%c0_222, %c2_223, %c2_224, %c0_225] : memref<1x18x18x4xf32, #tpu.memory_space<vmem>>, vector<1x16x16x4xf32>
    %196 = vector.shape_cast %195 : vector<1x16x16x4xf32> to vector<16x16x4xf32>
    %197 = arith.truncf %196 : vector<16x16x4xf32> to vector<16x16x4xbf16>
    %198 = vector.shape_cast %197 : vector<16x16x4xbf16> to vector<256x4xbf16>
    %c2_226 = arith.constant 2 : index
    %c2_227 = arith.constant 2 : index
    %c0_228 = arith.constant 0 : index
    %c0_229 = arith.constant 0 : index
    %199 = vector.load %arg10[%c2_226, %c2_227, %c0_228, %c0_229] : memref<3x3x4x6xbf16, #tpu.memory_space<vmem>>, vector<1x1x4x6xbf16>
    %200 = vector.shape_cast %199 : vector<1x1x4x6xbf16> to vector<4x6xbf16>
    %cst_230 = arith.constant dense<0.000000e+00> : vector<256x6xf32>
    %201 = tpu.matmul %198, %200, %cst_230 {dimension_numbers = #tpu.dot_dimension_numbers<[1], [0], [0], [1], [0, 0, 1, 1], [], []>} : vector<256x4xbf16>, vector<4x6xbf16>, vector<256x6xf32> -> vector<256x6xf32>
    %202 = arith.addf %194, %201 : vector<256x6xf32>
    %c0_231 = arith.constant 0 : index
    %c0_232 = arith.constant 0 : index
    %203 = vector.load %arg11[%c0_231, %c0_232] : memref<1x6xf32, #tpu.memory_space<vmem>>, vector<1x6xf32>
    %204 = vector.broadcast %203 : vector<1x6xf32> to vector<256x6xf32>
    %205 = arith.addf %202, %204 : vector<256x6xf32>
    %cst_233 = arith.constant 0.000000e+00 : f32
    %206 = vector.broadcast %cst_233 : f32 to vector<256x6xf32>
    %207 = arith.maximumf %205, %206 : vector<256x6xf32>
    %208 = vector.shape_cast %207 : vector<256x6xf32> to vector<16x16x6xf32>
    %c0_234 = arith.constant 0 : index
    %c1_235 = arith.constant 1 : index
    %c1_236 = arith.constant 1 : index
    %c0_237 = arith.constant 0 : index
    %209 = vector.load %arg24[%c0_234, %c1_235, %c1_236, %c0_237] : memref<1x18x18x6xf32, #tpu.memory_space<vmem>>, vector<1x16x16x6xf32>
    %210 = vector.shape_cast %209 : vector<1x16x16x6xf32> to vector<16x16x6xf32>
    %211 = vector.shape_cast %208 : vector<16x16x6xf32> to vector<1x16x16x6xf32>
    tpu.vector_store %arg24[%c0_234, %c1_235, %c1_236, %c0_237], %211 {strides = array<i32>} : memref<1x18x18x6xf32, #tpu.memory_space<vmem>>, vector<1x16x16x6xf32>,
    %cst_238 = arith.constant 0.000000e+00 : f32
    %212 = vector.broadcast %cst_238 : f32 to vector<256x8xf32>
    %c0_239 = arith.constant 0 : index
    %c0_240 = arith.constant 0 : index
    %c0_241 = arith.constant 0 : index
    %c0_242 = arith.constant 0 : index
    %213 = vector.load %arg24[%c0_239, %c0_240, %c0_241, %c0_242] : memref<1x18x18x6xf32, #tpu.memory_space<vmem>>, vector<1x16x16x6xf32>
    %214 = vector.shape_cast %213 : vector<1x16x16x6xf32> to vector<16x16x6xf32>
    %215 = arith.truncf %214 : vector<16x16x6xf32> to vector<16x16x6xbf16>
    %216 = vector.shape_cast %215 : vector<16x16x6xbf16> to vector<256x6xbf16>
    %c0_243 = arith.constant 0 : index
    %c0_244 = arith.constant 0 : index
    %c0_245 = arith.constant 0 : index
    %c0_246 = arith.constant 0 : index
    %217 = vector.load %arg12[%c0_243, %c0_244, %c0_245, %c0_246] : memref<3x3x6x8xbf16, #tpu.memory_space<vmem>>, vector<1x1x6x8xbf16>
    %218 = vector.shape_cast %217 : vector<1x1x6x8xbf16> to vector<6x8xbf16>
    %cst_247 = arith.constant dense<0.000000e+00> : vector<256x8xf32>
    %219 = tpu.matmul %216, %218, %cst_247 {dimension_numbers = #tpu.dot_dimension_numbers<[1], [0], [0], [1], [0, 0, 1, 1], [], []>} : vector<256x6xbf16>, vector<6x8xbf16>, vector<256x8xf32> -> vector<256x8xf32>
    %220 = arith.addf %212, %219 : vector<256x8xf32>
    %c0_248 = arith.constant 0 : index
    %c0_249 = arith.constant 0 : index
    %c1_250 = arith.constant 1 : index
    %c0_251 = arith.constant 0 : index
    %221 = vector.load %arg24[%c0_248, %c0_249, %c1_250, %c0_251] : memref<1x18x18x6xf32, #tpu.memory_space<vmem>>, vector<1x16x16x6xf32>
    %222 = vector.shape_cast %221 : vector<1x16x16x6xf32> to vector<16x16x6xf32>
    %223 = arith.truncf %222 : vector<16x16x6xf32> to vector<16x16x6xbf16>
    %224 = vector.shape_cast %223 : vector<16x16x6xbf16> to vector<256x6xbf16>
    %c0_252 = arith.constant 0 : index
    %c1_253 = arith.constant 1 : index
    %c0_254 = arith.constant 0 : index
    %c0_255 = arith.constant 0 : index
    %225 = vector.load %arg12[%c0_252, %c1_253, %c0_254, %c0_255] : memref<3x3x6x8xbf16, #tpu.memory_space<vmem>>, vector<1x1x6x8xbf16>
    %226 = vector.shape_cast %225 : vector<1x1x6x8xbf16> to vector<6x8xbf16>
    %cst_256 = arith.constant dense<0.000000e+00> : vector<256x8xf32>
    %227 = tpu.matmul %224, %226, %cst_256 {dimension_numbers = #tpu.dot_dimension_numbers<[1], [0], [0], [1], [0, 0, 1, 1], [], []>} : vector<256x6xbf16>, vector<6x8xbf16>, vector<256x8xf32> -> vector<256x8xf32>
    %228 = arith.addf %220, %227 : vector<256x8xf32>
    %c0_257 = arith.constant 0 : index
    %c0_258 = arith.constant 0 : index
    %c2_259 = arith.constant 2 : index
    %c0_260 = arith.constant 0 : index
    %229 = vector.load %arg24[%c0_257, %c0_258, %c2_259, %c0_260] : memref<1x18x18x6xf32, #tpu.memory_space<vmem>>, vector<1x16x16x6xf32>
    %230 = vector.shape_cast %229 : vector<1x16x16x6xf32> to vector<16x16x6xf32>
    %231 = arith.truncf %230 : vector<16x16x6xf32> to vector<16x16x6xbf16>
    %232 = vector.shape_cast %231 : vector<16x16x6xbf16> to vector<256x6xbf16>
    %c0_261 = arith.constant 0 : index
    %c2_262 = arith.constant 2 : index
    %c0_263 = arith.constant 0 : index
    %c0_264 = arith.constant 0 : index
    %233 = vector.load %arg12[%c0_261, %c2_262, %c0_263, %c0_264] : memref<3x3x6x8xbf16, #tpu.memory_space<vmem>>, vector<1x1x6x8xbf16>
    %234 = vector.shape_cast %233 : vector<1x1x6x8xbf16> to vector<6x8xbf16>
    %cst_265 = arith.constant dense<0.000000e+00> : vector<256x8xf32>
    %235 = tpu.matmul %232, %234, %cst_265 {dimension_numbers = #tpu.dot_dimension_numbers<[1], [0], [0], [1], [0, 0, 1, 1], [], []>} : vector<256x6xbf16>, vector<6x8xbf16>, vector<256x8xf32> -> vector<256x8xf32>
    %236 = arith.addf %228, %235 : vector<256x8xf32>
    %c0_266 = arith.constant 0 : index
    %c1_267 = arith.constant 1 : index
    %c0_268 = arith.constant 0 : index
    %c0_269 = arith.constant 0 : index
    %237 = vector.load %arg24[%c0_266, %c1_267, %c0_268, %c0_269] : memref<1x18x18x6xf32, #tpu.memory_space<vmem>>, vector<1x16x16x6xf32>
    %238 = vector.shape_cast %237 : vector<1x16x16x6xf32> to vector<16x16x6xf32>
    %239 = arith.truncf %238 : vector<16x16x6xf32> to vector<16x16x6xbf16>
    %240 = vector.shape_cast %239 : vector<16x16x6xbf16> to vector<256x6xbf16>
    %c1_270 = arith.constant 1 : index
    %c0_271 = arith.constant 0 : index
    %c0_272 = arith.constant 0 : index
    %c0_273 = arith.constant 0 : index
    %241 = vector.load %arg12[%c1_270, %c0_271, %c0_272, %c0_273] : memref<3x3x6x8xbf16, #tpu.memory_space<vmem>>, vector<1x1x6x8xbf16>
    %242 = vector.shape_cast %241 : vector<1x1x6x8xbf16> to vector<6x8xbf16>
    %cst_274 = arith.constant dense<0.000000e+00> : vector<256x8xf32>
    %243 = tpu.matmul %240, %242, %cst_274 {dimension_numbers = #tpu.dot_dimension_numbers<[1], [0], [0], [1], [0, 0, 1, 1], [], []>} : vector<256x6xbf16>, vector<6x8xbf16>, vector<256x8xf32> -> vector<256x8xf32>
    %244 = arith.addf %236, %243 : vector<256x8xf32>
    %c0_275 = arith.constant 0 : index
    %c1_276 = arith.constant 1 : index
    %c1_277 = arith.constant 1 : index
    %c0_278 = arith.constant 0 : index
    %245 = vector.load %arg24[%c0_275, %c1_276, %c1_277, %c0_278] : memref<1x18x18x6xf32, #tpu.memory_space<vmem>>, vector<1x16x16x6xf32>
    %246 = vector.shape_cast %245 : vector<1x16x16x6xf32> to vector<16x16x6xf32>
    %247 = arith.truncf %246 : vector<16x16x6xf32> to vector<16x16x6xbf16>
    %248 = vector.shape_cast %247 : vector<16x16x6xbf16> to vector<256x6xbf16>
    %c1_279 = arith.constant 1 : index
    %c1_280 = arith.constant 1 : index
    %c0_281 = arith.constant 0 : index
    %c0_282 = arith.constant 0 : index
    %249 = vector.load %arg12[%c1_279, %c1_280, %c0_281, %c0_282] : memref<3x3x6x8xbf16, #tpu.memory_space<vmem>>, vector<1x1x6x8xbf16>
    %250 = vector.shape_cast %249 : vector<1x1x6x8xbf16> to vector<6x8xbf16>
    %cst_283 = arith.constant dense<0.000000e+00> : vector<256x8xf32>
    %251 = tpu.matmul %248, %250, %cst_283 {dimension_numbers = #tpu.dot_dimension_numbers<[1], [0], [0], [1], [0, 0, 1, 1], [], []>} : vector<256x6xbf16>, vector<6x8xbf16>, vector<256x8xf32> -> vector<256x8xf32>
    %252 = arith.addf %244, %251 : vector<256x8xf32>
    %c0_284 = arith.constant 0 : index
    %c1_285 = arith.constant 1 : index
    %c2_286 = arith.constant 2 : index
    %c0_287 = arith.constant 0 : index
    %253 = vector.load %arg24[%c0_284, %c1_285, %c2_286, %c0_287] : memref<1x18x18x6xf32, #tpu.memory_space<vmem>>, vector<1x16x16x6xf32>
    %254 = vector.shape_cast %253 : vector<1x16x16x6xf32> to vector<16x16x6xf32>
    %255 = arith.truncf %254 : vector<16x16x6xf32> to vector<16x16x6xbf16>
    %256 = vector.shape_cast %255 : vector<16x16x6xbf16> to vector<256x6xbf16>
    %c1_288 = arith.constant 1 : index
    %c2_289 = arith.constant 2 : index
    %c0_290 = arith.constant 0 : index
    %c0_291 = arith.constant 0 : index
    %257 = vector.load %arg12[%c1_288, %c2_289, %c0_290, %c0_291] : memref<3x3x6x8xbf16, #tpu.memory_space<vmem>>, vector<1x1x6x8xbf16>
    %258 = vector.shape_cast %257 : vector<1x1x6x8xbf16> to vector<6x8xbf16>
    %cst_292 = arith.constant dense<0.000000e+00> : vector<256x8xf32>
    %259 = tpu.matmul %256, %258, %cst_292 {dimension_numbers = #tpu.dot_dimension_numbers<[1], [0], [0], [1], [0, 0, 1, 1], [], []>} : vector<256x6xbf16>, vector<6x8xbf16>, vector<256x8xf32> -> vector<256x8xf32>
    %260 = arith.addf %252, %259 : vector<256x8xf32>
    %c0_293 = arith.constant 0 : index
    %c2_294 = arith.constant 2 : index
    %c0_295 = arith.constant 0 : index
    %c0_296 = arith.constant 0 : index
    %261 = vector.load %arg24[%c0_293, %c2_294, %c0_295, %c0_296] : memref<1x18x18x6xf32, #tpu.memory_space<vmem>>, vector<1x16x16x6xf32>
    %262 = vector.shape_cast %261 : vector<1x16x16x6xf32> to vector<16x16x6xf32>
    %263 = arith.truncf %262 : vector<16x16x6xf32> to vector<16x16x6xbf16>
    %264 = vector.shape_cast %263 : vector<16x16x6xbf16> to vector<256x6xbf16>
    %c2_297 = arith.constant 2 : index
    %c0_298 = arith.constant 0 : index
    %c0_299 = arith.constant 0 : index
    %c0_300 = arith.constant 0 : index
    %265 = vector.load %arg12[%c2_297, %c0_298, %c0_299, %c0_300] : memref<3x3x6x8xbf16, #tpu.memory_space<vmem>>, vector<1x1x6x8xbf16>
    %266 = vector.shape_cast %265 : vector<1x1x6x8xbf16> to vector<6x8xbf16>
    %cst_301 = arith.constant dense<0.000000e+00> : vector<256x8xf32>
    %267 = tpu.matmul %264, %266, %cst_301 {dimension_numbers = #tpu.dot_dimension_numbers<[1], [0], [0], [1], [0, 0, 1, 1], [], []>} : vector<256x6xbf16>, vector<6x8xbf16>, vector<256x8xf32> -> vector<256x8xf32>
    %268 = arith.addf %260, %267 : vector<256x8xf32>
    %c0_302 = arith.constant 0 : index
    %c2_303 = arith.constant 2 : index
    %c1_304 = arith.constant 1 : index
    %c0_305 = arith.constant 0 : index
    %269 = vector.load %arg24[%c0_302, %c2_303, %c1_304, %c0_305] : memref<1x18x18x6xf32, #tpu.memory_space<vmem>>, vector<1x16x16x6xf32>
    %270 = vector.shape_cast %269 : vector<1x16x16x6xf32> to vector<16x16x6xf32>
    %271 = arith.truncf %270 : vector<16x16x6xf32> to vector<16x16x6xbf16>
    %272 = vector.shape_cast %271 : vector<16x16x6xbf16> to vector<256x6xbf16>
    %c2_306 = arith.constant 2 : index
    %c1_307 = arith.constant 1 : index
    %c0_308 = arith.constant 0 : index
    %c0_309 = arith.constant 0 : index
    %273 = vector.load %arg12[%c2_306, %c1_307, %c0_308, %c0_309] : memref<3x3x6x8xbf16, #tpu.memory_space<vmem>>, vector<1x1x6x8xbf16>
    %274 = vector.shape_cast %273 : vector<1x1x6x8xbf16> to vector<6x8xbf16>
    %cst_310 = arith.constant dense<0.000000e+00> : vector<256x8xf32>
    %275 = tpu.matmul %272, %274, %cst_310 {dimension_numbers = #tpu.dot_dimension_numbers<[1], [0], [0], [1], [0, 0, 1, 1], [], []>} : vector<256x6xbf16>, vector<6x8xbf16>, vector<256x8xf32> -> vector<256x8xf32>
    %276 = arith.addf %268, %275 : vector<256x8xf32>
    %c0_311 = arith.constant 0 : index
    %c2_312 = arith.constant 2 : index
    %c2_313 = arith.constant 2 : index
    %c0_314 = arith.constant 0 : index
    %277 = vector.load %arg24[%c0_311, %c2_312, %c2_313, %c0_314] : memref<1x18x18x6xf32, #tpu.memory_space<vmem>>, vector<1x16x16x6xf32>
    %278 = vector.shape_cast %277 : vector<1x16x16x6xf32> to vector<16x16x6xf32>
    %279 = arith.truncf %278 : vector<16x16x6xf32> to vector<16x16x6xbf16>
    %280 = vector.shape_cast %279 : vector<16x16x6xbf16> to vector<256x6xbf16>
    %c2_315 = arith.constant 2 : index
    %c2_316 = arith.constant 2 : index
    %c0_317 = arith.constant 0 : index
    %c0_318 = arith.constant 0 : index
    %281 = vector.load %arg12[%c2_315, %c2_316, %c0_317, %c0_318] : memref<3x3x6x8xbf16, #tpu.memory_space<vmem>>, vector<1x1x6x8xbf16>
    %282 = vector.shape_cast %281 : vector<1x1x6x8xbf16> to vector<6x8xbf16>
    %cst_319 = arith.constant dense<0.000000e+00> : vector<256x8xf32>
    %283 = tpu.matmul %280, %282, %cst_319 {dimension_numbers = #tpu.dot_dimension_numbers<[1], [0], [0], [1], [0, 0, 1, 1], [], []>} : vector<256x6xbf16>, vector<6x8xbf16>, vector<256x8xf32> -> vector<256x8xf32>
    %284 = arith.addf %276, %283 : vector<256x8xf32>
    %c0_320 = arith.constant 0 : index
    %c0_321 = arith.constant 0 : index
    %285 = vector.load %arg13[%c0_320, %c0_321] : memref<1x8xf32, #tpu.memory_space<vmem>>, vector<1x8xf32>
    %286 = vector.broadcast %285 : vector<1x8xf32> to vector<256x8xf32>
    %287 = arith.addf %284, %286 : vector<256x8xf32>
    %cst_322 = arith.constant 0.000000e+00 : f32
    %288 = vector.broadcast %cst_322 : f32 to vector<256x8xf32>
    %289 = arith.maximumf %287, %288 : vector<256x8xf32>
    %290 = vector.shape_cast %289 : vector<256x8xf32> to vector<16x16x8xf32>
    %c0_323 = arith.constant 0 : index
    %c3 = arith.constant 3 : index
    %c3_324 = arith.constant 3 : index
    %c0_325 = arith.constant 0 : index
    %291 = vector.load %arg25[%c0_323, %c3, %c3_324, %c0_325] : memref<1x22x22x8xf32, #tpu.memory_space<vmem>>, vector<1x16x16x8xf32>
    %292 = vector.shape_cast %291 : vector<1x16x16x8xf32> to vector<16x16x8xf32>
    %293 = vector.shape_cast %290 : vector<16x16x8xf32> to vector<1x16x16x8xf32>
    tpu.vector_store %arg25[%c0_323, %c3, %c3_324, %c0_325], %293 {strides = array<i32>} : memref<1x22x22x8xf32, #tpu.memory_space<vmem>>, vector<1x16x16x8xf32>,
    %cst_326 = arith.constant 0.000000e+00 : f32
    %294 = vector.broadcast %cst_326 : f32 to vector<256x32xf32>
    %c0_327 = arith.constant 0 : index
    %c0_328 = arith.constant 0 : index
    %c0_329 = arith.constant 0 : index
    %c0_330 = arith.constant 0 : index
    %295 = vector.load %arg20[%c0_327, %c0_328, %c0_329, %c0_330] : memref<1x18x18x8xf32, #tpu.memory_space<vmem>>, vector<1x16x16x8xf32>
    %296 = vector.shape_cast %295 : vector<1x16x16x8xf32> to vector<16x16x8xf32>
    %297 = arith.truncf %296 : vector<16x16x8xf32> to vector<16x16x8xbf16>
    %298 = vector.shape_cast %297 : vector<16x16x8xbf16> to vector<256x8xbf16>
    %c0_331 = arith.constant 0 : index
    %c0_332 = arith.constant 0 : index
    %c0_333 = arith.constant 0 : index
    %c0_334 = arith.constant 0 : index
    %299 = vector.load %arg14[%c0_331, %c0_332, %c0_333, %c0_334] : memref<3x3x8x32xbf16, #tpu.memory_space<vmem>>, vector<1x1x8x32xbf16>
    %300 = vector.shape_cast %299 : vector<1x1x8x32xbf16> to vector<8x32xbf16>
    %cst_335 = arith.constant dense<0.000000e+00> : vector<256x32xf32>
    %301 = tpu.matmul %298, %300, %cst_335 {dimension_numbers = #tpu.dot_dimension_numbers<[1], [0], [0], [1], [0, 0, 1, 1], [], []>} : vector<256x8xbf16>, vector<8x32xbf16>, vector<256x32xf32> -> vector<256x32xf32>
    %302 = arith.addf %294, %301 : vector<256x32xf32>
    %c0_336 = arith.constant 0 : index
    %c0_337 = arith.constant 0 : index
    %c1_338 = arith.constant 1 : index
    %c0_339 = arith.constant 0 : index
    %303 = vector.load %arg20[%c0_336, %c0_337, %c1_338, %c0_339] : memref<1x18x18x8xf32, #tpu.memory_space<vmem>>, vector<1x16x16x8xf32>
    %304 = vector.shape_cast %303 : vector<1x16x16x8xf32> to vector<16x16x8xf32>
    %305 = arith.truncf %304 : vector<16x16x8xf32> to vector<16x16x8xbf16>
    %306 = vector.shape_cast %305 : vector<16x16x8xbf16> to vector<256x8xbf16>
    %c0_340 = arith.constant 0 : index
    %c1_341 = arith.constant 1 : index
    %c0_342 = arith.constant 0 : index
    %c0_343 = arith.constant 0 : index
    %307 = vector.load %arg14[%c0_340, %c1_341, %c0_342, %c0_343] : memref<3x3x8x32xbf16, #tpu.memory_space<vmem>>, vector<1x1x8x32xbf16>
    %308 = vector.shape_cast %307 : vector<1x1x8x32xbf16> to vector<8x32xbf16>
    %cst_344 = arith.constant dense<0.000000e+00> : vector<256x32xf32>
    %309 = tpu.matmul %306, %308, %cst_344 {dimension_numbers = #tpu.dot_dimension_numbers<[1], [0], [0], [1], [0, 0, 1, 1], [], []>} : vector<256x8xbf16>, vector<8x32xbf16>, vector<256x32xf32> -> vector<256x32xf32>
    %310 = arith.addf %302, %309 : vector<256x32xf32>
    %c0_345 = arith.constant 0 : index
    %c0_346 = arith.constant 0 : index
    %c2_347 = arith.constant 2 : index
    %c0_348 = arith.constant 0 : index
    %311 = vector.load %arg20[%c0_345, %c0_346, %c2_347, %c0_348] : memref<1x18x18x8xf32, #tpu.memory_space<vmem>>, vector<1x16x16x8xf32>
    %312 = vector.shape_cast %311 : vector<1x16x16x8xf32> to vector<16x16x8xf32>
    %313 = arith.truncf %312 : vector<16x16x8xf32> to vector<16x16x8xbf16>
    %314 = vector.shape_cast %313 : vector<16x16x8xbf16> to vector<256x8xbf16>
    %c0_349 = arith.constant 0 : index
    %c2_350 = arith.constant 2 : index
    %c0_351 = arith.constant 0 : index
    %c0_352 = arith.constant 0 : index
    %315 = vector.load %arg14[%c0_349, %c2_350, %c0_351, %c0_352] : memref<3x3x8x32xbf16, #tpu.memory_space<vmem>>, vector<1x1x8x32xbf16>
    %316 = vector.shape_cast %315 : vector<1x1x8x32xbf16> to vector<8x32xbf16>
    %cst_353 = arith.constant dense<0.000000e+00> : vector<256x32xf32>
    %317 = tpu.matmul %314, %316, %cst_353 {dimension_numbers = #tpu.dot_dimension_numbers<[1], [0], [0], [1], [0, 0, 1, 1], [], []>} : vector<256x8xbf16>, vector<8x32xbf16>, vector<256x32xf32> -> vector<256x32xf32>
    %318 = arith.addf %310, %317 : vector<256x32xf32>
    %c0_354 = arith.constant 0 : index
    %c1_355 = arith.constant 1 : index
    %c0_356 = arith.constant 0 : index
    %c0_357 = arith.constant 0 : index
    %319 = vector.load %arg20[%c0_354, %c1_355, %c0_356, %c0_357] : memref<1x18x18x8xf32, #tpu.memory_space<vmem>>, vector<1x16x16x8xf32>
    %320 = vector.shape_cast %319 : vector<1x16x16x8xf32> to vector<16x16x8xf32>
    %321 = arith.truncf %320 : vector<16x16x8xf32> to vector<16x16x8xbf16>
    %322 = vector.shape_cast %321 : vector<16x16x8xbf16> to vector<256x8xbf16>
    %c1_358 = arith.constant 1 : index
    %c0_359 = arith.constant 0 : index
    %c0_360 = arith.constant 0 : index
    %c0_361 = arith.constant 0 : index
    %323 = vector.load %arg14[%c1_358, %c0_359, %c0_360, %c0_361] : memref<3x3x8x32xbf16, #tpu.memory_space<vmem>>, vector<1x1x8x32xbf16>
    %324 = vector.shape_cast %323 : vector<1x1x8x32xbf16> to vector<8x32xbf16>
    %cst_362 = arith.constant dense<0.000000e+00> : vector<256x32xf32>
    %325 = tpu.matmul %322, %324, %cst_362 {dimension_numbers = #tpu.dot_dimension_numbers<[1], [0], [0], [1], [0, 0, 1, 1], [], []>} : vector<256x8xbf16>, vector<8x32xbf16>, vector<256x32xf32> -> vector<256x32xf32>
    %326 = arith.addf %318, %325 : vector<256x32xf32>
    %c0_363 = arith.constant 0 : index
    %c1_364 = arith.constant 1 : index
    %c1_365 = arith.constant 1 : index
    %c0_366 = arith.constant 0 : index
    %327 = vector.load %arg20[%c0_363, %c1_364, %c1_365, %c0_366] : memref<1x18x18x8xf32, #tpu.memory_space<vmem>>, vector<1x16x16x8xf32>
    %328 = vector.shape_cast %327 : vector<1x16x16x8xf32> to vector<16x16x8xf32>
    %329 = arith.truncf %328 : vector<16x16x8xf32> to vector<16x16x8xbf16>
    %330 = vector.shape_cast %329 : vector<16x16x8xbf16> to vector<256x8xbf16>
    %c1_367 = arith.constant 1 : index
    %c1_368 = arith.constant 1 : index
    %c0_369 = arith.constant 0 : index
    %c0_370 = arith.constant 0 : index
    %331 = vector.load %arg14[%c1_367, %c1_368, %c0_369, %c0_370] : memref<3x3x8x32xbf16, #tpu.memory_space<vmem>>, vector<1x1x8x32xbf16>
    %332 = vector.shape_cast %331 : vector<1x1x8x32xbf16> to vector<8x32xbf16>
    %cst_371 = arith.constant dense<0.000000e+00> : vector<256x32xf32>
    %333 = tpu.matmul %330, %332, %cst_371 {dimension_numbers = #tpu.dot_dimension_numbers<[1], [0], [0], [1], [0, 0, 1, 1], [], []>} : vector<256x8xbf16>, vector<8x32xbf16>, vector<256x32xf32> -> vector<256x32xf32>
    %334 = arith.addf %326, %333 : vector<256x32xf32>
    %c0_372 = arith.constant 0 : index
    %c1_373 = arith.constant 1 : index
    %c2_374 = arith.constant 2 : index
    %c0_375 = arith.constant 0 : index
    %335 = vector.load %arg20[%c0_372, %c1_373, %c2_374, %c0_375] : memref<1x18x18x8xf32, #tpu.memory_space<vmem>>, vector<1x16x16x8xf32>
    %336 = vector.shape_cast %335 : vector<1x16x16x8xf32> to vector<16x16x8xf32>
    %337 = arith.truncf %336 : vector<16x16x8xf32> to vector<16x16x8xbf16>
    %338 = vector.shape_cast %337 : vector<16x16x8xbf16> to vector<256x8xbf16>
    %c1_376 = arith.constant 1 : index
    %c2_377 = arith.constant 2 : index
    %c0_378 = arith.constant 0 : index
    %c0_379 = arith.constant 0 : index
    %339 = vector.load %arg14[%c1_376, %c2_377, %c0_378, %c0_379] : memref<3x3x8x32xbf16, #tpu.memory_space<vmem>>, vector<1x1x8x32xbf16>
    %340 = vector.shape_cast %339 : vector<1x1x8x32xbf16> to vector<8x32xbf16>
    %cst_380 = arith.constant dense<0.000000e+00> : vector<256x32xf32>
    %341 = tpu.matmul %338, %340, %cst_380 {dimension_numbers = #tpu.dot_dimension_numbers<[1], [0], [0], [1], [0, 0, 1, 1], [], []>} : vector<256x8xbf16>, vector<8x32xbf16>, vector<256x32xf32> -> vector<256x32xf32>
    %342 = arith.addf %334, %341 : vector<256x32xf32>
    %c0_381 = arith.constant 0 : index
    %c2_382 = arith.constant 2 : index
    %c0_383 = arith.constant 0 : index
    %c0_384 = arith.constant 0 : index
    %343 = vector.load %arg20[%c0_381, %c2_382, %c0_383, %c0_384] : memref<1x18x18x8xf32, #tpu.memory_space<vmem>>, vector<1x16x16x8xf32>
    %344 = vector.shape_cast %343 : vector<1x16x16x8xf32> to vector<16x16x8xf32>
    %345 = arith.truncf %344 : vector<16x16x8xf32> to vector<16x16x8xbf16>
    %346 = vector.shape_cast %345 : vector<16x16x8xbf16> to vector<256x8xbf16>
    %c2_385 = arith.constant 2 : index
    %c0_386 = arith.constant 0 : index
    %c0_387 = arith.constant 0 : index
    %c0_388 = arith.constant 0 : index
    %347 = vector.load %arg14[%c2_385, %c0_386, %c0_387, %c0_388] : memref<3x3x8x32xbf16, #tpu.memory_space<vmem>>, vector<1x1x8x32xbf16>
    %348 = vector.shape_cast %347 : vector<1x1x8x32xbf16> to vector<8x32xbf16>
    %cst_389 = arith.constant dense<0.000000e+00> : vector<256x32xf32>
    %349 = tpu.matmul %346, %348, %cst_389 {dimension_numbers = #tpu.dot_dimension_numbers<[1], [0], [0], [1], [0, 0, 1, 1], [], []>} : vector<256x8xbf16>, vector<8x32xbf16>, vector<256x32xf32> -> vector<256x32xf32>
    %350 = arith.addf %342, %349 : vector<256x32xf32>
    %c0_390 = arith.constant 0 : index
    %c2_391 = arith.constant 2 : index
    %c1_392 = arith.constant 1 : index
    %c0_393 = arith.constant 0 : index
    %351 = vector.load %arg20[%c0_390, %c2_391, %c1_392, %c0_393] : memref<1x18x18x8xf32, #tpu.memory_space<vmem>>, vector<1x16x16x8xf32>
    %352 = vector.shape_cast %351 : vector<1x16x16x8xf32> to vector<16x16x8xf32>
    %353 = arith.truncf %352 : vector<16x16x8xf32> to vector<16x16x8xbf16>
    %354 = vector.shape_cast %353 : vector<16x16x8xbf16> to vector<256x8xbf16>
    %c2_394 = arith.constant 2 : index
    %c1_395 = arith.constant 1 : index
    %c0_396 = arith.constant 0 : index
    %c0_397 = arith.constant 0 : index
    %355 = vector.load %arg14[%c2_394, %c1_395, %c0_396, %c0_397] : memref<3x3x8x32xbf16, #tpu.memory_space<vmem>>, vector<1x1x8x32xbf16>
    %356 = vector.shape_cast %355 : vector<1x1x8x32xbf16> to vector<8x32xbf16>
    %cst_398 = arith.constant dense<0.000000e+00> : vector<256x32xf32>
    %357 = tpu.matmul %354, %356, %cst_398 {dimension_numbers = #tpu.dot_dimension_numbers<[1], [0], [0], [1], [0, 0, 1, 1], [], []>} : vector<256x8xbf16>, vector<8x32xbf16>, vector<256x32xf32> -> vector<256x32xf32>
    %358 = arith.addf %350, %357 : vector<256x32xf32>
    %c0_399 = arith.constant 0 : index
    %c2_400 = arith.constant 2 : index
    %c2_401 = arith.constant 2 : index
    %c0_402 = arith.constant 0 : index
    %359 = vector.load %arg20[%c0_399, %c2_400, %c2_401, %c0_402] : memref<1x18x18x8xf32, #tpu.memory_space<vmem>>, vector<1x16x16x8xf32>
    %360 = vector.shape_cast %359 : vector<1x16x16x8xf32> to vector<16x16x8xf32>
    %361 = arith.truncf %360 : vector<16x16x8xf32> to vector<16x16x8xbf16>
    %362 = vector.shape_cast %361 : vector<16x16x8xbf16> to vector<256x8xbf16>
    %c2_403 = arith.constant 2 : index
    %c2_404 = arith.constant 2 : index
    %c0_405 = arith.constant 0 : index
    %c0_406 = arith.constant 0 : index
    %363 = vector.load %arg14[%c2_403, %c2_404, %c0_405, %c0_406] : memref<3x3x8x32xbf16, #tpu.memory_space<vmem>>, vector<1x1x8x32xbf16>
    %364 = vector.shape_cast %363 : vector<1x1x8x32xbf16> to vector<8x32xbf16>
    %cst_407 = arith.constant dense<0.000000e+00> : vector<256x32xf32>
    %365 = tpu.matmul %362, %364, %cst_407 {dimension_numbers = #tpu.dot_dimension_numbers<[1], [0], [0], [1], [0, 0, 1, 1], [], []>} : vector<256x8xbf16>, vector<8x32xbf16>, vector<256x32xf32> -> vector<256x32xf32>
    %366 = arith.addf %358, %365 : vector<256x32xf32>
    %cst_408 = arith.constant 0.000000e+00 : f32
    %367 = vector.broadcast %cst_408 : f32 to vector<256x32xf32>
    %c0_409 = arith.constant 0 : index
    %c0_410 = arith.constant 0 : index
    %c0_411 = arith.constant 0 : index
    %c0_412 = arith.constant 0 : index
    %368 = vector.load %arg22[%c0_409, %c0_410, %c0_411, %c0_412] : memref<1x20x20x8xf32, #tpu.memory_space<vmem>>, vector<1x16x16x8xf32>
    %369 = vector.shape_cast %368 : vector<1x16x16x8xf32> to vector<16x16x8xf32>
    %370 = arith.truncf %369 : vector<16x16x8xf32> to vector<16x16x8xbf16>
    %371 = vector.shape_cast %370 : vector<16x16x8xbf16> to vector<256x8xbf16>
    %c0_413 = arith.constant 0 : index
    %c0_414 = arith.constant 0 : index
    %c0_415 = arith.constant 0 : index
    %c0_416 = arith.constant 0 : index
    %372 = vector.load %arg15[%c0_413, %c0_414, %c0_415, %c0_416] : memref<3x3x8x32xbf16, #tpu.memory_space<vmem>>, vector<1x1x8x32xbf16>
    %373 = vector.shape_cast %372 : vector<1x1x8x32xbf16> to vector<8x32xbf16>
    %cst_417 = arith.constant dense<0.000000e+00> : vector<256x32xf32>
    %374 = tpu.matmul %371, %373, %cst_417 {dimension_numbers = #tpu.dot_dimension_numbers<[1], [0], [0], [1], [0, 0, 1, 1], [], []>} : vector<256x8xbf16>, vector<8x32xbf16>, vector<256x32xf32> -> vector<256x32xf32>
    %375 = arith.addf %367, %374 : vector<256x32xf32>
    %c0_418 = arith.constant 0 : index
    %c0_419 = arith.constant 0 : index
    %c2_420 = arith.constant 2 : index
    %c0_421 = arith.constant 0 : index
    %376 = vector.load %arg22[%c0_418, %c0_419, %c2_420, %c0_421] : memref<1x20x20x8xf32, #tpu.memory_space<vmem>>, vector<1x16x16x8xf32>
    %377 = vector.shape_cast %376 : vector<1x16x16x8xf32> to vector<16x16x8xf32>
    %378 = arith.truncf %377 : vector<16x16x8xf32> to vector<16x16x8xbf16>
    %379 = vector.shape_cast %378 : vector<16x16x8xbf16> to vector<256x8xbf16>
    %c0_422 = arith.constant 0 : index
    %c1_423 = arith.constant 1 : index
    %c0_424 = arith.constant 0 : index
    %c0_425 = arith.constant 0 : index
    %380 = vector.load %arg15[%c0_422, %c1_423, %c0_424, %c0_425] : memref<3x3x8x32xbf16, #tpu.memory_space<vmem>>, vector<1x1x8x32xbf16>
    %381 = vector.shape_cast %380 : vector<1x1x8x32xbf16> to vector<8x32xbf16>
    %cst_426 = arith.constant dense<0.000000e+00> : vector<256x32xf32>
    %382 = tpu.matmul %379, %381, %cst_426 {dimension_numbers = #tpu.dot_dimension_numbers<[1], [0], [0], [1], [0, 0, 1, 1], [], []>} : vector<256x8xbf16>, vector<8x32xbf16>, vector<256x32xf32> -> vector<256x32xf32>
    %383 = arith.addf %375, %382 : vector<256x32xf32>
    %c0_427 = arith.constant 0 : index
    %c0_428 = arith.constant 0 : index
    %c4 = arith.constant 4 : index
    %c0_429 = arith.constant 0 : index
    %384 = vector.load %arg22[%c0_427, %c0_428, %c4, %c0_429] : memref<1x20x20x8xf32, #tpu.memory_space<vmem>>, vector<1x16x16x8xf32>
    %385 = vector.shape_cast %384 : vector<1x16x16x8xf32> to vector<16x16x8xf32>
    %386 = arith.truncf %385 : vector<16x16x8xf32> to vector<16x16x8xbf16>
    %387 = vector.shape_cast %386 : vector<16x16x8xbf16> to vector<256x8xbf16>
    %c0_430 = arith.constant 0 : index
    %c2_431 = arith.constant 2 : index
    %c0_432 = arith.constant 0 : index
    %c0_433 = arith.constant 0 : index
    %388 = vector.load %arg15[%c0_430, %c2_431, %c0_432, %c0_433] : memref<3x3x8x32xbf16, #tpu.memory_space<vmem>>, vector<1x1x8x32xbf16>
    %389 = vector.shape_cast %388 : vector<1x1x8x32xbf16> to vector<8x32xbf16>
    %cst_434 = arith.constant dense<0.000000e+00> : vector<256x32xf32>
    %390 = tpu.matmul %387, %389, %cst_434 {dimension_numbers = #tpu.dot_dimension_numbers<[1], [0], [0], [1], [0, 0, 1, 1], [], []>} : vector<256x8xbf16>, vector<8x32xbf16>, vector<256x32xf32> -> vector<256x32xf32>
    %391 = arith.addf %383, %390 : vector<256x32xf32>
    %c0_435 = arith.constant 0 : index
    %c2_436 = arith.constant 2 : index
    %c0_437 = arith.constant 0 : index
    %c0_438 = arith.constant 0 : index
    %392 = vector.load %arg22[%c0_435, %c2_436, %c0_437, %c0_438] : memref<1x20x20x8xf32, #tpu.memory_space<vmem>>, vector<1x16x16x8xf32>
    %393 = vector.shape_cast %392 : vector<1x16x16x8xf32> to vector<16x16x8xf32>
    %394 = arith.truncf %393 : vector<16x16x8xf32> to vector<16x16x8xbf16>
    %395 = vector.shape_cast %394 : vector<16x16x8xbf16> to vector<256x8xbf16>
    %c1_439 = arith.constant 1 : index
    %c0_440 = arith.constant 0 : index
    %c0_441 = arith.constant 0 : index
    %c0_442 = arith.constant 0 : index
    %396 = vector.load %arg15[%c1_439, %c0_440, %c0_441, %c0_442] : memref<3x3x8x32xbf16, #tpu.memory_space<vmem>>, vector<1x1x8x32xbf16>
    %397 = vector.shape_cast %396 : vector<1x1x8x32xbf16> to vector<8x32xbf16>
    %cst_443 = arith.constant dense<0.000000e+00> : vector<256x32xf32>
    %398 = tpu.matmul %395, %397, %cst_443 {dimension_numbers = #tpu.dot_dimension_numbers<[1], [0], [0], [1], [0, 0, 1, 1], [], []>} : vector<256x8xbf16>, vector<8x32xbf16>, vector<256x32xf32> -> vector<256x32xf32>
    %399 = arith.addf %391, %398 : vector<256x32xf32>
    %c0_444 = arith.constant 0 : index
    %c2_445 = arith.constant 2 : index
    %c2_446 = arith.constant 2 : index
    %c0_447 = arith.constant 0 : index
    %400 = vector.load %arg22[%c0_444, %c2_445, %c2_446, %c0_447] : memref<1x20x20x8xf32, #tpu.memory_space<vmem>>, vector<1x16x16x8xf32>
    %401 = vector.shape_cast %400 : vector<1x16x16x8xf32> to vector<16x16x8xf32>
    %402 = arith.truncf %401 : vector<16x16x8xf32> to vector<16x16x8xbf16>
    %403 = vector.shape_cast %402 : vector<16x16x8xbf16> to vector<256x8xbf16>
    %c1_448 = arith.constant 1 : index
    %c1_449 = arith.constant 1 : index
    %c0_450 = arith.constant 0 : index
    %c0_451 = arith.constant 0 : index
    %404 = vector.load %arg15[%c1_448, %c1_449, %c0_450, %c0_451] : memref<3x3x8x32xbf16, #tpu.memory_space<vmem>>, vector<1x1x8x32xbf16>
    %405 = vector.shape_cast %404 : vector<1x1x8x32xbf16> to vector<8x32xbf16>
    %cst_452 = arith.constant dense<0.000000e+00> : vector<256x32xf32>
    %406 = tpu.matmul %403, %405, %cst_452 {dimension_numbers = #tpu.dot_dimension_numbers<[1], [0], [0], [1], [0, 0, 1, 1], [], []>} : vector<256x8xbf16>, vector<8x32xbf16>, vector<256x32xf32> -> vector<256x32xf32>
    %407 = arith.addf %399, %406 : vector<256x32xf32>
    %c0_453 = arith.constant 0 : index
    %c2_454 = arith.constant 2 : index
    %c4_455 = arith.constant 4 : index
    %c0_456 = arith.constant 0 : index
    %408 = vector.load %arg22[%c0_453, %c2_454, %c4_455, %c0_456] : memref<1x20x20x8xf32, #tpu.memory_space<vmem>>, vector<1x16x16x8xf32>
    %409 = vector.shape_cast %408 : vector<1x16x16x8xf32> to vector<16x16x8xf32>
    %410 = arith.truncf %409 : vector<16x16x8xf32> to vector<16x16x8xbf16>
    %411 = vector.shape_cast %410 : vector<16x16x8xbf16> to vector<256x8xbf16>
    %c1_457 = arith.constant 1 : index
    %c2_458 = arith.constant 2 : index
    %c0_459 = arith.constant 0 : index
    %c0_460 = arith.constant 0 : index
    %412 = vector.load %arg15[%c1_457, %c2_458, %c0_459, %c0_460] : memref<3x3x8x32xbf16, #tpu.memory_space<vmem>>, vector<1x1x8x32xbf16>
    %413 = vector.shape_cast %412 : vector<1x1x8x32xbf16> to vector<8x32xbf16>
    %cst_461 = arith.constant dense<0.000000e+00> : vector<256x32xf32>
    %414 = tpu.matmul %411, %413, %cst_461 {dimension_numbers = #tpu.dot_dimension_numbers<[1], [0], [0], [1], [0, 0, 1, 1], [], []>} : vector<256x8xbf16>, vector<8x32xbf16>, vector<256x32xf32> -> vector<256x32xf32>
    %415 = arith.addf %407, %414 : vector<256x32xf32>
    %c0_462 = arith.constant 0 : index
    %c4_463 = arith.constant 4 : index
    %c0_464 = arith.constant 0 : index
    %c0_465 = arith.constant 0 : index
    %416 = vector.load %arg22[%c0_462, %c4_463, %c0_464, %c0_465] : memref<1x20x20x8xf32, #tpu.memory_space<vmem>>, vector<1x16x16x8xf32>
    %417 = vector.shape_cast %416 : vector<1x16x16x8xf32> to vector<16x16x8xf32>
    %418 = arith.truncf %417 : vector<16x16x8xf32> to vector<16x16x8xbf16>
    %419 = vector.shape_cast %418 : vector<16x16x8xbf16> to vector<256x8xbf16>
    %c2_466 = arith.constant 2 : index
    %c0_467 = arith.constant 0 : index
    %c0_468 = arith.constant 0 : index
    %c0_469 = arith.constant 0 : index
    %420 = vector.load %arg15[%c2_466, %c0_467, %c0_468, %c0_469] : memref<3x3x8x32xbf16, #tpu.memory_space<vmem>>, vector<1x1x8x32xbf16>
    %421 = vector.shape_cast %420 : vector<1x1x8x32xbf16> to vector<8x32xbf16>
    %cst_470 = arith.constant dense<0.000000e+00> : vector<256x32xf32>
    %422 = tpu.matmul %419, %421, %cst_470 {dimension_numbers = #tpu.dot_dimension_numbers<[1], [0], [0], [1], [0, 0, 1, 1], [], []>} : vector<256x8xbf16>, vector<8x32xbf16>, vector<256x32xf32> -> vector<256x32xf32>
    %423 = arith.addf %415, %422 : vector<256x32xf32>
    %c0_471 = arith.constant 0 : index
    %c4_472 = arith.constant 4 : index
    %c2_473 = arith.constant 2 : index
    %c0_474 = arith.constant 0 : index
    %424 = vector.load %arg22[%c0_471, %c4_472, %c2_473, %c0_474] : memref<1x20x20x8xf32, #tpu.memory_space<vmem>>, vector<1x16x16x8xf32>
    %425 = vector.shape_cast %424 : vector<1x16x16x8xf32> to vector<16x16x8xf32>
    %426 = arith.truncf %425 : vector<16x16x8xf32> to vector<16x16x8xbf16>
    %427 = vector.shape_cast %426 : vector<16x16x8xbf16> to vector<256x8xbf16>
    %c2_475 = arith.constant 2 : index
    %c1_476 = arith.constant 1 : index
    %c0_477 = arith.constant 0 : index
    %c0_478 = arith.constant 0 : index
    %428 = vector.load %arg15[%c2_475, %c1_476, %c0_477, %c0_478] : memref<3x3x8x32xbf16, #tpu.memory_space<vmem>>, vector<1x1x8x32xbf16>
    %429 = vector.shape_cast %428 : vector<1x1x8x32xbf16> to vector<8x32xbf16>
    %cst_479 = arith.constant dense<0.000000e+00> : vector<256x32xf32>
    %430 = tpu.matmul %427, %429, %cst_479 {dimension_numbers = #tpu.dot_dimension_numbers<[1], [0], [0], [1], [0, 0, 1, 1], [], []>} : vector<256x8xbf16>, vector<8x32xbf16>, vector<256x32xf32> -> vector<256x32xf32>
    %431 = arith.addf %423, %430 : vector<256x32xf32>
    %c0_480 = arith.constant 0 : index
    %c4_481 = arith.constant 4 : index
    %c4_482 = arith.constant 4 : index
    %c0_483 = arith.constant 0 : index
    %432 = vector.load %arg22[%c0_480, %c4_481, %c4_482, %c0_483] : memref<1x20x20x8xf32, #tpu.memory_space<vmem>>, vector<1x16x16x8xf32>
    %433 = vector.shape_cast %432 : vector<1x16x16x8xf32> to vector<16x16x8xf32>
    %434 = arith.truncf %433 : vector<16x16x8xf32> to vector<16x16x8xbf16>
    %435 = vector.shape_cast %434 : vector<16x16x8xbf16> to vector<256x8xbf16>
    %c2_484 = arith.constant 2 : index
    %c2_485 = arith.constant 2 : index
    %c0_486 = arith.constant 0 : index
    %c0_487 = arith.constant 0 : index
    %436 = vector.load %arg15[%c2_484, %c2_485, %c0_486, %c0_487] : memref<3x3x8x32xbf16, #tpu.memory_space<vmem>>, vector<1x1x8x32xbf16>
    %437 = vector.shape_cast %436 : vector<1x1x8x32xbf16> to vector<8x32xbf16>
    %cst_488 = arith.constant dense<0.000000e+00> : vector<256x32xf32>
    %438 = tpu.matmul %435, %437, %cst_488 {dimension_numbers = #tpu.dot_dimension_numbers<[1], [0], [0], [1], [0, 0, 1, 1], [], []>} : vector<256x8xbf16>, vector<8x32xbf16>, vector<256x32xf32> -> vector<256x32xf32>
    %439 = arith.addf %431, %438 : vector<256x32xf32>
    %440 = arith.addf %366, %439 : vector<256x32xf32>
    %cst_489 = arith.constant 0.000000e+00 : f32
    %441 = vector.broadcast %cst_489 : f32 to vector<256x32xf32>
    %c0_490 = arith.constant 0 : index
    %c0_491 = arith.constant 0 : index
    %c0_492 = arith.constant 0 : index
    %c0_493 = arith.constant 0 : index
    %442 = vector.load %arg25[%c0_490, %c0_491, %c0_492, %c0_493] : memref<1x22x22x8xf32, #tpu.memory_space<vmem>>, vector<1x16x16x8xf32>
    %443 = vector.shape_cast %442 : vector<1x16x16x8xf32> to vector<16x16x8xf32>
    %444 = arith.truncf %443 : vector<16x16x8xf32> to vector<16x16x8xbf16>
    %445 = vector.shape_cast %444 : vector<16x16x8xbf16> to vector<256x8xbf16>
    %c0_494 = arith.constant 0 : index
    %c0_495 = arith.constant 0 : index
    %c0_496 = arith.constant 0 : index
    %c0_497 = arith.constant 0 : index
    %446 = vector.load %arg16[%c0_494, %c0_495, %c0_496, %c0_497] : memref<3x3x8x32xbf16, #tpu.memory_space<vmem>>, vector<1x1x8x32xbf16>
    %447 = vector.shape_cast %446 : vector<1x1x8x32xbf16> to vector<8x32xbf16>
    %cst_498 = arith.constant dense<0.000000e+00> : vector<256x32xf32>
    %448 = tpu.matmul %445, %447, %cst_498 {dimension_numbers = #tpu.dot_dimension_numbers<[1], [0], [0], [1], [0, 0, 1, 1], [], []>} : vector<256x8xbf16>, vector<8x32xbf16>, vector<256x32xf32> -> vector<256x32xf32>
    %449 = arith.addf %441, %448 : vector<256x32xf32>
    %c0_499 = arith.constant 0 : index
    %c0_500 = arith.constant 0 : index
    %c3_501 = arith.constant 3 : index
    %c0_502 = arith.constant 0 : index
    %450 = vector.load %arg25[%c0_499, %c0_500, %c3_501, %c0_502] : memref<1x22x22x8xf32, #tpu.memory_space<vmem>>, vector<1x16x16x8xf32>
    %451 = vector.shape_cast %450 : vector<1x16x16x8xf32> to vector<16x16x8xf32>
    %452 = arith.truncf %451 : vector<16x16x8xf32> to vector<16x16x8xbf16>
    %453 = vector.shape_cast %452 : vector<16x16x8xbf16> to vector<256x8xbf16>
    %c0_503 = arith.constant 0 : index
    %c1_504 = arith.constant 1 : index
    %c0_505 = arith.constant 0 : index
    %c0_506 = arith.constant 0 : index
    %454 = vector.load %arg16[%c0_503, %c1_504, %c0_505, %c0_506] : memref<3x3x8x32xbf16, #tpu.memory_space<vmem>>, vector<1x1x8x32xbf16>
    %455 = vector.shape_cast %454 : vector<1x1x8x32xbf16> to vector<8x32xbf16>
    %cst_507 = arith.constant dense<0.000000e+00> : vector<256x32xf32>
    %456 = tpu.matmul %453, %455, %cst_507 {dimension_numbers = #tpu.dot_dimension_numbers<[1], [0], [0], [1], [0, 0, 1, 1], [], []>} : vector<256x8xbf16>, vector<8x32xbf16>, vector<256x32xf32> -> vector<256x32xf32>
    %457 = arith.addf %449, %456 : vector<256x32xf32>
    %c0_508 = arith.constant 0 : index
    %c0_509 = arith.constant 0 : index
    %c6 = arith.constant 6 : index
    %c0_510 = arith.constant 0 : index
    %458 = vector.load %arg25[%c0_508, %c0_509, %c6, %c0_510] : memref<1x22x22x8xf32, #tpu.memory_space<vmem>>, vector<1x16x16x8xf32>
    %459 = vector.shape_cast %458 : vector<1x16x16x8xf32> to vector<16x16x8xf32>
    %460 = arith.truncf %459 : vector<16x16x8xf32> to vector<16x16x8xbf16>
    %461 = vector.shape_cast %460 : vector<16x16x8xbf16> to vector<256x8xbf16>
    %c0_511 = arith.constant 0 : index
    %c2_512 = arith.constant 2 : index
    %c0_513 = arith.constant 0 : index
    %c0_514 = arith.constant 0 : index
    %462 = vector.load %arg16[%c0_511, %c2_512, %c0_513, %c0_514] : memref<3x3x8x32xbf16, #tpu.memory_space<vmem>>, vector<1x1x8x32xbf16>
    %463 = vector.shape_cast %462 : vector<1x1x8x32xbf16> to vector<8x32xbf16>
    %cst_515 = arith.constant dense<0.000000e+00> : vector<256x32xf32>
    %464 = tpu.matmul %461, %463, %cst_515 {dimension_numbers = #tpu.dot_dimension_numbers<[1], [0], [0], [1], [0, 0, 1, 1], [], []>} : vector<256x8xbf16>, vector<8x32xbf16>, vector<256x32xf32> -> vector<256x32xf32>
    %465 = arith.addf %457, %464 : vector<256x32xf32>
    %c0_516 = arith.constant 0 : index
    %c3_517 = arith.constant 3 : index
    %c0_518 = arith.constant 0 : index
    %c0_519 = arith.constant 0 : index
    %466 = vector.load %arg25[%c0_516, %c3_517, %c0_518, %c0_519] : memref<1x22x22x8xf32, #tpu.memory_space<vmem>>, vector<1x16x16x8xf32>
    %467 = vector.shape_cast %466 : vector<1x16x16x8xf32> to vector<16x16x8xf32>
    %468 = arith.truncf %467 : vector<16x16x8xf32> to vector<16x16x8xbf16>
    %469 = vector.shape_cast %468 : vector<16x16x8xbf16> to vector<256x8xbf16>
    %c1_520 = arith.constant 1 : index
    %c0_521 = arith.constant 0 : index
    %c0_522 = arith.constant 0 : index
    %c0_523 = arith.constant 0 : index
    %470 = vector.load %arg16[%c1_520, %c0_521, %c0_522, %c0_523] : memref<3x3x8x32xbf16, #tpu.memory_space<vmem>>, vector<1x1x8x32xbf16>
    %471 = vector.shape_cast %470 : vector<1x1x8x32xbf16> to vector<8x32xbf16>
    %cst_524 = arith.constant dense<0.000000e+00> : vector<256x32xf32>
    %472 = tpu.matmul %469, %471, %cst_524 {dimension_numbers = #tpu.dot_dimension_numbers<[1], [0], [0], [1], [0, 0, 1, 1], [], []>} : vector<256x8xbf16>, vector<8x32xbf16>, vector<256x32xf32> -> vector<256x32xf32>
    %473 = arith.addf %465, %472 : vector<256x32xf32>
    %c0_525 = arith.constant 0 : index
    %c3_526 = arith.constant 3 : index
    %c3_527 = arith.constant 3 : index
    %c0_528 = arith.constant 0 : index
    %474 = vector.load %arg25[%c0_525, %c3_526, %c3_527, %c0_528] : memref<1x22x22x8xf32, #tpu.memory_space<vmem>>, vector<1x16x16x8xf32>
    %475 = vector.shape_cast %474 : vector<1x16x16x8xf32> to vector<16x16x8xf32>
    %476 = arith.truncf %475 : vector<16x16x8xf32> to vector<16x16x8xbf16>
    %477 = vector.shape_cast %476 : vector<16x16x8xbf16> to vector<256x8xbf16>
    %c1_529 = arith.constant 1 : index
    %c1_530 = arith.constant 1 : index
    %c0_531 = arith.constant 0 : index
    %c0_532 = arith.constant 0 : index
    %478 = vector.load %arg16[%c1_529, %c1_530, %c0_531, %c0_532] : memref<3x3x8x32xbf16, #tpu.memory_space<vmem>>, vector<1x1x8x32xbf16>
    %479 = vector.shape_cast %478 : vector<1x1x8x32xbf16> to vector<8x32xbf16>
    %cst_533 = arith.constant dense<0.000000e+00> : vector<256x32xf32>
    %480 = tpu.matmul %477, %479, %cst_533 {dimension_numbers = #tpu.dot_dimension_numbers<[1], [0], [0], [1], [0, 0, 1, 1], [], []>} : vector<256x8xbf16>, vector<8x32xbf16>, vector<256x32xf32> -> vector<256x32xf32>
    %481 = arith.addf %473, %480 : vector<256x32xf32>
    %c0_534 = arith.constant 0 : index
    %c3_535 = arith.constant 3 : index
    %c6_536 = arith.constant 6 : index
    %c0_537 = arith.constant 0 : index
    %482 = vector.load %arg25[%c0_534, %c3_535, %c6_536, %c0_537] : memref<1x22x22x8xf32, #tpu.memory_space<vmem>>, vector<1x16x16x8xf32>
    %483 = vector.shape_cast %482 : vector<1x16x16x8xf32> to vector<16x16x8xf32>
    %484 = arith.truncf %483 : vector<16x16x8xf32> to vector<16x16x8xbf16>
    %485 = vector.shape_cast %484 : vector<16x16x8xbf16> to vector<256x8xbf16>
    %c1_538 = arith.constant 1 : index
    %c2_539 = arith.constant 2 : index
    %c0_540 = arith.constant 0 : index
    %c0_541 = arith.constant 0 : index
    %486 = vector.load %arg16[%c1_538, %c2_539, %c0_540, %c0_541] : memref<3x3x8x32xbf16, #tpu.memory_space<vmem>>, vector<1x1x8x32xbf16>
    %487 = vector.shape_cast %486 : vector<1x1x8x32xbf16> to vector<8x32xbf16>
    %cst_542 = arith.constant dense<0.000000e+00> : vector<256x32xf32>
    %488 = tpu.matmul %485, %487, %cst_542 {dimension_numbers = #tpu.dot_dimension_numbers<[1], [0], [0], [1], [0, 0, 1, 1], [], []>} : vector<256x8xbf16>, vector<8x32xbf16>, vector<256x32xf32> -> vector<256x32xf32>
    %489 = arith.addf %481, %488 : vector<256x32xf32>
    %c0_543 = arith.constant 0 : index
    %c6_544 = arith.constant 6 : index
    %c0_545 = arith.constant 0 : index
    %c0_546 = arith.constant 0 : index
    %490 = vector.load %arg25[%c0_543, %c6_544, %c0_545, %c0_546] : memref<1x22x22x8xf32, #tpu.memory_space<vmem>>, vector<1x16x16x8xf32>
    %491 = vector.shape_cast %490 : vector<1x16x16x8xf32> to vector<16x16x8xf32>
    %492 = arith.truncf %491 : vector<16x16x8xf32> to vector<16x16x8xbf16>
    %493 = vector.shape_cast %492 : vector<16x16x8xbf16> to vector<256x8xbf16>
    %c2_547 = arith.constant 2 : index
    %c0_548 = arith.constant 0 : index
    %c0_549 = arith.constant 0 : index
    %c0_550 = arith.constant 0 : index
    %494 = vector.load %arg16[%c2_547, %c0_548, %c0_549, %c0_550] : memref<3x3x8x32xbf16, #tpu.memory_space<vmem>>, vector<1x1x8x32xbf16>
    %495 = vector.shape_cast %494 : vector<1x1x8x32xbf16> to vector<8x32xbf16>
    %cst_551 = arith.constant dense<0.000000e+00> : vector<256x32xf32>
    %496 = tpu.matmul %493, %495, %cst_551 {dimension_numbers = #tpu.dot_dimension_numbers<[1], [0], [0], [1], [0, 0, 1, 1], [], []>} : vector<256x8xbf16>, vector<8x32xbf16>, vector<256x32xf32> -> vector<256x32xf32>
    %497 = arith.addf %489, %496 : vector<256x32xf32>
    %c0_552 = arith.constant 0 : index
    %c6_553 = arith.constant 6 : index
    %c3_554 = arith.constant 3 : index
    %c0_555 = arith.constant 0 : index
    %498 = vector.load %arg25[%c0_552, %c6_553, %c3_554, %c0_555] : memref<1x22x22x8xf32, #tpu.memory_space<vmem>>, vector<1x16x16x8xf32>
    %499 = vector.shape_cast %498 : vector<1x16x16x8xf32> to vector<16x16x8xf32>
    %500 = arith.truncf %499 : vector<16x16x8xf32> to vector<16x16x8xbf16>
    %501 = vector.shape_cast %500 : vector<16x16x8xbf16> to vector<256x8xbf16>
    %c2_556 = arith.constant 2 : index
    %c1_557 = arith.constant 1 : index
    %c0_558 = arith.constant 0 : index
    %c0_559 = arith.constant 0 : index
    %502 = vector.load %arg16[%c2_556, %c1_557, %c0_558, %c0_559] : memref<3x3x8x32xbf16, #tpu.memory_space<vmem>>, vector<1x1x8x32xbf16>
    %503 = vector.shape_cast %502 : vector<1x1x8x32xbf16> to vector<8x32xbf16>
    %cst_560 = arith.constant dense<0.000000e+00> : vector<256x32xf32>
    %504 = tpu.matmul %501, %503, %cst_560 {dimension_numbers = #tpu.dot_dimension_numbers<[1], [0], [0], [1], [0, 0, 1, 1], [], []>} : vector<256x8xbf16>, vector<8x32xbf16>, vector<256x32xf32> -> vector<256x32xf32>
    %505 = arith.addf %497, %504 : vector<256x32xf32>
    %c0_561 = arith.constant 0 : index
    %c6_562 = arith.constant 6 : index
    %c6_563 = arith.constant 6 : index
    %c0_564 = arith.constant 0 : index
    %506 = vector.load %arg25[%c0_561, %c6_562, %c6_563, %c0_564] : memref<1x22x22x8xf32, #tpu.memory_space<vmem>>, vector<1x16x16x8xf32>
    %507 = vector.shape_cast %506 : vector<1x16x16x8xf32> to vector<16x16x8xf32>
    %508 = arith.truncf %507 : vector<16x16x8xf32> to vector<16x16x8xbf16>
    %509 = vector.shape_cast %508 : vector<16x16x8xbf16> to vector<256x8xbf16>
    %c2_565 = arith.constant 2 : index
    %c2_566 = arith.constant 2 : index
    %c0_567 = arith.constant 0 : index
    %c0_568 = arith.constant 0 : index
    %510 = vector.load %arg16[%c2_565, %c2_566, %c0_567, %c0_568] : memref<3x3x8x32xbf16, #tpu.memory_space<vmem>>, vector<1x1x8x32xbf16>
    %511 = vector.shape_cast %510 : vector<1x1x8x32xbf16> to vector<8x32xbf16>
    %cst_569 = arith.constant dense<0.000000e+00> : vector<256x32xf32>
    %512 = tpu.matmul %509, %511, %cst_569 {dimension_numbers = #tpu.dot_dimension_numbers<[1], [0], [0], [1], [0, 0, 1, 1], [], []>} : vector<256x8xbf16>, vector<8x32xbf16>, vector<256x32xf32> -> vector<256x32xf32>
    %513 = arith.addf %505, %512 : vector<256x32xf32>
    %514 = arith.addf %440, %513 : vector<256x32xf32>
    %c0_570 = arith.constant 0 : index
    %c0_571 = arith.constant 0 : index
    %515 = vector.load %arg17[%c0_570, %c0_571] : memref<32x32xbf16, #tpu.memory_space<vmem>>, vector<32x32xbf16>
    %cst_572 = arith.constant dense<0.000000e+00> : vector<256x32xf32>
    %516 = tpu.matmul %14, %515, %cst_572 {dimension_numbers = #tpu.dot_dimension_numbers<[1], [0], [0], [1], [0, 0, 1, 1], [], []>} : vector<256x32xbf16>, vector<32x32xbf16>, vector<256x32xf32> -> vector<256x32xf32>
    %517 = arith.addf %514, %516 : vector<256x32xf32>
    %c0_573 = arith.constant 0 : index
    %c0_574 = arith.constant 0 : index
    %518 = vector.load %arg18[%c0_573, %c0_574] : memref<1x32xf32, #tpu.memory_space<vmem>>, vector<1x32xf32>
    %519 = vector.broadcast %518 : vector<1x32xf32> to vector<256x32xf32>
    %520 = arith.addf %517, %519 : vector<256x32xf32>
    %cst_575 = arith.constant 0.000000e+00 : f32
    %521 = vector.broadcast %cst_575 : f32 to vector<256x32xf32>
    %522 = arith.maximumf %520, %521 : vector<256x32xf32>
    %523 = vector.shape_cast %522 : vector<256x32xf32> to vector<1x16x16x32xf32>
    %c0_576 = arith.constant 0 : index
    %c0_577 = arith.constant 0 : index
    %c0_578 = arith.constant 0 : index
    %c0_579 = arith.constant 0 : index
    %524 = vector.load %arg19[%c0_576, %c0_577, %c0_578, %c0_579] : memref<1x16x16x32xf32, #tpu.memory_space<vmem>>, vector<1x16x16x32xf32>
    tpu.vector_store %arg19[%c0_576, %c0_577, %c0_578, %c0_579], %523 {strides = array<i32>} : memref<1x16x16x32xf32, #tpu.memory_space<vmem>>, vector<1x16x16x32xf32>,
    return
  }
  func.func @transform_0(%arg0: i32) -> (i32, i32, i32, i32) {
    %c0_i32 = arith.constant 0 : i32
    %c0_i32_0 = arith.constant 0 : i32
    %c0_i32_1 = arith.constant 0 : i32
    %c0_i32_2 = arith.constant 0 : i32
    return %arg0, %c0_i32, %c0_i32_0, %c0_i32_1 : i32, i32, i32, i32
  }
  func.func @transform_1(%arg0: i32) -> (i32, i32) {
    %c0_i32 = arith.constant 0 : i32
    %c0_i32_0 = arith.constant 0 : i32
    %c0_i32_1 = arith.constant 0 : i32
    return %c0_i32, %c0_i32_0 : i32, i32
  }
  func.func @transform_2(%arg0: i32) -> (i32, i32) {
    %c0_i32 = arith.constant 0 : i32
    %c0_i32_0 = arith.constant 0 : i32
    %c0_i32_1 = arith.constant 0 : i32
    return %c0_i32, %c0_i32_0 : i32, i32
  }
  func.func @transform_3(%arg0: i32) -> (i32, i32) {
    %c0_i32 = arith.constant 0 : i32
    %c0_i32_0 = arith.constant 0 : i32
    %c0_i32_1 = arith.constant 0 : i32
    return %c0_i32, %c0_i32_0 : i32, i32
  }
  func.func @transform_4(%arg0: i32) -> (i32, i32) {
    %c0_i32 = arith.constant 0 : i32
    %c0_i32_0 = arith.constant 0 : i32
    %c0_i32_1 = arith.constant 0 : i32
    return %c0_i32, %c0_i32_0 : i32, i32
  }
  func.func @transform_5(%arg0: i32) -> (i32, i32) {
    %c0_i32 = arith.constant 0 : i32
    %c0_i32_0 = arith.constant 0 : i32
    %c0_i32_1 = arith.constant 0 : i32
    return %c0_i32, %c0_i32_0 : i32, i32
  }
  func.func @transform_6(%arg0: i32) -> (i32, i32) {
    %c0_i32 = arith.constant 0 : i32
    %c0_i32_0 = arith.constant 0 : i32
    %c0_i32_1 = arith.constant 0 : i32
    return %c0_i32, %c0_i32_0 : i32, i32
  }
  func.func @transform_7(%arg0: i32) -> (i32, i32, i32, i32) {
    %c0_i32 = arith.constant 0 : i32
    %c0_i32_0 = arith.constant 0 : i32
    %c0_i32_1 = arith.constant 0 : i32
    %c0_i32_2 = arith.constant 0 : i32
    %c0_i32_3 = arith.constant 0 : i32
    return %c0_i32, %c0_i32_0, %c0_i32_1, %c0_i32_2 : i32, i32, i32, i32
  }
  func.func @transform_8(%arg0: i32) -> (i32, i32) {
    %c0_i32 = arith.constant 0 : i32
    %c0_i32_0 = arith.constant 0 : i32
    %c0_i32_1 = arith.constant 0 : i32
    return %c0_i32, %c0_i32_0 : i32, i32
  }
  func.func @transform_9(%arg0: i32) -> (i32, i32, i32, i32) {
    %c0_i32 = arith.constant 0 : i32
    %c0_i32_0 = arith.constant 0 : i32
    %c0_i32_1 = arith.constant 0 : i32
    %c0_i32_2 = arith.constant 0 : i32
    %c0_i32_3 = arith.constant 0 : i32
    return %c0_i32, %c0_i32_0, %c0_i32_1, %c0_i32_2 : i32, i32, i32, i32
  }
  func.func @transform_10(%arg0: i32) -> (i32, i32) {
    %c0_i32 = arith.constant 0 : i32
    %c0_i32_0 = arith.constant 0 : i32
    %c0_i32_1 = arith.constant 0 : i32
    return %c0_i32, %c0_i32_0 : i32, i32
  }
  func.func @transform_11(%arg0: i32) -> (i32, i32, i32, i32) {
    %c0_i32 = arith.constant 0 : i32
    %c0_i32_0 = arith.constant 0 : i32
    %c0_i32_1 = arith.constant 0 : i32
    %c0_i32_2 = arith.constant 0 : i32
    %c0_i32_3 = arith.constant 0 : i32
    return %c0_i32, %c0_i32_0, %c0_i32_1, %c0_i32_2 : i32, i32, i32, i32
  }
  func.func @transform_12(%arg0: i32) -> (i32, i32) {
    %c0_i32 = arith.constant 0 : i32
    %c0_i32_0 = arith.constant 0 : i32
    %c0_i32_1 = arith.constant 0 : i32
    return %c0_i32, %c0_i32_0 : i32, i32
  }
  func.func @transform_13(%arg0: i32) -> (i32, i32, i32, i32) {
    %c0_i32 = arith.constant 0 : i32
    %c0_i32_0 = arith.constant 0 : i32
    %c0_i32_1 = arith.constant 0 : i32
    %c0_i32_2 = arith.constant 0 : i32
    %c0_i32_3 = arith.constant 0 : i32
    return %c0_i32, %c0_i32_0, %c0_i32_1, %c0_i32_2 : i32, i32, i32, i32
  }
  func.func @transform_14(%arg0: i32) -> (i32, i32, i32, i32) {
    %c0_i32 = arith.constant 0 : i32
    %c0_i32_0 = arith.constant 0 : i32
    %c0_i32_1 = arith.constant 0 : i32
    %c0_i32_2 = arith.constant 0 : i32
    %c0_i32_3 = arith.constant 0 : i32
    return %c0_i32, %c0_i32_0, %c0_i32_1, %c0_i32_2 : i32, i32, i32, i32
  }
  func.func @transform_15(%arg0: i32) -> (i32, i32, i32, i32) {
    %c0_i32 = arith.constant 0 : i32
    %c0_i32_0 = arith.constant 0 : i32
    %c0_i32_1 = arith.constant 0 : i32
    %c0_i32_2 = arith.constant 0 : i32
    %c0_i32_3 = arith.constant 0 : i32
    return %c0_i32, %c0_i32_0, %c0_i32_1, %c0_i32_2 : i32, i32, i32, i32
  }
  func.func @transform_16(%arg0: i32) -> (i32, i32) {
    %c0_i32 = arith.constant 0 : i32
    %c0_i32_0 = arith.constant 0 : i32
    %c0_i32_1 = arith.constant 0 : i32
    return %c0_i32, %c0_i32_0 : i32, i32
  }
  func.func @transform_17(%arg0: i32) -> (i32, i32) {
    %c0_i32 = arith.constant 0 : i32
    %c0_i32_0 = arith.constant 0 : i32
    %c0_i32_1 = arith.constant 0 : i32
    return %c0_i32, %c0_i32_0 : i32, i32
  }
  func.func @transform_18(%arg0: i32) -> (i32, i32, i32, i32) {
    %c0_i32 = arith.constant 0 : i32
    %c0_i32_0 = arith.constant 0 : i32
    %c0_i32_1 = arith.constant 0 : i32
    %c0_i32_2 = arith.constant 0 : i32
    return %arg0, %c0_i32, %c0_i32_0, %c0_i32_1 : i32, i32, i32, i32
  }
}

</mosaic_0001>

<bundles_post_ra>
// kernel: basic_rfb_forward.1
= control target key start
LH: loop header
LB: loop body
LE: loop exit
PB: predicated region body
PF: predicated region fallthrough
CT: control target
= control target key end

     0   :  { %s28068_s0 = inlined_call_operand.vmem [shape: bf16[2,16,16,32], index: 0, kind: input, shape index: {}]   ;;  %s28069_s1 = inlined_call_operand.vmem [shape: bf16[32,8], index: 1, kind: input, shape index: {}]   ;;  %s28070_s2 = inlined_call_operand.vmem [shape: f32[1,8], index: 2, kind: input, shape index: {}]   ;;  %s28071_s3 = inlined_call_operand.vmem [shape: bf16[32,4], index: 3, kind: input, shape index: {}]   ;;  %s28072_s4 = inlined_call_operand.vmem [shape: f32[1,4], index: 4, kind: input, shape index: {}]   ;;  %s28073_s5 = inlined_call_operand.vmem [shape: bf16[32,4], index: 5, kind: input, shape index: {}]   ;;  %s28074_s6 = inlined_call_operand.vmem [shape: f32[1,4], index: 6, kind: input, shape index: {}]   ;;  %s28075_s7 = inlined_call_operand.vmem [shape: bf16[3,3,4,8], index: 7, kind: input, shape index: {}]   ;;  %s28076_s8 = inlined_call_operand.vmem [shape: f32[1,8], index: 8, kind: input, shape index: {}]   ;;  %s28077_s9 = inlined_call_operand.vmem [shape: bf16[3,3,4,6], index: 9, kind: input, shape index: {}]   ;;  %s28078_s10 = inlined_call_operand.vmem [shape: f32[1,6], index: 10, kind: input, shape index: {}]   ;;  %s28079_s11 = inlined_call_operand.vmem [shape: bf16[3,3,6,8], index: 11, kind: input, shape index: {}]   ;;  %s28080_s12 = inlined_call_operand.vmem [shape: f32[1,8], index: 12, kind: input, shape index: {}]   ;;  %s28081_s13 = inlined_call_operand.vmem [shape: bf16[3,3,8,32], index: 13, kind: input, shape index: {}]   ;;  %s28082_s14 = inlined_call_operand.vmem [shape: bf16[3,3,8,32], index: 14, kind: input, shape index: {}]   ;;  %s28083_s15 = inlined_call_operand.vmem [shape: bf16[3,3,8,32], index: 15, kind: input, shape index: {}]   ;;  %s28084_s16 = inlined_call_operand.vmem [shape: bf16[32,32], index: 16, kind: input, shape index: {}]   ;;  %s28085_s17 = inlined_call_operand.vmem [shape: f32[1,32], index: 17, kind: input, shape index: {}]   ;;  %s28086_s18 = inlined_call_operand.hbm [shape: f32[2,16,16,32], index: 18, kind: output, shape index: {}]  }
   0x1   :  { %28106 = sst [smem:[#allocation52_spill]] %s28068_s0 }
   0x2   :  { %28107 = sst [smem:[#allocation53_spill]] %s28069_s1 }
   0x3   :  { %28108 = sst [smem:[#allocation54_spill]] %s28070_s2 }
   0x4   :  { %23 = vsyncpa [#allocation9], 0 }
   0x5   :  { %25 = vsyncpa [#allocation9 + $0x1], 0  ;;  %s24014_s27 = smov 0   ;;  %s24016_s28 = smov 0  }
   0x6   :  { %s24018_s29 = smov 0   ;;  %s24020_s30 = smov 0  }
   0x7 LB: > { %28109 = sst [smem:[#allocation11_spill]] %s23901_s27  ;;  %s24035_s0 = sadd.s32 4294967295, %s23913_s30   ;;  %s23913_s30 = sphi %s24020_s30, %s28199_s30   ;;  %s23909_s29 = sphi %s24018_s29, %s28204_s29   ;;  %s23905_s28 = sphi %s24016_s28, %s28203_s28   ;;  %s23901_s27 = sphi %s24014_s27, %s28202_s27  }
   0x8   : > { %28110 = sst [smem:[#allocation12_spill]] %s23909_s29  ;;  %s18092_s19 = sadd.s32 4294967294, %s23913_s30  }
   0x9   : > { %s24039_s1 = sadd.s32 1, %s23913_s30   ;;  %s421_s20 = sadd.s32 1, %s23909_s29 }
   0xa   : > { %28111 = sst [smem:[#allocation13_spill]] %s24039_s1  ;;  %s418_s21 = ssub.s32 %s23913_s30, %s24039_s1 }
   0xb   : > { %p431_p0 = scmp.ne.s32.totalorder %s23909_s29, %s23905_s28  ;;  %p419_p1 = scmp.eq.s32.totalorder %s418_s21, 0 }
   0xc   : > { %p432_p2 = scmp.eq.s32.totalorder %s24035_s0, 1  ;;  %p437_p3 = scmp.ne.s32.totalorder %s23905_s28, %s23901_s27 }
   0xd   : > { %p438_p4 = scmp.eq.s32.totalorder %s18092_s19, 1  ;;  %p18095_p7 = scmp.ge.s32.totalorder %s23913_s30, 1 }
   0xe   : > { %s24050_s22 = scalar_select %p419_p1, %s23909_s29, %s421_s20  }
   0xf   : > { %p24052_p5 = por %p432_p2, %p431_p0  ;;  %p24056_p6 = por %p438_p4, %p437_p3 }
  0x10   : > { %28112 = sst [smem:[#allocation14_spill]] %s24050_s22  ;;  %p515_p8 = scmp.lt.s32.totalorder %s23913_s30, 3 }
  0x11   : > { %s28114_s23 = scalar_select %p24056_p6, 1, 0 }
  0x12   : > { %p516_p9 = pnand %p18095_p7, %p515_p8 }
  0x13   : > { %28115 = sst [smem:[#allocation15_spill]] %s28114_s23 }
  0x14   : > { %519 = sbr.rel (%p516_p9) target bundleno = 3189 (0xc75), region = 92 }
  0x1b   : > { %s28116_s26 = sld [smem:[#allocation53_spill]]  ;;  %p569_p10 = scmp.lt.s32.totalorder %s24035_s0, 1  ;;  %v23815_v2 = vld [vmem:[%s28071_s3] sm:$0xff]   ;;  %vm1060_vm0 = vcmask 261120   ;;  %v23824_v4 = vld [vmem:[%s28071_s3 + $0x8] sm:$0xff]   ;;  %vm575_vm1 = vcmask 64512  }
  0x1c   : > { %s28117_s24 = sld [smem:[#allocation52_spill]]  ;;  %v24099_v7 = vld [vmem:[%s28073_s5] sm:$0xff]   ;;  %v28093_v21 = vmov 0.0   ;;  %v23832_v22 = vld [vmem:[%s28073_s5 + $0x8] sm:$0xff]   ;;  %vm578_vm2 = vcmask 58368   ;;  %vm1980_vm3 = vcmask 1041408  }
  0x1d   : > { %s570_s21 = scalar_select %p569_p10, %s24035_s0, 1  ;;  %583 = vst.msk [vmem:[#allocation2 + $0x30] sm:$0xff] %vm575_vm1, %v28093_v21  ;;  %584 = vst.msk [vmem:[#allocation2 + $0x38] sm:$0xff] %vm575_vm1, %v28093_v21  ;;  %v18172_v23 = vld [vmem:[%s28075_s7 + $0x2] sm:$0x3]  ;;  %vm631_vm4 = vcmask 31744  }
  0x1e   : > { %576 = vst.msk [vmem:[#allocation2] sm:$0xff] %vm575_vm1, %v28093_v21  ;;  %577 = vst.msk [vmem:[#allocation2 + $0x8] sm:$0xff] %vm575_vm1, %v28093_v21  ;;  %v1982_v24 = vsel %vm1980_vm3, %v18172_v23, 0  ;;  %vm634_vm5 = vcmask 25600   ;;  %v24729_v25 = vld [vmem:[%s28075_s7] sm:$0x3] }
  0x1f   : > { %s19111_s22 = sshll.u32 %s570_s21, 7  ;;  %580 = vst.msk [vmem:[#allocation2 + $0x18] sm:$0xff] %vm575_vm1, %v28093_v21  ;;  %581 = vst.msk [vmem:[#allocation2 + $0x20] sm:$0xff] %vm575_vm1, %v28093_v21  ;;  %s28118_s29 = sld [smem:[#allocation54_spill]]  ;;  %vm10040_vm6 = vcmask 1043456   ;;  %vm689_vm7 = vcmask 60416  }
  0x20   : > { %586 = vst.msk [vmem:[#allocation2 + $0x48] sm:$0xff] %vm575_vm1, %v28093_v21  ;;  %587 = vst.msk [vmem:[#allocation2 + $0x50] sm:$0xff] %vm575_vm1, %v28093_v21  ;;  %vm7353_vm8 = vcmask 1042432   ;;  %vm802_vm9 = vcmask 48128   ;;  %vm805_vm10 = vcmask 41984   ;;  %vm860_vm11 = vcmask 62464  }
  0x21   : > { %v23811_v0 = vld [vmem:[%s28116_s26] sm:$0xff]   ;;  %v23812_v1 = vld [vmem:[%s28116_s26 + $0x8] sm:$0xff]   ;;  %589 = vst.msk [vmem:[#allocation2 + $0x60] sm:$0xff] %vm575_vm1, %v28093_v21  ;;  %590 = vst.msk [vmem:[#allocation2 + $0x68] sm:$0xff] %vm575_vm1, %v28093_v21  ;;  %s19112_s19 = sshll.u32 %s24035_s0, 12  ;;  %s23916_s21 = smov [#allocation8]  }
  0x22   : > { %20103 = vmatprep.subr.bf16.mxu1 %v23811_v0  ;;  %s24076_s25 = scalar_lea.vmem %s28117_s24, %s19111_s22  ;;  %592 = vst.msk [vmem:[#allocation2 + $0x78] sm:$0xff] %vm575_vm1, %v28093_v21  ;;  %593 = vst.msk [vmem:[#allocation2 + $0x80] sm:$0xff] %vm575_vm1, %v28093_v21  ;;  %s566_s22 = sand.u32 1, %s23905_s28  }
  0x23   : > { %20104 = vmatpush3.bf16.msra.mxu1 %v23811_v0  ;;  %v24079_v3 = vld [vmem:[%s24076_s25] sm:$0xff]   ;;  %v24085_v5 = vld [vmem:[%s24076_s25 + $0x8] sm:$0xff]   ;;  %v24090_v6 = vld [vmem:[%s24076_s25 + $0x10] sm:$0xff]   ;;  %595 = vst.msk [vmem:[#allocation2 + $0x90] sm:$0xff] %vm575_vm1, %v28093_v21  ;;  %s18096_s24 = sshll.u32 %s566_s22, 8  ;;  %s28015_s1 = scalar_lea.hbm %s28086_s18, %s19112_s19 }
  0x24   : > { %20105 = vmatprep.subr.bf16.mxu1 %v23812_v1  ;;  %20107 = vmatprep.mubr.msk.bf16.mxu1 %vm1060_vm0, %v24079_v3  ;;  %v24102_v8 = vld [vmem:[%s24076_s25 + $0x18] sm:$0xff]   ;;  %v24105_v9 = vld [vmem:[%s24076_s25 + $0x20] sm:$0xff]   ;;  %v24113_v10 = vld [vmem:[%s24076_s25 + $0x28] sm:$0xff]   ;;  %596 = vst.msk [vmem:[#allocation2 + $0x98] sm:$0xff] %vm575_vm1, %v28093_v21  ;;  %s28027_s0 = scalar_lea.sflag [#allocation9], %s566_s22 }
  0x25   : > { %v24116_v11 = vld [vmem:[%s24076_s25 + $0x30] sm:$0xff]   ;;  %v24123_v12 = vld [vmem:[%s24076_s25 + $0x38] sm:$0xff]   ;;  %v24126_v13 = vld [vmem:[%s24076_s25 + $0x40] sm:$0xff]   ;;  %598 = vst.msk [vmem:[#allocation2 + $0xa8] sm:$0xff] %vm575_vm1, %v28093_v21 }
  0x26   : > { %v24133_v14 = vld [vmem:[%s24076_s25 + $0x48] sm:$0xff]   ;;  %v24136_v15 = vld [vmem:[%s24076_s25 + $0x50] sm:$0xff]   ;;  %v24143_v16 = vld [vmem:[%s24076_s25 + $0x58] sm:$0xff]   ;;  %599 = vst.msk [vmem:[#allocation2 + $0xb0] sm:$0xff] %vm575_vm1, %v28093_v21 }
  0x27   : > { %20106 = vmatpush3.bf16.msra.mxu1 %v23812_v1  ;;  %v24146_v17 = vld [vmem:[%s24076_s25 + $0x60] sm:$0xff]   ;;  %v24153_v18 = vld [vmem:[%s24076_s25 + $0x68] sm:$0xff]   ;;  %v24156_v19 = vld [vmem:[%s24076_s25 + $0x70] sm:$0xff]   ;;  %601 = vst.msk [vmem:[#allocation2 + $0xc0] sm:$0xff] %vm575_vm1, %v28093_v21 }
  0x28   : > { %20139 = vmatprep.subr.bf16.mxu1 %v23815_v2  ;;  %v24163_v20 = vld [vmem:[%s24076_s25 + $0x78] sm:$0xff]   ;;  %602 = vst.msk [vmem:[#allocation2 + $0xc8] sm:$0xff] %vm575_vm1, %v28093_v21  ;;  %604 = vst.msk [vmem:[#allocation2 + $0xd8] sm:$0xff] %vm575_vm1, %v28093_v21  ;;  %v24743_v29 = vld [vmem:[%s28118_s29] ss:$0 sm:$0xff] }
  0x29   : > { %605 = vst.msk [vmem:[#allocation2 + $0xe0] sm:$0xff] %vm575_vm1, %v28093_v21  ;;  %607 = vst.msk [vmem:[#allocation2 + $0xf0] sm:$0xff] %vm575_vm1, %v28093_v21  ;;  %v18460_v1 = vld [vmem:[%s28077_s9 + $0x10] sm:$0x3] }
  0x2a   : > { %20108 = vmatmul.mubr.msk.bf16.vlgmr.msra.gmra.mrb[0].mxu1 %vm1060_vm0, %v24085_v5  ;;  %608 = vst.msk [vmem:[#allocation2 + $0xf8] sm:$0xff] %vm575_vm1, %v28093_v21  ;;  %610 = vst.msk [vmem:[#allocation2 + $0x108] sm:$0xff] %vm575_vm1, %v28093_v21  ;;  %23732 = vmatprep.subr.msk.bf16.mxu0 %vm1980_vm3, %v18460_v1 }
  0x2b   : > { %20140 = vmatpush3.bf16.msra.mxu1 %v23815_v2  ;;  %20111 = vmatprep.mubr.msk.bf16.mxu1 %vm1060_vm0, %v24090_v6  ;;  %611 = vst.msk [vmem:[#allocation2 + $0x110] sm:$0xff] %vm575_vm1, %v28093_v21  ;;  %613 = vst.msk [vmem:[#allocation2 + $0x120] sm:$0xff] %vm575_vm1, %v28093_v21 }
  0x2c   : > { %20141 = vmatprep.subr.bf16.mxu1 %v23824_v4  ;;  %614 = vst.msk [vmem:[#allocation2 + $0x128] sm:$0xff] %vm575_vm1, %v28093_v21  ;;  %616 = vst.msk [vmem:[#allocation2 + $0x138] sm:$0xff] %vm575_vm1, %v28093_v21 }
  0x2d   : > { %617 = vst.msk [vmem:[#allocation2 + $0x140] sm:$0xff] %vm575_vm1, %v28093_v21  ;;  %619 = vst.msk [vmem:[#allocation2 + $0x150] sm:$0xff] %vm575_vm1, %v28093_v21 }
  0x2e   : > { %620 = vst.msk [vmem:[#allocation2 + $0x158] sm:$0xff] %vm575_vm1, %v28093_v21  ;;  %622 = vst.msk [vmem:[#allocation2 + $0x168] sm:$0xff] %vm575_vm1, %v28093_v21 }
  0x2f   : > { %20142 = vmatpush3.bf16.msra.mxu1 %v23824_v4  ;;  %623 = vst.msk [vmem:[#allocation2 + $0x170] sm:$0xff] %vm575_vm1, %v28093_v21  ;;  %625 = vst.msk [vmem:[#allocation2 + $0x180] sm:$0xff] %vm575_vm1, %v28093_v21 }
  0x30   : > { %20175 = vmatprep.subr.bf16.mxu1 %v24099_v7  ;;  %626 = vst.msk [vmem:[#allocation2 + $0x188] sm:$0xff] %vm575_vm1, %v28093_v21  ;;  %628 = vst.msk [vmem:[#allocation2 + $0x198] sm:$0xff] %vm575_vm1, %v28093_v21 }
  0x31   : > { %629 = vst.msk [vmem:[#allocation2 + $0x1a0] sm:$0xff] %vm575_vm1, %v28093_v21  ;;  %687 = vst.msk [vmem:[#allocation4] sm:$0xff] %vm575_vm1, %v28093_v21 }
  0x32   : > { %20112 = vmatmul.mubr.msk.bf16.gmra.mrb[4].mxu1 %vm1060_vm0, %v24102_v8  ;;  %688 = vst.msk [vmem:[#allocation4 + $0x8] sm:$0xff] %vm575_vm1, %v28093_v21  ;;  %691 = vst.msk [vmem:[#allocation4 + $0x18] sm:$0xff] %vm575_vm1, %v28093_v21 }
  0x33   : > { %20115 = vmatprep.mubr.msk.bf16.mxu1 %vm1060_vm0, %v24105_v9  ;;  %692 = vst.msk [vmem:[#allocation4 + $0x20] sm:$0xff] %vm575_vm1, %v28093_v21  ;;  %694 = vst.msk [vmem:[#allocation4 + $0x30] sm:$0xff] %vm575_vm1, %v28093_v21 }
  0x34   : > { %695 = vst.msk [vmem:[#allocation4 + $0x38] sm:$0xff] %vm575_vm1, %v28093_v21  ;;  %697 = vst.msk [vmem:[#allocation4 + $0x48] sm:$0xff] %vm575_vm1, %v28093_v21 }
  0x35   : > { %698 = vst.msk [vmem:[#allocation4 + $0x50] sm:$0xff] %vm575_vm1, %v28093_v21  ;;  %700 = vst.msk [vmem:[#allocation4 + $0x60] sm:$0xff] %vm575_vm1, %v28093_v21 }
  0x36   : > { %701 = vst.msk [vmem:[#allocation4 + $0x68] sm:$0xff] %vm575_vm1, %v28093_v21  ;;  %703 = vst.msk [vmem:[#allocation4 + $0x78] sm:$0xff] %vm575_vm1, %v28093_v21 }
  0x37   : > { %704 = vst.msk [vmem:[#allocation4 + $0x80] sm:$0xff] %vm575_vm1, %v28093_v21  ;;  %706 = vst.msk [vmem:[#allocation4 + $0x90] sm:$0xff] %vm575_vm1, %v28093_v21 }
  0x38   : > { %707 = vst.msk [vmem:[#allocation4 + $0x98] sm:$0xff] %vm575_vm1, %v28093_v21  ;;  %709 = vst.msk [vmem:[#allocation4 + $0xa8] sm:$0xff] %vm575_vm1, %v28093_v21 }
  0x39   : > { %710 = vst.msk [vmem:[#allocation4 + $0xb0] sm:$0xff] %vm575_vm1, %v28093_v21  ;;  %712 = vst.msk [vmem:[#allocation4 + $0xc0] sm:$0xff] %vm575_vm1, %v28093_v21 }
  0x3a   : > { %20116 = vmatmul.mubr.msk.bf16.gmra.mrb[8].mxu1 %vm1060_vm0, %v24113_v10  ;;  %713 = vst.msk [vmem:[#allocation4 + $0xc8] sm:$0xff] %vm575_vm1, %v28093_v21  ;;  %715 = vst.msk [vmem:[#allocation4 + $0xd8] sm:$0xff] %vm575_vm1, %v28093_v21 }
  0x3b   : > { %20119 = vmatprep.mubr.msk.bf16.mxu1 %vm1060_vm0, %v24116_v11  ;;  %716 = vst.msk [vmem:[#allocation4 + $0xe0] sm:$0xff] %vm575_vm1, %v28093_v21  ;;  %718 = vst.msk [vmem:[#allocation4 + $0xf0] sm:$0xff] %vm575_vm1, %v28093_v21 }
  0x3c   : > { %719 = vst.msk [vmem:[#allocation4 + $0xf8] sm:$0xff] %vm575_vm1, %v28093_v21  ;;  %721 = vst.msk [vmem:[#allocation4 + $0x108] sm:$0xff] %vm575_vm1, %v28093_v21 }
  0x3d   : > { %722 = vst.msk [vmem:[#allocation4 + $0x110] sm:$0xff] %vm575_vm1, %v28093_v21  ;;  %724 = vst.msk [vmem:[#allocation4 + $0x120] sm:$0xff] %vm575_vm1, %v28093_v21 }
  0x3e   : > { %725 = vst.msk [vmem:[#allocation4 + $0x128] sm:$0xff] %vm575_vm1, %v28093_v21  ;;  %727 = vst.msk [vmem:[#allocation4 + $0x138] sm:$0xff] %vm575_vm1, %v28093_v21 }
  0x3f   : > { %728 = vst.msk [vmem:[#allocation4 + $0x140] sm:$0xff] %vm575_vm1, %v28093_v21  ;;  %730 = vst.msk [vmem:[#allocation4 + $0x150] sm:$0xff] %vm575_vm1, %v28093_v21 }
  0x40   : > { %731 = vst.msk [vmem:[#allocation4 + $0x158] sm:$0xff] %vm575_vm1, %v28093_v21  ;;  %733 = vst.msk [vmem:[#allocation4 + $0x168] sm:$0xff] %vm575_vm1, %v28093_v21 }
  0x41   : > { %734 = vst.msk [vmem:[#allocation4 + $0x170] sm:$0xff] %vm575_vm1, %v28093_v21  ;;  %736 = vst.msk [vmem:[#allocation4 + $0x180] sm:$0xff] %vm575_vm1, %v28093_v21 }
  0x42   : > { %20120 = vmatmul.mubr.msk.bf16.gmra.mrb[12].mxu1 %vm1060_vm0, %v24123_v12  ;;  %737 = vst.msk [vmem:[#allocation4 + $0x188] sm:$0xff] %vm575_vm1, %v28093_v21  ;;  %739 = vst.msk [vmem:[#allocation4 + $0x198] sm:$0xff] %vm575_vm1, %v28093_v21 }
  0x43   : > { %20123 = vmatprep.mubr.msk.bf16.mxu1 %vm1060_vm0, %v24126_v13  ;;  %740 = vst.msk [vmem:[#allocation4 + $0x1a0] sm:$0xff] %vm575_vm1, %v28093_v21  ;;  %742 = vst.msk [vmem:[#allocation4 + $0x1b0] sm:$0xff] %vm575_vm1, %v28093_v21 }
  0x44   : > { %743 = vst.msk [vmem:[#allocation4 + $0x1b8] sm:$0xff] %vm575_vm1, %v28093_v21  ;;  %745 = vst.msk [vmem:[#allocation4 + $0x1c8] sm:$0xff] %vm575_vm1, %v28093_v21 }
  0x45   : > { %746 = vst.msk [vmem:[#allocation4 + $0x1d0] sm:$0xff] %vm575_vm1, %v28093_v21  ;;  %858 = vst.msk [vmem:[#allocation7] sm:$0xff] %vm575_vm1, %v28093_v21 }
  0x46   : > { %859 = vst.msk [vmem:[#allocation7 + $0x8] sm:$0xff] %vm575_vm1, %v28093_v21  ;;  %862 = vst.msk [vmem:[#allocation7 + $0x18] sm:$0xff] %vm575_vm1, %v28093_v21 }
  0x47   : > { %863 = vst.msk [vmem:[#allocation7 + $0x20] sm:$0xff] %vm575_vm1, %v28093_v21  ;;  %865 = vst.msk [vmem:[#allocation7 + $0x30] sm:$0xff] %vm575_vm1, %v28093_v21 }
  0x48   : > { %866 = vst.msk [vmem:[#allocation7 + $0x38] sm:$0xff] %vm575_vm1, %v28093_v21  ;;  %868 = vst.msk [vmem:[#allocation7 + $0x48] sm:$0xff] %vm575_vm1, %v28093_v21 }
  0x49   : > { %869 = vst.msk [vmem:[#allocation7 + $0x50] sm:$0xff] %vm575_vm1, %v28093_v21  ;;  %871 = vst.msk [vmem:[#allocation7 + $0x60] sm:$0xff] %vm575_vm1, %v28093_v21 }
  0x4a   : > { %20124 = vmatmul.mubr.msk.bf16.gmra.mrb[16].mxu1 %vm1060_vm0, %v24133_v14  ;;  %872 = vst.msk [vmem:[#allocation7 + $0x68] sm:$0xff] %vm575_vm1, %v28093_v21  ;;  %874 = vst.msk [vmem:[#allocation7 + $0x78] sm:$0xff] %vm575_vm1, %v28093_v21 }
  0x4b   : > { %20127 = vmatprep.mubr.msk.bf16.mxu1 %vm1060_vm0, %v24136_v15  ;;  %875 = vst.msk [vmem:[#allocation7 + $0x80] sm:$0xff] %vm575_vm1, %v28093_v21  ;;  %877 = vst.msk [vmem:[#allocation7 + $0x90] sm:$0xff] %vm575_vm1, %v28093_v21 }
  0x4c   : > { %878 = vst.msk [vmem:[#allocation7 + $0x98] sm:$0xff] %vm575_vm1, %v28093_v21  ;;  %880 = vst.msk [vmem:[#allocation7 + $0xa8] sm:$0xff] %vm575_vm1, %v28093_v21 }
  0x4d   : > { %881 = vst.msk [vmem:[#allocation7 + $0xb0] sm:$0xff] %vm575_vm1, %v28093_v21  ;;  %883 = vst.msk [vmem:[#allocation7 + $0xc0] sm:$0xff] %vm575_vm1, %v28093_v21 }
  0x4e   : > { %884 = vst.msk [vmem:[#allocation7 + $0xc8] sm:$0xff] %vm575_vm1, %v28093_v21  ;;  %886 = vst.msk [vmem:[#allocation7 + $0xd8] sm:$0xff] %vm575_vm1, %v28093_v21 }
  0x4f   : > { %887 = vst.msk [vmem:[#allocation7 + $0xe0] sm:$0xff] %vm575_vm1, %v28093_v21  ;;  %889 = vst.msk [vmem:[#allocation7 + $0xf0] sm:$0xff] %vm575_vm1, %v28093_v21 }
  0x50   : > { %890 = vst.msk [vmem:[#allocation7 + $0xf8] sm:$0xff] %vm575_vm1, %v28093_v21  ;;  %892 = vst.msk [vmem:[#allocation7 + $0x108] sm:$0xff] %vm575_vm1, %v28093_v21 }
  0x51   : > { %893 = vst.msk [vmem:[#allocation7 + $0x110] sm:$0xff] %vm575_vm1, %v28093_v21  ;;  %895 = vst.msk [vmem:[#allocation7 + $0x120] sm:$0xff] %vm575_vm1, %v28093_v21 }
  0x52   : > { %20128 = vmatmul.mubr.msk.bf16.gmra.mrb[20].mxu1 %vm1060_vm0, %v24143_v16  ;;  %896 = vst.msk [vmem:[#allocation7 + $0x128] sm:$0xff] %vm575_vm1, %v28093_v21  ;;  %898 = vst.msk [vmem:[#allocation7 + $0x138] sm:$0xff] %vm575_vm1, %v28093_v21 }
  0x53   : > { %20131 = vmatprep.mubr.msk.bf16.mxu1 %vm1060_vm0, %v24146_v17  ;;  %899 = vst.msk [vmem:[#allocation7 + $0x140] sm:$0xff] %vm575_vm1, %v28093_v21  ;;  %901 = vst.msk [vmem:[#allocation7 + $0x150] sm:$0xff] %vm575_vm1, %v28093_v21 }
  0x54   : > { %902 = vst.msk [vmem:[#allocation7 + $0x158] sm:$0xff] %vm575_vm1, %v28093_v21  ;;  %904 = vst.msk [vmem:[#allocation7 + $0x168] sm:$0xff] %vm575_vm1, %v28093_v21 }
  0x55   : > { %905 = vst.msk [vmem:[#allocation7 + $0x170] sm:$0xff] %vm575_vm1, %v28093_v21  ;;  %907 = vst.msk [vmem:[#allocation7 + $0x180] sm:$0xff] %vm575_vm1, %v28093_v21 }
  0x56   : > { %908 = vst.msk [vmem:[#allocation7 + $0x188] sm:$0xff] %vm575_vm1, %v28093_v21  ;;  %910 = vst.msk [vmem:[#allocation7 + $0x198] sm:$0xff] %vm575_vm1, %v28093_v21 }
  0x57   : > { %911 = vst.msk [vmem:[#allocation7 + $0x1a0] sm:$0xff] %vm575_vm1, %v28093_v21  ;;  %913 = vst.msk [vmem:[#allocation7 + $0x1b0] sm:$0xff] %vm575_vm1, %v28093_v21 }
  0x58   : > { %914 = vst.msk [vmem:[#allocation7 + $0x1b8] sm:$0xff] %vm575_vm1, %v28093_v21  ;;  %916 = vst.msk [vmem:[#allocation7 + $0x1c8] sm:$0xff] %vm575_vm1, %v28093_v21 }
  0x59   : > { %917 = vst.msk [vmem:[#allocation7 + $0x1d0] sm:$0xff] %vm575_vm1, %v28093_v21  ;;  %919 = vst.msk [vmem:[#allocation7 + $0x1e0] sm:$0xff] %vm575_vm1, %v28093_v21 }
  0x5a   : > { %20132 = vmatmul.mubr.msk.bf16.gmra.mrb[24].mxu1 %vm1060_vm0, %v24153_v18  ;;  %920 = vst.msk [vmem:[#allocation7 + $0x1e8] sm:$0xff] %vm575_vm1, %v28093_v21  ;;  %922 = vst.msk [vmem:[#allocation7 + $0x1f8] sm:$0xff] %vm575_vm1, %v28093_v21 }
  0x5b   : > { %20135 = vmatprep.mubr.msk.bf16.mxu1 %vm1060_vm0, %v24156_v19  ;;  %923 = vst.msk [vmem:[#allocation7 + $0x200] sm:$0xff] %vm575_vm1, %v28093_v21 }
  0x5c   : > { %585 = vst.msk [vmem:[#allocation2 + $0x40] sm:$0x3] %vm578_vm2, %v28093_v21  ;;  %579 = vst.msk [vmem:[#allocation2 + $0x10] sm:$0x3] %vm578_vm2, %v28093_v21 }
  0x5d   : > { %582 = vst.msk [vmem:[#allocation2 + $0x28] sm:$0x3] %vm578_vm2, %v28093_v21  ;;  %588 = vst.msk [vmem:[#allocation2 + $0x58] sm:$0x3] %vm578_vm2, %v28093_v21 }
  0x5e   : > { %591 = vst.msk [vmem:[#allocation2 + $0x70] sm:$0x3] %vm578_vm2, %v28093_v21  ;;  %594 = vst.msk [vmem:[#allocation2 + $0x88] sm:$0x3] %vm578_vm2, %v28093_v21 }
  0x5f   : > { %597 = vst.msk [vmem:[#allocation2 + $0xa0] sm:$0x3] %vm578_vm2, %v28093_v21  ;;  %600 = vst.msk [vmem:[#allocation2 + $0xb8] sm:$0x3] %vm578_vm2, %v28093_v21 }
  0x60   : > { %603 = vst.msk [vmem:[#allocation2 + $0xd0] sm:$0x3] %vm578_vm2, %v28093_v21  ;;  %606 = vst.msk [vmem:[#allocation2 + $0xe8] sm:$0x3] %vm578_vm2, %v28093_v21 }
  0x61   : > { %609 = vst.msk [vmem:[#allocation2 + $0x100] sm:$0x3] %vm578_vm2, %v28093_v21  ;;  %612 = vst.msk [vmem:[#allocation2 + $0x118] sm:$0x3] %vm578_vm2, %v28093_v21 }
  0x62   : > { %20136 = vmatmul.mubr.msk.bf16.gmra.mrb[28].mxu1 %vm1060_vm0, %v24163_v20  ;;  %615 = vst.msk [vmem:[#allocation2 + $0x130] sm:$0x3] %vm578_vm2, %v28093_v21  ;;  %618 = vst.msk [vmem:[#allocation2 + $0x148] sm:$0x3] %vm578_vm2, %v28093_v21 }
  0x63   : > { %20143 = vmatprep.mubr.msk.bf16.mxu1 %vm1060_vm0, %v24079_v3  ;;  %621 = vst.msk [vmem:[#allocation2 + $0x160] sm:$0x3] %vm578_vm2, %v28093_v21  ;;  %624 = vst.msk [vmem:[#allocation2 + $0x178] sm:$0x3] %vm578_vm2, %v28093_v21 }
  0x64   : > { %627 = vst.msk [vmem:[#allocation2 + $0x190] sm:$0x3] %vm578_vm2, %v28093_v21  ;;  %630 = vst.msk [vmem:[#allocation2 + $0x1a8] sm:$0x3] %vm578_vm2, %v28093_v21 }
  0x65   : > { %639 = vst.msk [vmem:[#allocation3 + $0x30] sm:$0xff] %vm631_vm4, %v28093_v21  ;;  %640 = vst.msk [vmem:[#allocation3 + $0x38] sm:$0xff] %vm631_vm4, %v28093_v21 }
  0x66   : > { %632 = vst.msk [vmem:[#allocation3] sm:$0xff] %vm631_vm4, %v28093_v21  ;;  %633 = vst.msk [vmem:[#allocation3 + $0x8] sm:$0xff] %vm631_vm4, %v28093_v21 }
  0x67   : > { %636 = vst.msk [vmem:[#allocation3 + $0x18] sm:$0xff] %vm631_vm4, %v28093_v21  ;;  %637 = vst.msk [vmem:[#allocation3 + $0x20] sm:$0xff] %vm631_vm4, %v28093_v21 }
  0x68   : > { %642 = vst.msk [vmem:[#allocation3 + $0x48] sm:$0xff] %vm631_vm4, %v28093_v21  ;;  %643 = vst.msk [vmem:[#allocation3 + $0x50] sm:$0xff] %vm631_vm4, %v28093_v21 }
  0x69   : > { %645 = vst.msk [vmem:[#allocation3 + $0x60] sm:$0xff] %vm631_vm4, %v28093_v21  ;;  %646 = vst.msk [vmem:[#allocation3 + $0x68] sm:$0xff] %vm631_vm4, %v28093_v21 }
  0x6a   : > { %20144 = vmatmul.mubr.msk.bf16.vlgmr.msra.gmra.mrb[32].mxu1 %vm1060_vm0, %v24085_v5  ;;  %648 = vst.msk [vmem:[#allocation3 + $0x78] sm:$0xff] %vm631_vm4, %v28093_v21  ;;  %649 = vst.msk [vmem:[#allocation3 + $0x80] sm:$0xff] %vm631_vm4, %v28093_v21 }
  0x6b   : > { %20147 = vmatprep.mubr.msk.bf16.mxu1 %vm1060_vm0, %v24090_v6  ;;  %20176 = vmatpush3.bf16.msra.mxu1 %v24099_v7  ;;  %651 = vst.msk [vmem:[#allocation3 + $0x90] sm:$0xff] %vm631_vm4, %v28093_v21  ;;  %652 = vst.msk [vmem:[#allocation3 + $0x98] sm:$0xff] %vm631_vm4, %v28093_v21 }
  0x6c   : > { %20177 = vmatprep.subr.bf16.mxu1 %v23832_v22  ;;  %654 = vst.msk [vmem:[#allocation3 + $0xa8] sm:$0xff] %vm631_vm4, %v28093_v21  ;;  %655 = vst.msk [vmem:[#allocation3 + $0xb0] sm:$0xff] %vm631_vm4, %v28093_v21 }
  0x6d   : > { %657 = vst.msk [vmem:[#allocation3 + $0xc0] sm:$0xff] %vm631_vm4, %v28093_v21  ;;  %658 = vst.msk [vmem:[#allocation3 + $0xc8] sm:$0xff] %vm631_vm4, %v28093_v21  ;;  %v1882_v26 = vld [vmem:[#allocation3 + $0x1] sm:$0xff] }
  0x6e   : > { %660 = vst.msk [vmem:[#allocation3 + $0xd8] sm:$0xff] %vm631_vm4, %v28093_v21  ;;  %661 = vst.msk [vmem:[#allocation3 + $0xe0] sm:$0xff] %vm631_vm4, %v28093_v21 }
  0x6f   : > { %20178 = vmatpush3.bf16.msra.mxu1 %v23832_v22  ;;  %663 = vst.msk [vmem:[#allocation3 + $0xf0] sm:$0xff] %vm631_vm4, %v28093_v21  ;;  %664 = vst.msk [vmem:[#allocation3 + $0xf8] sm:$0xff] %vm631_vm4, %v28093_v21 }
  0x70   : > { %23715 = vmatprep.subr.msk.bf16.mxu1 %vm1980_vm3, %v18172_v23  ;;  %666 = vst.msk [vmem:[#allocation3 + $0x108] sm:$0xff] %vm631_vm4, %v28093_v21  ;;  %667 = vst.msk [vmem:[#allocation3 + $0x110] sm:$0xff] %vm631_vm4, %v28093_v21 }
  0x71   : > { %669 = vst.msk [vmem:[#allocation3 + $0x120] sm:$0xff] %vm631_vm4, %v28093_v21  ;;  %670 = vst.msk [vmem:[#allocation3 + $0x128] sm:$0xff] %vm631_vm4, %v28093_v21 }
  0x72   : > { %20148 = vmatmul.mubr.msk.bf16.gmra.mrb[36].mxu1 %vm1060_vm0, %v24102_v8  ;;  %672 = vst.msk [vmem:[#allocation3 + $0x138] sm:$0xff] %vm631_vm4, %v28093_v21  ;;  %673 = vst.msk [vmem:[#allocation3 + $0x140] sm:$0xff] %vm631_vm4, %v28093_v21 }
  0x73   : > { %20151 = vmatprep.mubr.msk.bf16.mxu1 %vm1060_vm0, %v24105_v9  ;;  %675 = vst.msk [vmem:[#allocation3 + $0x150] sm:$0xff] %vm631_vm4, %v28093_v21  ;;  %676 = vst.msk [vmem:[#allocation3 + $0x158] sm:$0xff] %vm631_vm4, %v28093_v21 }
  0x74   : > { %678 = vst.msk [vmem:[#allocation3 + $0x168] sm:$0xff] %vm631_vm4, %v28093_v21  ;;  %679 = vst.msk [vmem:[#allocation3 + $0x170] sm:$0xff] %vm631_vm4, %v28093_v21 }
  0x75   : > { %681 = vst.msk [vmem:[#allocation3 + $0x180] sm:$0xff] %vm631_vm4, %v28093_v21  ;;  %682 = vst.msk [vmem:[#allocation3 + $0x188] sm:$0xff] %vm631_vm4, %v28093_v21 }
  0x76   : > { %684 = vst.msk [vmem:[#allocation3 + $0x198] sm:$0xff] %vm631_vm4, %v28093_v21  ;;  %685 = vst.msk [vmem:[#allocation3 + $0x1a0] sm:$0xff] %vm631_vm4, %v28093_v21 }
  0x77   : > { %748 = vst.msk [vmem:[#allocation5] sm:$0xff] %vm631_vm4, %v28093_v21  ;;  %749 = vst.msk [vmem:[#allocation5 + $0x8] sm:$0xff] %vm631_vm4, %v28093_v21 }
  0x78   : > { %751 = vst.msk [vmem:[#allocation5 + $0x18] sm:$0xff] %vm631_vm4, %v28093_v21  ;;  %752 = vst.msk [vmem:[#allocation5 + $0x20] sm:$0xff] %vm631_vm4, %v28093_v21 }
  0x79   : > { %754 = vst.msk [vmem:[#allocation5 + $0x30] sm:$0xff] %vm631_vm4, %v28093_v21  ;;  %755 = vst.msk [vmem:[#allocation5 + $0x38] sm:$0xff] %vm631_vm4, %v28093_v21 }
  0x7a   : > { %20152 = vmatmul.mubr.msk.bf16.gmra.mrb[40].mxu1 %vm1060_vm0, %v24113_v10  ;;  %757 = vst.msk [vmem:[#allocation5 + $0x48] sm:$0xff] %vm631_vm4, %v28093_v21  ;;  %758 = vst.msk [vmem:[#allocation5 + $0x50] sm:$0xff] %vm631_vm4, %v28093_v21 }
  0x7b   : > { %20155 = vmatprep.mubr.msk.bf16.mxu1 %vm1060_vm0, %v24116_v11  ;;  %760 = vst.msk [vmem:[#allocation5 + $0x60] sm:$0xff] %vm631_vm4, %v28093_v21  ;;  %761 = vst.msk [vmem:[#allocation5 + $0x68] sm:$0xff] %vm631_vm4, %v28093_v21 }
  0x7c   : > { %763 = vst.msk [vmem:[#allocation5 + $0x78] sm:$0xff] %vm631_vm4, %v28093_v21  ;;  %764 = vst.msk [vmem:[#allocation5 + $0x80] sm:$0xff] %vm631_vm4, %v28093_v21 }
  0x7d   : > { %766 = vst.msk [vmem:[#allocation5 + $0x90] sm:$0xff] %vm631_vm4, %v28093_v21  ;;  %767 = vst.msk [vmem:[#allocation5 + $0x98] sm:$0xff] %vm631_vm4, %v28093_v21 }
  0x7e   : > { %769 = vst.msk [vmem:[#allocation5 + $0xa8] sm:$0xff] %vm631_vm4, %v28093_v21  ;;  %770 = vst.msk [vmem:[#allocation5 + $0xb0] sm:$0xff] %vm631_vm4, %v28093_v21 }
  0x7f   : > { %772 = vst.msk [vmem:[#allocation5 + $0xc0] sm:$0xff] %vm631_vm4, %v28093_v21  ;;  %773 = vst.msk [vmem:[#allocation5 + $0xc8] sm:$0xff] %vm631_vm4, %v28093_v21 }
  0x80   : > { %775 = vst.msk [vmem:[#allocation5 + $0xd8] sm:$0xff] %vm631_vm4, %v28093_v21  ;;  %776 = vst.msk [vmem:[#allocation5 + $0xe0] sm:$0xff] %vm631_vm4, %v28093_v21 }
  0x81   : > { %778 = vst.msk [vmem:[#allocation5 + $0xf0] sm:$0xff] %vm631_vm4, %v28093_v21  ;;  %779 = vst.msk [vmem:[#allocation5 + $0xf8] sm:$0xff] %vm631_vm4, %v28093_v21 }
  0x82   : > { %20156 = vmatmul.mubr.msk.bf16.gmra.mrb[44].mxu1 %vm1060_vm0, %v24123_v12  ;;  %781 = vst.msk [vmem:[#allocation5 + $0x108] sm:$0xff] %vm631_vm4, %v28093_v21  ;;  %782 = vst.msk [vmem:[#allocation5 + $0x110] sm:$0xff] %vm631_vm4, %v28093_v21 }
  0x83   : > { %20159 = vmatprep.mubr.msk.bf16.mxu1 %vm1060_vm0, %v24126_v13  ;;  %784 = vst.msk [vmem:[#allocation5 + $0x120] sm:$0xff] %vm631_vm4, %v28093_v21  ;;  %785 = vst.msk [vmem:[#allocation5 + $0x128] sm:$0xff] %vm631_vm4, %v28093_v21 }
  0x84   : > { %787 = vst.msk [vmem:[#allocation5 + $0x138] sm:$0xff] %vm631_vm4, %v28093_v21  ;;  %788 = vst.msk [vmem:[#allocation5 + $0x140] sm:$0xff] %vm631_vm4, %v28093_v21 }
  0x85   : > { %790 = vst.msk [vmem:[#allocation5 + $0x150] sm:$0xff] %vm631_vm4, %v28093_v21  ;;  %791 = vst.msk [vmem:[#allocation5 + $0x158] sm:$0xff] %vm631_vm4, %v28093_v21 }
  0x86   : > { %793 = vst.msk [vmem:[#allocation5 + $0x168] sm:$0xff] %vm631_vm4, %v28093_v21  ;;  %794 = vst.msk [vmem:[#allocation5 + $0x170] sm:$0xff] %vm631_vm4, %v28093_v21 }
  0x87   : > { %796 = vst.msk [vmem:[#allocation5 + $0x180] sm:$0xff] %vm631_vm4, %v28093_v21  ;;  %797 = vst.msk [vmem:[#allocation5 + $0x188] sm:$0xff] %vm631_vm4, %v28093_v21 }
  0x88   : > { %799 = vst.msk [vmem:[#allocation5 + $0x198] sm:$0xff] %vm631_vm4, %v28093_v21  ;;  %800 = vst.msk [vmem:[#allocation5 + $0x1a0] sm:$0xff] %vm631_vm4, %v28093_v21 }
  0x89   : > { %641 = vst.msk [vmem:[#allocation3 + $0x40] sm:$0x3] %vm634_vm5, %v28093_v21  ;;  %635 = vst.msk [vmem:[#allocation3 + $0x10] sm:$0x3] %vm634_vm5, %v28093_v21 }
  0x8a   : > { %20160 = vmatmul.mubr.msk.bf16.gmra.mrb[48].mxu1 %vm1060_vm0, %v24133_v14  ;;  %638 = vst.msk [vmem:[#allocation3 + $0x28] sm:$0x3] %vm634_vm5, %v28093_v21  ;;  %644 = vst.msk [vmem:[#allocation3 + $0x58] sm:$0x3] %vm634_vm5, %v28093_v21 }
  0x8b   : > { %20163 = vmatprep.mubr.msk.bf16.mxu1 %vm1060_vm0, %v24136_v15  ;;  %647 = vst.msk [vmem:[#allocation3 + $0x70] sm:$0x3] %vm634_vm5, %v28093_v21  ;;  %650 = vst.msk [vmem:[#allocation3 + $0x88] sm:$0x3] %vm634_vm5, %v28093_v21 }
  0x8c   : > { %653 = vst.msk [vmem:[#allocation3 + $0xa0] sm:$0x3] %vm634_vm5, %v28093_v21  ;;  %656 = vst.msk [vmem:[#allocation3 + $0xb8] sm:$0x3] %vm634_vm5, %v28093_v21 }
  0x8d   : > { %659 = vst.msk [vmem:[#allocation3 + $0xd0] sm:$0x3] %vm634_vm5, %v28093_v21  ;;  %662 = vst.msk [vmem:[#allocation3 + $0xe8] sm:$0x3] %vm634_vm5, %v28093_v21 }
  0x8e   : > { %665 = vst.msk [vmem:[#allocation3 + $0x100] sm:$0x3] %vm634_vm5, %v28093_v21  ;;  %668 = vst.msk [vmem:[#allocation3 + $0x118] sm:$0x3] %vm634_vm5, %v28093_v21 }
  0x8f   : > { %671 = vst.msk [vmem:[#allocation3 + $0x130] sm:$0x3] %vm634_vm5, %v28093_v21  ;;  %674 = vst.msk [vmem:[#allocation3 + $0x148] sm:$0x3] %vm634_vm5, %v28093_v21 }
  0x90   : > { %677 = vst.msk [vmem:[#allocation3 + $0x160] sm:$0x3] %vm634_vm5, %v28093_v21  ;;  %680 = vst.msk [vmem:[#allocation3 + $0x178] sm:$0x3] %vm634_vm5, %v28093_v21  ;;  %v1883_v27 = vld [vmem:[#allocation3 + $0x9] sm:$0xff] }
  0x91   : > { %683 = vst.msk [vmem:[#allocation3 + $0x190] sm:$0x3] %vm634_vm5, %v28093_v21  ;;  %686 = vst.msk [vmem:[#allocation3 + $0x1a8] sm:$0x3] %vm634_vm5, %v28093_v21  ;;  %v1914_v28 = vpack.c.bf16 %v1883_v27, %v1882_v26 }
  0x92   : > { %20164 = vmatmul.mubr.msk.bf16.gmra.mrb[52].mxu1 %vm1060_vm0, %v24143_v16  ;;  %750 = vst.msk [vmem:[#allocation5 + $0x10] sm:$0x3] %vm634_vm5, %v28093_v21  ;;  %753 = vst.msk [vmem:[#allocation5 + $0x28] sm:$0x3] %vm634_vm5, %v28093_v21 }
  0x93   : > { %20167 = vmatprep.mubr.msk.bf16.mxu1 %vm1060_vm0, %v24146_v17  ;;  %756 = vst.msk [vmem:[#allocation5 + $0x40] sm:$0x3] %vm634_vm5, %v28093_v21  ;;  %759 = vst.msk [vmem:[#allocation5 + $0x58] sm:$0x3] %vm634_vm5, %v28093_v21 }
  0x94   : > { %762 = vst.msk [vmem:[#allocation5 + $0x70] sm:$0x3] %vm634_vm5, %v28093_v21  ;;  %765 = vst.msk [vmem:[#allocation5 + $0x88] sm:$0x3] %vm634_vm5, %v28093_v21 }
  0x95   : > { %768 = vst.msk [vmem:[#allocation5 + $0xa0] sm:$0x3] %vm634_vm5, %v28093_v21  ;;  %771 = vst.msk [vmem:[#allocation5 + $0xb8] sm:$0x3] %vm634_vm5, %v28093_v21 }
  0x96   : > { %774 = vst.msk [vmem:[#allocation5 + $0xd0] sm:$0x3] %vm634_vm5, %v28093_v21  ;;  %777 = vst.msk [vmem:[#allocation5 + $0xe8] sm:$0x3] %vm634_vm5, %v28093_v21 }
  0x97   : > { %780 = vst.msk [vmem:[#allocation5 + $0x100] sm:$0x3] %vm634_vm5, %v28093_v21  ;;  %783 = vst.msk [vmem:[#allocation5 + $0x118] sm:$0x3] %vm634_vm5, %v28093_v21 }
  0x98   : > { %786 = vst.msk [vmem:[#allocation5 + $0x130] sm:$0x3] %vm634_vm5, %v28093_v21  ;;  %789 = vst.msk [vmem:[#allocation5 + $0x148] sm:$0x3] %vm634_vm5, %v28093_v21 }
  0x99   : > { %792 = vst.msk [vmem:[#allocation5 + $0x160] sm:$0x3] %vm634_vm5, %v28093_v21  ;;  %795 = vst.msk [vmem:[#allocation5 + $0x178] sm:$0x3] %vm634_vm5, %v28093_v21 }
  0x9a   : > { %20168 = vmatmul.mubr.msk.bf16.gmra.mrb[56].mxu1 %vm1060_vm0, %v24153_v18  ;;  %798 = vst.msk [vmem:[#allocation5 + $0x190] sm:$0x3] %vm634_vm5, %v28093_v21  ;;  %801 = vst.msk [vmem:[#allocation5 + $0x1a8] sm:$0x3] %vm634_vm5, %v28093_v21 }
  0x9b   : > { %20171 = vmatprep.mubr.msk.bf16.mxu1 %vm1060_vm0, %v24156_v19 }
  0xa2   : > { %20172 = vmatmul.mubr.msk.bf16.gmra.mrb[60].mxu1 %vm1060_vm0, %v24163_v20 }
  0xa3   : > { %20179 = vmatprep.mubr.msk.bf16.mxu1 %vm1060_vm0, %v24079_v3  ;;  %v6907_v3 = vsel %vm1980_vm3, %v18460_v1, 0 }
  0xa4   : > { %20790 = vmatpush3.bf16.msra.mxu0 %v6907_v3  ;;  %v24815_v3 = vld [vmem:[%s28072_s4] ss:$0 sm:$0xff] }
  0xaa   : > { %20180 = vmatmul.mubr.msk.bf16.vlgmr.msra.gmra.mrb[64].mxu1 %vm1060_vm0, %v24085_v5 }
  0xab   : > { %20183 = vmatprep.mubr.msk.bf16.mxu1 %vm1060_vm0, %v24090_v6  ;;  %20212 = vmatpush3.bf16.msra.mxu1 %v1982_v24 }
  0xac   : > { %23716 = vmatprep.subr.msk.bf16.mxu1 %vm1980_vm3, %v24729_v25 }
  0xb2   : > { %20184 = vmatmul.mubr.msk.bf16.gmra.mrb[68].mxu1 %vm1060_vm0, %v24102_v8 }
  0xb3   : > { %20187 = vmatprep.mubr.msk.bf16.mxu1 %vm1060_vm0, %v24105_v9 }
  0xba   : > { %20188 = vmatmul.mubr.msk.bf16.gmra.mrb[72].mxu1 %vm1060_vm0, %v24113_v10 }
  0xbb   : > { %20191 = vmatprep.mubr.msk.bf16.mxu1 %vm1060_vm0, %v24116_v11 }
  0xc2   : > { %20192 = vmatmul.mubr.msk.bf16.gmra.mrb[76].mxu1 %vm1060_vm0, %v24123_v12 }
  0xc3   : > { %20195 = vmatprep.mubr.msk.bf16.mxu1 %vm1060_vm0, %v24126_v13 }
  0xca   : > { %20196 = vmatmul.mubr.msk.bf16.gmra.mrb[80].mxu1 %vm1060_vm0, %v24133_v14 }
  0xcb   : > { %20199 = vmatprep.mubr.msk.bf16.mxu1 %vm1060_vm0, %v24136_v15 }
  0xd2   : > { %20200 = vmatmul.mubr.msk.bf16.gmra.mrb[84].mxu1 %vm1060_vm0, %v24143_v16 }
  0xd3   : > { %20203 = vmatprep.mubr.msk.bf16.mxu1 %vm1060_vm0, %v24146_v17 }
  0xda   : > { %20204 = vmatmul.mubr.msk.bf16.gmra.mrb[88].mxu1 %vm1060_vm0, %v24153_v18 }
  0xdb   : > { %20207 = vmatprep.mubr.msk.bf16.mxu1 %vm1060_vm0, %v24156_v19 }
  0xe2   : > { %20208 = vmatmul.mubr.msk.bf16.gmra.mrb[92].mxu1 %vm1060_vm0, %v24163_v20 }
  0xe3   : > { %20213 = vmatprep.mubr.msk.bf16.mxu1 %vm631_vm4, %v1914_v28 }
  0xfd   : > { %v20109_v30 = vpop.f32.mrb[0].mxu1 }
  0xfe   : > { %v1152_v31 = vadd.f32 %v20109_v30, %v24743_v29  ;;  %v1143_v32 = vpop.f32.mrb[1].mxu1 }
  0xff   : > { %v1144_v33 = vadd.f32 %v24743_v29, %v1143_v32  ;;  %v20110_v34 = vpop.f32.mrb[2].mxu1 }
 0x100   : > { %v1272_v35 = vmax.f32 %v1152_v31, 0.0  ;;  %v1155_v36 = vadd.f32 %v20110_v34, %v24743_v29  ;;  %v1146_v37 = vpop.f32.mrb[3].mxu1 }
 0x101   : > { %v1270_v38 = vmax.f32 %v1144_v33, 0.0  ;;  %v1147_v39 = vadd.f32 %v24743_v29, %v1146_v37 }
 0x102   : > { %1305 = vst.msk [vmem:[#allocation2 + $0x31] sm:$0xff] %vm575_vm1, %v1272_v35  ;;  %v1273_v40 = vmax.f32 %v1155_v36, 0.0 }
 0x103   : > { %1303 = vst.msk [vmem:[#allocation2 + $0x19] sm:$0xff] %vm575_vm1, %v1270_v38  ;;  %v1271_v41 = vmax.f32 %v1147_v39, 0.0 }
 0x104   : > { %1306 = vst.msk [vmem:[#allocation2 + $0x39] sm:$0xff] %vm575_vm1, %v1273_v40 }
 0x105   : > { %1304 = vst.msk [vmem:[#allocation2 + $0x21] sm:$0xff] %vm575_vm1, %v1271_v41  ;;  %v20113_v42 = vpop.f32.mrb[4].mxu1 }
 0x106   : > { %v1168_v43 = vadd.f32 %v20113_v42, %v24743_v29  ;;  %v1159_v44 = vpop.f32.mrb[5].mxu1 }
 0x107   : > { %v1160_v45 = vadd.f32 %v24743_v29, %v1159_v44  ;;  %v20114_v46 = vpop.f32.mrb[6].mxu1 }
 0x108   : > { %v1276_v47 = vmax.f32 %v1168_v43, 0.0  ;;  %v1171_v48 = vadd.f32 %v20114_v46, %v24743_v29  ;;  %v1162_v49 = vpop.f32.mrb[7].mxu1 }
 0x109   : > { %v1274_v50 = vmax.f32 %v1160_v45, 0.0  ;;  %v1163_v51 = vadd.f32 %v24743_v29, %v1162_v49 }
 0x10a   : > { %1309 = vst.msk [vmem:[#allocation2 + $0x61] sm:$0xff] %vm575_vm1, %v1276_v47  ;;  %v1277_v52 = vmax.f32 %v1171_v48, 0.0 }
 0x10b   : > { %1307 = vst.msk [vmem:[#allocation2 + $0x49] sm:$0xff] %vm575_vm1, %v1274_v50  ;;  %v1275_v53 = vmax.f32 %v1163_v51, 0.0 }
 0x10c   : > { %1310 = vst.msk [vmem:[#allocation2 + $0x69] sm:$0xff] %vm575_vm1, %v1277_v52 }
 0x10d   : > { %1308 = vst.msk [vmem:[#allocation2 + $0x51] sm:$0xff] %vm575_vm1, %v1275_v53  ;;  %v20117_v54 = vpop.f32.mrb[8].mxu1 }
 0x10e   : > { %v1184_v55 = vadd.f32 %v20117_v54, %v24743_v29  ;;  %v1175_v56 = vpop.f32.mrb[9].mxu1 }
 0x10f   : > { %v1176_v57 = vadd.f32 %v24743_v29, %v1175_v56  ;;  %v20118_v58 = vpop.f32.mrb[10].mxu1 }
 0x110   : > { %v1280_v59 = vmax.f32 %v1184_v55, 0.0  ;;  %v1187_v60 = vadd.f32 %v20118_v58, %v24743_v29  ;;  %v1178_v61 = vpop.f32.mrb[11].mxu1 }
 0x111   : > { %v1278_v62 = vmax.f32 %v1176_v57, 0.0  ;;  %v1179_v63 = vadd.f32 %v24743_v29, %v1178_v61 }
 0x112   : > { %1313 = vst.msk [vmem:[#allocation2 + $0x91] sm:$0xff] %vm575_vm1, %v1280_v59  ;;  %v1281_v0 = vmax.f32 %v1187_v60, 0.0 }
 0x113   : > { %1311 = vst.msk [vmem:[#allocation2 + $0x79] sm:$0xff] %vm575_vm1, %v1278_v62  ;;  %v1279_v2 = vmax.f32 %v1179_v63, 0.0 }
 0x114   : > { %1314 = vst.msk [vmem:[#allocation2 + $0x99] sm:$0xff] %vm575_vm1, %v1281_v0 }
 0x115   : > { %1312 = vst.msk [vmem:[#allocation2 + $0x81] sm:$0xff] %vm575_vm1, %v1279_v2  ;;  %v20121_v4 = vpop.f32.mrb[12].mxu1 }
 0x116   : > { %v1200_v5 = vadd.f32 %v20121_v4, %v24743_v29  ;;  %v1191_v6 = vpop.f32.mrb[13].mxu1 }
 0x117   : > { %v1192_v7 = vadd.f32 %v24743_v29, %v1191_v6  ;;  %v20122_v8 = vpop.f32.mrb[14].mxu1 }
 0x118   : > { %v1284_v9 = vmax.f32 %v1200_v5, 0.0  ;;  %v1203_v10 = vadd.f32 %v20122_v8, %v24743_v29  ;;  %v1194_v11 = vpop.f32.mrb[15].mxu1 }
 0x119   : > { %v1282_v12 = vmax.f32 %v1192_v7, 0.0  ;;  %v1195_v13 = vadd.f32 %v24743_v29, %v1194_v11 }
 0x11a   : > { %1317 = vst.msk [vmem:[#allocation2 + $0xc1] sm:$0xff] %vm575_vm1, %v1284_v9  ;;  %v1285_v14 = vmax.f32 %v1203_v10, 0.0 }
 0x11b   : > { %1315 = vst.msk [vmem:[#allocation2 + $0xa9] sm:$0xff] %vm575_vm1, %v1282_v12  ;;  %v1283_v15 = vmax.f32 %v1195_v13, 0.0 }
 0x11c   : > { %1318 = vst.msk [vmem:[#allocation2 + $0xc9] sm:$0xff] %vm575_vm1, %v1285_v14 }
 0x11d   : > { %1316 = vst.msk [vmem:[#allocation2 + $0xb1] sm:$0xff] %vm575_vm1, %v1283_v15  ;;  %v20125_v16 = vpop.f32.mrb[16].mxu1 }
 0x11e   : > { %v1216_v17 = vadd.f32 %v20125_v16, %v24743_v29  ;;  %v1207_v18 = vpop.f32.mrb[17].mxu1 }
 0x11f   : > { %v1208_v19 = vadd.f32 %v24743_v29, %v1207_v18  ;;  %v20126_v20 = vpop.f32.mrb[18].mxu1 }
 0x120   : > { %v1288_v22 = vmax.f32 %v1216_v17, 0.0  ;;  %v1219_v23 = vadd.f32 %v20126_v20, %v24743_v29  ;;  %v1210_v24 = vpop.f32.mrb[19].mxu1 }
 0x121   : > { %v1286_v26 = vmax.f32 %v1208_v19, 0.0  ;;  %v1211_v27 = vadd.f32 %v24743_v29, %v1210_v24 }
 0x122   : > { %1321 = vst.msk [vmem:[#allocation2 + $0xf1] sm:$0xff] %vm575_vm1, %v1288_v22  ;;  %v1289_v28 = vmax.f32 %v1219_v23, 0.0 }
 0x123   : > { %1319 = vst.msk [vmem:[#allocation2 + $0xd9] sm:$0xff] %vm575_vm1, %v1286_v26  ;;  %v1287_v30 = vmax.f32 %v1211_v27, 0.0 }
 0x124   : > { %1322 = vst.msk [vmem:[#allocation2 + $0xf9] sm:$0xff] %vm575_vm1, %v1289_v28 }
 0x125   : > { %1320 = vst.msk [vmem:[#allocation2 + $0xe1] sm:$0xff] %vm575_vm1, %v1287_v30  ;;  %v20129_v31 = vpop.f32.mrb[20].mxu1 }
 0x126   : > { %v1232_v32 = vadd.f32 %v20129_v31, %v24743_v29  ;;  %v1223_v33 = vpop.f32.mrb[21].mxu1 }
 0x127   : > { %v1224_v34 = vadd.f32 %v24743_v29, %v1223_v33  ;;  %v20130_v35 = vpop.f32.mrb[22].mxu1 }
 0x128   : > { %v1292_v36 = vmax.f32 %v1232_v32, 0.0  ;;  %v1235_v37 = vadd.f32 %v20130_v35, %v24743_v29  ;;  %v1226_v38 = vpop.f32.mrb[23].mxu1 }
 0x129   : > { %v1290_v39 = vmax.f32 %v1224_v34, 0.0  ;;  %v1227_v40 = vadd.f32 %v24743_v29, %v1226_v38 }
 0x12a   : > { %1325 = vst.msk [vmem:[#allocation2 + $0x121] sm:$0xff] %vm575_vm1, %v1292_v36  ;;  %v1293_v41 = vmax.f32 %v1235_v37, 0.0  ;;  %v2194_v36 = vsel %vm1980_vm3, %v24729_v25, 0  ;;  %v24850_v25 = vld [vmem:[%s28081_s13 + $0x4] sm:$0xf] }
 0x12b   : > { %1323 = vst.msk [vmem:[#allocation2 + $0x109] sm:$0xff] %vm575_vm1, %v1290_v39  ;;  %v1291_v42 = vmax.f32 %v1227_v40, 0.0  ;;  %v24841_v40 = vld [vmem:[%s28075_s7 + $0x4] sm:$0x3]  ;;  %23742 = vmatprep.subr.msk.bf16.mxu0 %vm10040_vm6, %v24850_v25 }
 0x12c   : > { %1326 = vst.msk [vmem:[#allocation2 + $0x129] sm:$0xff] %vm575_vm1, %v1293_v41 }
 0x12d   : > { %1324 = vst.msk [vmem:[#allocation2 + $0x111] sm:$0xff] %vm575_vm1, %v1291_v42  ;;  %v20133_v43 = vpop.f32.mrb[24].mxu1 }
 0x12e   : > { %v1248_v44 = vadd.f32 %v20133_v43, %v24743_v29  ;;  %v1239_v45 = vpop.f32.mrb[25].mxu1 }
 0x12f   : > { %v1240_v46 = vadd.f32 %v24743_v29, %v1239_v45  ;;  %v20134_v47 = vpop.f32.mrb[26].mxu1 }
 0x130   : > { %v1296_v48 = vmax.f32 %v1248_v44, 0.0  ;;  %v1251_v49 = vadd.f32 %v20134_v47, %v24743_v29  ;;  %v1242_v50 = vpop.f32.mrb[27].mxu1 }
 0x131   : > { %v1294_v51 = vmax.f32 %v1240_v46, 0.0  ;;  %v1243_v52 = vadd.f32 %v24743_v29, %v1242_v50 }
 0x132   : > { %1329 = vst.msk [vmem:[#allocation2 + $0x151] sm:$0xff] %vm575_vm1, %v1296_v48  ;;  %v1297_v53 = vmax.f32 %v1251_v49, 0.0 }
 0x133   : > { %1327 = vst.msk [vmem:[#allocation2 + $0x139] sm:$0xff] %vm575_vm1, %v1294_v51  ;;  %v1295_v54 = vmax.f32 %v1243_v52, 0.0 }
 0x134   : > { %1330 = vst.msk [vmem:[#allocation2 + $0x159] sm:$0xff] %vm575_vm1, %v1297_v53 }
 0x135   : > { %1328 = vst.msk [vmem:[#allocation2 + $0x141] sm:$0xff] %vm575_vm1, %v1295_v54  ;;  %v20137_v55 = vpop.f32.mrb[28].mxu1 }
 0x136   : > { %v1264_v56 = vadd.f32 %v20137_v55, %v24743_v29  ;;  %v1255_v57 = vpop.f32.mrb[29].mxu1 }
 0x137   : > { %v1256_v58 = vadd.f32 %v24743_v29, %v1255_v57  ;;  %v20138_v59 = vpop.f32.mrb[30].mxu1 }
 0x138   : > { %v1300_v60 = vmax.f32 %v1264_v56, 0.0  ;;  %v1267_v61 = vadd.f32 %v20138_v59, %v24743_v29  ;;  %v1258_v62 = vpop.f32.mrb[31].mxu1 }
 0x139   : > { %v1298_v63 = vmax.f32 %v1256_v58, 0.0  ;;  %v1259_v0 = vadd.f32 %v24743_v29, %v1258_v62 }
 0x13a   : > { %1333 = vst.msk [vmem:[#allocation2 + $0x181] sm:$0xff] %vm575_vm1, %v1300_v60  ;;  %v1301_v1 = vmax.f32 %v1267_v61, 0.0 }
 0x13b   : > { %1331 = vst.msk [vmem:[#allocation2 + $0x169] sm:$0xff] %vm575_vm1, %v1298_v63  ;;  %v1299_v2 = vmax.f32 %v1259_v0, 0.0 }
 0x13c   : > { %1334 = vst.msk [vmem:[#allocation2 + $0x189] sm:$0xff] %vm575_vm1, %v1301_v1 }
 0x13d   : > { %1332 = vst.msk [vmem:[#allocation2 + $0x171] sm:$0xff] %vm575_vm1, %v1299_v2  ;;  %v20145_v4 = vpop.f32.mrb[32].mxu1 }
 0x13e   : > { %v1401_v5 = vadd.f32 %v20145_v4, %v24815_v3  ;;  %v1392_v6 = vpop.f32.mrb[33].mxu1 }
 0x13f   : > { %v1393_v29 = vadd.f32 %v24815_v3, %v1392_v6  ;;  %v20146_v7 = vpop.f32.mrb[34].mxu1 }
 0x140   : > { %v1521_v8 = vmax.f32 %v1401_v5, 0.0  ;;  %v1404_v9 = vadd.f32 %v20146_v7, %v24815_v3  ;;  %v1395_v10 = vpop.f32.mrb[35].mxu1 }
 0x141   : > { %v1519_v11 = vmax.f32 %v1393_v29, 0.0  ;;  %v1396_v12 = vadd.f32 %v24815_v3, %v1395_v10 }
 0x142   : > { %1554 = vst.msk [vmem:[#allocation3 + $0x31] sm:$0xff] %vm631_vm4, %v1521_v8  ;;  %v1522_v13 = vmax.f32 %v1404_v9, 0.0 }
 0x143   : > { %1552 = vst.msk [vmem:[#allocation3 + $0x19] sm:$0xff] %vm631_vm4, %v1519_v11  ;;  %v1520_v14 = vmax.f32 %v1396_v12, 0.0 }
 0x144   : > { %1555 = vst.msk [vmem:[#allocation3 + $0x39] sm:$0xff] %vm631_vm4, %v1522_v13 }
 0x145   : > { %1553 = vst.msk [vmem:[#allocation3 + $0x21] sm:$0xff] %vm631_vm4, %v1520_v14  ;;  %v20149_v15 = vpop.f32.mrb[36].mxu1 }
 0x146   : > { %v1417_v16 = vadd.f32 %v20149_v15, %v24815_v3  ;;  %v1408_v17 = vpop.f32.mrb[37].mxu1 }
 0x147   : > { %v1409_v18 = vadd.f32 %v24815_v3, %v1408_v17  ;;  %v20150_v19 = vpop.f32.mrb[38].mxu1 }
 0x148   : > { %v1525_v20 = vmax.f32 %v1417_v16, 0.0  ;;  %v1420_v22 = vadd.f32 %v20150_v19, %v24815_v3  ;;  %v1411_v23 = vpop.f32.mrb[39].mxu1 }
 0x149   : > { %v1523_v24 = vmax.f32 %v1409_v18, 0.0  ;;  %v1412_v26 = vadd.f32 %v24815_v3, %v1411_v23  ;;  %v1886_v35 = vld [vmem:[#allocation3 + $0x31] sm:$0xff] }
 0x14a   : > { %1558 = vst.msk [vmem:[#allocation3 + $0x61] sm:$0xff] %vm631_vm4, %v1525_v20  ;;  %v1526_v27 = vmax.f32 %v1420_v22, 0.0  ;;  %v1884_v31 = vld [vmem:[#allocation3 + $0x19] sm:$0xff] }
 0x14b   : > { %1556 = vst.msk [vmem:[#allocation3 + $0x49] sm:$0xff] %vm631_vm4, %v1523_v24  ;;  %v1524_v28 = vmax.f32 %v1412_v26, 0.0  ;;  %v1887_v30 = vld [vmem:[#allocation3 + $0x39] sm:$0xff] }
 0x14c   : > { %1559 = vst.msk [vmem:[#allocation3 + $0x69] sm:$0xff] %vm631_vm4, %v1526_v27  ;;  %v1885_v32 = vld [vmem:[#allocation3 + $0x21] sm:$0xff]  ;;  %v1916_v39 = vpack.c.bf16 %v1887_v30, %v1886_v35 }
 0x14d   : > { %1557 = vst.msk [vmem:[#allocation3 + $0x51] sm:$0xff] %vm631_vm4, %v1524_v28  ;;  %v20153_v33 = vpop.f32.mrb[40].mxu1  ;;  %v1915_v34 = vpack.c.bf16 %v1885_v32, %v1884_v31 }
 0x14e   : > { %v1433_v37 = vadd.f32 %v20153_v33, %v24815_v3  ;;  %v1424_v38 = vpop.f32.mrb[41].mxu1 }
 0x14f   : > { %v1425_v41 = vadd.f32 %v24815_v3, %v1424_v38  ;;  %v20154_v42 = vpop.f32.mrb[42].mxu1  ;;  %20214 = vmatmul.mubr.msk.bf16.vlgmr.msra.gmra.mrb[96].mxu1 %vm631_vm4, %v1915_v34 }
 0x150   : > { %v1529_v43 = vmax.f32 %v1433_v37, 0.0  ;;  %v1436_v44 = vadd.f32 %v20154_v42, %v24815_v3  ;;  %v1427_v45 = vpop.f32.mrb[43].mxu1  ;;  %20217 = vmatprep.mubr.msk.bf16.mxu1 %vm631_vm4, %v1916_v39  ;;  %20246 = vmatpush3.bf16.msra.mxu1 %v2194_v36 }
 0x151   : > { %v1527_v46 = vmax.f32 %v1425_v41, 0.0  ;;  %v1428_v47 = vadd.f32 %v24815_v3, %v1427_v45  ;;  %23717 = vmatprep.subr.msk.bf16.mxu1 %vm1980_vm3, %v24841_v40  ;;  %v1890_v55 = vld [vmem:[#allocation3 + $0x61] sm:$0xff] }
 0x152   : > { %1562 = vst.msk [vmem:[#allocation3 + $0x91] sm:$0xff] %vm631_vm4, %v1529_v43  ;;  %v1530_v48 = vmax.f32 %v1436_v44, 0.0  ;;  %v1888_v51 = vld [vmem:[#allocation3 + $0x49] sm:$0xff] }
 0x153   : > { %1560 = vst.msk [vmem:[#allocation3 + $0x79] sm:$0xff] %vm631_vm4, %v1527_v46  ;;  %v1528_v49 = vmax.f32 %v1428_v47, 0.0  ;;  %v1891_v50 = vld [vmem:[#allocation3 + $0x69] sm:$0xff] }
 0x154   : > { %1563 = vst.msk [vmem:[#allocation3 + $0x99] sm:$0xff] %vm631_vm4, %v1530_v48  ;;  %v1889_v52 = vld [vmem:[#allocation3 + $0x51] sm:$0xff]  ;;  %v1918_v58 = vpack.c.bf16 %v1891_v50, %v1890_v55 }
 0x155   : > { %1561 = vst.msk [vmem:[#allocation3 + $0x81] sm:$0xff] %vm631_vm4, %v1528_v49  ;;  %v20157_v53 = vpop.f32.mrb[44].mxu1  ;;  %v1917_v54 = vpack.c.bf16 %v1889_v52, %v1888_v51 }
 0x156   : > { %v1449_v56 = vadd.f32 %v20157_v53, %v24815_v3  ;;  %v1440_v57 = vpop.f32.mrb[45].mxu1 }
 0x157   : > { %v1441_v59 = vadd.f32 %v24815_v3, %v1440_v57  ;;  %v20158_v60 = vpop.f32.mrb[46].mxu1  ;;  %20218 = vmatmul.mubr.msk.bf16.gmra.mrb[100].mxu1 %vm631_vm4, %v1917_v54 }
 0x158   : > { %v1533_v61 = vmax.f32 %v1449_v56, 0.0  ;;  %v1452_v62 = vadd.f32 %v20158_v60, %v24815_v3  ;;  %v1443_v63 = vpop.f32.mrb[47].mxu1  ;;  %20221 = vmatprep.mubr.msk.bf16.mxu1 %vm631_vm4, %v1918_v58 }
 0x159   : > { %v1531_v0 = vmax.f32 %v1441_v59, 0.0  ;;  %v1444_v1 = vadd.f32 %v24815_v3, %v1443_v63  ;;  %v1894_v9 = vld [vmem:[#allocation3 + $0x91] sm:$0xff] }
 0x15a   : > { %1566 = vst.msk [vmem:[#allocation3 + $0xc1] sm:$0xff] %vm631_vm4, %v1533_v61  ;;  %v1534_v2 = vmax.f32 %v1452_v62, 0.0  ;;  %v1892_v6 = vld [vmem:[#allocation3 + $0x79] sm:$0xff] }
 0x15b   : > { %1564 = vst.msk [vmem:[#allocation3 + $0xa9] sm:$0xff] %vm631_vm4, %v1531_v0  ;;  %v1532_v4 = vmax.f32 %v1444_v1, 0.0  ;;  %v1895_v5 = vld [vmem:[#allocation3 + $0x99] sm:$0xff] }
 0x15c   : > { %1567 = vst.msk [vmem:[#allocation3 + $0xc9] sm:$0xff] %vm631_vm4, %v1534_v2  ;;  %v1893_v29 = vld [vmem:[#allocation3 + $0x81] sm:$0xff]  ;;  %v1920_v12 = vpack.c.bf16 %v1895_v5, %v1894_v9 }
 0x15d   : > { %1565 = vst.msk [vmem:[#allocation3 + $0xb1] sm:$0xff] %vm631_vm4, %v1532_v4  ;;  %v20161_v7 = vpop.f32.mrb[48].mxu1  ;;  %v1919_v8 = vpack.c.bf16 %v1893_v29, %v1892_v6 }
 0x15e   : > { %v1465_v10 = vadd.f32 %v20161_v7, %v24815_v3  ;;  %v1456_v11 = vpop.f32.mrb[49].mxu1 }
 0x15f   : > { %v1457_v13 = vadd.f32 %v24815_v3, %v1456_v11  ;;  %v20162_v14 = vpop.f32.mrb[50].mxu1  ;;  %20222 = vmatmul.mubr.msk.bf16.gmra.mrb[104].mxu1 %vm631_vm4, %v1919_v8 }
 0x160   : > { %v1537_v15 = vmax.f32 %v1465_v10, 0.0  ;;  %v1468_v16 = vadd.f32 %v20162_v14, %v24815_v3  ;;  %v1459_v17 = vpop.f32.mrb[51].mxu1  ;;  %20225 = vmatprep.mubr.msk.bf16.mxu1 %vm631_vm4, %v1920_v12 }
 0x161   : > { %v1535_v18 = vmax.f32 %v1457_v13, 0.0  ;;  %v1460_v19 = vadd.f32 %v24815_v3, %v1459_v17  ;;  %v1898_v30 = vld [vmem:[#allocation3 + $0xc1] sm:$0xff]  ;;  %v24912_v17 = vld [vmem:[%s28074_s6] ss:$0 sm:$0xff] }
 0x162   : > { %1570 = vst.msk [vmem:[#allocation3 + $0xf1] sm:$0xff] %vm631_vm4, %v1537_v15  ;;  %v1538_v20 = vmax.f32 %v1468_v16, 0.0  ;;  %v1896_v24 = vld [vmem:[#allocation3 + $0xa9] sm:$0xff] }
 0x163   : > { %1568 = vst.msk [vmem:[#allocation3 + $0xd9] sm:$0xff] %vm631_vm4, %v1535_v18  ;;  %v1536_v22 = vmax.f32 %v1460_v19, 0.0  ;;  %v1899_v23 = vld [vmem:[#allocation3 + $0xc9] sm:$0xff] }
 0x164   : > { %1571 = vst.msk [vmem:[#allocation3 + $0xf9] sm:$0xff] %vm631_vm4, %v1538_v20  ;;  %v1897_v26 = vld [vmem:[#allocation3 + $0xb1] sm:$0xff]  ;;  %v1922_v33 = vpack.c.bf16 %v1899_v23, %v1898_v30 }
 0x165   : > { %1569 = vst.msk [vmem:[#allocation3 + $0xe1] sm:$0xff] %vm631_vm4, %v1536_v22  ;;  %v20165_v27 = vpop.f32.mrb[52].mxu1  ;;  %v1921_v28 = vpack.c.bf16 %v1897_v26, %v1896_v24 }
 0x166   : > { %v1481_v31 = vadd.f32 %v20165_v27, %v24815_v3  ;;  %v1472_v32 = vpop.f32.mrb[53].mxu1 }
 0x167   : > { %v1473_v34 = vadd.f32 %v24815_v3, %v1472_v32  ;;  %v20166_v35 = vpop.f32.mrb[54].mxu1  ;;  %20226 = vmatmul.mubr.msk.bf16.gmra.mrb[108].mxu1 %vm631_vm4, %v1921_v28 }
 0x168   : > { %v1541_v36 = vmax.f32 %v1481_v31, 0.0  ;;  %v1484_v37 = vadd.f32 %v20166_v35, %v24815_v3  ;;  %v1475_v38 = vpop.f32.mrb[55].mxu1  ;;  %20229 = vmatprep.mubr.msk.bf16.mxu1 %vm631_vm4, %v1922_v33  ;;  %v1833_v35 = vld [vmem:[#allocation3] sm:$0xff] }
 0x169   : > { %v1539_v39 = vmax.f32 %v1473_v34, 0.0  ;;  %v1476_v41 = vadd.f32 %v24815_v3, %v1475_v38  ;;  %v1902_v49 = vld [vmem:[#allocation3 + $0xf1] sm:$0xff] }
 0x16a   : > { %1574 = vst.msk [vmem:[#allocation3 + $0x121] sm:$0xff] %vm631_vm4, %v1541_v36  ;;  %v1542_v42 = vmax.f32 %v1484_v37, 0.0  ;;  %v1900_v45 = vld [vmem:[#allocation3 + $0xd9] sm:$0xff]  ;;  %v1834_v36 = vld [vmem:[#allocation3 + $0x8] sm:$0xff] }
 0x16b   : > { %1572 = vst.msk [vmem:[#allocation3 + $0x109] sm:$0xff] %vm631_vm4, %v1539_v39  ;;  %v1540_v43 = vmax.f32 %v1476_v41, 0.0  ;;  %v1903_v44 = vld [vmem:[#allocation3 + $0xf9] sm:$0xff] }
 0x16c   : > { %1575 = vst.msk [vmem:[#allocation3 + $0x129] sm:$0xff] %vm631_vm4, %v1542_v42  ;;  %v1901_v46 = vld [vmem:[#allocation3 + $0xe1] sm:$0xff]  ;;  %v1924_v52 = vpack.c.bf16 %v1903_v44, %v1902_v49  ;;  %v1865_v42 = vpack.c.bf16 %v1834_v36, %v1833_v35  ;;  %v24976_v35 = vld [vmem:[%s28081_s13] sm:$0xf] }
 0x16d   : > { %1573 = vst.msk [vmem:[#allocation3 + $0x111] sm:$0xff] %vm631_vm4, %v1540_v43  ;;  %v20169_v47 = vpop.f32.mrb[56].mxu1  ;;  %v1923_v48 = vpack.c.bf16 %v1901_v46, %v1900_v45 }
 0x16e   : > { %v1497_v50 = vadd.f32 %v20169_v47, %v24815_v3  ;;  %v1488_v51 = vpop.f32.mrb[57].mxu1 }
 0x16f   : > { %v1489_v53 = vadd.f32 %v24815_v3, %v1488_v51  ;;  %v20170_v54 = vpop.f32.mrb[58].mxu1  ;;  %20230 = vmatmul.mubr.msk.bf16.gmra.mrb[112].mxu1 %vm631_vm4, %v1923_v48 }
 0x170   : > { %v1545_v55 = vmax.f32 %v1497_v50, 0.0  ;;  %v1500_v56 = vadd.f32 %v20170_v54, %v24815_v3  ;;  %v1491_v57 = vpop.f32.mrb[59].mxu1  ;;  %20233 = vmatprep.mubr.msk.bf16.mxu1 %vm631_vm4, %v1924_v52 }
 0x171   : > { %v1543_v58 = vmax.f32 %v1489_v53, 0.0  ;;  %v1492_v59 = vadd.f32 %v24815_v3, %v1491_v57  ;;  %v1906_v4 = vld [vmem:[#allocation3 + $0x121] sm:$0xff]  ;;  %v1838_v57 = vld [vmem:[#allocation3 + $0x38] sm:$0xff] }
 0x172   : > { %1578 = vst.msk [vmem:[#allocation3 + $0x151] sm:$0xff] %vm631_vm4, %v1545_v55  ;;  %v1546_v60 = vmax.f32 %v1500_v56, 0.0  ;;  %v1904_v63 = vld [vmem:[#allocation3 + $0x109] sm:$0xff]  ;;  %v1836_v55 = vld [vmem:[#allocation3 + $0x20] sm:$0xff] }
 0x173   : > { %1576 = vst.msk [vmem:[#allocation3 + $0x139] sm:$0xff] %vm631_vm4, %v1543_v58  ;;  %v1544_v61 = vmax.f32 %v1492_v59, 0.0  ;;  %v1907_v62 = vld [vmem:[#allocation3 + $0x129] sm:$0xff]  ;;  %v2967_v21 = vld [vmem:[#allocation3 + $0x121] sm:$0xff] }
 0x174   : > { %1579 = vst.msk [vmem:[#allocation3 + $0x159] sm:$0xff] %vm631_vm4, %v1546_v60  ;;  %v1905_v0 = vld [vmem:[#allocation3 + $0x111] sm:$0xff]  ;;  %v1926_v29 = vpack.c.bf16 %v1907_v62, %v1906_v4 }
 0x175   : > { %1577 = vst.msk [vmem:[#allocation3 + $0x141] sm:$0xff] %vm631_vm4, %v1544_v61  ;;  %v20173_v1 = vpop.f32.mrb[60].mxu1  ;;  %v1925_v2 = vpack.c.bf16 %v1905_v0, %v1904_v63  ;;  %v1835_v60 = vld [vmem:[#allocation3 + $0x18] sm:$0xff]  ;;  %v1837_v0 = vld [vmem:[#allocation3 + $0x30] sm:$0xff] }
 0x176   : > { %v1513_v5 = vadd.f32 %v20173_v1, %v24815_v3  ;;  %v1504_v6 = vpop.f32.mrb[61].mxu1  ;;  %v24936_v63 = vpack.c.bf16 %v1836_v55, %v1835_v60  ;;  %v2456_v1 = vsel %vm1980_vm3, %v24841_v40, 0 }
 0x177   : > { %v1505_v7 = vadd.f32 %v24815_v3, %v1504_v6  ;;  %v20174_v8 = vpop.f32.mrb[62].mxu1  ;;  %20234 = vmatmul.mubr.msk.bf16.gmra.mrb[116].mxu1 %vm631_vm4, %v1925_v2  ;;  %v24947_v6 = vld [vmem:[%s28075_s7 + $0x6] sm:$0x3] }
 0x178   : > { %v1549_v9 = vmax.f32 %v1513_v5, 0.0  ;;  %v1516_v10 = vadd.f32 %v20174_v8, %v24815_v3  ;;  %v1507_v11 = vpop.f32.mrb[63].mxu1  ;;  %20237 = vmatprep.mubr.msk.bf16.mxu1 %vm631_vm4, %v1926_v29  ;;  %v24941_v5 = vpack.c.bf16 %v1838_v57, %v1837_v0 }
 0x179   : > { %v1547_v12 = vmax.f32 %v1505_v7, 0.0  ;;  %v1508_v13 = vadd.f32 %v24815_v3, %v1507_v11  ;;  %v1910_v3 = vld [vmem:[#allocation3 + $0x151] sm:$0xff] }
 0x17a   : > { %1582 = vst.msk [vmem:[#allocation3 + $0x181] sm:$0xff] %vm631_vm4, %v1549_v9  ;;  %v1550_v14 = vmax.f32 %v1516_v10, 0.0  ;;  %v1908_v18 = vld [vmem:[#allocation3 + $0x139] sm:$0xff] }
 0x17b   : > { %1580 = vst.msk [vmem:[#allocation3 + $0x169] sm:$0xff] %vm631_vm4, %v1547_v12  ;;  %v1548_v15 = vmax.f32 %v1508_v13, 0.0  ;;  %v1911_v16 = vld [vmem:[#allocation3 + $0x159] sm:$0xff]  ;;  %v1840_v13 = vld [vmem:[#allocation3 + $0x50] sm:$0xff] }
 0x17c   : > { %1583 = vst.msk [vmem:[#allocation3 + $0x189] sm:$0xff] %vm631_vm4, %v1550_v14  ;;  %v1909_v19 = vld [vmem:[#allocation3 + $0x141] sm:$0xff]  ;;  %v1928_v23 = vpack.c.bf16 %v1911_v16, %v1910_v3 }
 0x17d   : > { %1581 = vst.msk [vmem:[#allocation3 + $0x171] sm:$0xff] %vm631_vm4, %v1548_v15  ;;  %v1927_v20 = vpack.c.bf16 %v1909_v19, %v1908_v18  ;;  %v20181_v22 = vpop.f32.mrb[64].mxu1  ;;  %v1842_v15 = vld [vmem:[#allocation3 + $0x68] sm:$0xff] }
 0x17e   : > { %v1650_v24 = vadd.f32 %v20181_v22, %v24912_v17  ;;  %v1641_v26 = vpop.f32.mrb[65].mxu1  ;;  %v1839_v19 = vld [vmem:[#allocation3 + $0x48] sm:$0xff] }
 0x17f   : > { %20238 = vmatmul.mubr.msk.bf16.gmra.mrb[120].mxu1 %vm631_vm4, %v1927_v20  ;;  %v1642_v27 = vadd.f32 %v24912_v17, %v1641_v26  ;;  %v20182_v28 = vpop.f32.mrb[66].mxu1 }
 0x180   : > { %20241 = vmatprep.mubr.msk.bf16.mxu1 %vm631_vm4, %v1928_v23  ;;  %v1770_v30 = vmax.f32 %v1650_v24, 0.0  ;;  %v1653_v31 = vadd.f32 %v20182_v28, %v24912_v17  ;;  %v1644_v32 = vpop.f32.mrb[67].mxu1  ;;  %v24962_v24 = vpack.c.bf16 %v1840_v13, %v1839_v19 }
 0x181   : > { %v1768_v33 = vmax.f32 %v1642_v27, 0.0  ;;  %v1645_v34 = vadd.f32 %v24912_v17, %v1644_v32  ;;  %v1841_v27 = vld [vmem:[#allocation3 + $0x60] sm:$0xff]  ;;  %v10042_v32 = vsel %vm10040_vm6, %v24850_v25, 0 }
 0x182   : > { %1803 = vst.msk [vmem:[#allocation5 + $0x31] sm:$0xff] %vm631_vm4, %v1770_v30  ;;  %v1771_v37 = vmax.f32 %v1653_v31, 0.0  ;;  %v1912_v39 = vld [vmem:[#allocation3 + $0x169] sm:$0xff]  ;;  %v24965_v31 = vpack.c.bf16 %v1842_v15, %v1841_v27 }
 0x183   : > { %1801 = vst.msk [vmem:[#allocation5 + $0x19] sm:$0xff] %vm631_vm4, %v1768_v33  ;;  %v1769_v38 = vmax.f32 %v1645_v34, 0.0 }
 0x184   : > { %1804 = vst.msk [vmem:[#allocation5 + $0x39] sm:$0xff] %vm631_vm4, %v1771_v37  ;;  %v1913_v41 = vld [vmem:[#allocation3 + $0x171] sm:$0xff] }
 0x185   : > { %1802 = vst.msk [vmem:[#allocation5 + $0x21] sm:$0xff] %vm631_vm4, %v1769_v38  ;;  %v20185_v43 = vpop.f32.mrb[68].mxu1  ;;  %v1929_v44 = vpack.c.bf16 %v1913_v41, %v1912_v39 }
 0x186   : > { %v1666_v45 = vadd.f32 %v20185_v43, %v24912_v17  ;;  %v1657_v46 = vpop.f32.mrb[69].mxu1 }
 0x187   : > { %v1658_v47 = vadd.f32 %v24912_v17, %v1657_v46  ;;  %v20186_v48 = vpop.f32.mrb[70].mxu1  ;;  %20242 = vmatmul.mubr.msk.bf16.gmra.mrb[124].mxu1 %vm631_vm4, %v1929_v44  ;;  %v1846_v44 = vld [vmem:[#allocation3 + $0x98] sm:$0xff] }
 0x188   : > { %v1774_v49 = vmax.f32 %v1666_v45, 0.0  ;;  %v1669_v50 = vadd.f32 %v20186_v48, %v24912_v17  ;;  %v1660_v51 = vpop.f32.mrb[71].mxu1  ;;  %20247 = vmatprep.mubr.msk.bf16.mxu1 %vm631_vm4, %v1865_v42  ;;  %v1844_v42 = vld [vmem:[#allocation3 + $0x80] sm:$0xff] }
 0x189   : > { %v1772_v52 = vmax.f32 %v1658_v47, 0.0  ;;  %v1661_v53 = vadd.f32 %v24912_v17, %v1660_v51  ;;  %v1843_v47 = vld [vmem:[#allocation3 + $0x78] sm:$0xff] }
 0x18a   : > { %1807 = vst.msk [vmem:[#allocation5 + $0x61] sm:$0xff] %vm631_vm4, %v1774_v49  ;;  %v1775_v54 = vmax.f32 %v1669_v50, 0.0 }
 0x18b   : > { %1805 = vst.msk [vmem:[#allocation5 + $0x49] sm:$0xff] %vm631_vm4, %v1772_v52  ;;  %v1773_v56 = vmax.f32 %v1661_v53, 0.0  ;;  %v6808_v58 = vld [vmem:[#allocation5 + $0x32] sm:$0xff]  ;;  %v6809_v59 = vld [vmem:[#allocation5 + $0x3a] sm:$0xff]  ;;  %v24989_v52 = vpack.c.bf16 %v1844_v42, %v1843_v47 }
 0x18c   : > { %1808 = vst.msk [vmem:[#allocation5 + $0x69] sm:$0xff] %vm631_vm4, %v1775_v54  ;;  %v6840_v61 = vpack.c.bf16 %v6809_v59, %v6808_v58  ;;  %v1845_v54 = vld [vmem:[#allocation3 + $0x90] sm:$0xff] }
 0x18d   : > { %1806 = vst.msk [vmem:[#allocation5 + $0x51] sm:$0xff] %vm631_vm4, %v1773_v56  ;;  %v20189_v62 = vpop.f32.mrb[72].mxu1  ;;  %v24992_v57 = vpack.c.bf16 %v1846_v44, %v1845_v54 }
 0x18e   : > { %v1682_v2 = vadd.f32 %v20189_v62, %v24912_v17  ;;  %v1673_v4 = vpop.f32.mrb[73].mxu1  ;;  %20791 = vmatprep.mubr.msk.bf16.mxu0 %vm631_vm4, %v6840_v61 }
 0x18f   : > { %v1674_v29 = vadd.f32 %v24912_v17, %v1673_v4  ;;  %v20190_v7 = vpop.f32.mrb[74].mxu1  ;;  %20248 = vmatmul.mubr.msk.bf16.vlgmr.msra.gmra.mrb[96].mxu1 %vm631_vm4, %v24936_v63  ;;  %v1848_v4 = vld [vmem:[#allocation3 + $0xb0] sm:$0xff] }
 0x190   : > { %v1778_v8 = vmax.f32 %v1682_v2, 0.0  ;;  %v1685_v40 = vadd.f32 %v20190_v7, %v24912_v17  ;;  %v1676_v9 = vpop.f32.mrb[75].mxu1  ;;  %20251 = vmatprep.mubr.msk.bf16.mxu1 %vm631_vm4, %v24941_v5  ;;  %20280 = vmatpush3.bf16.msra.mxu1 %v2456_v1  ;;  %v1850_v7 = vld [vmem:[#allocation3 + $0xc8] sm:$0xff] }
 0x191   : > { %v1776_v10 = vmax.f32 %v1674_v29, 0.0  ;;  %v1677_v11 = vadd.f32 %v24912_v17, %v1676_v9  ;;  %23718 = vmatprep.subr.msk.bf16.mxu1 %vm1980_vm3, %v24947_v6  ;;  %v1847_v9 = vld [vmem:[#allocation3 + $0xa8] sm:$0xff] }
 0x192   : > { %1811 = vst.msk [vmem:[#allocation5 + $0x91] sm:$0xff] %vm631_vm4, %v1778_v8  ;;  %v1779_v12 = vmax.f32 %v1685_v40, 0.0 }
 0x193   : > { %1809 = vst.msk [vmem:[#allocation5 + $0x79] sm:$0xff] %vm631_vm4, %v1776_v10  ;;  %v1777_v14 = vmax.f32 %v1677_v11, 0.0  ;;  %v6812_v16 = vld [vmem:[#allocation5 + $0x62] sm:$0xff]  ;;  %v6813_v18 = vld [vmem:[#allocation5 + $0x6a] sm:$0xff] }
 0x194   : > { %1812 = vst.msk [vmem:[#allocation5 + $0x99] sm:$0xff] %vm631_vm4, %v1779_v12  ;;  %v6810_v20 = vld [vmem:[#allocation5 + $0x4a] sm:$0xff]  ;;  %v6811_v3 = vld [vmem:[#allocation5 + $0x52] sm:$0xff]  ;;  %v6842_v22 = vpack.c.bf16 %v6813_v18, %v6812_v16 }
 0x195   : > { %1810 = vst.msk [vmem:[#allocation5 + $0x81] sm:$0xff] %vm631_vm4, %v1777_v14  ;;  %v20193_v23 = vpop.f32.mrb[76].mxu1  ;;  %v6841_v26 = vpack.c.bf16 %v6811_v3, %v6810_v20  ;;  %v25007_v14 = vpack.c.bf16 %v1848_v4, %v1847_v9  ;;  %v1849_v16 = vld [vmem:[#allocation3 + $0xc0] sm:$0xff] }
 0x196   : > { %v1698_v28 = vadd.f32 %v20193_v23, %v24912_v17  ;;  %v1689_v30 = vpop.f32.mrb[77].mxu1  ;;  %v25010_v20 = vpack.c.bf16 %v1850_v7, %v1849_v16 }
 0x197   : > { %v1690_v33 = vadd.f32 %v24912_v17, %v1689_v30  ;;  %v20194_v34 = vpop.f32.mrb[78].mxu1  ;;  %20252 = vmatmul.mubr.msk.bf16.gmra.mrb[100].mxu1 %vm631_vm4, %v24962_v24  ;;  %20792 = vmatmul.mubr.msk.bf16.vlgmr.msra.gmra.mrb[0].mxu0 %vm631_vm4, %v6841_v26 }
 0x198   : > { %v1782_v36 = vmax.f32 %v1698_v28, 0.0  ;;  %v1701_v37 = vadd.f32 %v20194_v34, %v24912_v17  ;;  %v1692_v38 = vpop.f32.mrb[79].mxu1  ;;  %20255 = vmatprep.mubr.msk.bf16.mxu1 %vm631_vm4, %v24965_v31  ;;  %20795 = vmatprep.mubr.msk.bf16.mxu0 %vm631_vm4, %v6842_v22 }
 0x199   : > { %v1780_v25 = vmax.f32 %v1690_v33, 0.0  ;;  %v1693_v39 = vadd.f32 %v24912_v17, %v1692_v38  ;;  %21130 = vmatpush3.bf16.msra.mxu0 %v10042_v32  ;;  %v1852_v33 = vld [vmem:[#allocation3 + $0xe0] sm:$0xff] }
 0x19a   : > { %1815 = vst.msk [vmem:[#allocation5 + $0xc1] sm:$0xff] %vm631_vm4, %v1782_v36  ;;  %v1783_v41 = vmax.f32 %v1701_v37, 0.0  ;;  %23743 = vmatprep.subr.msk.bf16.mxu0 %vm10040_vm6, %v24976_v35  ;;  %v1854_v36 = vld [vmem:[#allocation3 + $0xf8] sm:$0xff] }
 0x19b   : > { %1813 = vst.msk [vmem:[#allocation5 + $0xa9] sm:$0xff] %vm631_vm4, %v1780_v25  ;;  %v1781_v43 = vmax.f32 %v1693_v39, 0.0  ;;  %v6816_v45 = vld [vmem:[#allocation5 + $0x92] sm:$0xff]  ;;  %v6817_v46 = vld [vmem:[#allocation5 + $0x9a] sm:$0xff]  ;;  %v1851_v25 = vld [vmem:[#allocation3 + $0xd8] sm:$0xff] }
 0x19c   : > { %1816 = vst.msk [vmem:[#allocation5 + $0xc9] sm:$0xff] %vm631_vm4, %v1783_v41  ;;  %v6814_v48 = vld [vmem:[#allocation5 + $0x7a] sm:$0xff]  ;;  %v6815_v49 = vld [vmem:[#allocation5 + $0x82] sm:$0xff]  ;;  %v6844_v50 = vpack.c.bf16 %v6817_v46, %v6816_v45  ;;  %v25025_v44 = vpack.c.bf16 %v1852_v33, %v1851_v25 }
 0x19d   : > { %1814 = vst.msk [vmem:[#allocation5 + $0xb1] sm:$0xff] %vm631_vm4, %v1781_v43  ;;  %v20197_v51 = vpop.f32.mrb[80].mxu1  ;;  %v6843_v53 = vpack.c.bf16 %v6815_v49, %v6814_v48  ;;  %v1853_v46 = vld [vmem:[#allocation3 + $0xf0] sm:$0xff] }
 0x19e   : > { %v1714_v55 = vadd.f32 %v20197_v51, %v24912_v17  ;;  %v1705_v56 = vpop.f32.mrb[81].mxu1  ;;  %v25028_v49 = vpack.c.bf16 %v1854_v36, %v1853_v46 }
 0x19f   : > { %v1706_v58 = vadd.f32 %v24912_v17, %v1705_v56  ;;  %v20198_v59 = vpop.f32.mrb[82].mxu1  ;;  %20256 = vmatmul.mubr.msk.bf16.gmra.mrb[104].mxu1 %vm631_vm4, %v24989_v52  ;;  %20796 = vmatmul.mubr.msk.bf16.gmra.mrb[4].mxu0 %vm631_vm4, %v6843_v53 }
 0x1a0   : > { %v1786_v60 = vmax.f32 %v1714_v55, 0.0  ;;  %v1717_v61 = vadd.f32 %v20198_v59, %v24912_v17  ;;  %v1708_v62 = vpop.f32.mrb[83].mxu1  ;;  %20259 = vmatprep.mubr.msk.bf16.mxu1 %vm631_vm4, %v24992_v57  ;;  %20799 = vmatprep.mubr.msk.bf16.mxu0 %vm631_vm4, %v6844_v50 }
 0x1a1   : > { %v1784_v0 = vmax.f32 %v1706_v58, 0.0  ;;  %v1709_v1 = vadd.f32 %v24912_v17, %v1708_v62  ;;  %v1858_v62 = vld [vmem:[#allocation3 + $0x128] sm:$0xff] }
 0x1a2   : > { %1819 = vst.msk [vmem:[#allocation5 + $0xf1] sm:$0xff] %vm631_vm4, %v1786_v60  ;;  %v1787_v2 = vmax.f32 %v1717_v61, 0.0  ;;  %v1856_v60 = vld [vmem:[#allocation3 + $0x110] sm:$0xff] }
 0x1a3   : > { %1817 = vst.msk [vmem:[#allocation5 + $0xd9] sm:$0xff] %vm631_vm4, %v1784_v0  ;;  %v1785_v29 = vmax.f32 %v1709_v1, 0.0  ;;  %v6820_v8 = vld [vmem:[#allocation5 + $0xc2] sm:$0xff]  ;;  %v6821_v40 = vld [vmem:[#allocation5 + $0xca] sm:$0xff] }
 0x1a4   : > { %1820 = vst.msk [vmem:[#allocation5 + $0xf9] sm:$0xff] %vm631_vm4, %v1787_v2  ;;  %v6818_v10 = vld [vmem:[#allocation5 + $0xaa] sm:$0xff]  ;;  %v6819_v11 = vld [vmem:[#allocation5 + $0xb2] sm:$0xff]  ;;  %v6846_v12 = vpack.c.bf16 %v6821_v40, %v6820_v8 }
 0x1a5   : > { %1818 = vst.msk [vmem:[#allocation5 + $0xe1] sm:$0xff] %vm631_vm4, %v1785_v29  ;;  %v20201_v13 = vpop.f32.mrb[84].mxu1  ;;  %v6845_v15 = vpack.c.bf16 %v6819_v11, %v6818_v10  ;;  %v1855_v2 = vld [vmem:[#allocation3 + $0x108] sm:$0xff]  ;;  %v1857_v10 = vld [vmem:[#allocation3 + $0x120] sm:$0xff] }
 0x1a6   : > { %v1730_v18 = vadd.f32 %v20201_v13, %v24912_v17  ;;  %v1721_v19 = vpop.f32.mrb[85].mxu1  ;;  %v25043_v40 = vpack.c.bf16 %v1856_v60, %v1855_v2  ;;  %v25046_v13 = vpack.c.bf16 %v1858_v62, %v1857_v10  ;;  %v2359_v60 = vld [vmem:[#allocation3 + $0x1a] sm:$0xff]  ;;  %v9942_v62 = vld [vmem:[#allocation2 + $0x1] sm:$0xff] }
 0x1a7   : > { %v1722_v3 = vadd.f32 %v24912_v17, %v1721_v19  ;;  %v20202_v22 = vpop.f32.mrb[86].mxu1  ;;  %20260 = vmatmul.mubr.msk.bf16.gmra.mrb[108].mxu1 %vm631_vm4, %v25007_v14  ;;  %20800 = vmatmul.mubr.msk.bf16.gmra.mrb[8].mxu0 %vm631_vm4, %v6845_v15  ;;  %v2361_v2 = vld [vmem:[#allocation3 + $0x32] sm:$0xff] }
 0x1a8   : > { %v1790_v23 = vmax.f32 %v1730_v18, 0.0  ;;  %v1733_v26 = vadd.f32 %v20202_v22, %v24912_v17  ;;  %v1724_v27 = vpop.f32.mrb[87].mxu1  ;;  %20263 = vmatprep.mubr.msk.bf16.mxu1 %vm631_vm4, %v25010_v20  ;;  %20803 = vmatprep.mubr.msk.bf16.mxu0 %vm631_vm4, %v6846_v12  ;;  %v25087_v10 = vld [vmem:[%s28075_s7 + $0x8] sm:$0x3] }
 0x1a9   : > { %v1788_v28 = vmax.f32 %v1722_v3, 0.0  ;;  %v1725_v30 = vadd.f32 %v24912_v17, %v1724_v27  ;;  %v1860_v27 = vld [vmem:[#allocation3 + $0x140] sm:$0xff] }
 0x1aa   : > { %1823 = vst.msk [vmem:[#allocation5 + $0x121] sm:$0xff] %vm631_vm4, %v1790_v23  ;;  %v1791_v32 = vmax.f32 %v1733_v26, 0.0 }
 0x1ab   : > { %1821 = vst.msk [vmem:[#allocation5 + $0x109] sm:$0xff] %vm631_vm4, %v1788_v28  ;;  %v1789_v34 = vmax.f32 %v1725_v30, 0.0  ;;  %v6824_v37 = vld [vmem:[#allocation5 + $0xf2] sm:$0xff]  ;;  %v6825_v38 = vld [vmem:[#allocation5 + $0xfa] sm:$0xff]  ;;  %v1862_v30 = vld [vmem:[#allocation3 + $0x158] sm:$0xff] }
 0x1ac   : > { %1824 = vst.msk [vmem:[#allocation5 + $0x129] sm:$0xff] %vm631_vm4, %v1791_v32  ;;  %v6822_v39 = vld [vmem:[#allocation5 + $0xda] sm:$0xff]  ;;  %v6823_v41 = vld [vmem:[#allocation5 + $0xe2] sm:$0xff]  ;;  %v6848_v42 = vpack.c.bf16 %v6825_v38, %v6824_v37 }
 0x1ad   : > { %1822 = vst.msk [vmem:[#allocation5 + $0x111] sm:$0xff] %vm631_vm4, %v1789_v34  ;;  %v20205_v43 = vpop.f32.mrb[88].mxu1  ;;  %v6847_v45 = vpack.c.bf16 %v6823_v41, %v6822_v39  ;;  %v1859_v34 = vld [vmem:[#allocation3 + $0x138] sm:$0xff]  ;;  %v1861_v39 = vld [vmem:[#allocation3 + $0x150] sm:$0xff] }
 0x1ae   : > { %v1746_v47 = vadd.f32 %v20205_v43, %v24912_v17  ;;  %v1737_v48 = vpop.f32.mrb[89].mxu1  ;;  %v25061_v25 = vpack.c.bf16 %v1860_v27, %v1859_v34  ;;  %v25063_v41 = vpack.c.bf16 %v1862_v30, %v1861_v39  ;;  %v2358_v43 = vld [vmem:[#allocation3 + $0xa] sm:$0xff]  ;;  %v25109_v30 = vld [vmem:[%s28081_s13 + $0x8] sm:$0xf]  ;;  %v9949_v34 = vld [vmem:[#allocation2 + $0x51] sm:$0xff] }
 0x1af   : > { %v1738_v50 = vadd.f32 %v24912_v17, %v1737_v48  ;;  %v20206_v51 = vpop.f32.mrb[90].mxu1  ;;  %20264 = vmatmul.mubr.msk.bf16.gmra.mrb[112].mxu1 %vm631_vm4, %v25025_v44  ;;  %20804 = vmatmul.mubr.msk.bf16.gmra.mrb[12].mxu0 %vm631_vm4, %v6847_v45  ;;  %v1864_v45 = vld [vmem:[#allocation3 + $0x170] sm:$0xff]  ;;  %v1863_v48 = vld [vmem:[#allocation3 + $0x168] sm:$0xff] }
 0x1b0   : > { %v1794_v53 = vmax.f32 %v1746_v47, 0.0  ;;  %v1749_v54 = vadd.f32 %v20206_v51, %v24912_v17  ;;  %v1740_v55 = vpop.f32.mrb[91].mxu1  ;;  %20267 = vmatprep.mubr.msk.bf16.mxu1 %vm631_vm4, %v25028_v49  ;;  %20807 = vmatprep.mubr.msk.bf16.mxu0 %vm631_vm4, %v6848_v42  ;;  %v2357_v42 = vld [vmem:[#allocation3 + $0x2] sm:$0xff] }
 0x1b1   : > { %v1792_v56 = vmax.f32 %v1738_v50, 0.0  ;;  %v1741_v58 = vadd.f32 %v24912_v17, %v1740_v55  ;;  %v25071_v55 = vpack.c.bf16 %v1864_v45, %v1863_v48  ;;  %v9953_v48 = vld [vmem:[#allocation2 + $0x81] sm:$0xff] }
 0x1b2   : > { %1827 = vst.msk [vmem:[#allocation5 + $0x151] sm:$0xff] %vm631_vm4, %v1794_v53  ;;  %v1795_v59 = vmax.f32 %v1749_v54, 0.0  ;;  %v2389_v53 = vpack.c.bf16 %v2358_v43, %v2357_v42  ;;  %v9950_v42 = vld [vmem:[#allocation2 + $0x61] sm:$0xff] }
 0x1b3   : > { %1825 = vst.msk [vmem:[#allocation5 + $0x139] sm:$0xff] %vm631_vm4, %v1792_v56  ;;  %v1793_v61 = vmax.f32 %v1741_v58, 0.0  ;;  %v6828_v0 = vld [vmem:[#allocation5 + $0x122] sm:$0xff]  ;;  %v6829_v1 = vld [vmem:[#allocation5 + $0x12a] sm:$0xff]  ;;  %v6838_v58 = vld [vmem:[#allocation5 + $0x19a] sm:$0xff] }
 0x1b4   : > { %1828 = vst.msk [vmem:[#allocation5 + $0x159] sm:$0xff] %vm631_vm4, %v1795_v59  ;;  %v6826_v4 = vld [vmem:[#allocation5 + $0x10a] sm:$0xff]  ;;  %v6827_v29 = vld [vmem:[#allocation5 + $0x112] sm:$0xff]  ;;  %v6850_v7 = vpack.c.bf16 %v6829_v1, %v6828_v0  ;;  %v6839_v59 = vld [vmem:[#allocation5 + $0x1a2] sm:$0xff] }
 0x1b5   : > { %1826 = vst.msk [vmem:[#allocation5 + $0x141] sm:$0xff] %vm631_vm4, %v1793_v61  ;;  %v20209_v8 = vpop.f32.mrb[92].mxu1  ;;  %v6849_v9 = vpack.c.bf16 %v6827_v29, %v6826_v4  ;;  %v2360_v61 = vld [vmem:[#allocation3 + $0x22] sm:$0xff]  ;;  %v9943_v0 = vld [vmem:[#allocation2 + $0x9] sm:$0xff]  ;;  %v6855_v1 = vpack.c.bf16 %v6839_v59, %v6838_v58 }
 0x1b6   : > { %v1762_v11 = vadd.f32 %v20209_v8, %v24912_v17  ;;  %v1753_v12 = vpop.f32.mrb[93].mxu1  ;;  %v2362_v4 = vld [vmem:[#allocation3 + $0x3a] sm:$0xff]  ;;  %v25078_v29 = vpack.c.bf16 %v2360_v61, %v2359_v60  ;;  %v9974_v8 = vpack.c.bf16 %v9943_v0, %v9942_v62  ;;  %v2376_v0 = vld [vmem:[#allocation3 + $0xe2] sm:$0xff] }
 0x1b7   : > { %v1754_v15 = vadd.f32 %v24912_v17, %v1753_v12  ;;  %v20210_v16 = vpop.f32.mrb[94].mxu1  ;;  %20268 = vmatmul.mubr.msk.bf16.gmra.mrb[116].mxu1 %vm631_vm4, %v25043_v40  ;;  %20808 = vmatmul.mubr.msk.bf16.gmra.mrb[16].mxu0 %vm631_vm4, %v6849_v9  ;;  %v25082_v9 = vpack.c.bf16 %v2362_v4, %v2361_v2  ;;  %v9945_v12 = vld [vmem:[#allocation2 + $0x21] sm:$0xff]  ;;  %v9954_v59 = vld [vmem:[#allocation2 + $0x91] sm:$0xff] }
 0x1b8   : > { %v1798_v18 = vmax.f32 %v1762_v11, 0.0  ;;  %v1765_v19 = vadd.f32 %v20210_v16, %v24912_v17  ;;  %v1756_v3 = vpop.f32.mrb[95].mxu1  ;;  %20271 = vmatprep.mubr.msk.bf16.mxu1 %vm631_vm4, %v25046_v13  ;;  %20811 = vmatprep.mubr.msk.bf16.mxu0 %vm631_vm4, %v6850_v7  ;;  %v2750_v7 = vsel %vm1980_vm3, %v24947_v6, 0  ;;  %v2363_v6 = vld [vmem:[#allocation3 + $0x4a] sm:$0xff]  ;;  %v2364_v11 = vld [vmem:[#allocation3 + $0x52] sm:$0xff]  ;;  %v2375_v62 = vld [vmem:[#allocation3 + $0xda] sm:$0xff] }
 0x1b9   : > { %v1796_v22 = vmax.f32 %v1754_v15, 0.0  ;;  %v1757_v23 = vadd.f32 %v24912_v17, %v1756_v3  ;;  %v2365_v15 = vld [vmem:[#allocation3 + $0x62] sm:$0xff]  ;;  %v2366_v16 = vld [vmem:[#allocation3 + $0x6a] sm:$0xff]  ;;  %v25097_v3 = vpack.c.bf16 %v2364_v11, %v2363_v6  ;;  %v2377_v2 = vld [vmem:[#allocation3 + $0xf2] sm:$0xff]  ;;  %v25136_v6 = vpack.c.bf16 %v2376_v0, %v2375_v62 }
 0x1ba   : > { %1831 = vst.msk [vmem:[#allocation5 + $0x181] sm:$0xff] %vm631_vm4, %v1798_v18  ;;  %v1799_v26 = vmax.f32 %v1765_v19, 0.0  ;;  %v9947_v18 = vld [vmem:[#allocation2 + $0x39] sm:$0xff]  ;;  %v2378_v4 = vld [vmem:[#allocation3 + $0xfa] sm:$0xff]  ;;  %v9969_v62 = vld [vmem:[#allocation2 + $0x141] sm:$0xff] }
 0x1bb   : > { %1829 = vst.msk [vmem:[#allocation5 + $0x169] sm:$0xff] %vm631_vm4, %v1796_v22  ;;  %v1797_v28 = vmax.f32 %v1757_v23, 0.0  ;;  %v6832_v32 = vld [vmem:[#allocation5 + $0x152] sm:$0xff]  ;;  %v6833_v33 = vld [vmem:[#allocation5 + $0x15a] sm:$0xff] }
 0x1bc   : > { %1832 = vst.msk [vmem:[#allocation5 + $0x189] sm:$0xff] %vm631_vm4, %v1799_v26  ;;  %v6830_v36 = vld [vmem:[#allocation5 + $0x13a] sm:$0xff]  ;;  %v6831_v37 = vld [vmem:[#allocation5 + $0x142] sm:$0xff]  ;;  %v6852_v38 = vpack.c.bf16 %v6833_v33, %v6832_v32  ;;  %v9946_v23 = vld [vmem:[#allocation2 + $0x31] sm:$0xff]  ;;  %v25099_v26 = vpack.c.bf16 %v2366_v16, %v2365_v15  ;;  %v25138_v15 = vpack.c.bf16 %v2378_v4, %v2377_v2 }
 0x1bd   : > { %1830 = vst.msk [vmem:[#allocation5 + $0x171] sm:$0xff] %vm631_vm4, %v1797_v28  ;;  %v6851_v17 = vpack.c.bf16 %v6831_v37, %v6830_v36  ;;  %v9944_v19 = vld [vmem:[#allocation2 + $0x19] sm:$0xff]  ;;  %v9976_v27 = vpack.c.bf16 %v9947_v18, %v9946_v23  ;;  %v10254_v28 = vsel %vm10040_vm6, %v24976_v35, 0  ;;  %v2367_v32 = vld [vmem:[#allocation3 + $0x7a] sm:$0xff]  ;;  %v2369_v35 = vld [vmem:[#allocation3 + $0x92] sm:$0xff] }
 0x1be   : > { %v9975_v22 = vpack.c.bf16 %v9945_v12, %v9944_v19  ;;  %v2368_v33 = vld [vmem:[#allocation3 + $0x82] sm:$0xff]  ;;  %v2370_v36 = vld [vmem:[#allocation3 + $0x9a] sm:$0xff]  ;;  %v9958_v12 = vld [vmem:[#allocation2 + $0xc1] sm:$0xff] }
 0x1bf   : > { %20272 = vmatmul.mubr.msk.bf16.gmra.mrb[120].mxu1 %vm631_vm4, %v25061_v25  ;;  %20812 = vmatmul.mubr.msk.bf16.gmra.mrb[20].mxu0 %vm631_vm4, %v6851_v17  ;;  %v9951_v37 = vld [vmem:[#allocation2 + $0x69] sm:$0xff]  ;;  %v25116_v17 = vpack.c.bf16 %v2368_v33, %v2367_v32  ;;  %v25118_v43 = vpack.c.bf16 %v2370_v36, %v2369_v35  ;;  %v2379_v18 = vld [vmem:[#allocation3 + $0x10a] sm:$0xff]  ;;  %v2381_v23 = vld [vmem:[#allocation3 + $0x122] sm:$0xff] }
 0x1c0   : > { %20275 = vmatprep.mubr.msk.bf16.mxu1 %vm631_vm4, %v25063_v41  ;;  %20815 = vmatprep.mubr.msk.bf16.mxu0 %vm631_vm4, %v6852_v38  ;;  %v9948_v38 = vld [vmem:[#allocation2 + $0x49] sm:$0xff]  ;;  %v9978_v45 = vpack.c.bf16 %v9951_v37, %v9950_v42  ;;  %v9960_v32 = vld [vmem:[#allocation2 + $0xd9] sm:$0xff]  ;;  %v9962_v35 = vld [vmem:[#allocation2 + $0xf1] sm:$0xff] }
 0x1c1   : > { %v9977_v39 = vpack.c.bf16 %v9949_v34, %v9948_v38  ;;  %v2380_v19 = vld [vmem:[#allocation3 + $0x112] sm:$0xff]  ;;  %v2383_v38 = vld [vmem:[#allocation3 + $0x13a] sm:$0xff]  ;;  %v9971_v0 = vld [vmem:[#allocation2 + $0x159] sm:$0xff] }
 0x1c2   : > { %v25146_v33 = vpack.c.bf16 %v2380_v19, %v2379_v18  ;;  %v9965_v42 = vld [vmem:[#allocation2 + $0x111] sm:$0xff]  ;;  %v9972_v18 = vld [vmem:[#allocation2 + $0x169] sm:$0xff] }
 0x1c3   : > { %v6836_v46 = vld [vmem:[#allocation5 + $0x182] sm:$0xff]  ;;  %v6837_v47 = vld [vmem:[#allocation5 + $0x18a] sm:$0xff] }
 0x1c4   : > { %v6834_v50 = vld [vmem:[#allocation5 + $0x16a] sm:$0xff]  ;;  %v6835_v51 = vld [vmem:[#allocation5 + $0x172] sm:$0xff]  ;;  %v6854_v54 = vpack.c.bf16 %v6837_v47, %v6836_v46  ;;  %v2371_v46 = vld [vmem:[#allocation3 + $0xaa] sm:$0xff] }
 0x1c5   : > { %v6853_v56 = vpack.c.bf16 %v6835_v51, %v6834_v50  ;;  %v2372_v47 = vld [vmem:[#allocation3 + $0xb2] sm:$0xff]  ;;  %v2373_v50 = vld [vmem:[#allocation3 + $0xc2] sm:$0xff]  ;;  %v2374_v51 = vld [vmem:[#allocation3 + $0xca] sm:$0xff] }
 0x1c6   : > { %v25128_v60 = vpack.c.bf16 %v2374_v51, %v2373_v50 }
 0x1c7   : > { %20276 = vmatmul.mubr.msk.bf16.gmra.mrb[124].mxu1 %vm631_vm4, %v25071_v55  ;;  %20816 = vmatmul.mubr.msk.bf16.gmra.mrb[24].mxu0 %vm631_vm4, %v6853_v56  ;;  %v25126_v56 = vpack.c.bf16 %v2372_v47, %v2371_v46  ;;  %v2386_v46 = vld [vmem:[#allocation3 + $0x15a] sm:$0xff] }
 0x1c8   : > { %20281 = vmatprep.mubr.msk.bf16.mxu1 %vm631_vm4, %v2389_v53  ;;  %20819 = vmatprep.mubr.msk.bf16.mxu0 %vm631_vm4, %v6854_v54  ;;  %v9955_v53 = vld [vmem:[#allocation2 + $0x99] sm:$0xff]  ;;  %v9967_v47 = vld [vmem:[#allocation2 + $0x129] sm:$0xff] }
 0x1c9   : > { %v9952_v54 = vld [vmem:[#allocation2 + $0x79] sm:$0xff]  ;;  %v9980_v61 = vpack.c.bf16 %v9955_v53, %v9954_v59  ;;  %v9966_v53 = vld [vmem:[#allocation2 + $0x121] sm:$0xff] }
 0x1ca   : > { %v9979_v58 = vpack.c.bf16 %v9953_v48, %v9952_v54  ;;  %v9964_v48 = vld [vmem:[#allocation2 + $0x109] sm:$0xff]  ;;  %v2387_v59 = vld [vmem:[#allocation3 + $0x16a] sm:$0xff] }
 0x1cb   : > { %v9985_v51 = vpack.c.bf16 %v9965_v42, %v9964_v48  ;;  %v9905_v48 = vld [vmem:[#allocation2 + $0x90] sm:$0xff] }
 0x1cf   : > { %20282 = vmatmul.mubr.msk.bf16.vlgmr.msra.gmra.mrb[96].mxu1 %vm631_vm4, %v25078_v29  ;;  %20820 = vmatmul.mubr.msk.bf16.gmra.mrb[28].mxu0 %vm631_vm4, %v6855_v1  ;;  %v9957_v1 = vld [vmem:[#allocation2 + $0xb1] sm:$0xff] }
 0x1d0   : > { %20285 = vmatprep.mubr.msk.bf16.mxu1 %vm631_vm4, %v25082_v9  ;;  %20314 = vmatpush3.bf16.msra.mxu1 %v2750_v7  ;;  %v9959_v7 = vld [vmem:[#allocation2 + $0xc9] sm:$0xff] }
 0x1d1   : > { %21131 = vmatprep.mubr.msk.bf16.mxu0 %vm575_vm1, %v9974_v8  ;;  %23719 = vmatprep.subr.msk.bf16.mxu1 %vm1980_vm3, %v25087_v10  ;;  %v9956_v8 = vld [vmem:[#allocation2 + $0xa9] sm:$0xff]  ;;  %v9982_v16 = vpack.c.bf16 %v9959_v7, %v9958_v12  ;;  %v9970_v7 = vld [vmem:[#allocation2 + $0x151] sm:$0xff]  ;;  %v9893_v12 = vld [vmem:[#allocation2] sm:$0xff] }
 0x1d2   : > { %v9981_v11 = vpack.c.bf16 %v9957_v1, %v9956_v8  ;;  %v9968_v1 = vld [vmem:[#allocation2 + $0x139] sm:$0xff]  ;;  %v9988_v8 = vpack.c.bf16 %v9971_v0, %v9970_v7  ;;  %v9915_v7 = vld [vmem:[#allocation2 + $0x108] sm:$0xff] }
 0x1d3   : > { %v9987_v4 = vpack.c.bf16 %v9969_v62, %v9968_v1  ;;  %v9911_v62 = vld [vmem:[#allocation2 + $0xd8] sm:$0xff]  ;;  %v9913_v1 = vld [vmem:[#allocation2 + $0xf0] sm:$0xff] }
 0x1d7   : > { %20286 = vmatmul.mubr.msk.bf16.gmra.mrb[100].mxu1 %vm631_vm4, %v25097_v3  ;;  %21132 = vmatmul.mubr.msk.bf16.vlgmr.msra.gmra.mrb[32].mxu0 %vm575_vm1, %v9975_v22  ;;  %v9961_v22 = vld [vmem:[#allocation2 + $0xe1] sm:$0xff] }
 0x1d8   : > { %20289 = vmatprep.mubr.msk.bf16.mxu1 %vm631_vm4, %v25099_v26  ;;  %21135 = vmatprep.mubr.msk.bf16.mxu0 %vm575_vm1, %v9976_v27  ;;  %v2382_v27 = vld [vmem:[#allocation3 + $0x12a] sm:$0xff]  ;;  %v9983_v34 = vpack.c.bf16 %v9961_v22, %v9960_v32  ;;  %v3044_v22 = vsel %vm1980_vm3, %v25087_v10, 0 }
 0x1d9   : > { %21164 = vmatpush3.bf16.msra.mxu0 %v10254_v28  ;;  %v9963_v28 = vld [vmem:[#allocation2 + $0xf9] sm:$0xff]  ;;  %v25148_v36 = vpack.c.bf16 %v2382_v27, %v2381_v23  ;;  %v25179_v27 = vld [vmem:[%s28075_s7 + $0xa] sm:$0x3] }
 0x1da   : > { %23744 = vmatprep.subr.msk.bf16.mxu0 %vm10040_vm6, %v25109_v30  ;;  %v9984_v37 = vpack.c.bf16 %v9963_v28, %v9962_v35  ;;  %v9898_v10 = vld [vmem:[#allocation2 + $0x38] sm:$0xff] }
 0x1db   : > { %v9895_v28 = vld [vmem:[#allocation2 + $0x18] sm:$0xff] }
 0x1df   : > { %20290 = vmatmul.mubr.msk.bf16.gmra.mrb[104].mxu1 %vm631_vm4, %v25116_v17  ;;  %21136 = vmatmul.mubr.msk.bf16.gmra.mrb[36].mxu0 %vm575_vm1, %v9977_v39  ;;  %v2384_v39 = vld [vmem:[#allocation3 + $0x142] sm:$0xff] }
 0x1e0   : > { %20293 = vmatprep.mubr.msk.bf16.mxu1 %vm631_vm4, %v25118_v43  ;;  %21139 = vmatprep.mubr.msk.bf16.mxu0 %vm575_vm1, %v9978_v45  ;;  %v2385_v45 = vld [vmem:[#allocation3 + $0x152] sm:$0xff]  ;;  %v25156_v50 = vpack.c.bf16 %v2384_v39, %v2383_v38 }
 0x1e1   : > { %v25158_v54 = vpack.c.bf16 %v2386_v46, %v2385_v45  ;;  %v9901_v39 = vld [vmem:[#allocation2 + $0x60] sm:$0xff]  ;;  %v9906_v45 = vld [vmem:[#allocation2 + $0x98] sm:$0xff] }
 0x1e2   : > { %v9903_v46 = vld [vmem:[#allocation2 + $0x78] sm:$0xff] }
 0x1e7   : > { %20294 = vmatmul.mubr.msk.bf16.gmra.mrb[108].mxu1 %vm631_vm4, %v25126_v56  ;;  %21140 = vmatmul.mubr.msk.bf16.gmra.mrb[40].mxu0 %vm575_vm1, %v9979_v58  ;;  %v9986_v58 = vpack.c.bf16 %v9967_v47, %v9966_v53  ;;  %v9907_v53 = vld [vmem:[#allocation2 + $0xa8] sm:$0xff] }
 0x1e8   : > { %20297 = vmatprep.mubr.msk.bf16.mxu1 %vm631_vm4, %v25128_v60  ;;  %21143 = vmatprep.mubr.msk.bf16.mxu0 %vm575_vm1, %v9980_v61  ;;  %v2388_v61 = vld [vmem:[#allocation3 + $0x172] sm:$0xff] }
 0x1e9   : > { %v25166_v2 = vpack.c.bf16 %v2388_v61, %v2387_v59  ;;  %v9909_v59 = vld [vmem:[#allocation2 + $0xc0] sm:$0xff] }
 0x1ef   : > { %20298 = vmatmul.mubr.msk.bf16.gmra.mrb[112].mxu1 %vm631_vm4, %v25136_v6  ;;  %21144 = vmatmul.mubr.msk.bf16.gmra.mrb[44].mxu0 %vm575_vm1, %v9981_v11  ;;  %v9973_v11 = vld [vmem:[#allocation2 + $0x171] sm:$0xff] }
 0x1f0   : > { %20301 = vmatprep.mubr.msk.bf16.mxu1 %vm631_vm4, %v25138_v15  ;;  %21147 = vmatprep.mubr.msk.bf16.mxu0 %vm575_vm1, %v9982_v16  ;;  %v9894_v16 = vld [vmem:[#allocation2 + $0x8] sm:$0xff]  ;;  %v9989_v19 = vpack.c.bf16 %v9973_v11, %v9972_v18  ;;  %v9917_v11 = vld [vmem:[#allocation2 + $0x120] sm:$0xff]  ;;  %v9922_v18 = vld [vmem:[#allocation2 + $0x158] sm:$0xff] }
 0x1f1   : > { %v9925_v23 = vpack.c.bf16 %v9894_v16, %v9893_v12  ;;  %v2946_v16 = vld [vmem:[#allocation3 + $0x21] sm:$0xff] }
 0x1f7   : > { %20302 = vmatmul.mubr.msk.bf16.gmra.mrb[116].mxu1 %vm631_vm4, %v25146_v33  ;;  %21148 = vmatmul.mubr.msk.bf16.gmra.mrb[48].mxu0 %vm575_vm1, %v9983_v34  ;;  %v9897_v34 = vld [vmem:[#allocation2 + $0x30] sm:$0xff] }
 0x1f8   : > { %20305 = vmatprep.mubr.msk.bf16.mxu1 %vm631_vm4, %v25148_v36  ;;  %21151 = vmatprep.mubr.msk.bf16.mxu0 %vm575_vm1, %v9984_v37  ;;  %v25191_v35 = vpack.c.bf16 %v9898_v10, %v9897_v34  ;;  %v9900_v37 = vld [vmem:[#allocation2 + $0x50] sm:$0xff] }
 0x1f9   : > { %v9921_v10 = vld [vmem:[#allocation2 + $0x150] sm:$0xff] }
 0x1fa   : > { %v25274_v34 = vpack.c.bf16 %v9922_v18, %v9921_v10  ;;  %v2958_v10 = vld [vmem:[#allocation3 + $0xb1] sm:$0xff] }
 0x1ff   : > { %20306 = vmatmul.mubr.msk.bf16.gmra.mrb[120].mxu1 %vm631_vm4, %v25156_v50  ;;  %21152 = vmatmul.mubr.msk.bf16.gmra.mrb[52].mxu0 %vm575_vm1, %v9985_v51  ;;  %v25224_v51 = vpack.c.bf16 %v9906_v45, %v9905_v48  ;;  %v2949_v48 = vld [vmem:[#allocation3 + $0x49] sm:$0xff] }
 0x200   : > { %20309 = vmatprep.mubr.msk.bf16.mxu1 %vm631_vm4, %v25158_v54  ;;  %21155 = vmatprep.mubr.msk.bf16.mxu0 %vm575_vm1, %v9986_v58 }
 0x207   : > { %20310 = vmatmul.mubr.msk.bf16.gmra.mrb[124].mxu1 %vm631_vm4, %v25166_v2  ;;  %21156 = vmatmul.mubr.msk.bf16.gmra.mrb[56].mxu0 %vm575_vm1, %v9987_v4 }
 0x208   : > { %20315 = vmatprep.mubr.msk.bf16.mxu1 %vm631_vm4, %v24936_v63  ;;  %21159 = vmatprep.mubr.msk.bf16.mxu0 %vm575_vm1, %v9988_v8  ;;  %v9896_v63 = vld [vmem:[#allocation2 + $0x20] sm:$0xff] }
 0x209   : > { %v25189_v32 = vpack.c.bf16 %v9896_v63, %v9895_v28 }
 0x20f   : > { %20316 = vmatmul.mubr.msk.bf16.vlgmr.msra.gmra.mrb[96].mxu1 %vm631_vm4, %v24941_v5  ;;  %21160 = vmatmul.mubr.msk.bf16.gmra.mrb[60].mxu0 %vm575_vm1, %v9989_v19  ;;  %v10516_v5 = vsel %vm10040_vm6, %v25109_v30, 0  ;;  %v9899_v30 = vld [vmem:[#allocation2 + $0x48] sm:$0xff]  ;;  %v2681_v19 = vld [vmem:[#allocation3 + $0x180] sm:$0xff] }
 0x210   : > { %20319 = vmatprep.mubr.msk.bf16.mxu1 %vm631_vm4, %v24962_v24  ;;  %20348 = vmatpush3.bf16.msra.mxu1 %v3044_v22  ;;  %v25202_v24 = vld [vmem:[%s28081_s13 + $0xc] sm:$0xf]  ;;  %v25210_v38 = vpack.c.bf16 %v9900_v37, %v9899_v30  ;;  %v9919_v22 = vld [vmem:[#allocation2 + $0x138] sm:$0xff]  ;;  %v10417_v37 = vld [vmem:[#allocation2 + $0x2] sm:$0xff] }
 0x211   : > { %21165 = vmatprep.mubr.msk.bf16.mxu0 %vm575_vm1, %v9925_v23  ;;  %23720 = vmatprep.subr.msk.bf16.mxu1 %vm1980_vm3, %v25179_v27  ;;  %v2950_v30 = vld [vmem:[#allocation3 + $0x51] sm:$0xff]  ;;  %v10810_v18 = vsel %vm10040_vm6, %v25202_v24, 0 }
 0x217   : > { %20320 = vmatmul.mubr.msk.bf16.gmra.mrb[100].mxu1 %vm631_vm4, %v24965_v31  ;;  %21166 = vmatmul.mubr.msk.bf16.vlgmr.msra.gmra.mrb[32].mxu0 %vm575_vm1, %v25189_v32  ;;  %v9902_v31 = vld [vmem:[#allocation2 + $0x68] sm:$0xff] }
 0x218   : > { %20323 = vmatprep.mubr.msk.bf16.mxu1 %vm631_vm4, %v24989_v52  ;;  %21169 = vmatprep.mubr.msk.bf16.mxu0 %vm575_vm1, %v25191_v35  ;;  %v25212_v42 = vpack.c.bf16 %v9902_v31, %v9901_v39  ;;  %v9904_v52 = vld [vmem:[#allocation2 + $0x80] sm:$0xff]  ;;  %v10418_v31 = vld [vmem:[#allocation2 + $0xa] sm:$0xff] }
 0x219   : > { %21198 = vmatpush3.bf16.msra.mxu0 %v10516_v5  ;;  %v25222_v47 = vpack.c.bf16 %v9904_v52, %v9903_v46  ;;  %v2948_v5 = vld [vmem:[#allocation3 + $0x39] sm:$0xff]  ;;  %v2947_v39 = vld [vmem:[#allocation3 + $0x31] sm:$0xff] }
 0x21a   : > { %23745 = vmatprep.subr.msk.bf16.mxu0 %vm10040_vm6, %v25202_v24  ;;  %v9923_v52 = vld [vmem:[#allocation2 + $0x168] sm:$0xff]  ;;  %v25283_v45 = vpack.c.bf16 %v2948_v5, %v2947_v39 }
 0x21b   : > { %v10423_v24 = vld [vmem:[#allocation2 + $0x4a] sm:$0xff]  ;;  %v2955_v5 = vld [vmem:[#allocation3 + $0x91] sm:$0xff] }
 0x21f   : > { %20324 = vmatmul.mubr.msk.bf16.gmra.mrb[104].mxu1 %vm631_vm4, %v24992_v57  ;;  %21170 = vmatmul.mubr.msk.bf16.gmra.mrb[36].mxu0 %vm575_vm1, %v25210_v38  ;;  %v9908_v57 = vld [vmem:[#allocation2 + $0xb0] sm:$0xff] }
 0x220   : > { %20327 = vmatprep.mubr.msk.bf16.mxu1 %vm631_vm4, %v25007_v14  ;;  %21173 = vmatprep.mubr.msk.bf16.mxu0 %vm575_vm1, %v25212_v42  ;;  %v9910_v14 = vld [vmem:[#allocation2 + $0xc8] sm:$0xff]  ;;  %v25234_v58 = vpack.c.bf16 %v9908_v57, %v9907_v53  ;;  %v3338_v57 = vsel %vm1980_vm3, %v25179_v27, 0  ;;  %v25289_v53 = vpack.c.bf16 %v2950_v30, %v2949_v48  ;;  %v2952_v27 = vld [vmem:[#allocation3 + $0x69] sm:$0xff] }
 0x221   : > { %v25236_v61 = vpack.c.bf16 %v9910_v14, %v9909_v59  ;;  %v10449_v14 = vpack.c.bf16 %v10418_v31, %v10417_v37  ;;  %v25294_v59 = vld [vmem:[%s28075_s7 + $0xc] sm:$0x3]  ;;  %v2957_v30 = vld [vmem:[#allocation3 + $0xa9] sm:$0xff] }
 0x222   : > { %v25334_v39 = vpack.c.bf16 %v2958_v10, %v2957_v30  ;;  %v2960_v48 = vld [vmem:[#allocation3 + $0xc9] sm:$0xff] }
 0x227   : > { %20328 = vmatmul.mubr.msk.bf16.gmra.mrb[108].mxu1 %vm631_vm4, %v25010_v20  ;;  %21174 = vmatmul.mubr.msk.bf16.gmra.mrb[40].mxu0 %vm575_vm1, %v25222_v47  ;;  %v9912_v20 = vld [vmem:[#allocation2 + $0xe0] sm:$0xff] }
 0x228   : > { %20331 = vmatprep.mubr.msk.bf16.mxu1 %vm631_vm4, %v25025_v44  ;;  %21177 = vmatprep.mubr.msk.bf16.mxu0 %vm575_vm1, %v25224_v51  ;;  %v9914_v44 = vld [vmem:[#allocation2 + $0xf8] sm:$0xff]  ;;  %v25246_v0 = vpack.c.bf16 %v9912_v20, %v9911_v62 }
 0x229   : > { %v25248_v4 = vpack.c.bf16 %v9914_v44, %v9913_v1  ;;  %v10419_v20 = vld [vmem:[#allocation2 + $0x1a] sm:$0xff]  ;;  %v10420_v44 = vld [vmem:[#allocation2 + $0x22] sm:$0xff]  ;;  %v2954_v62 = vld [vmem:[#allocation3 + $0x81] sm:$0xff] }
 0x22a   : > { %v10421_v1 = vld [vmem:[#allocation2 + $0x32] sm:$0xff] }
 0x22f   : > { %20332 = vmatmul.mubr.msk.bf16.gmra.mrb[112].mxu1 %vm631_vm4, %v25028_v49  ;;  %21178 = vmatmul.mubr.msk.bf16.gmra.mrb[44].mxu0 %vm575_vm1, %v25234_v58  ;;  %v9916_v49 = vld [vmem:[#allocation2 + $0x110] sm:$0xff] }
 0x230   : > { %20335 = vmatprep.mubr.msk.bf16.mxu1 %vm631_vm4, %v25043_v40  ;;  %21181 = vmatprep.mubr.msk.bf16.mxu0 %vm575_vm1, %v25236_v61  ;;  %v9918_v40 = vld [vmem:[#allocation2 + $0x128] sm:$0xff]  ;;  %v25258_v8 = vpack.c.bf16 %v9916_v49, %v9915_v7  ;;  %v10422_v49 = vld [vmem:[#allocation2 + $0x3a] sm:$0xff] }
 0x231   : > { %v25260_v12 = vpack.c.bf16 %v9918_v40, %v9917_v11  ;;  %v2951_v40 = vld [vmem:[#allocation3 + $0x61] sm:$0xff]  ;;  %v25307_v11 = vpack.c.bf16 %v10420_v44, %v10419_v20  ;;  %v10430_v44 = vld [vmem:[#allocation2 + $0x9a] sm:$0xff] }
 0x232   : > { %v25305_v7 = vpack.c.bf16 %v2952_v27, %v2951_v40  ;;  %v2962_v27 = vld [vmem:[#allocation3 + $0xe1] sm:$0xff]  ;;  %v2961_v40 = vld [vmem:[#allocation3 + $0xd9] sm:$0xff] }
 0x233   : > { %v10429_v20 = vld [vmem:[#allocation2 + $0x92] sm:$0xff] }
 0x237   : > { %20336 = vmatmul.mubr.msk.bf16.gmra.mrb[116].mxu1 %vm631_vm4, %v25046_v13  ;;  %21182 = vmatmul.mubr.msk.bf16.gmra.mrb[48].mxu0 %vm575_vm1, %v25246_v0  ;;  %v2682_v13 = vld [vmem:[#allocation3 + $0x188] sm:$0xff] }
 0x238   : > { %20339 = vmatprep.mubr.msk.bf16.mxu1 %vm631_vm4, %v25061_v25  ;;  %21185 = vmatprep.mubr.msk.bf16.mxu0 %vm575_vm1, %v25248_v4  ;;  %v9920_v25 = vld [vmem:[#allocation2 + $0x140] sm:$0xff]  ;;  %v25270_v23 = vpack.c.bf16 %v2682_v13, %v2681_v19  ;;  %v2953_v13 = vld [vmem:[#allocation3 + $0x79] sm:$0xff] }
 0x239   : > { %v25272_v63 = vpack.c.bf16 %v9920_v25, %v9919_v22  ;;  %v25309_v25 = vpack.c.bf16 %v2954_v62, %v2953_v13  ;;  %v25322_v19 = vld [vmem:[%s28081_s13 + $0x10] sm:$0xf]  ;;  %v25350_v13 = vpack.c.bf16 %v2962_v27, %v2961_v40 }
 0x23a   : > { %v2956_v22 = vld [vmem:[#allocation3 + $0x99] sm:$0xff]  ;;  %v2959_v62 = vld [vmem:[#allocation3 + $0xc1] sm:$0xff] }
 0x23b   : > { %v25330_v37 = vpack.c.bf16 %v2956_v22, %v2955_v5  ;;  %v2964_v22 = vld [vmem:[#allocation3 + $0xf9] sm:$0xff] }
 0x23c   : > { %v10434_v5 = vld [vmem:[#allocation2 + $0xca] sm:$0xff] }
 0x23f   : > { %20340 = vmatmul.mubr.msk.bf16.gmra.mrb[120].mxu1 %vm631_vm4, %v25063_v41  ;;  %21186 = vmatmul.mubr.msk.bf16.gmra.mrb[52].mxu0 %vm575_vm1, %v25258_v8  ;;  %v2945_v41 = vld [vmem:[#allocation3 + $0x19] sm:$0xff] }
 0x240   : > { %20343 = vmatprep.mubr.msk.bf16.mxu1 %vm631_vm4, %v25071_v55  ;;  %21189 = vmatprep.mubr.msk.bf16.mxu0 %vm575_vm1, %v25260_v12  ;;  %v2977_v28 = vpack.c.bf16 %v2946_v16, %v2945_v41  ;;  %v9924_v55 = vld [vmem:[#allocation2 + $0x170] sm:$0xff]  ;;  %v25311_v16 = vpack.c.bf16 %v10422_v49, %v10421_v1  ;;  %v25346_v1 = vpack.c.bf16 %v2960_v48, %v2959_v62  ;;  %v2963_v48 = vld [vmem:[#allocation3 + $0xf1] sm:$0xff] }
 0x241   : > { %v25285_v46 = vpack.c.bf16 %v9924_v55, %v9923_v52  ;;  %v10424_v41 = vld [vmem:[#allocation2 + $0x52] sm:$0xff]  ;;  %v10426_v55 = vld [vmem:[#allocation2 + $0x6a] sm:$0xff] }
 0x242   : > { %v25332_v31 = vpack.c.bf16 %v10424_v41, %v10423_v24  ;;  %v10431_v24 = vld [vmem:[#allocation2 + $0xaa] sm:$0xff]  ;;  %v10432_v41 = vld [vmem:[#allocation2 + $0xb2] sm:$0xff] }
 0x243   : > { %v25370_v27 = vpack.c.bf16 %v10432_v41, %v10431_v24  ;;  %v10435_v24 = vld [vmem:[#allocation2 + $0xda] sm:$0xff]  ;;  %v10436_v41 = vld [vmem:[#allocation2 + $0xe2] sm:$0xff] }
 0x245   : > { %28122 = vst [vmem:[#allocation19_spill] sm:$0xff] %v25370_v27 }
 0x247   : > { %20344 = vmatmul.mubr.msk.bf16.gmra.mrb[124].mxu1 %vm631_vm4, %v25270_v23  ;;  %21190 = vmatmul.mubr.msk.bf16.gmra.mrb[56].mxu0 %vm575_vm1, %v25272_v63 }
 0x248   : > { %20349 = vmatprep.mubr.msk.bf16.mxu1 %vm631_vm4, %v2977_v28  ;;  %21193 = vmatprep.mubr.msk.bf16.mxu0 %vm575_vm1, %v25274_v34  ;;  %v10425_v28 = vld [vmem:[#allocation2 + $0x62] sm:$0xff] }
 0x249   : > { %v25336_v52 = vpack.c.bf16 %v10426_v55, %v10425_v28  ;;  %v2966_v28 = vld [vmem:[#allocation3 + $0x111] sm:$0xff] }
 0x24a   : > { %v10433_v55 = vld [vmem:[#allocation2 + $0xc2] sm:$0xff] }
 0x24b   : > { %v25376_v40 = vpack.c.bf16 %v10434_v5, %v10433_v55  ;;  %v10437_v55 = vld [vmem:[#allocation2 + $0xf2] sm:$0xff]  ;;  %v10438_v5 = vld [vmem:[#allocation2 + $0xfa] sm:$0xff] }
 0x24d   : > { %28125 = vst [vmem:[#allocation22_spill] sm:$0xff] %v25376_v40 }
 0x24f   : > { %20350 = vmatmul.mubr.msk.bf16.vlgmr.msra.gmra.mrb[96].mxu1 %vm631_vm4, %v25283_v45  ;;  %21194 = vmatmul.mubr.msk.bf16.gmra.mrb[60].mxu0 %vm575_vm1, %v25285_v46 }
 0x250   : > { %20353 = vmatprep.mubr.msk.bf16.mxu1 %vm631_vm4, %v25289_v53  ;;  %20382 = vmatpush3.bf16.msra.mxu1 %v3338_v57  ;;  %v10427_v57 = vld [vmem:[#allocation2 + $0x7a] sm:$0xff] }
 0x251   : > { %21199 = vmatprep.mubr.msk.bf16.mxu0 %vm575_vm1, %v10449_v14  ;;  %23721 = vmatprep.subr.msk.bf16.mxu1 %vm1980_vm3, %v25294_v59  ;;  %v10428_v14 = vld [vmem:[#allocation2 + $0x82] sm:$0xff] }
 0x252   : > { %v25348_v49 = vpack.c.bf16 %v10428_v14, %v10427_v57  ;;  %v25368_v14 = vpack.c.bf16 %v2964_v22, %v2963_v48  ;;  %v2968_v22 = vld [vmem:[#allocation3 + $0x129] sm:$0xff] }
 0x257   : > { %20354 = vmatmul.mubr.msk.bf16.gmra.mrb[100].mxu1 %vm631_vm4, %v25305_v7  ;;  %21200 = vmatmul.mubr.msk.bf16.vlgmr.msra.gmra.mrb[32].mxu0 %vm575_vm1, %v25307_v11 }
 0x258   : > { %20357 = vmatprep.mubr.msk.bf16.mxu1 %vm631_vm4, %v25309_v25  ;;  %21203 = vmatprep.mubr.msk.bf16.mxu0 %vm575_vm1, %v25311_v16 }
 0x259   : > { %21232 = vmatpush3.bf16.msra.mxu0 %v10810_v18  ;;  %v25352_v18 = vpack.c.bf16 %v10430_v44, %v10429_v20  ;;  %v2965_v20 = vld [vmem:[#allocation3 + $0x109] sm:$0xff] }
 0x25a   : > { %23746 = vmatprep.subr.msk.bf16.mxu0 %vm10040_vm6, %v25322_v19  ;;  %v25374_v62 = vpack.c.bf16 %v2966_v28, %v2965_v20  ;;  %v2970_v28 = vld [vmem:[#allocation3 + $0x141] sm:$0xff] }
 0x25c   : > { %28124 = vst [vmem:[#allocation21_spill] sm:$0xff] %v25374_v62 }
 0x25f   : > { %20358 = vmatmul.mubr.msk.bf16.gmra.mrb[104].mxu1 %vm631_vm4, %v25330_v37  ;;  %21204 = vmatmul.mubr.msk.bf16.gmra.mrb[36].mxu0 %vm575_vm1, %v25332_v31 }
 0x260   : > { %20361 = vmatprep.mubr.msk.bf16.mxu1 %vm631_vm4, %v25334_v39  ;;  %21207 = vmatprep.mubr.msk.bf16.mxu0 %vm575_vm1, %v25336_v52 }
 0x267   : > { %20362 = vmatmul.mubr.msk.bf16.gmra.mrb[108].mxu1 %vm631_vm4, %v25346_v1  ;;  %21208 = vmatmul.mubr.msk.bf16.gmra.mrb[40].mxu0 %vm575_vm1, %v25348_v49 }
 0x268   : > { %20365 = vmatprep.mubr.msk.bf16.mxu1 %vm631_vm4, %v25350_v13  ;;  %21211 = vmatprep.mubr.msk.bf16.mxu0 %vm575_vm1, %v25352_v18 }
 0x26a   : > { %v25362_v10 = vpop.f32.mrb[0].mxu0 }
 0x26b   : > { %28119 = vst [vmem:[#allocation16_spill] sm:$0xff] %v25362_v10  ;;  %v25364_v30 = vpop.f32.mrb[1].mxu0  ;;  %v2969_v10 = vld [vmem:[#allocation3 + $0x139] sm:$0xff] }
 0x26c   : > { %28120 = vst [vmem:[#allocation17_spill] sm:$0xff] %v25364_v30  ;;  %v25366_v57 = vpop.f32.mrb[2].mxu0  ;;  %v25394_v30 = vpack.c.bf16 %v10436_v41, %v10435_v24  ;;  %v10440_v24 = vld [vmem:[#allocation2 + $0x112] sm:$0xff] }
 0x26d   : > { %28121 = vst [vmem:[#allocation18_spill] sm:$0xff] %v25366_v57  ;;  %v25372_v44 = vpop.f32.mrb[3].mxu0  ;;  %v25392_v57 = vpack.c.bf16 %v2968_v22, %v2967_v21  ;;  %v2972_v21 = vld [vmem:[#allocation3 + $0x159] sm:$0xff] }
 0x26e   : > { %28123 = vst [vmem:[#allocation20_spill] sm:$0xff] %v25372_v44  ;;  %28130 = vst [vmem:[#allocation27_spill] sm:$0xff] %v25394_v30  ;;  %v10439_v22 = vld [vmem:[#allocation2 + $0x10a] sm:$0xff] }
 0x26f   : > { %20366 = vmatmul.mubr.msk.bf16.gmra.mrb[112].mxu1 %vm631_vm4, %v25368_v14  ;;  %21212 = vmatmul.mubr.msk.bf16.gmra.mrb[44].mxu0 %vm575_vm1, %v25370_v27  ;;  %28129 = vst [vmem:[#allocation26_spill] sm:$0xff] %v25392_v57  ;;  %v25400_v27 = vpack.c.bf16 %v10438_v5, %v10437_v55  ;;  %v10442_v55 = vld [vmem:[#allocation2 + $0x12a] sm:$0xff] }
 0x270   : > { %20369 = vmatprep.mubr.msk.bf16.mxu1 %vm631_vm4, %v25374_v62  ;;  %21215 = vmatprep.mubr.msk.bf16.mxu0 %vm575_vm1, %v25376_v40  ;;  %v25398_v40 = vpack.c.bf16 %v2970_v28, %v2969_v10  ;;  %v2974_v10 = vld [vmem:[#allocation3 + $0x171] sm:$0xff] }
 0x271   : > { %28133 = vst [vmem:[#allocation30_spill] sm:$0xff] %v25400_v27  ;;  %v10441_v28 = vld [vmem:[#allocation2 + $0x122] sm:$0xff] }
 0x272   : > { %v25386_v48 = vpop.f32.mrb[4].mxu0  ;;  %28132 = vst [vmem:[#allocation29_spill] sm:$0xff] %v25398_v40 }
 0x273   : > { %28126 = vst [vmem:[#allocation23_spill] sm:$0xff] %v25386_v48  ;;  %v25388_v20 = vpop.f32.mrb[5].mxu0  ;;  %v25418_v48 = vpack.c.bf16 %v10440_v24, %v10439_v22  ;;  %v10444_v22 = vld [vmem:[#allocation2 + $0x142] sm:$0xff] }
 0x274   : > { %28127 = vst [vmem:[#allocation24_spill] sm:$0xff] %v25388_v20  ;;  %v25390_v44 = vpop.f32.mrb[6].mxu0 }
 0x275   : > { %28128 = vst [vmem:[#allocation25_spill] sm:$0xff] %v25390_v44  ;;  %v25396_v62 = vpop.f32.mrb[7].mxu0 }
 0x276   : > { %28131 = vst [vmem:[#allocation28_spill] sm:$0xff] %v25396_v62  ;;  %v2971_v62 = vld [vmem:[#allocation3 + $0x151] sm:$0xff] }
 0x277   : > { %20370 = vmatmul.mubr.msk.bf16.gmra.mrb[116].mxu1 %vm631_vm4, %v25392_v57  ;;  %21216 = vmatmul.mubr.msk.bf16.gmra.mrb[48].mxu0 %vm575_vm1, %v25394_v30  ;;  %v25416_v20 = vpack.c.bf16 %v2972_v21, %v2971_v62  ;;  %v25424_v57 = vpack.c.bf16 %v10442_v55, %v10441_v28  ;;  %v2976_v62 = vld [vmem:[#allocation3 + $0x189] sm:$0xff]  ;;  %v2975_v55 = vld [vmem:[#allocation3 + $0x181] sm:$0xff] }
 0x278   : > { %20373 = vmatprep.mubr.msk.bf16.mxu1 %vm631_vm4, %v25398_v40  ;;  %21219 = vmatprep.mubr.msk.bf16.mxu0 %vm575_vm1, %v25400_v27  ;;  %v2973_v40 = vld [vmem:[#allocation3 + $0x169] sm:$0xff] }
 0x279   : > { %v25422_v27 = vpack.c.bf16 %v2974_v10, %v2973_v40  ;;  %v10443_v21 = vld [vmem:[#allocation2 + $0x13a] sm:$0xff]  ;;  %v10445_v40 = vld [vmem:[#allocation2 + $0x152] sm:$0xff] }
 0x27a   : > { %v25410_v41 = vpop.f32.mrb[8].mxu0  ;;  %v10446_v10 = vld [vmem:[#allocation2 + $0x15a] sm:$0xff] }
 0x27b   : > { %28134 = vst [vmem:[#allocation31_spill] sm:$0xff] %v25410_v41  ;;  %v25412_v5 = vpop.f32.mrb[9].mxu0  ;;  %28138 = vst [vmem:[#allocation35_spill] sm:$0xff] %v25422_v27 }
 0x27c   : > { %28135 = vst [vmem:[#allocation32_spill] sm:$0xff] %v25412_v5  ;;  %v25414_v44 = vpop.f32.mrb[10].mxu0  ;;  %v25442_v5 = vpack.c.bf16 %v10444_v22, %v10443_v21 }
 0x27d   : > { %28136 = vst [vmem:[#allocation33_spill] sm:$0xff] %v25414_v44  ;;  %v25420_v30 = vpop.f32.mrb[11].mxu0  ;;  %v25440_v44 = vpack.c.bf16 %v2976_v62, %v2975_v55  ;;  %v10447_v62 = vld [vmem:[#allocation2 + $0x16a] sm:$0xff]  ;;  %v10448_v55 = vld [vmem:[#allocation2 + $0x172] sm:$0xff] }
 0x27e   : > { %28137 = vst [vmem:[#allocation34_spill] sm:$0xff] %v25420_v30 }
 0x27f   : > { %20374 = vmatmul.mubr.msk.bf16.gmra.mrb[120].mxu1 %vm631_vm4, %v25416_v20  ;;  %21220 = vmatmul.mubr.msk.bf16.gmra.mrb[52].mxu0 %vm575_vm1, %v25418_v48 }
 0x280   : > { %20377 = vmatprep.mubr.msk.bf16.mxu1 %vm631_vm4, %v25422_v27  ;;  %21223 = vmatprep.mubr.msk.bf16.mxu0 %vm575_vm1, %v25424_v57  ;;  %v25446_v27 = vpack.c.bf16 %v10446_v10, %v10445_v40  ;;  %v25462_v10 = vpack.c.bf16 %v10448_v55, %v10447_v62 }
 0x282   : > { %v25434_v24 = vpop.f32.mrb[12].mxu0 }
 0x283   : > { %28139 = vst [vmem:[#allocation36_spill] sm:$0xff] %v25434_v24  ;;  %v25436_v28 = vpop.f32.mrb[13].mxu0 }
 0x284   : > { %28140 = vst [vmem:[#allocation37_spill] sm:$0xff] %v25436_v28  ;;  %v25438_v30 = vpop.f32.mrb[14].mxu0 }
 0x285   : > { %28141 = vst [vmem:[#allocation38_spill] sm:$0xff] %v25438_v30  ;;  %v25444_v41 = vpop.f32.mrb[15].mxu0 }
 0x286   : > { %28142 = vst [vmem:[#allocation39_spill] sm:$0xff] %v25444_v41  ;;  %v3633_v41 = vsel %vm1980_vm3, %v25294_v59, 0 }
 0x287   : > { %20378 = vmatmul.mubr.msk.bf16.gmra.mrb[124].mxu1 %vm631_vm4, %v25440_v44  ;;  %21224 = vmatmul.mubr.msk.bf16.gmra.mrb[56].mxu0 %vm575_vm1, %v25442_v5 }
 0x288   : > { %20383 = vmatprep.mubr.msk.bf16.mxu1 %vm631_vm4, %v25078_v29  ;;  %21227 = vmatprep.mubr.msk.bf16.mxu0 %vm575_vm1, %v25446_v27  ;;  %v18290_v29 = vld [vmem:[%s28075_s7 + $0xe] sm:$0x3] }
 0x28a   : > { %v25456_v21 = vpop.f32.mrb[16].mxu0 }
 0x28b   : > { %28143 = vst [vmem:[#allocation40_spill] sm:$0xff] %v25456_v21  ;;  %v25458_v22 = vpop.f32.mrb[17].mxu0  ;;  %v5934_v21 = vld [vmem:[#allocation5 + $0x82] sm:$0xff] }
 0x28c   : > { %28144 = vst [vmem:[#allocation41_spill] sm:$0xff] %v25458_v22  ;;  %v25460_v40 = vpop.f32.mrb[18].mxu0  ;;  %v5929_v22 = vld [vmem:[#allocation5 + $0x4a] sm:$0xff] }
 0x28d   : > { %28145 = vst [vmem:[#allocation42_spill] sm:$0xff] %v25460_v40  ;;  %v25466_v30 = vpop.f32.mrb[19].mxu0 }
 0x28e   : > { %28146 = vst [vmem:[#allocation43_spill] sm:$0xff] %v25466_v30 }
 0x28f   : > { %20384 = vmatmul.mubr.msk.bf16.vlgmr.msra.gmra.mrb[96].mxu1 %vm631_vm4, %v25082_v9  ;;  %21228 = vmatmul.mubr.msk.bf16.gmra.mrb[60].mxu0 %vm575_vm1, %v25462_v10  ;;  %v11104_v9 = vsel %vm10040_vm6, %v25322_v19, 0 }
 0x290   : > { %20387 = vmatprep.mubr.msk.bf16.mxu1 %vm631_vm4, %v25097_v3  ;;  %20416 = vmatpush3.bf16.msra.mxu1 %v3633_v41  ;;  %v25497_v3 = vld [vmem:[%s28081_s13 + $0x14] sm:$0xf]  ;;  %v3540_v41 = vld [vmem:[#allocation3 + $0x78] sm:$0xff] }
 0x291   : > { %21233 = vmatprep.mubr.msk.bf16.mxu0 %vm575_vm1, %v25189_v32  ;;  %23722 = vmatprep.subr.msk.bf16.mxu1 %vm1980_vm3, %v18290_v29 }
 0x292   : > { %v25480_v59 = vpop.f32.mrb[20].mxu0 }
 0x293   : > { %28147 = vst [vmem:[#allocation44_spill] sm:$0xff] %v25480_v59  ;;  %v25482_v62 = vpop.f32.mrb[21].mxu0 }
 0x294   : > { %28148 = vst [vmem:[#allocation45_spill] sm:$0xff] %v25482_v62  ;;  %v25484_v55 = vpop.f32.mrb[22].mxu0 }
 0x295   : > { %28149 = vst [vmem:[#allocation46_spill] sm:$0xff] %v25484_v55  ;;  %v25486_v30 = vpop.f32.mrb[23].mxu0 }
 0x296   : > { %28150 = vst [vmem:[#allocation47_spill] sm:$0xff] %v25486_v30 }
 0x297   : > { %20388 = vmatmul.mubr.msk.bf16.gmra.mrb[100].mxu1 %vm631_vm4, %v25099_v26  ;;  %21234 = vmatmul.mubr.msk.bf16.vlgmr.msra.gmra.mrb[32].mxu0 %vm575_vm1, %v25191_v35 }
 0x298   : > { %20391 = vmatprep.mubr.msk.bf16.mxu1 %vm631_vm4, %v25116_v17  ;;  %21237 = vmatprep.mubr.msk.bf16.mxu0 %vm575_vm1, %v25210_v38  ;;  %v3269_v17 = vld [vmem:[#allocation3 + $0x182] sm:$0xff]  ;;  %v11006_v38 = vld [vmem:[#allocation2 + $0x21] sm:$0xff] }
 0x299   : > { %21266 = vmatpush3.bf16.msra.mxu0 %v11104_v9 }
 0x29a   : > { %v25503_v32 = vpop.f32.mrb[24].mxu0  ;;  %23747 = vmatprep.subr.msk.bf16.mxu0 %vm10040_vm6, %v25497_v3 }
 0x29b   : > { %28151 = vst [vmem:[#allocation48_spill] sm:$0xff] %v25503_v32  ;;  %v25507_v26 = vpop.f32.mrb[25].mxu0  ;;  %v5662_v32 = vld [vmem:[#allocation5 + $0x189] sm:$0xff] }
 0x29c   : > { %28152 = vst [vmem:[#allocation49_spill] sm:$0xff] %v25507_v26  ;;  %v25509_v35 = vpop.f32.mrb[26].mxu0  ;;  %v5661_v26 = vld [vmem:[#allocation5 + $0x181] sm:$0xff] }
 0x29d   : > { %28153 = vst [vmem:[#allocation50_spill] sm:$0xff] %v25509_v35  ;;  %v25511_v19 = vpop.f32.mrb[27].mxu0 }
 0x29e   : > { %28154 = vst [vmem:[#allocation51_spill] sm:$0xff] %v25511_v19 }
 0x29f   : > { %20392 = vmatmul.mubr.msk.bf16.gmra.mrb[104].mxu1 %vm631_vm4, %v25118_v43  ;;  %21238 = vmatmul.mubr.msk.bf16.gmra.mrb[36].mxu0 %vm575_vm1, %v25212_v42  ;;  %v3270_v43 = vld [vmem:[#allocation3 + $0x18a] sm:$0xff] }
 0x2a0   : > { %20395 = vmatprep.mubr.msk.bf16.mxu1 %vm631_vm4, %v25126_v56  ;;  %21241 = vmatprep.mubr.msk.bf16.mxu0 %vm575_vm1, %v25222_v47  ;;  %v3535_v56 = vld [vmem:[#allocation3 + $0x38] sm:$0xff] }
 0x2a7   : > { %20396 = vmatmul.mubr.msk.bf16.gmra.mrb[108].mxu1 %vm631_vm4, %v25128_v60  ;;  %21242 = vmatmul.mubr.msk.bf16.gmra.mrb[40].mxu0 %vm575_vm1, %v25224_v51  ;;  %v25553_v60 = vpack.c.bf16 %v3270_v43, %v3269_v17  ;;  %v3538_v51 = vld [vmem:[#allocation3 + $0x60] sm:$0xff]  ;;  %v3542_v43 = vld [vmem:[#allocation3 + $0x90] sm:$0xff] }
 0x2a8   : > { %20399 = vmatprep.mubr.msk.bf16.mxu1 %vm631_vm4, %v25136_v6  ;;  %21245 = vmatprep.mubr.msk.bf16.mxu0 %vm575_vm1, %v25234_v58  ;;  %v3534_v6 = vld [vmem:[#allocation3 + $0x30] sm:$0xff]  ;;  %v3927_v58 = vsel %vm1980_vm3, %v18290_v29, 0  ;;  %v11007_v29 = vld [vmem:[#allocation2 + $0x31] sm:$0xff] }
 0x2af   : > { %20400 = vmatmul.mubr.msk.bf16.gmra.mrb[112].mxu1 %vm631_vm4, %v25138_v15  ;;  %21246 = vmatmul.mubr.msk.bf16.gmra.mrb[44].mxu0 %vm575_vm1, %v25236_v61  ;;  %v3566_v15 = vpack.c.bf16 %v3535_v56, %v3534_v6  ;;  %v11009_v56 = vld [vmem:[#allocation2 + $0x49] sm:$0xff] }
 0x2b0   : > { %20403 = vmatprep.mubr.msk.bf16.mxu1 %vm631_vm4, %v25146_v33  ;;  %21249 = vmatprep.mubr.msk.bf16.mxu0 %vm575_vm1, %v25246_v0  ;;  %v3537_v33 = vld [vmem:[#allocation3 + $0x50] sm:$0xff] }
 0x2b1   : > { %v11005_v0 = vld [vmem:[#allocation2 + $0x19] sm:$0xff] }
 0x2b7   : > { %20404 = vmatmul.mubr.msk.bf16.gmra.mrb[116].mxu1 %vm631_vm4, %v25148_v36  ;;  %21250 = vmatmul.mubr.msk.bf16.gmra.mrb[48].mxu0 %vm575_vm1, %v25248_v4  ;;  %v10742_v36 = vld [vmem:[#allocation2 + $0x188] sm:$0xff]  ;;  %v25568_v4 = vld [vmem:[%s28075_s7 + $0x10] sm:$0x3] }
 0x2b8   : > { %20407 = vmatprep.mubr.msk.bf16.mxu1 %vm631_vm4, %v25156_v50  ;;  %21253 = vmatprep.mubr.msk.bf16.mxu0 %vm575_vm1, %v25258_v8  ;;  %v3539_v50 = vld [vmem:[#allocation3 + $0x68] sm:$0xff]  ;;  %v11037_v8 = vpack.c.bf16 %v11006_v38, %v11005_v0 }
 0x2b9   : > { %v3568_v61 = vpack.c.bf16 %v3539_v50, %v3538_v51  ;;  %v3545_v50 = vld [vmem:[#allocation3 + $0xb0] sm:$0xff]  ;;  %v3544_v38 = vld [vmem:[#allocation3 + $0xa8] sm:$0xff] }
 0x2ba   : > { %v3571_v51 = vpack.c.bf16 %v3545_v50, %v3544_v38  ;;  %v11013_v0 = vld [vmem:[#allocation2 + $0x79] sm:$0xff] }
 0x2bb   : > { %v3555_v38 = vld [vmem:[#allocation3 + $0x128] sm:$0xff] }
 0x2bf   : > { %20408 = vmatmul.mubr.msk.bf16.gmra.mrb[120].mxu1 %vm631_vm4, %v25158_v54  ;;  %21254 = vmatmul.mubr.msk.bf16.gmra.mrb[52].mxu0 %vm575_vm1, %v25260_v12  ;;  %v3536_v54 = vld [vmem:[#allocation3 + $0x48] sm:$0xff]  ;;  %v3541_v12 = vld [vmem:[#allocation3 + $0x80] sm:$0xff] }
 0x2c0   : > { %20411 = vmatprep.mubr.msk.bf16.mxu1 %vm631_vm4, %v25166_v2  ;;  %21257 = vmatprep.mubr.msk.bf16.mxu0 %vm575_vm1, %v25272_v63  ;;  %v10741_v2 = vld [vmem:[#allocation2 + $0x180] sm:$0xff]  ;;  %v3567_v42 = vpack.c.bf16 %v3537_v33, %v3536_v54  ;;  %v3569_v9 = vpack.c.bf16 %v3541_v12, %v3540_v41  ;;  %v11398_v33 = vsel %vm10040_vm6, %v25497_v3, 0  ;;  %v11012_v54 = vld [vmem:[#allocation2 + $0x69] sm:$0xff]  ;;  %v3547_v3 = vld [vmem:[#allocation3 + $0xc8] sm:$0xff] }
 0x2c1   : > { %v25562_v47 = vpack.c.bf16 %v10742_v36, %v10741_v2  ;;  %v11008_v63 = vld [vmem:[#allocation2 + $0x39] sm:$0xff]  ;;  %v11014_v2 = vld [vmem:[#allocation2 + $0x81] sm:$0xff]  ;;  %v11018_v41 = vld [vmem:[#allocation2 + $0xb1] sm:$0xff] }
 0x2c2   : > { %v25577_v17 = vpack.c.bf16 %v11008_v63, %v11007_v29  ;;  %v25589_v36 = vld [vmem:[%s28081_s13 + $0x18] sm:$0xf]  ;;  %v25598_v12 = vpack.c.bf16 %v11014_v2, %v11013_v0  ;;  %v3549_v63 = vld [vmem:[#allocation3 + $0xe0] sm:$0xff]  ;;  %v3548_v29 = vld [vmem:[#allocation3 + $0xd8] sm:$0xff] }
 0x2c3   : > { %v11020_v2 = vld [vmem:[#allocation2 + $0xc9] sm:$0xff] }
 0x2c7   : > { %20412 = vmatmul.mubr.msk.bf16.gmra.mrb[124].mxu1 %vm631_vm4, %v25553_v60  ;;  %21258 = vmatmul.mubr.msk.bf16.gmra.mrb[56].mxu0 %vm575_vm1, %v25274_v34  ;;  %v3543_v34 = vld [vmem:[#allocation3 + $0x98] sm:$0xff] }
 0x2c8   : > { %20417 = vmatprep.mubr.msk.bf16.mxu1 %vm631_vm4, %v3566_v15  ;;  %21261 = vmatprep.mubr.msk.bf16.mxu0 %vm575_vm1, %v25285_v46  ;;  %v11010_v46 = vld [vmem:[#allocation2 + $0x51] sm:$0xff]  ;;  %v3570_v6 = vpack.c.bf16 %v3543_v34, %v3542_v43  ;;  %v11016_v34 = vld [vmem:[#allocation2 + $0x99] sm:$0xff]  ;;  %v3573_v43 = vpack.c.bf16 %v3549_v63, %v3548_v29 }
 0x2c9   : > { %v25579_v15 = vpack.c.bf16 %v11010_v46, %v11009_v56  ;;  %v3551_v46 = vld [vmem:[#allocation3 + $0xf8] sm:$0xff]  ;;  %v3554_v63 = vld [vmem:[#allocation3 + $0x120] sm:$0xff] }
 0x2ca   : > { %v3557_v29 = vld [vmem:[#allocation3 + $0x140] sm:$0xff] }
 0x2cf   : > { %20418 = vmatmul.mubr.msk.bf16.vlgmr.msra.gmra.mrb[96].mxu1 %vm631_vm4, %v3567_v42  ;;  %21262 = vmatmul.mubr.msk.bf16.gmra.mrb[60].mxu0 %vm575_vm1, %v25562_v47  ;;  %v11011_v42 = vld [vmem:[#allocation2 + $0x61] sm:$0xff] }
 0x2d0   : > { %20421 = vmatprep.mubr.msk.bf16.mxu1 %vm631_vm4, %v3568_v61  ;;  %20450 = vmatpush3.bf16.msra.mxu1 %v3927_v58  ;;  %v25596_v58 = vpack.c.bf16 %v11012_v54, %v11011_v42  ;;  %v3546_v61 = vld [vmem:[#allocation3 + $0xc0] sm:$0xff]  ;;  %v11022_v42 = vld [vmem:[#allocation2 + $0xe1] sm:$0xff] }
 0x2d1   : > { %21267 = vmatprep.mubr.msk.bf16.mxu0 %vm575_vm1, %v11037_v8  ;;  %23723 = vmatprep.subr.msk.bf16.mxu1 %vm1980_vm3, %v25568_v4  ;;  %v3572_v8 = vpack.c.bf16 %v3547_v3, %v3546_v61  ;;  %v3553_v3 = vld [vmem:[#allocation3 + $0x110] sm:$0xff] }
 0x2d2   : > { %v11019_v61 = vld [vmem:[#allocation2 + $0xc1] sm:$0xff] }
 0x2d7   : > { %20422 = vmatmul.mubr.msk.bf16.gmra.mrb[100].mxu1 %vm631_vm4, %v3569_v9  ;;  %21268 = vmatmul.mubr.msk.bf16.vlgmr.msra.gmra.mrb[32].mxu0 %vm575_vm1, %v25577_v17  ;;  %v11015_v9 = vld [vmem:[#allocation2 + $0x91] sm:$0xff] }
 0x2d8   : > { %20425 = vmatprep.mubr.msk.bf16.mxu1 %vm631_vm4, %v3570_v6  ;;  %21271 = vmatprep.mubr.msk.bf16.mxu0 %vm575_vm1, %v25579_v15  ;;  %v25606_v56 = vpack.c.bf16 %v11016_v34, %v11015_v9  ;;  %v3550_v6 = vld [vmem:[#allocation3 + $0xf0] sm:$0xff] }
 0x2d9   : > { %21300 = vmatpush3.bf16.msra.mxu0 %v11398_v33  ;;  %v11017_v33 = vld [vmem:[#allocation2 + $0xa9] sm:$0xff]  ;;  %v3574_v50 = vpack.c.bf16 %v3551_v46, %v3550_v6  ;;  %v11021_v34 = vld [vmem:[#allocation2 + $0xd9] sm:$0xff]  ;;  %v3576_v46 = vpack.c.bf16 %v3555_v38, %v3554_v63  ;;  %v11026_v6 = vld [vmem:[#allocation2 + $0x111] sm:$0xff] }
 0x2da   : > { %23748 = vmatprep.subr.msk.bf16.mxu0 %vm10040_vm6, %v25589_v36  ;;  %v25608_v54 = vpack.c.bf16 %v11018_v41, %v11017_v33  ;;  %v25618_v41 = vpack.c.bf16 %v11022_v42, %v11021_v34  ;;  %v11024_v9 = vld [vmem:[#allocation2 + $0xf9] sm:$0xff]  ;;  %v3556_v33 = vld [vmem:[#allocation3 + $0x138] sm:$0xff] }
 0x2db   : > { %v3558_v38 = vld [vmem:[#allocation3 + $0x150] sm:$0xff]  ;;  %v11025_v42 = vld [vmem:[#allocation2 + $0x109] sm:$0xff] }
 0x2dc   : > { %v11028_v63 = vld [vmem:[#allocation2 + $0x129] sm:$0xff]  ;;  %v11030_v34 = vld [vmem:[#allocation2 + $0x141] sm:$0xff] }
 0x2df   : > { %20426 = vmatmul.mubr.msk.bf16.gmra.mrb[104].mxu1 %vm631_vm4, %v3571_v51  ;;  %21272 = vmatmul.mubr.msk.bf16.gmra.mrb[36].mxu0 %vm575_vm1, %v25596_v58  ;;  %v3552_v51 = vld [vmem:[#allocation3 + $0x108] sm:$0xff] }
 0x2e0   : > { %20429 = vmatprep.mubr.msk.bf16.mxu1 %vm631_vm4, %v3572_v8  ;;  %21275 = vmatprep.mubr.msk.bf16.mxu0 %vm575_vm1, %v25598_v12  ;;  %v3575_v0 = vpack.c.bf16 %v3553_v3, %v3552_v51  ;;  %v25616_v8 = vpack.c.bf16 %v11020_v2, %v11019_v61  ;;  %v3577_v3 = vpack.c.bf16 %v3557_v29, %v3556_v33  ;;  %v11027_v29 = vld [vmem:[#allocation2 + $0x121] sm:$0xff] }
 0x2e1   : > { %v25628_v61 = vpack.c.bf16 %v11026_v6, %v11025_v42  ;;  %v25636_v33 = vpack.c.bf16 %v11028_v63, %v11027_v29  ;;  %v11035_v29 = vld [vmem:[#allocation2 + $0x181] sm:$0xff] }
 0x2e7   : > { %20430 = vmatmul.mubr.msk.bf16.gmra.mrb[108].mxu1 %vm631_vm4, %v3573_v43  ;;  %21276 = vmatmul.mubr.msk.bf16.gmra.mrb[40].mxu0 %vm575_vm1, %v25606_v56  ;;  %v3559_v43 = vld [vmem:[#allocation3 + $0x158] sm:$0xff] }
 0x2e8   : > { %20433 = vmatprep.mubr.msk.bf16.mxu1 %vm631_vm4, %v3574_v50  ;;  %21279 = vmatprep.mubr.msk.bf16.mxu0 %vm575_vm1, %v25608_v54  ;;  %v11023_v50 = vld [vmem:[#allocation2 + $0xf1] sm:$0xff]  ;;  %v3578_v51 = vpack.c.bf16 %v3559_v43, %v3558_v38  ;;  %v11029_v43 = vld [vmem:[#allocation2 + $0x139] sm:$0xff] }
 0x2e9   : > { %v25626_v2 = vpack.c.bf16 %v11024_v9, %v11023_v50  ;;  %v25638_v6 = vpack.c.bf16 %v11030_v34, %v11029_v43  ;;  %v3564_v50 = vld [vmem:[#allocation3 + $0x198] sm:$0xff]  ;;  %v11032_v38 = vld [vmem:[#allocation2 + $0x159] sm:$0xff]  ;;  %v4221_v43 = vsel %vm1980_vm3, %v25568_v4, 0 }
 0x2ea   : > { %v11033_v34 = vld [vmem:[#allocation2 + $0x169] sm:$0xff]  ;;  %v4126_v4 = vld [vmem:[#allocation3 + $0x62] sm:$0xff] }
 0x2ef   : > { %20434 = vmatmul.mubr.msk.bf16.gmra.mrb[112].mxu1 %vm631_vm4, %v3575_v0  ;;  %21280 = vmatmul.mubr.msk.bf16.gmra.mrb[44].mxu0 %vm575_vm1, %v25616_v8  ;;  %v3561_v0 = vld [vmem:[#allocation3 + $0x170] sm:$0xff] }
 0x2f0   : > { %20437 = vmatprep.mubr.msk.bf16.mxu1 %vm631_vm4, %v3576_v46  ;;  %21283 = vmatprep.mubr.msk.bf16.mxu0 %vm575_vm1, %v25618_v41  ;;  %v3560_v46 = vld [vmem:[#allocation3 + $0x168] sm:$0xff] }
 0x2f1   : > { %v3579_v9 = vpack.c.bf16 %v3561_v0, %v3560_v46  ;;  %v11031_v0 = vld [vmem:[#allocation2 + $0x151] sm:$0xff] }
 0x2f2   : > { %v25647_v63 = vpack.c.bf16 %v11032_v38, %v11031_v0 }
 0x2f7   : > { %20438 = vmatmul.mubr.msk.bf16.gmra.mrb[116].mxu1 %vm631_vm4, %v3577_v3  ;;  %21284 = vmatmul.mubr.msk.bf16.gmra.mrb[48].mxu0 %vm575_vm1, %v25626_v2  ;;  %v3565_v3 = vld [vmem:[#allocation3 + $0x1a0] sm:$0xff] }
 0x2f8   : > { %20441 = vmatprep.mubr.msk.bf16.mxu1 %vm631_vm4, %v3578_v51  ;;  %21287 = vmatprep.mubr.msk.bf16.mxu0 %vm575_vm1, %v25628_v61  ;;  %v3581_v42 = vpack.c.bf16 %v3565_v3, %v3564_v50  ;;  %v11034_v51 = vld [vmem:[#allocation2 + $0x171] sm:$0xff]  ;;  %v18325_v50 = vld [vmem:[%s28077_s9 + $0x2] sm:$0x3] }
 0x2f9   : > { %v25649_v46 = vpack.c.bf16 %v11034_v51, %v11033_v34  ;;  %v11595_v3 = vld [vmem:[#allocation2 + $0x38] sm:$0xff]  ;;  %v4668_v51 = vsel %vm1980_vm3, %v18325_v50, 0  ;;  %v11594_v34 = vld [vmem:[#allocation2 + $0x30] sm:$0xff] }
 0x2ff   : > { %20442 = vmatmul.mubr.msk.bf16.gmra.mrb[120].mxu1 %vm631_vm4, %v3579_v9  ;;  %21288 = vmatmul.mubr.msk.bf16.gmra.mrb[52].mxu0 %vm575_vm1, %v25636_v33 }
 0x300   : > { %20445 = vmatprep.mubr.msk.bf16.mxu1 %vm631_vm4, %v25270_v23  ;;  %21291 = vmatprep.mubr.msk.bf16.mxu0 %vm575_vm1, %v25638_v6  ;;  %v11036_v23 = vld [vmem:[#allocation2 + $0x189] sm:$0xff] }
 0x301   : > { %v25658_v9 = vpack.c.bf16 %v11036_v23, %v11035_v29  ;;  %v4128_v23 = vld [vmem:[#allocation3 + $0x7a] sm:$0xff]  ;;  %v4129_v29 = vld [vmem:[#allocation3 + $0x82] sm:$0xff] }
 0x307   : > { %20446 = vmatmul.mubr.msk.bf16.gmra.mrb[124].mxu1 %vm631_vm4, %v3581_v42  ;;  %21292 = vmatmul.mubr.msk.bf16.gmra.mrb[56].mxu0 %vm575_vm1, %v25647_v63 }
 0x308   : > { %20451 = vmatprep.mubr.msk.bf16.mxu1 %vm631_vm4, %v25283_v45  ;;  %21295 = vmatprep.mubr.msk.bf16.mxu0 %vm575_vm1, %v25649_v46  ;;  %v11693_v45 = vsel %vm10040_vm6, %v25589_v36, 0  ;;  %v4127_v36 = vld [vmem:[#allocation3 + $0x6a] sm:$0xff] }
 0x309   : > { %v4156_v0 = vpack.c.bf16 %v4127_v36, %v4126_v4 }
 0x30f   : > { %20452 = vmatmul.mubr.msk.bf16.vlgmr.msra.gmra.mrb[96].mxu1 %vm631_vm4, %v25289_v53  ;;  %21296 = vmatmul.mubr.msk.bf16.gmra.mrb[60].mxu0 %vm575_vm1, %v25658_v9  ;;  %v25683_v53 = vld [vmem:[%s28081_s13 + $0x1c] sm:$0xf] }
 0x310   : > { %20455 = vmatprep.mubr.msk.bf16.mxu1 %vm631_vm4, %v25305_v7  ;;  %20484 = vmatpush3.bf16.msra.mxu1 %v4221_v43  ;;  %v28155_v7 = vld [vmem:[#allocation19_spill] sm:$0xff]  ;;  %v11597_v43 = vld [vmem:[#allocation2 + $0x50] sm:$0xff] }
 0x311   : > { %21301 = vmatprep.mubr.msk.bf16.mxu0 %vm575_vm1, %v25307_v11  ;;  %23724 = vmatprep.subr.msk.bf16.mxu1 %vm1980_vm3, %v18325_v50  ;;  %v28156_v11 = vld [vmem:[#allocation21_spill] sm:$0xff]  ;;  %v4130_v50 = vld [vmem:[#allocation3 + $0x92] sm:$0xff] }
 0x317   : > { %20456 = vmatmul.mubr.msk.bf16.gmra.mrb[100].mxu1 %vm631_vm4, %v25309_v25  ;;  %21302 = vmatmul.mubr.msk.bf16.vlgmr.msra.gmra.mrb[32].mxu0 %vm575_vm1, %v25311_v16  ;;  %v28157_v25 = vld [vmem:[#allocation22_spill] sm:$0xff] }
 0x318   : > { %20459 = vmatprep.mubr.msk.bf16.mxu1 %vm631_vm4, %v25330_v37  ;;  %21305 = vmatprep.mubr.msk.bf16.mxu0 %vm575_vm1, %v25332_v31  ;;  %v28158_v16 = vld [vmem:[#allocation26_spill] sm:$0xff]  ;;  %v28159_v37 = vld [vmem:[#allocation27_spill] sm:$0xff]  ;;  %v28160_v31 = vld [vmem:[#allocation29_spill] sm:$0xff] }
 0x319   : > { %21334 = vmatpush3.bf16.msra.mxu0 %v11693_v45  ;;  %v4131_v45 = vld [vmem:[#allocation3 + $0x9a] sm:$0xff] }
 0x31a   : > { %23749 = vmatprep.subr.msk.bf16.mxu0 %vm10040_vm6, %v25683_v53 }
 0x31f   : > { %20460 = vmatmul.mubr.msk.bf16.gmra.mrb[104].mxu1 %vm631_vm4, %v25334_v39  ;;  %21306 = vmatmul.mubr.msk.bf16.gmra.mrb[36].mxu0 %vm575_vm1, %v25336_v52  ;;  %v28161_v39 = vld [vmem:[#allocation30_spill] sm:$0xff]  ;;  %v28162_v52 = vld [vmem:[#allocation35_spill] sm:$0xff] }
 0x320   : > { %20463 = vmatprep.mubr.msk.bf16.mxu1 %vm631_vm4, %v25346_v1  ;;  %21309 = vmatprep.mubr.msk.bf16.mxu0 %vm575_vm1, %v25348_v49  ;;  %v3858_v1 = vld [vmem:[#allocation3 + $0x199] sm:$0xff]  ;;  %v3859_v49 = vld [vmem:[#allocation3 + $0x1a1] sm:$0xff] }
 0x327   : > { %20464 = vmatmul.mubr.msk.bf16.gmra.mrb[108].mxu1 %vm631_vm4, %v25350_v13  ;;  %21310 = vmatmul.mubr.msk.bf16.gmra.mrb[40].mxu0 %vm575_vm1, %v25352_v18  ;;  %v3875_v13 = vpack.c.bf16 %v3859_v49, %v3858_v1  ;;  %v4122_v18 = vld [vmem:[#allocation3 + $0x32] sm:$0xff]  ;;  %v4132_v49 = vld [vmem:[#allocation3 + $0xaa] sm:$0xff] }
 0x328   : > { %20467 = vmatprep.mubr.msk.bf16.mxu1 %vm631_vm4, %v25368_v14  ;;  %21313 = vmatprep.mubr.msk.bf16.mxu0 %vm575_vm1, %v28155_v7  ;;  %v4123_v14 = vld [vmem:[#allocation3 + $0x3a] sm:$0xff]  ;;  %v25759_v1 = vld [vmem:[%s28081_s13 + $0x20] sm:$0xf] }
 0x329   : > { %v11599_v7 = vld [vmem:[#allocation2 + $0x68] sm:$0xff] }
 0x32f   : > { %20468 = vmatmul.mubr.msk.bf16.gmra.mrb[112].mxu1 %vm631_vm4, %v28156_v11  ;;  %21314 = vmatmul.mubr.msk.bf16.gmra.mrb[44].mxu0 %vm575_vm1, %v28157_v25  ;;  %v11596_v11 = vld [vmem:[#allocation2 + $0x48] sm:$0xff]  ;;  %v4157_v25 = vpack.c.bf16 %v4129_v29, %v4128_v23 }
 0x330   : > { %20471 = vmatprep.mubr.msk.bf16.mxu1 %vm631_vm4, %v28158_v16  ;;  %21317 = vmatprep.mubr.msk.bf16.mxu0 %vm575_vm1, %v28159_v37  ;;  %v11627_v16 = vpack.c.bf16 %v11597_v43, %v11596_v11  ;;  %v11598_v37 = vld [vmem:[#allocation2 + $0x60] sm:$0xff]  ;;  %v11604_v23 = vld [vmem:[#allocation2 + $0xa8] sm:$0xff] }
 0x331   : > { %v4140_v11 = vld [vmem:[#allocation3 + $0x10a] sm:$0xff] }
 0x337   : > { %20472 = vmatmul.mubr.msk.bf16.gmra.mrb[116].mxu1 %vm631_vm4, %v28160_v31  ;;  %21318 = vmatmul.mubr.msk.bf16.gmra.mrb[48].mxu0 %vm575_vm1, %v28161_v39  ;;  %v4158_v31 = vpack.c.bf16 %v4131_v45, %v4130_v50  ;;  %v11628_v39 = vpack.c.bf16 %v11599_v7, %v11598_v37  ;;  %v11606_v50 = vld [vmem:[#allocation2 + $0xc0] sm:$0xff]  ;;  %v4142_v37 = vld [vmem:[#allocation3 + $0x122] sm:$0xff] }
 0x338   : > { %20475 = vmatprep.mubr.msk.bf16.mxu1 %vm631_vm4, %v25416_v20  ;;  %21321 = vmatprep.mubr.msk.bf16.mxu0 %vm575_vm1, %v25418_v48  ;;  %v4154_v20 = vpack.c.bf16 %v4123_v14, %v4122_v18  ;;  %v4125_v48 = vld [vmem:[#allocation3 + $0x52] sm:$0xff]  ;;  %v4135_v14 = vld [vmem:[#allocation3 + $0xca] sm:$0xff] }
 0x339   : > { %v11601_v18 = vld [vmem:[#allocation2 + $0x80] sm:$0xff] }
 0x33f   : > { %20476 = vmatmul.mubr.msk.bf16.gmra.mrb[120].mxu1 %vm631_vm4, %v28162_v52  ;;  %21322 = vmatmul.mubr.msk.bf16.gmra.mrb[52].mxu0 %vm575_vm1, %v25424_v57  ;;  %v11329_v57 = vld [vmem:[#allocation2 + $0x182] sm:$0xff]  ;;  %v11987_v52 = vsel %vm10040_vm6, %v25683_v53, 0  ;;  %v4134_v53 = vld [vmem:[#allocation3 + $0xc2] sm:$0xff] }
 0x340   : > { %20479 = vmatprep.mubr.msk.bf16.mxu1 %vm631_vm4, %v25440_v44  ;;  %21325 = vmatprep.mubr.msk.bf16.mxu0 %vm575_vm1, %v25442_v5  ;;  %v4124_v44 = vld [vmem:[#allocation3 + $0x4a] sm:$0xff]  ;;  %v11330_v5 = vld [vmem:[#allocation2 + $0x18a] sm:$0xff]  ;;  %v4160_v4 = vpack.c.bf16 %v4135_v14, %v4134_v53 }
 0x341   : > { %v4155_v38 = vpack.c.bf16 %v4125_v48, %v4124_v44  ;;  %v25737_v42 = vpack.c.bf16 %v11330_v5, %v11329_v57  ;;  %v11600_v57 = vld [vmem:[#allocation2 + $0x78] sm:$0xff]  ;;  %v11602_v5 = vld [vmem:[#allocation2 + $0x90] sm:$0xff] }
 0x342   : > { %v11629_v48 = vpack.c.bf16 %v11601_v18, %v11600_v57  ;;  %v11610_v18 = vld [vmem:[#allocation2 + $0xf0] sm:$0xff] }
 0x343   : > { %v4145_v57 = vld [vmem:[#allocation3 + $0x142] sm:$0xff] }
 0x347   : > { %20480 = vmatmul.mubr.msk.bf16.gmra.mrb[124].mxu1 %vm631_vm4, %v3875_v13  ;;  %21326 = vmatmul.mubr.msk.bf16.gmra.mrb[56].mxu0 %vm575_vm1, %v25446_v27  ;;  %v25743_v27 = vld [vmem:[%s28077_s9] sm:$0x3]  ;;  %v4133_v13 = vld [vmem:[#allocation3 + $0xb2] sm:$0xff] }
 0x348   : > { %20485 = vmatprep.mubr.msk.bf16.mxu1 %vm631_vm4, %v4154_v20  ;;  %21329 = vmatprep.mubr.msk.bf16.mxu0 %vm575_vm1, %v25462_v10  ;;  %v11626_v10 = vpack.c.bf16 %v11595_v3, %v11594_v34  ;;  %v11603_v20 = vld [vmem:[#allocation2 + $0x98] sm:$0xff]  ;;  %v4159_v44 = vpack.c.bf16 %v4133_v13, %v4132_v49  ;;  %v4136_v3 = vld [vmem:[#allocation3 + $0xda] sm:$0xff] }
 0x349   : > { %v11630_v36 = vpack.c.bf16 %v11603_v20, %v11602_v5  ;;  %v4139_v34 = vld [vmem:[#allocation3 + $0xfa] sm:$0xff] }
 0x34a   : > { %v4144_v20 = vld [vmem:[#allocation3 + $0x13a] sm:$0xff] }
 0x34b   : > { %v4147_v5 = vld [vmem:[#allocation3 + $0x15a] sm:$0xff] }
 0x34f   : > { %20486 = vmatmul.mubr.msk.bf16.vlgmr.msra.gmra.mrb[96].mxu1 %vm631_vm4, %v4155_v38  ;;  %21330 = vmatmul.mubr.msk.bf16.gmra.mrb[60].mxu0 %vm575_vm1, %v25737_v42  ;;  %v4137_v38 = vld [vmem:[#allocation3 + $0xe2] sm:$0xff] }
 0x350   : > { %20489 = vmatprep.mubr.msk.bf16.mxu1 %vm631_vm4, %v4156_v0  ;;  %20518 = vmatpush3.bf16.msra.mxu1 %v4668_v51  ;;  %v11605_v51 = vld [vmem:[#allocation2 + $0xb0] sm:$0xff]  ;;  %v4138_v0 = vld [vmem:[#allocation3 + $0xf2] sm:$0xff]  ;;  %v4161_v29 = vpack.c.bf16 %v4137_v38, %v4136_v3  ;;  %v4165_v3 = vpack.c.bf16 %v4145_v57, %v4144_v20  ;;  %v4571_v20 = vld [vmem:[#allocation5 + $0x19] sm:$0xff] }
 0x351   : > { %21335 = vmatprep.mubr.msk.bf16.mxu0 %vm575_vm1, %v11626_v10  ;;  %23725 = vmatprep.subr.msk.bf16.mxu1 %vm1980_vm3, %v25743_v27  ;;  %v11607_v10 = vld [vmem:[#allocation2 + $0xc8] sm:$0xff]  ;;  %v11631_v43 = vpack.c.bf16 %v11605_v51, %v11604_v23  ;;  %v4162_v45 = vpack.c.bf16 %v4139_v34, %v4138_v0  ;;  %v11614_v51 = vld [vmem:[#allocation2 + $0x120] sm:$0xff] }
 0x352   : > { %v11632_v7 = vpack.c.bf16 %v11607_v10, %v11606_v50  ;;  %v4148_v10 = vld [vmem:[#allocation3 + $0x16a] sm:$0xff]  ;;  %v4149_v23 = vld [vmem:[#allocation3 + $0x172] sm:$0xff] }
 0x353   : > { %v11616_v50 = vld [vmem:[#allocation2 + $0x138] sm:$0xff]  ;;  %v4572_v57 = vld [vmem:[#allocation5 + $0x21] sm:$0xff] }
 0x357   : > { %20490 = vmatmul.mubr.msk.bf16.gmra.mrb[100].mxu1 %vm631_vm4, %v4157_v25  ;;  %21336 = vmatmul.mubr.msk.bf16.vlgmr.msra.gmra.mrb[32].mxu0 %vm575_vm1, %v11627_v16  ;;  %v4141_v25 = vld [vmem:[#allocation3 + $0x112] sm:$0xff] }
 0x358   : > { %20493 = vmatprep.mubr.msk.bf16.mxu1 %vm631_vm4, %v4158_v31  ;;  %21339 = vmatprep.mubr.msk.bf16.mxu0 %vm575_vm1, %v11628_v39  ;;  %v11609_v16 = vld [vmem:[#allocation2 + $0xe0] sm:$0xff]  ;;  %v11611_v39 = vld [vmem:[#allocation2 + $0xf8] sm:$0xff]  ;;  %v4163_v49 = vpack.c.bf16 %v4141_v25, %v4140_v11  ;;  %v11618_v11 = vld [vmem:[#allocation2 + $0x150] sm:$0xff] }
 0x359   : > { %21368 = vmatpush3.bf16.msra.mxu0 %v11987_v52  ;;  %v4143_v31 = vld [vmem:[#allocation3 + $0x12a] sm:$0xff]  ;;  %v11634_v14 = vpack.c.bf16 %v11611_v39, %v11610_v18  ;;  %v4570_v39 = vld [vmem:[#allocation5 + $0x9] sm:$0xff] }
 0x35a   : > { %23750 = vmatprep.subr.msk.bf16.mxu0 %vm10040_vm6, %v25759_v1  ;;  %v11608_v52 = vld [vmem:[#allocation2 + $0xd8] sm:$0xff]  ;;  %v4164_v53 = vpack.c.bf16 %v4143_v31, %v4142_v37  ;;  %v4569_v31 = vld [vmem:[#allocation5 + $0x1] sm:$0xff] }
 0x35b   : > { %v11633_v13 = vpack.c.bf16 %v11609_v16, %v11608_v52  ;;  %v4152_v16 = vld [vmem:[#allocation3 + $0x19a] sm:$0xff]  ;;  %v4153_v37 = vld [vmem:[#allocation3 + $0x1a2] sm:$0xff]  ;;  %v4601_v18 = vpack.c.bf16 %v4570_v39, %v4569_v31 }
 0x35c   : > { %v11621_v52 = vld [vmem:[#allocation2 + $0x170] sm:$0xff]  ;;  %v4590_v31 = vld [vmem:[#allocation5 + $0xf9] sm:$0xff] }
 0x35f   : > { %20494 = vmatmul.mubr.msk.bf16.gmra.mrb[104].mxu1 %vm631_vm4, %v4159_v44  ;;  %21340 = vmatmul.mubr.msk.bf16.gmra.mrb[36].mxu0 %vm575_vm1, %v11629_v48  ;;  %v11613_v44 = vld [vmem:[#allocation2 + $0x110] sm:$0xff]  ;;  %v4146_v48 = vld [vmem:[#allocation3 + $0x152] sm:$0xff] }
 0x360   : > { %20497 = vmatprep.mubr.msk.bf16.mxu1 %vm631_vm4, %v4160_v4  ;;  %21343 = vmatprep.mubr.msk.bf16.mxu0 %vm575_vm1, %v11630_v36  ;;  %v11615_v4 = vld [vmem:[#allocation2 + $0x128] sm:$0xff]  ;;  %v4166_v0 = vpack.c.bf16 %v4147_v5, %v4146_v48  ;;  %v4573_v48 = vld [vmem:[#allocation5 + $0x31] sm:$0xff]  ;;  %v4574_v5 = vld [vmem:[#allocation5 + $0x39] sm:$0xff] }
 0x361   : > { %v11612_v36 = vld [vmem:[#allocation2 + $0x108] sm:$0xff]  ;;  %v11636_v34 = vpack.c.bf16 %v11615_v4, %v11614_v51  ;;  %v4602_v4 = vpack.c.bf16 %v4572_v57, %v4571_v20  ;;  %v4597_v57 = vld [vmem:[#allocation5 + $0x151] sm:$0xff] }
 0x362   : > { %v11635_v38 = vpack.c.bf16 %v11613_v44, %v11612_v36  ;;  %v4880_v36 = vsel %vm1980_vm3, %v25743_v27, 0  ;;  %v4576_v27 = vld [vmem:[#allocation5 + $0x51] sm:$0xff]  ;;  %v4577_v51 = vld [vmem:[#allocation5 + $0x61] sm:$0xff] }
 0x363   : > { %v4596_v20 = vld [vmem:[#allocation5 + $0x141] sm:$0xff] }
 0x367   : > { %20498 = vmatmul.mubr.msk.bf16.gmra.mrb[108].mxu1 %vm631_vm4, %v4161_v29  ;;  %21344 = vmatmul.mubr.msk.bf16.gmra.mrb[40].mxu0 %vm575_vm1, %v11631_v43  ;;  %v11617_v29 = vld [vmem:[#allocation2 + $0x140] sm:$0xff]  ;;  %v11619_v43 = vld [vmem:[#allocation2 + $0x158] sm:$0xff] }
 0x368   : > { %20501 = vmatprep.mubr.msk.bf16.mxu1 %vm631_vm4, %v4162_v45  ;;  %21347 = vmatprep.mubr.msk.bf16.mxu0 %vm575_vm1, %v11632_v7  ;;  %v4167_v45 = vpack.c.bf16 %v4149_v23, %v4148_v10  ;;  %v11637_v7 = vpack.c.bf16 %v11617_v29, %v11616_v50  ;;  %v11638_v25 = vpack.c.bf16 %v11619_v43, %v11618_v11  ;;  %v12281_v23 = vsel %vm10040_vm6, %v25759_v1, 0  ;;  %v4580_v29 = vld [vmem:[#allocation5 + $0x81] sm:$0xff]  ;;  %v4581_v43 = vld [vmem:[#allocation5 + $0x91] sm:$0xff]  ;;  %v4582_v50 = vld [vmem:[#allocation5 + $0x99] sm:$0xff] }
 0x369   : > { %v4584_v1 = vld [vmem:[#allocation5 + $0xb1] sm:$0xff]  ;;  %v4586_v11 = vld [vmem:[#allocation5 + $0xc9] sm:$0xff] }
 0x36f   : > { %20502 = vmatmul.mubr.msk.bf16.gmra.mrb[112].mxu1 %vm631_vm4, %v4163_v49  ;;  %21348 = vmatmul.mubr.msk.bf16.gmra.mrb[44].mxu0 %vm575_vm1, %v11633_v13  ;;  %v4169_v49 = vpack.c.bf16 %v4153_v37, %v4152_v16  ;;  %v11620_v13 = vld [vmem:[#allocation2 + $0x168] sm:$0xff]  ;;  %v4589_v37 = vld [vmem:[#allocation5 + $0xf1] sm:$0xff] }
 0x370   : > { %20505 = vmatprep.mubr.msk.bf16.mxu1 %vm631_vm4, %v4164_v53  ;;  %21351 = vmatprep.mubr.msk.bf16.mxu0 %vm575_vm1, %v11634_v14  ;;  %v11639_v53 = vpack.c.bf16 %v11621_v52, %v11620_v13  ;;  %v11625_v14 = vld [vmem:[#allocation2 + $0x1a0] sm:$0xff]  ;;  %v4611_v52 = vpack.c.bf16 %v4590_v31, %v4589_v37  ;;  %v4592_v13 = vld [vmem:[#allocation5 + $0x111] sm:$0xff] }
 0x371   : > { %v12188_v31 = vld [vmem:[#allocation2 + $0x7a] sm:$0xff] }
 0x377   : > { %20506 = vmatmul.mubr.msk.bf16.gmra.mrb[116].mxu1 %vm631_vm4, %v4165_v3  ;;  %21352 = vmatmul.mubr.msk.bf16.gmra.mrb[48].mxu0 %vm575_vm1, %v11635_v38  ;;  %v4603_v3 = vpack.c.bf16 %v4574_v5, %v4573_v48  ;;  %v25796_v38 = vld [vmem:[%s28077_s9 + $0x4] sm:$0x3]  ;;  %v4521_v5 = vld [vmem:[#allocation5 + $0x8] sm:$0xff] }
 0x378   : > { %20509 = vmatprep.mubr.msk.bf16.mxu1 %vm631_vm4, %v4166_v0  ;;  %21355 = vmatprep.mubr.msk.bf16.mxu0 %vm575_vm1, %v11636_v34  ;;  %v4578_v0 = vld [vmem:[#allocation5 + $0x69] sm:$0xff] }
 0x379   : > { %v4605_v10 = vpack.c.bf16 %v4578_v0, %v4577_v51  ;;  %v4524_v0 = vld [vmem:[#allocation5 + $0x30] sm:$0xff] }
 0x37f   : > { %20510 = vmatmul.mubr.msk.bf16.gmra.mrb[120].mxu1 %vm631_vm4, %v4167_v45  ;;  %21356 = vmatmul.mubr.msk.bf16.gmra.mrb[52].mxu0 %vm575_vm1, %v11637_v7  ;;  %v4607_v7 = vpack.c.bf16 %v4582_v50, %v4581_v43  ;;  %v12185_v50 = vld [vmem:[#allocation2 + $0x52] sm:$0xff] }
 0x380   : > { %20513 = vmatprep.mubr.msk.bf16.mxu1 %vm631_vm4, %v25553_v60  ;;  %21359 = vmatprep.mubr.msk.bf16.mxu0 %vm575_vm1, %v11638_v25  ;;  %v11624_v60 = vld [vmem:[#allocation2 + $0x198] sm:$0xff] }
 0x381   : > { %v11641_v44 = vpack.c.bf16 %v11625_v14, %v11624_v60 }
 0x387   : > { %20514 = vmatmul.mubr.msk.bf16.gmra.mrb[124].mxu1 %vm631_vm4, %v4169_v49  ;;  %21360 = vmatmul.mubr.msk.bf16.gmra.mrb[56].mxu0 %vm575_vm1, %v11639_v53  ;;  %v4591_v49 = vld [vmem:[#allocation5 + $0x109] sm:$0xff] }
 0x388   : > { %21363 = vmatprep.mubr.msk.bf16.mxu0 %vm575_vm1, %v25562_v47  ;;  %20519 = vmatprep.mubr.msk.bf16.mxu1 %vm631_vm4, %v4601_v18  ;;  %v4575_v47 = vld [vmem:[#allocation5 + $0x49] sm:$0xff]  ;;  %v4593_v18 = vld [vmem:[#allocation5 + $0x121] sm:$0xff]  ;;  %v4612_v60 = vpack.c.bf16 %v4592_v13, %v4591_v49  ;;  %v12190_v13 = vld [vmem:[#allocation2 + $0x92] sm:$0xff] }
 0x389   : > { %v4604_v34 = vpack.c.bf16 %v4576_v27, %v4575_v47  ;;  %v4594_v53 = vld [vmem:[#allocation5 + $0x129] sm:$0xff]  ;;  %v11919_v47 = vld [vmem:[#allocation2 + $0x1a1] sm:$0xff]  ;;  %v4522_v27 = vld [vmem:[#allocation5 + $0x18] sm:$0xff] }
 0x38a   : > { %v4613_v14 = vpack.c.bf16 %v4594_v53, %v4593_v18  ;;  %v4531_v49 = vld [vmem:[#allocation5 + $0x80] sm:$0xff]  ;;  %v4532_v18 = vld [vmem:[#allocation5 + $0x90] sm:$0xff]  ;;  %v4533_v53 = vld [vmem:[#allocation5 + $0x98] sm:$0xff] }
 0x38f   : > { %20520 = vmatmul.mubr.msk.bf16.vlgmr.msra.gmra.mrb[128].mxu1 %vm631_vm4, %v4602_v4  ;;  %21364 = vmatmul.mubr.msk.bf16.gmra.mrb[60].mxu0 %vm575_vm1, %v11641_v44  ;;  %v4599_v4 = vld [vmem:[#allocation5 + $0x169] sm:$0xff] }
 0x390   : > { %20523 = vmatprep.mubr.msk.bf16.mxu1 %vm631_vm4, %v4603_v3  ;;  %20552 = vmatpush3.bf16.msra.mxu1 %v4880_v36 }
 0x391   : > { %21369 = vmatprep.mubr.msk.bf16.mxu0 %vm575_vm1, %v25577_v17  ;;  %23726 = vmatprep.subr.msk.bf16.mxu1 %vm1980_vm3, %v25796_v38  ;;  %v4579_v17 = vld [vmem:[#allocation5 + $0x79] sm:$0xff] }
 0x392   : > { %v4606_v45 = vpack.c.bf16 %v4580_v29, %v4579_v17  ;;  %v5142_v29 = vsel %vm1980_vm3, %v25796_v38, 0  ;;  %v12184_v38 = vld [vmem:[#allocation2 + $0x4a] sm:$0xff] }
 0x397   : > { %20524 = vmatmul.mubr.msk.bf16.gmra.mrb[132].mxu1 %vm631_vm4, %v4604_v34  ;;  %21370 = vmatmul.mubr.msk.bf16.vlgmr.msra.gmra.mrb[32].mxu0 %vm575_vm1, %v25579_v15  ;;  %v4583_v15 = vld [vmem:[#allocation5 + $0xa9] sm:$0xff]  ;;  %v4525_v34 = vld [vmem:[#allocation5 + $0x38] sm:$0xff] }
 0x398   : > { %20527 = vmatprep.mubr.msk.bf16.mxu1 %vm631_vm4, %v4605_v10  ;;  %21373 = vmatprep.mubr.msk.bf16.mxu0 %vm575_vm1, %v25596_v58  ;;  %v4585_v58 = vld [vmem:[#allocation5 + $0xc1] sm:$0xff]  ;;  %v4608_v25 = vpack.c.bf16 %v4584_v1, %v4583_v15  ;;  %v12182_v10 = vld [vmem:[#allocation2 + $0x32] sm:$0xff] }
 0x399   : > { %21402 = vmatpush3.bf16.msra.mxu0 %v12281_v23  ;;  %v4609_v16 = vpack.c.bf16 %v4586_v11, %v4585_v58  ;;  %v12183_v23 = vld [vmem:[#allocation2 + $0x3a] sm:$0xff]  ;;  %v12186_v15 = vld [vmem:[#allocation2 + $0x62] sm:$0xff]  ;;  %v12187_v11 = vld [vmem:[#allocation2 + $0x6a] sm:$0xff] }
 0x39a   : > { %v12214_v43 = vpack.c.bf16 %v12183_v23, %v12182_v10  ;;  %v4528_v1 = vld [vmem:[#allocation5 + $0x60] sm:$0xff]  ;;  %v4529_v58 = vld [vmem:[#allocation5 + $0x68] sm:$0xff]  ;;  %v12198_v10 = vld [vmem:[#allocation2 + $0xf2] sm:$0xff] }
 0x39b   : > { %v4540_v23 = vld [vmem:[#allocation5 + $0xf0] sm:$0xff] }
 0x39f   : > { %20528 = vmatmul.mubr.msk.bf16.gmra.mrb[136].mxu1 %vm631_vm4, %v4606_v45  ;;  %21374 = vmatmul.mubr.msk.bf16.gmra.mrb[36].mxu0 %vm575_vm1, %v25598_v12  ;;  %v28163_v12 = vmov 0.0   ;;  %v4526_v45 = vld [vmem:[#allocation5 + $0x48] sm:$0xff] }
 0x3a0   : > { %20531 = vmatprep.mubr.msk.bf16.mxu1 %vm631_vm4, %v4607_v7  ;;  %21377 = vmatprep.mubr.msk.bf16.mxu0 %vm575_vm1, %v25606_v56  ;;  %699 = vst.msk [vmem:[#allocation4 + $0x58] sm:$0xf] %vm689_vm7, %v28163_v12  ;;  %690 = vst.msk [vmem:[#allocation4 + $0x10] sm:$0xf] %vm689_vm7, %v28163_v12  ;;  %v4587_v56 = vld [vmem:[#allocation5 + $0xd9] sm:$0xff]  ;;  %v4527_v7 = vld [vmem:[#allocation5 + $0x50] sm:$0xff] }
 0x3a1   : > { %693 = vst.msk [vmem:[#allocation4 + $0x28] sm:$0xf] %vm689_vm7, %v28163_v12  ;;  %696 = vst.msk [vmem:[#allocation4 + $0x40] sm:$0xf] %vm689_vm7, %v28163_v12 }
 0x3a2   : > { %702 = vst.msk [vmem:[#allocation4 + $0x70] sm:$0xf] %vm689_vm7, %v28163_v12  ;;  %705 = vst.msk [vmem:[#allocation4 + $0x88] sm:$0xf] %vm689_vm7, %v28163_v12 }
 0x3a3   : > { %708 = vst.msk [vmem:[#allocation4 + $0xa0] sm:$0xf] %vm689_vm7, %v28163_v12  ;;  %711 = vst.msk [vmem:[#allocation4 + $0xb8] sm:$0xf] %vm689_vm7, %v28163_v12 }
 0x3a4   : > { %714 = vst.msk [vmem:[#allocation4 + $0xd0] sm:$0xf] %vm689_vm7, %v28163_v12  ;;  %717 = vst.msk [vmem:[#allocation4 + $0xe8] sm:$0xf] %vm689_vm7, %v28163_v12 }
 0x3a5   : > { %720 = vst.msk [vmem:[#allocation4 + $0x100] sm:$0xf] %vm689_vm7, %v28163_v12  ;;  %723 = vst.msk [vmem:[#allocation4 + $0x118] sm:$0xf] %vm689_vm7, %v28163_v12 }
 0x3a6   : > { %726 = vst.msk [vmem:[#allocation4 + $0x130] sm:$0xf] %vm689_vm7, %v28163_v12  ;;  %729 = vst.msk [vmem:[#allocation4 + $0x148] sm:$0xf] %vm689_vm7, %v28163_v12 }
 0x3a7   : > { %20532 = vmatmul.mubr.msk.bf16.gmra.mrb[140].mxu1 %vm631_vm4, %v4608_v25  ;;  %21378 = vmatmul.mubr.msk.bf16.gmra.mrb[40].mxu0 %vm575_vm1, %v25608_v54  ;;  %732 = vst.msk [vmem:[#allocation4 + $0x160] sm:$0xf] %vm689_vm7, %v28163_v12  ;;  %735 = vst.msk [vmem:[#allocation4 + $0x178] sm:$0xf] %vm689_vm7, %v28163_v12  ;;  %v4588_v54 = vld [vmem:[#allocation5 + $0xe1] sm:$0xff]  ;;  %v25915_v25 = vpack.c.bf16 %v4527_v7, %v4526_v45 }
 0x3a8   : > { %20535 = vmatprep.mubr.msk.bf16.mxu1 %vm631_vm4, %v4609_v16  ;;  %21381 = vmatprep.mubr.msk.bf16.mxu0 %vm575_vm1, %v25616_v8  ;;  %738 = vst.msk [vmem:[#allocation4 + $0x190] sm:$0xf] %vm689_vm7, %v28163_v12  ;;  %741 = vst.msk [vmem:[#allocation4 + $0x1a8] sm:$0xf] %vm689_vm7, %v28163_v12  ;;  %v25868_v8 = vld [vmem:[%s28082_s14 + $0x4] sm:$0xf]  ;;  %v4610_v39 = vpack.c.bf16 %v4588_v54, %v4587_v56  ;;  %v12215_v16 = vpack.c.bf16 %v12185_v50, %v12184_v38 }
 0x3a9   : > { %744 = vst.msk [vmem:[#allocation4 + $0x1c0] sm:$0xf] %vm689_vm7, %v28163_v12  ;;  %747 = vst.msk [vmem:[#allocation4 + $0x1d8] sm:$0xf] %vm689_vm7, %v28163_v12  ;;  %23751 = vmatprep.subr.msk.bf16.mxu0 %vm10040_vm6, %v25868_v8  ;;  %v25917_v56 = vpack.c.bf16 %v4529_v58, %v4528_v1  ;;  %v12216_v54 = vpack.c.bf16 %v12187_v11, %v12186_v15  ;;  %v12624_v37 = vsel %vm10040_vm6, %v25868_v8, 0  ;;  %v12200_v15 = vld [vmem:[#allocation2 + $0x10a] sm:$0xff] }
 0x3aa   : > { %v12201_v1 = vld [vmem:[#allocation2 + $0x112] sm:$0xff]  ;;  %v4542_v58 = vld [vmem:[#allocation5 + $0x108] sm:$0xff] }
 0x3ab   : > { %v4543_v11 = vld [vmem:[#allocation5 + $0x110] sm:$0xff] }
 0x3af   : > { %20536 = vmatmul.mubr.msk.bf16.gmra.mrb[144].mxu1 %vm631_vm4, %v4610_v39  ;;  %21382 = vmatmul.mubr.msk.bf16.gmra.mrb[44].mxu0 %vm575_vm1, %v25618_v41  ;;  %v4595_v41 = vld [vmem:[#allocation5 + $0x139] sm:$0xff]  ;;  %v12189_v39 = vld [vmem:[#allocation2 + $0x82] sm:$0xff] }
 0x3b0   : > { %20539 = vmatprep.mubr.msk.bf16.mxu1 %vm631_vm4, %v4611_v52  ;;  %21385 = vmatprep.mubr.msk.bf16.mxu0 %vm575_vm1, %v25626_v2  ;;  %v4598_v2 = vld [vmem:[#allocation5 + $0x159] sm:$0xff]  ;;  %v4614_v44 = vpack.c.bf16 %v4596_v20, %v4595_v41  ;;  %v25929_v41 = vpack.c.bf16 %v4533_v53, %v4532_v18  ;;  %v12205_v53 = vld [vmem:[#allocation2 + $0x142] sm:$0xff] }
 0x3b1   : > { %v4615_v48 = vpack.c.bf16 %v4598_v2, %v4597_v57  ;;  %v4530_v52 = vld [vmem:[#allocation5 + $0x78] sm:$0xff]  ;;  %v12192_v57 = vld [vmem:[#allocation2 + $0xaa] sm:$0xff] }
 0x3b2   : > { %v25927_v8 = vpack.c.bf16 %v4531_v49, %v4530_v52  ;;  %v12193_v2 = vld [vmem:[#allocation2 + $0xb2] sm:$0xff]  ;;  %v12223_v52 = vpack.c.bf16 %v12201_v1, %v12200_v15  ;;  %v12204_v18 = vld [vmem:[#allocation2 + $0x13a] sm:$0xff]  ;;  %v12525_v15 = vld [vmem:[#allocation4 + $0x2] sm:$0xff] }
 0x3b3   : > { %v12526_v1 = vld [vmem:[#allocation4 + $0xa] sm:$0xff] }
 0x3b7   : > { %20540 = vmatmul.mubr.msk.bf16.gmra.mrb[148].mxu1 %vm631_vm4, %v4612_v60  ;;  %21386 = vmatmul.mubr.msk.bf16.gmra.mrb[48].mxu0 %vm575_vm1, %v25628_v61  ;;  %v4520_v61 = vld [vmem:[#allocation5] sm:$0xff] }
 0x3b8   : > { %20543 = vmatprep.mubr.msk.bf16.mxu1 %vm631_vm4, %v4613_v14  ;;  %21389 = vmatprep.mubr.msk.bf16.mxu0 %vm575_vm1, %v25636_v33  ;;  %v4600_v33 = vld [vmem:[#allocation5 + $0x171] sm:$0xff]  ;;  %v4552_v36 = vpack.c.bf16 %v4521_v5, %v4520_v61  ;;  %v12191_v60 = vld [vmem:[#allocation2 + $0x9a] sm:$0xff]  ;;  %v12217_v14 = vpack.c.bf16 %v12189_v39, %v12188_v31  ;;  %v12194_v61 = vld [vmem:[#allocation2 + $0xc2] sm:$0xff]  ;;  %v25964_v39 = vpack.c.bf16 %v4543_v11, %v4542_v58 }
 0x3b9   : > { %v4616_v3 = vpack.c.bf16 %v4600_v33, %v4599_v4  ;;  %v12218_v20 = vpack.c.bf16 %v12191_v60, %v12190_v13  ;;  %v4536_v5 = vld [vmem:[#allocation5 + $0xc0] sm:$0xff]  ;;  %v4537_v4 = vld [vmem:[#allocation5 + $0xc8] sm:$0xff]  ;;  %v4546_v60 = vld [vmem:[#allocation5 + $0x138] sm:$0xff] }
 0x3ba   : > { %v12195_v33 = vld [vmem:[#allocation2 + $0xca] sm:$0xff]  ;;  %v5047_v58 = vld [vmem:[#allocation5 + $0x32] sm:$0xff]  ;;  %v5048_v11 = vld [vmem:[#allocation5 + $0x3a] sm:$0xff] }
 0x3bb   : > { %v12203_v31 = vld [vmem:[#allocation2 + $0x12a] sm:$0xff] }
 0x3bf   : > { %20544 = vmatmul.mubr.msk.bf16.gmra.mrb[152].mxu1 %vm631_vm4, %v4614_v44  ;;  %21390 = vmatmul.mubr.msk.bf16.gmra.mrb[52].mxu0 %vm575_vm1, %v25638_v6  ;;  %v11918_v6 = vld [vmem:[#allocation2 + $0x199] sm:$0xff]  ;;  %v4534_v44 = vld [vmem:[#allocation5 + $0xa8] sm:$0xff] }
 0x3c0   : > { %20547 = vmatprep.mubr.msk.bf16.mxu1 %vm631_vm4, %v4615_v48  ;;  %21393 = vmatprep.mubr.msk.bf16.mxu0 %vm575_vm1, %v25647_v63  ;;  %v4523_v63 = vld [vmem:[#allocation5 + $0x20] sm:$0xff]  ;;  %v11935_v51 = vpack.c.bf16 %v11919_v47, %v11918_v6  ;;  %v4535_v48 = vld [vmem:[#allocation5 + $0xb0] sm:$0xff]  ;;  %v25939_v6 = vpack.c.bf16 %v4537_v4, %v4536_v5  ;;  %v12220_v47 = vpack.c.bf16 %v12195_v33, %v12194_v61 }
 0x3c1   : > { %v25896_v17 = vpack.c.bf16 %v4523_v63, %v4522_v27  ;;  %v25950_v27 = vld [vmem:[%s28082_s14] sm:$0xf]  ;;  %v12225_v61 = vpack.c.bf16 %v12205_v53, %v12204_v18  ;;  %v12208_v33 = vld [vmem:[#allocation2 + $0x16a] sm:$0xff]  ;;  %v5050_v53 = vld [vmem:[#allocation5 + $0x52] sm:$0xff] }
 0x3c2   : > { %v12196_v63 = vld [vmem:[#allocation2 + $0xda] sm:$0xff]  ;;  %v12528_v18 = vld [vmem:[#allocation4 + $0x22] sm:$0xff] }
 0x3c7   : > { %20548 = vmatmul.mubr.msk.bf16.gmra.mrb[156].mxu1 %vm631_vm4, %v4616_v3  ;;  %21394 = vmatmul.mubr.msk.bf16.gmra.mrb[56].mxu0 %vm575_vm1, %v25649_v46  ;;  %v25900_v46 = vpack.c.bf16 %v4525_v34, %v4524_v0  ;;  %v12219_v3 = vpack.c.bf16 %v12193_v2, %v12192_v57  ;;  %v4538_v0 = vld [vmem:[#allocation5 + $0xd8] sm:$0xff]  ;;  %v4539_v34 = vld [vmem:[#allocation5 + $0xe0] sm:$0xff]  ;;  %v4548_v57 = vld [vmem:[#allocation5 + $0x150] sm:$0xff] }
 0x3c8   : > { %21397 = vmatprep.mubr.msk.bf16.mxu0 %vm575_vm1, %v25658_v9  ;;  %20553 = vmatprep.mubr.msk.bf16.mxu1 %vm631_vm4, %v4552_v36  ;;  %v25905_v9 = vld [vmem:[%s28077_s9 + $0x6] sm:$0x3]  ;;  %v25937_v36 = vpack.c.bf16 %v4535_v48, %v4534_v44  ;;  %v25954_v38 = vpack.c.bf16 %v4539_v34, %v4538_v0  ;;  %v4549_v2 = vld [vmem:[#allocation5 + $0x158] sm:$0xff] }
 0x3c9   : > { %v12207_v44 = vld [vmem:[#allocation2 + $0x15a] sm:$0xff]  ;;  %v25976_v5 = vpack.c.bf16 %v4549_v2, %v4548_v57  ;;  %v12209_v0 = vld [vmem:[#allocation2 + $0x172] sm:$0xff]  ;;  %v12836_v2 = vsel %vm10040_vm6, %v25950_v27, 0 }
 0x3cf   : > { %20554 = vmatmul.mubr.msk.bf16.vlgmr.msra.gmra.mrb[128].mxu1 %vm631_vm4, %v25896_v17  ;;  %21398 = vmatmul.mubr.msk.bf16.gmra.mrb[60].mxu0 %vm575_vm1, %v11935_v51  ;;  %v12197_v51 = vld [vmem:[#allocation2 + $0xe2] sm:$0xff] }
 0x3d0   : > { %20557 = vmatprep.mubr.msk.bf16.mxu1 %vm631_vm4, %v25900_v46  ;;  %20586 = vmatpush3.bf16.msra.mxu1 %v5142_v29  ;;  %v4541_v29 = vld [vmem:[#allocation5 + $0xf8] sm:$0xff]  ;;  %v12221_v50 = vpack.c.bf16 %v12197_v51, %v12196_v63  ;;  %v4550_v63 = vld [vmem:[#allocation5 + $0x168] sm:$0xff]  ;;  %v4551_v51 = vld [vmem:[#allocation5 + $0x170] sm:$0xff] }
 0x3d1   : > { %21403 = vmatprep.mubr.msk.bf16.mxu0 %vm575_vm1, %v12214_v43  ;;  %23727 = vmatprep.subr.msk.bf16.mxu1 %vm1980_vm3, %v25905_v9  ;;  %v12199_v43 = vld [vmem:[#allocation2 + $0xfa] sm:$0xff]  ;;  %v25956_v45 = vpack.c.bf16 %v4541_v29, %v4540_v23  ;;  %v12227_v23 = vpack.c.bf16 %v12209_v0, %v12208_v33  ;;  %v5055_v33 = vld [vmem:[#allocation5 + $0x92] sm:$0xff]  ;;  %v5057_v0 = vld [vmem:[#allocation5 + $0xaa] sm:$0xff] }
 0x3d2   : > { %v12222_v7 = vpack.c.bf16 %v12199_v43, %v12198_v10  ;;  %v25984_v10 = vpack.c.bf16 %v4551_v51, %v4550_v63  ;;  %v12212_v29 = vld [vmem:[#allocation2 + $0x19a] sm:$0xff]  ;;  %v12213_v43 = vld [vmem:[#allocation2 + $0x1a2] sm:$0xff] }
 0x3d7   : > { %20558 = vmatmul.mubr.msk.bf16.gmra.mrb[132].mxu1 %vm631_vm4, %v25915_v25  ;;  %21404 = vmatmul.mubr.msk.bf16.vlgmr.msra.gmra.mrb[32].mxu0 %vm575_vm1, %v12215_v16  ;;  %v12202_v16 = vld [vmem:[#allocation2 + $0x122] sm:$0xff] }
 0x3d8   : > { %20561 = vmatprep.mubr.msk.bf16.mxu1 %vm631_vm4, %v25917_v56  ;;  %21407 = vmatprep.mubr.msk.bf16.mxu0 %vm575_vm1, %v12216_v54  ;;  %v4544_v54 = vld [vmem:[#allocation5 + $0x120] sm:$0xff]  ;;  %v12224_v13 = vpack.c.bf16 %v12203_v31, %v12202_v16  ;;  %v12229_v16 = vpack.c.bf16 %v12213_v43, %v12212_v29  ;;  %v12557_v31 = vpack.c.bf16 %v12526_v1, %v12525_v15 }
 0x3d9   : > { %21436 = vmatpush3.bf16.msra.mxu0 %v12624_v37  ;;  %v4545_v37 = vld [vmem:[#allocation5 + $0x128] sm:$0xff] }
 0x3da   : > { %23752 = vmatprep.subr.msk.bf16.mxu0 %vm10040_vm6, %v25950_v27  ;;  %v25966_v49 = vpack.c.bf16 %v4545_v37, %v4544_v54  ;;  %v5436_v37 = vsel %vm1980_vm3, %v25905_v9, 0  ;;  %v5049_v9 = vld [vmem:[#allocation5 + $0x4a] sm:$0xff]  ;;  %v26015_v27 = vld [vmem:[%s28076_s8] ss:$0 sm:$0xff]  ;;  %v5059_v43 = vld [vmem:[#allocation5 + $0xc2] sm:$0xff] }
 0x3db   : > { %v5078_v57 = vpack.c.bf16 %v5050_v53, %v5049_v9  ;;  %v5061_v53 = vld [vmem:[#allocation5 + $0xda] sm:$0xff] }
 0x3df   : > { %20562 = vmatmul.mubr.msk.bf16.gmra.mrb[136].mxu1 %vm631_vm4, %v25927_v8  ;;  %21408 = vmatmul.mubr.msk.bf16.gmra.mrb[36].mxu0 %vm575_vm1, %v12217_v14  ;;  %v4547_v14 = vld [vmem:[#allocation5 + $0x140] sm:$0xff] }
 0x3e0   : > { %20565 = vmatprep.mubr.msk.bf16.mxu1 %vm631_vm4, %v25929_v41  ;;  %21411 = vmatprep.mubr.msk.bf16.mxu0 %vm575_vm1, %v12218_v20  ;;  %v12206_v20 = vld [vmem:[#allocation2 + $0x152] sm:$0xff]  ;;  %v25974_v48 = vpack.c.bf16 %v4547_v14, %v4546_v60  ;;  %v5051_v60 = vld [vmem:[#allocation5 + $0x62] sm:$0xff]  ;;  %v5052_v14 = vld [vmem:[#allocation5 + $0x6a] sm:$0xff] }
 0x3e1   : > { %v12226_v4 = vpack.c.bf16 %v12207_v44, %v12206_v20  ;;  %v5079_v44 = vpack.c.bf16 %v5052_v14, %v5051_v60  ;;  %v5062_v60 = vld [vmem:[#allocation5 + $0xe2] sm:$0xff] }
 0x3e7   : > { %20566 = vmatmul.mubr.msk.bf16.gmra.mrb[140].mxu1 %vm631_vm4, %v25937_v36  ;;  %21412 = vmatmul.mubr.msk.bf16.gmra.mrb[40].mxu0 %vm575_vm1, %v12219_v3  ;;  %v5043_v3 = vld [vmem:[#allocation5 + $0x2] sm:$0xff] }
 0x3e8   : > { %20569 = vmatprep.mubr.msk.bf16.mxu1 %vm631_vm4, %v25939_v6  ;;  %21415 = vmatprep.mubr.msk.bf16.mxu0 %vm575_vm1, %v12220_v47  ;;  %v5044_v47 = vld [vmem:[#allocation5 + $0xa] sm:$0xff] }
 0x3e9   : > { %v5075_v34 = vpack.c.bf16 %v5044_v47, %v5043_v3  ;;  %v5056_v3 = vld [vmem:[#allocation5 + $0x9a] sm:$0xff] }
 0x3ea   : > { %v5081_v63 = vpack.c.bf16 %v5056_v3, %v5055_v33 }
 0x3ef   : > { %20570 = vmatmul.mubr.msk.bf16.gmra.mrb[144].mxu1 %vm631_vm4, %v25954_v38  ;;  %21416 = vmatmul.mubr.msk.bf16.gmra.mrb[44].mxu0 %vm575_vm1, %v12221_v50  ;;  %v5045_v50 = vld [vmem:[#allocation5 + $0x1a] sm:$0xff] }
 0x3f0   : > { %20573 = vmatprep.mubr.msk.bf16.mxu1 %vm631_vm4, %v25956_v45  ;;  %21419 = vmatprep.mubr.msk.bf16.mxu0 %vm575_vm1, %v12222_v7  ;;  %v5046_v7 = vld [vmem:[#allocation5 + $0x22] sm:$0xff] }
 0x3f1   : > { %v5076_v54 = vpack.c.bf16 %v5046_v7, %v5045_v50  ;;  %v5060_v50 = vld [vmem:[#allocation5 + $0xca] sm:$0xff] }
 0x3f7   : > { %20574 = vmatmul.mubr.msk.bf16.gmra.mrb[148].mxu1 %vm631_vm4, %v25964_v39  ;;  %21420 = vmatmul.mubr.msk.bf16.gmra.mrb[48].mxu0 %vm575_vm1, %v12223_v52  ;;  %v5077_v52 = vpack.c.bf16 %v5048_v11, %v5047_v58 }
 0x3f8   : > { %20577 = vmatprep.mubr.msk.bf16.mxu1 %vm631_vm4, %v25966_v49  ;;  %21423 = vmatprep.mubr.msk.bf16.mxu0 %vm575_vm1, %v12224_v13  ;;  %v12527_v13 = vld [vmem:[#allocation4 + $0x1a] sm:$0xff] }
 0x3f9   : > { %v12558_v20 = vpack.c.bf16 %v12528_v18, %v12527_v13  ;;  %v26031_v18 = vld [vmem:[%s28082_s14 + $0x8] sm:$0xf] }
 0x3ff   : > { %20578 = vmatmul.mubr.msk.bf16.gmra.mrb[152].mxu1 %vm631_vm4, %v25974_v48  ;;  %21424 = vmatmul.mubr.msk.bf16.gmra.mrb[52].mxu0 %vm575_vm1, %v12225_v61  ;;  %v5053_v61 = vld [vmem:[#allocation5 + $0x7a] sm:$0xff] }
 0x400   : > { %20581 = vmatprep.mubr.msk.bf16.mxu1 %vm631_vm4, %v25976_v5  ;;  %21427 = vmatprep.mubr.msk.bf16.mxu0 %vm575_vm1, %v12226_v4  ;;  %v5054_v4 = vld [vmem:[#allocation5 + $0x82] sm:$0xff] }
 0x401   : > { %v5080_v47 = vpack.c.bf16 %v5054_v4, %v5053_v61 }
 0x407   : > { %20582 = vmatmul.mubr.msk.bf16.gmra.mrb[156].mxu1 %vm631_vm4, %v25984_v10  ;;  %21428 = vmatmul.mubr.msk.bf16.gmra.mrb[56].mxu0 %vm575_vm1, %v12227_v23 }
 0x408   : > { %21431 = vmatprep.mubr.msk.bf16.mxu0 %vm575_vm1, %v25737_v42  ;;  %20587 = vmatprep.mubr.msk.bf16.mxu1 %vm631_vm4, %v5075_v34  ;;  %v25997_v42 = vld [vmem:[%s28077_s9 + $0x8] sm:$0x3]  ;;  %v5058_v34 = vld [vmem:[#allocation5 + $0xb2] sm:$0xff] }
 0x40f   : > { %20588 = vmatmul.mubr.msk.bf16.vlgmr.msra.gmra.mrb[128].mxu1 %vm631_vm4, %v5076_v54  ;;  %21432 = vmatmul.mubr.msk.bf16.gmra.mrb[60].mxu0 %vm575_vm1, %v12229_v16  ;;  %v26020_v16 = vpack.c.bf16 %v5058_v34, %v5057_v0 }
 0x410   : > { %20591 = vmatprep.mubr.msk.bf16.mxu1 %vm631_vm4, %v5077_v52  ;;  %20620 = vmatpush3.bf16.msra.mxu1 %v5436_v37 }
 0x411   : > { %21437 = vmatprep.mubr.msk.bf16.mxu0 %vm575_vm1, %v12557_v31  ;;  %23728 = vmatprep.subr.msk.bf16.mxu1 %vm1980_vm3, %v25997_v42  ;;  %v5083_v31 = vpack.c.bf16 %v5060_v50, %v5059_v43 }
 0x417   : > { %20592 = vmatmul.mubr.msk.bf16.gmra.mrb[132].mxu1 %vm631_vm4, %v5078_v57  ;;  %21438 = vmatmul.mubr.msk.bf16.vlgmr.msra.gmra.mrb[32].mxu0 %vm575_vm1, %v12558_v20  ;;  %v5063_v57 = vld [vmem:[#allocation5 + $0xf2] sm:$0xff] }
 0x418   : > { %20595 = vmatprep.mubr.msk.bf16.mxu1 %vm631_vm4, %v5079_v44  ;;  %21470 = vmatpush3.bf16.msra.mxu0 %v12836_v2  ;;  %v5064_v2 = vld [vmem:[#allocation5 + $0xfa] sm:$0xff] }
 0x419   : > { %23753 = vmatprep.subr.msk.bf16.mxu0 %vm10040_vm6, %v26031_v18  ;;  %v26043_v0 = vpack.c.bf16 %v5064_v2, %v5063_v57 }
 0x41f   : > { %20596 = vmatmul.mubr.msk.bf16.gmra.mrb[136].mxu1 %vm631_vm4, %v5080_v47  ;;  %v26040_v47 = vpack.c.bf16 %v5062_v60, %v5061_v53 }
 0x420   : > { %20599 = vmatprep.mubr.msk.bf16.mxu1 %vm631_vm4, %v5081_v63 }
 0x422   : > { %v20487_v51 = vpop.f32.mrb[96].mxu1 }
 0x423   : > { %v4425_v23 = vadd.f32 %v20487_v51, %v26015_v27  ;;  %v4257_v29 = vpop.f32.mrb[97].mxu1 }
 0x424   : > { %v4423_v7 = vadd.f32 %v26015_v27, %v4257_v29  ;;  %v20488_v15 = vpop.f32.mrb[98].mxu1 }
 0x425   : > { %v4457_v1 = vmax.f32 %v4425_v23, 0.0  ;;  %v4426_v58 = vadd.f32 %v20488_v15, %v26015_v27  ;;  %v4260_v11 = vpop.f32.mrb[99].mxu1 }
 0x426   : > { %v4455_v54 = vmax.f32 %v4423_v7, 0.0  ;;  %v4424_v37 = vadd.f32 %v26015_v27, %v4260_v11  ;;  %v5066_v11 = vld [vmem:[#allocation5 + $0x112] sm:$0xff] }
 0x427   : > { %4490 = vst.msk [vmem:[#allocation4 + $0x4a] sm:$0xff] %vm575_vm1, %v4457_v1  ;;  %v4458_v52 = vmax.f32 %v4426_v58, 0.0  ;;  %20600 = vmatmul.mubr.msk.bf16.gmra.mrb[140].mxu1 %vm631_vm4, %v26020_v16  ;;  %v5065_v58 = vld [vmem:[#allocation5 + $0x10a] sm:$0xff] }
 0x428   : > { %4488 = vst.msk [vmem:[#allocation4 + $0x32] sm:$0xff] %vm575_vm1, %v4455_v54  ;;  %v4456_v13 = vmax.f32 %v4424_v37, 0.0  ;;  %20603 = vmatprep.mubr.msk.bf16.mxu1 %vm631_vm4, %v5083_v31  ;;  %v26058_v57 = vpack.c.bf16 %v5066_v11, %v5065_v58  ;;  %v5071_v58 = vld [vmem:[#allocation5 + $0x152] sm:$0xff]  ;;  %v5072_v11 = vld [vmem:[#allocation5 + $0x15a] sm:$0xff] }
 0x429   : > { %4491 = vst.msk [vmem:[#allocation4 + $0x52] sm:$0xff] %vm575_vm1, %v4458_v52  ;;  %v5067_v52 = vld [vmem:[#allocation5 + $0x122] sm:$0xff] }
 0x42a   : > { %4489 = vst.msk [vmem:[#allocation4 + $0x3a] sm:$0xff] %vm575_vm1, %v4456_v13  ;;  %v20491_v9 = vpop.f32.mrb[100].mxu1  ;;  %v5068_v13 = vld [vmem:[#allocation5 + $0x12a] sm:$0xff] }
 0x42b   : > { %v4429_v14 = vadd.f32 %v20491_v9, %v26015_v27  ;;  %v4273_v20 = vpop.f32.mrb[101].mxu1 }
 0x42c   : > { %v4427_v44 = vadd.f32 %v26015_v27, %v4273_v20  ;;  %v20492_v61 = vpop.f32.mrb[102].mxu1 }
 0x42d   : > { %v4461_v4 = vmax.f32 %v4429_v14, 0.0  ;;  %v4430_v33 = vadd.f32 %v20492_v61, %v26015_v27  ;;  %v4276_v3 = vpop.f32.mrb[103].mxu1  ;;  %v26061_v61 = vpack.c.bf16 %v5068_v13, %v5067_v52 }
 0x42e   : > { %v4459_v63 = vmax.f32 %v4427_v44, 0.0  ;;  %v4428_v51 = vadd.f32 %v26015_v27, %v4276_v3  ;;  %v12531_v1 = vld [vmem:[#allocation4 + $0x4a] sm:$0xff] }
 0x42f   : > { %4494 = vst.msk [vmem:[#allocation4 + $0x7a] sm:$0xff] %vm575_vm1, %v4461_v4  ;;  %v4462_v34 = vmax.f32 %v4430_v33, 0.0  ;;  %20604 = vmatmul.mubr.msk.bf16.gmra.mrb[144].mxu1 %vm631_vm4, %v26040_v47  ;;  %v12529_v43 = vld [vmem:[#allocation4 + $0x32] sm:$0xff] }
 0x430   : > { %4492 = vst.msk [vmem:[#allocation4 + $0x62] sm:$0xff] %vm575_vm1, %v4459_v63  ;;  %v4460_v23 = vmax.f32 %v4428_v51, 0.0  ;;  %20607 = vmatprep.mubr.msk.bf16.mxu1 %vm631_vm4, %v26043_v0  ;;  %v12532_v29 = vld [vmem:[#allocation4 + $0x52] sm:$0xff] }
 0x431   : > { %4495 = vst.msk [vmem:[#allocation4 + $0x82] sm:$0xff] %vm575_vm1, %v4462_v34  ;;  %v12530_v50 = vld [vmem:[#allocation4 + $0x3a] sm:$0xff]  ;;  %v12560_v31 = vpack.c.bf16 %v12532_v29, %v12531_v1 }
 0x432   : > { %4493 = vst.msk [vmem:[#allocation4 + $0x6a] sm:$0xff] %vm575_vm1, %v4460_v23  ;;  %v20495_v7 = vpop.f32.mrb[104].mxu1  ;;  %v12559_v15 = vpack.c.bf16 %v12530_v50, %v12529_v43  ;;  %v5069_v43 = vld [vmem:[#allocation5 + $0x13a] sm:$0xff]  ;;  %v5070_v50 = vld [vmem:[#allocation5 + $0x142] sm:$0xff] }
 0x433   : > { %v4433_v54 = vadd.f32 %v20495_v7, %v26015_v27  ;;  %v4289_v37 = vpop.f32.mrb[105].mxu1 }
 0x434   : > { %v4431_v9 = vadd.f32 %v26015_v27, %v4289_v37  ;;  %v20496_v53 = vpop.f32.mrb[106].mxu1  ;;  %21441 = vmatprep.mubr.msk.bf16.mxu0 %vm575_vm1, %v12559_v15 }
 0x435   : > { %v4465_v60 = vmax.f32 %v4433_v54, 0.0  ;;  %v4434_v14 = vadd.f32 %v20496_v53, %v26015_v27  ;;  %v4292_v20 = vpop.f32.mrb[107].mxu1  ;;  %21442 = vmatmul.mubr.msk.bf16.gmra.mrb[36].mxu0 %vm575_vm1, %v12560_v31 }
 0x436   : > { %v4463_v2 = vmax.f32 %v4431_v9, 0.0  ;;  %v4432_v44 = vadd.f32 %v26015_v27, %v4292_v20  ;;  %v12535_v29 = vld [vmem:[#allocation4 + $0x7a] sm:$0xff]  ;;  %v26076_v9 = vpack.c.bf16 %v5070_v50, %v5069_v43 }
 0x437   : > { %4498 = vst.msk [vmem:[#allocation4 + $0xaa] sm:$0xff] %vm575_vm1, %v4465_v60  ;;  %v4466_v4 = vmax.f32 %v4434_v14, 0.0  ;;  %20608 = vmatmul.mubr.msk.bf16.gmra.mrb[148].mxu1 %vm631_vm4, %v26058_v57  ;;  %v12533_v63 = vld [vmem:[#allocation4 + $0x62] sm:$0xff]  ;;  %v26079_v14 = vpack.c.bf16 %v5072_v11, %v5071_v58 }
 0x438   : > { %4496 = vst.msk [vmem:[#allocation4 + $0x92] sm:$0xff] %vm575_vm1, %v4463_v2  ;;  %v4464_v33 = vmax.f32 %v4432_v44, 0.0  ;;  %20611 = vmatprep.mubr.msk.bf16.mxu1 %vm631_vm4, %v26061_v61  ;;  %v12536_v3 = vld [vmem:[#allocation4 + $0x82] sm:$0xff] }
 0x439   : > { %4499 = vst.msk [vmem:[#allocation4 + $0xb2] sm:$0xff] %vm575_vm1, %v4466_v4  ;;  %v12534_v51 = vld [vmem:[#allocation4 + $0x6a] sm:$0xff]  ;;  %v12562_v1 = vpack.c.bf16 %v12536_v3, %v12535_v29 }
 0x43a   : > { %4497 = vst.msk [vmem:[#allocation4 + $0x9a] sm:$0xff] %vm575_vm1, %v4464_v33  ;;  %v20499_v34 = vpop.f32.mrb[108].mxu1  ;;  %v12561_v23 = vpack.c.bf16 %v12534_v51, %v12533_v63 }
 0x43b   : > { %v4437_v7 = vadd.f32 %v20499_v34, %v26015_v27  ;;  %v4305_v15 = vpop.f32.mrb[109].mxu1  ;;  %v5073_v34 = vld [vmem:[#allocation5 + $0x16a] sm:$0xff] }
 0x43c   : > { %v4435_v54 = vadd.f32 %v26015_v27, %v4305_v15  ;;  %v20500_v37 = vpop.f32.mrb[110].mxu1  ;;  %21445 = vmatprep.mubr.msk.bf16.mxu0 %vm575_vm1, %v12561_v23  ;;  %v5074_v23 = vld [vmem:[#allocation5 + $0x172] sm:$0xff] }
 0x43d   : > { %v4469_v31 = vmax.f32 %v4437_v7, 0.0  ;;  %v4438_v52 = vadd.f32 %v20500_v37, %v26015_v27  ;;  %v4308_v13 = vpop.f32.mrb[111].mxu1  ;;  %21446 = vmatmul.mubr.msk.bf16.gmra.mrb[40].mxu0 %vm575_vm1, %v12562_v1 }
 0x43e   : > { %v4467_v53 = vmax.f32 %v4435_v54, 0.0  ;;  %v4436_v60 = vadd.f32 %v26015_v27, %v4308_v13  ;;  %v12539_v51 = vld [vmem:[#allocation4 + $0xaa] sm:$0xff]  ;;  %v26094_v54 = vpack.c.bf16 %v5074_v23, %v5073_v34 }
 0x43f   : > { %4502 = vst.msk [vmem:[#allocation4 + $0xda] sm:$0xff] %vm575_vm1, %v4469_v31  ;;  %v4470_v20 = vmax.f32 %v4438_v52, 0.0  ;;  %20612 = vmatmul.mubr.msk.bf16.gmra.mrb[152].mxu1 %vm631_vm4, %v26076_v9  ;;  %v12537_v4 = vld [vmem:[#allocation4 + $0x92] sm:$0xff] }
 0x440   : > { %4500 = vst.msk [vmem:[#allocation4 + $0xc2] sm:$0xff] %vm575_vm1, %v4467_v53  ;;  %v4468_v2 = vmax.f32 %v4436_v60, 0.0  ;;  %20615 = vmatprep.mubr.msk.bf16.mxu1 %vm631_vm4, %v26079_v14  ;;  %v12540_v44 = vld [vmem:[#allocation4 + $0xb2] sm:$0xff] }
 0x441   : > { %4503 = vst.msk [vmem:[#allocation4 + $0xe2] sm:$0xff] %vm575_vm1, %v4470_v20  ;;  %v12538_v33 = vld [vmem:[#allocation4 + $0x9a] sm:$0xff]  ;;  %v12564_v50 = vpack.c.bf16 %v12540_v44, %v12539_v51 }
 0x442   : > { %4501 = vst.msk [vmem:[#allocation4 + $0xca] sm:$0xff] %vm575_vm1, %v4468_v2  ;;  %v20503_v3 = vpop.f32.mrb[112].mxu1  ;;  %v12563_v63 = vpack.c.bf16 %v12538_v33, %v12537_v4 }
 0x443   : > { %v4441_v29 = vadd.f32 %v20503_v3, %v26015_v27  ;;  %v4321_v43 = vpop.f32.mrb[113].mxu1 }
 0x444   : > { %v4439_v7 = vadd.f32 %v26015_v27, %v4321_v43  ;;  %v20504_v15 = vpop.f32.mrb[114].mxu1  ;;  %21449 = vmatprep.mubr.msk.bf16.mxu0 %vm575_vm1, %v12563_v63  ;;  %v5730_v43 = vsel %vm1980_vm3, %v25997_v42, 0 }
 0x445   : > { %v4473_v1 = vmax.f32 %v4441_v29, 0.0  ;;  %v4442_v58 = vadd.f32 %v20504_v15, %v26015_v27  ;;  %v4324_v11 = vpop.f32.mrb[115].mxu1  ;;  %21450 = vmatmul.mubr.msk.bf16.gmra.mrb[44].mxu0 %vm575_vm1, %v12564_v50  ;;  %v26116_v15 = vld [vmem:[%s28077_s9 + $0xa] sm:$0x3] }
 0x446   : > { %v4471_v37 = vmax.f32 %v4439_v7, 0.0  ;;  %v4440_v31 = vadd.f32 %v26015_v27, %v4324_v11  ;;  %v12543_v4 = vld [vmem:[#allocation4 + $0xda] sm:$0xff] }
 0x447   : > { %4506 = vst.msk [vmem:[#allocation4 + $0x10a] sm:$0xff] %vm575_vm1, %v4473_v1  ;;  %v4474_v52 = vmax.f32 %v4442_v58, 0.0  ;;  %20616 = vmatmul.mubr.msk.bf16.gmra.mrb[156].mxu1 %vm631_vm4, %v26094_v54  ;;  %v12541_v60 = vld [vmem:[#allocation4 + $0xc2] sm:$0xff] }
 0x448   : > { %4504 = vst.msk [vmem:[#allocation4 + $0xf2] sm:$0xff] %vm575_vm1, %v4471_v37  ;;  %v4472_v13 = vmax.f32 %v4440_v31, 0.0  ;;  %20621 = vmatprep.mubr.msk.bf16.mxu1 %vm631_vm4, %v25896_v17  ;;  %v12544_v53 = vld [vmem:[#allocation4 + $0xe2] sm:$0xff] }
 0x449   : > { %4507 = vst.msk [vmem:[#allocation4 + $0x112] sm:$0xff] %vm575_vm1, %v4474_v52  ;;  %v12542_v20 = vld [vmem:[#allocation4 + $0xca] sm:$0xff]  ;;  %v12566_v63 = vpack.c.bf16 %v12544_v53, %v12543_v4 }
 0x44a   : > { %4505 = vst.msk [vmem:[#allocation4 + $0xfa] sm:$0xff] %vm575_vm1, %v4472_v13  ;;  %v20507_v2 = vpop.f32.mrb[116].mxu1  ;;  %v12565_v44 = vpack.c.bf16 %v12542_v20, %v12541_v60 }
 0x44b   : > { %v4445_v33 = vadd.f32 %v20507_v2, %v26015_v27  ;;  %v4337_v3 = vpop.f32.mrb[117].mxu1 }
 0x44c   : > { %v4443_v51 = vadd.f32 %v26015_v27, %v4337_v3  ;;  %v20508_v34 = vpop.f32.mrb[118].mxu1  ;;  %21453 = vmatprep.mubr.msk.bf16.mxu0 %vm575_vm1, %v12565_v44 }
 0x44d   : > { %v4477_v17 = vmax.f32 %v4445_v33, 0.0  ;;  %v4446_v23 = vadd.f32 %v20508_v34, %v26015_v27  ;;  %v4340_v29 = vpop.f32.mrb[119].mxu1  ;;  %21454 = vmatmul.mubr.msk.bf16.gmra.mrb[48].mxu0 %vm575_vm1, %v12566_v63 }
 0x44e   : > { %v4475_v50 = vmax.f32 %v4443_v51, 0.0  ;;  %v4444_v7 = vadd.f32 %v26015_v27, %v4340_v29 }
 0x44f   : > { %4510 = vst.msk [vmem:[#allocation4 + $0x13a] sm:$0xff] %vm575_vm1, %v4477_v17  ;;  %v4478_v1 = vmax.f32 %v4446_v23, 0.0  ;;  %20622 = vmatmul.mubr.msk.bf16.vlgmr.msra.gmra.mrb[128].mxu1 %vm631_vm4, %v25900_v46  ;;  %v12545_v11 = vld [vmem:[#allocation4 + $0xf2] sm:$0xff]  ;;  %v12547_v46 = vld [vmem:[#allocation4 + $0x10a] sm:$0xff] }
 0x450   : > { %4508 = vst.msk [vmem:[#allocation4 + $0x122] sm:$0xff] %vm575_vm1, %v4475_v50  ;;  %v4476_v58 = vmax.f32 %v4444_v7, 0.0  ;;  %20625 = vmatprep.mubr.msk.bf16.mxu1 %vm631_vm4, %v25915_v25  ;;  %20654 = vmatpush3.bf16.msra.mxu1 %v5730_v43  ;;  %v12548_v42 = vld [vmem:[#allocation4 + $0x112] sm:$0xff] }
 0x451   : > { %4511 = vst.msk [vmem:[#allocation4 + $0x142] sm:$0xff] %vm575_vm1, %v4478_v1  ;;  %v12546_v37 = vld [vmem:[#allocation4 + $0xfa] sm:$0xff]  ;;  %23729 = vmatprep.subr.msk.bf16.mxu1 %vm1980_vm3, %v26116_v15  ;;  %v12568_v60 = vpack.c.bf16 %v12548_v42, %v12547_v46 }
 0x452   : > { %4509 = vst.msk [vmem:[#allocation4 + $0x12a] sm:$0xff] %vm575_vm1, %v4476_v58  ;;  %v20511_v31 = vpop.f32.mrb[120].mxu1  ;;  %v12567_v52 = vpack.c.bf16 %v12546_v37, %v12545_v11  ;;  %v13019_v62 = vld [vmem:[#allocation4 + $0xf4] sm:$0xff]  ;;  %v13020_v59 = vld [vmem:[#allocation4 + $0xfc] sm:$0xff] }
 0x453   : > { %v4449_v13 = vadd.f32 %v20511_v31, %v26015_v27  ;;  %v4353_v53 = vpop.f32.mrb[121].mxu1 }
 0x454   : > { %v4447_v25 = vadd.f32 %v26015_v27, %v4353_v53  ;;  %v20512_v20 = vpop.f32.mrb[122].mxu1  ;;  %21457 = vmatprep.mubr.msk.bf16.mxu0 %vm575_vm1, %v12567_v52  ;;  %v12477_v53 = vld [vmem:[#allocation4 + $0x8] sm:$0xff] }
 0x455   : > { %v4481_v2 = vmax.f32 %v4449_v13, 0.0  ;;  %v4450_v44 = vadd.f32 %v20512_v20, %v26015_v27  ;;  %v4356_v4 = vpop.f32.mrb[123].mxu1  ;;  %21458 = vmatmul.mubr.msk.bf16.gmra.mrb[52].mxu0 %vm575_vm1, %v12568_v60  ;;  %v12476_v13 = vld [vmem:[#allocation4] sm:$0xff] }
 0x456   : > { %v4479_v33 = vmax.f32 %v4447_v25, 0.0  ;;  %v4448_v3 = vadd.f32 %v26015_v27, %v4356_v4  ;;  %v12551_v50 = vld [vmem:[#allocation4 + $0x13a] sm:$0xff]  ;;  %v12508_v4 = vpack.c.bf16 %v12477_v53, %v12476_v13 }
 0x457   : > { %4514 = vst.msk [vmem:[#allocation4 + $0x16a] sm:$0xff] %vm575_vm1, %v4481_v2  ;;  %v4482_v63 = vmax.f32 %v4450_v44, 0.0  ;;  %20626 = vmatmul.mubr.msk.bf16.gmra.mrb[132].mxu1 %vm631_vm4, %v25917_v56  ;;  %v12549_v17 = vld [vmem:[#allocation4 + $0x122] sm:$0xff] }
 0x458   : > { %4512 = vst.msk [vmem:[#allocation4 + $0x152] sm:$0xff] %vm575_vm1, %v4479_v33  ;;  %v4480_v51 = vmax.f32 %v4448_v3, 0.0  ;;  %20629 = vmatprep.mubr.msk.bf16.mxu1 %vm631_vm4, %v25927_v8  ;;  %v12552_v34 = vld [vmem:[#allocation4 + $0x142] sm:$0xff] }
 0x459   : > { %4515 = vst.msk [vmem:[#allocation4 + $0x172] sm:$0xff] %vm575_vm1, %v4482_v63  ;;  %v12550_v23 = vld [vmem:[#allocation4 + $0x12a] sm:$0xff]  ;;  %v12570_v56 = vpack.c.bf16 %v12552_v34, %v12551_v50  ;;  %v12479_v3 = vld [vmem:[#allocation4 + $0x20] sm:$0xff]  ;;  %v12481_v63 = vld [vmem:[#allocation4 + $0x38] sm:$0xff]  ;;  %v13098_v34 = vsel %vm10040_vm6, %v26031_v18, 0 }
 0x45a   : > { %4513 = vst.msk [vmem:[#allocation4 + $0x15a] sm:$0xff] %vm575_vm1, %v4480_v51  ;;  %v20515_v29 = vpop.f32.mrb[124].mxu1  ;;  %v12569_v43 = vpack.c.bf16 %v12550_v23, %v12549_v17  ;;  %v12480_v51 = vld [vmem:[#allocation4 + $0x30] sm:$0xff]  ;;  %v26170_v23 = vld [vmem:[%s28082_s14 + $0xc] sm:$0xf]  ;;  %v13026_v24 = vld [vmem:[#allocation4 + $0x144] sm:$0xff] }
 0x45b   : > { %v4453_v7 = vadd.f32 %v20515_v29, %v26015_v27  ;;  %v4369_v1 = vpop.f32.mrb[125].mxu1  ;;  %v26165_v17 = vpack.c.bf16 %v12481_v63, %v12480_v51  ;;  %v12482_v18 = vld [vmem:[#allocation4 + $0x48] sm:$0xff] }
 0x45c   : > { %v4451_v58 = vadd.f32 %v26015_v27, %v4369_v1  ;;  %v20516_v42 = vpop.f32.mrb[126].mxu1  ;;  %21461 = vmatprep.mubr.msk.bf16.mxu0 %vm575_vm1, %v12569_v43  ;;  %v12484_v43 = vld [vmem:[#allocation4 + $0x60] sm:$0xff]  ;;  %v26235_v51 = vld [vmem:[%s28077_s9 + $0xc] sm:$0x3] }
 0x45d   : > { %v4485_v8 = vmax.f32 %v4453_v7, 0.0  ;;  %v4454_v11 = vadd.f32 %v20516_v42, %v26015_v27  ;;  %v4372_v37 = vpop.f32.mrb[127].mxu1  ;;  %21462 = vmatmul.mubr.msk.bf16.gmra.mrb[56].mxu0 %vm575_vm1, %v12570_v56  ;;  %v12486_v7 = vld [vmem:[#allocation4 + $0x78] sm:$0xff]  ;;  %v12488_v56 = vld [vmem:[#allocation4 + $0x90] sm:$0xff]  ;;  %v12490_v42 = vld [vmem:[#allocation4 + $0xa8] sm:$0xff] }
 0x45e   : > { %v4483_v31 = vmax.f32 %v4451_v58, 0.0  ;;  %v4452_v52 = vadd.f32 %v26015_v27, %v4372_v37  ;;  %v12555_v44 = vld [vmem:[#allocation4 + $0x16a] sm:$0xff] }
 0x45f   : > { %4518 = vst.msk [vmem:[#allocation4 + $0x19a] sm:$0xff] %vm575_vm1, %v4485_v8  ;;  %v4486_v46 = vmax.f32 %v4454_v11, 0.0  ;;  %20630 = vmatmul.mubr.msk.bf16.gmra.mrb[136].mxu1 %vm631_vm4, %v25929_v41  ;;  %v12553_v20 = vld [vmem:[#allocation4 + $0x152] sm:$0xff]  ;;  %v5367_v8 = vld [vmem:[#allocation5 + $0x180] sm:$0xff]  ;;  %v5368_v11 = vld [vmem:[#allocation5 + $0x188] sm:$0xff] }
 0x460   : > { %4516 = vst.msk [vmem:[#allocation4 + $0x182] sm:$0xff] %vm575_vm1, %v4483_v31  ;;  %v4484_v60 = vmax.f32 %v4452_v52, 0.0  ;;  %20633 = vmatprep.mubr.msk.bf16.mxu1 %vm631_vm4, %v25937_v36  ;;  %v12556_v25 = vld [vmem:[#allocation4 + $0x172] sm:$0xff]  ;;  %v12492_v31 = vld [vmem:[#allocation4 + $0xc0] sm:$0xff]  ;;  %v26211_v53 = vpack.c.bf16 %v5368_v11, %v5367_v8 }
 0x461   : > { %4519 = vst.msk [vmem:[#allocation4 + $0x1a2] sm:$0xff] %vm575_vm1, %v4486_v46  ;;  %v12554_v2 = vld [vmem:[#allocation4 + $0x15a] sm:$0xff]  ;;  %v12572_v33 = vpack.c.bf16 %v12556_v25, %v12555_v44  ;;  %v12496_v44 = vld [vmem:[#allocation4 + $0xf0] sm:$0xff] }
 0x462   : > { %4517 = vst.msk [vmem:[#allocation4 + $0x18a] sm:$0xff] %vm575_vm1, %v4484_v60  ;;  %v12571_v27 = vpack.c.bf16 %v12554_v2, %v12553_v20  ;;  %v12478_v41 = vld [vmem:[#allocation4 + $0x18] sm:$0xff]  ;;  %v5632_v46 = vld [vmem:[#allocation5 + $0x21] sm:$0xff] }
 0x463   : > { %v12509_v36 = vpack.c.bf16 %v12479_v3, %v12478_v41  ;;  %v5631_v52 = vld [vmem:[#allocation5 + $0x19] sm:$0xff]  ;;  %v5633_v20 = vld [vmem:[#allocation5 + $0x31] sm:$0xff] }
 0x464   : > { %21465 = vmatprep.mubr.msk.bf16.mxu0 %vm575_vm1, %v12571_v27  ;;  %v12497_v60 = vld [vmem:[#allocation4 + $0xf8] sm:$0xff] }
 0x465   : > { %21466 = vmatmul.mubr.msk.bf16.gmra.mrb[60].mxu0 %vm575_vm1, %v12572_v33  ;;  %v12494_v25 = vld [vmem:[#allocation4 + $0xd8] sm:$0xff]  ;;  %v26220_v41 = vpack.c.bf16 %v12497_v60, %v12496_v44  ;;  %v12999_v44 = vld [vmem:[#allocation4 + $0x4] sm:$0xff] }
 0x466   : > { %21471 = vmatprep.mubr.msk.bf16.mxu0 %vm575_vm1, %v12508_v4  ;;  %v5634_v2 = vld [vmem:[#allocation5 + $0x39] sm:$0xff]  ;;  %v5635_v4 = vld [vmem:[#allocation5 + $0x49] sm:$0xff]  ;;  %v5636_v33 = vld [vmem:[#allocation5 + $0x51] sm:$0xff] }
 0x467   : > { %20634 = vmatmul.mubr.msk.bf16.gmra.mrb[140].mxu1 %vm631_vm4, %v25939_v6  ;;  %v12483_v6 = vld [vmem:[#allocation4 + $0x50] sm:$0xff]  ;;  %v26224_v3 = vpack.c.bf16 %v5634_v2, %v5633_v20  ;;  %v26230_v63 = vpack.c.bf16 %v5636_v33, %v5635_v4  ;;  %v12505_v8 = vld [vmem:[#allocation4 + $0x158] sm:$0xff] }
 0x468   : > { %20637 = vmatprep.mubr.msk.bf16.mxu1 %vm631_vm4, %v25954_v38  ;;  %v12485_v38 = vld [vmem:[#allocation4 + $0x68] sm:$0xff]  ;;  %v26181_v29 = vpack.c.bf16 %v12483_v6, %v12482_v18  ;;  %v12502_v11 = vld [vmem:[#allocation4 + $0x138] sm:$0xff]  ;;  %v12507_v33 = vld [vmem:[#allocation4 + $0x170] sm:$0xff] }
 0x469   : > { %v26183_v50 = vpack.c.bf16 %v12485_v38, %v12484_v43  ;;  %v12501_v6 = vld [vmem:[#allocation4 + $0x128] sm:$0xff]  ;;  %v5644_v60 = vld [vmem:[#allocation5 + $0xb1] sm:$0xff]  ;;  %v13028_v12 = vld [vmem:[#allocation4 + $0x15c] sm:$0xff] }
 0x46a   : > { %v5637_v38 = vld [vmem:[#allocation5 + $0x61] sm:$0xff]  ;;  %v5638_v18 = vld [vmem:[#allocation5 + $0x69] sm:$0xff] }
 0x46b   : > { %v13000_v4 = vld [vmem:[#allocation4 + $0xc] sm:$0xff] }
 0x46d   : > { %21472 = vmatmul.mubr.msk.bf16.vlgmr.msra.gmra.mrb[32].mxu0 %vm575_vm1, %v12509_v36  ;;  %v6024_v36 = vsel %vm1980_vm3, %v26116_v15, 0  ;;  %v12498_v15 = vld [vmem:[#allocation4 + $0x108] sm:$0xff] }
 0x46e   : > { %21475 = vmatprep.mubr.msk.bf16.mxu0 %vm575_vm1, %v26165_v17  ;;  %21504 = vmatpush3.bf16.msra.mxu0 %v13098_v34  ;;  %v12499_v34 = vld [vmem:[#allocation4 + $0x110] sm:$0xff] }
 0x46f   : > { %20638 = vmatmul.mubr.msk.bf16.gmra.mrb[144].mxu1 %vm631_vm4, %v25956_v45  ;;  %23754 = vmatprep.subr.msk.bf16.mxu0 %vm10040_vm6, %v26170_v23  ;;  %v12487_v45 = vld [vmem:[#allocation4 + $0x80] sm:$0xff]  ;;  %v26243_v43 = vpack.c.bf16 %v12499_v34, %v12498_v15  ;;  %v13031_v15 = vpack.c.bf16 %v13000_v4, %v12999_v44  ;;  %v5652_v44 = vld [vmem:[#allocation5 + $0x111] sm:$0xff]  ;;  %v13392_v4 = vsel %vm10040_vm6, %v26170_v23, 0 }
 0x470   : > { %20641 = vmatprep.mubr.msk.bf16.mxu1 %vm631_vm4, %v25964_v39  ;;  %v12489_v39 = vld [vmem:[#allocation4 + $0x98] sm:$0xff]  ;;  %v26193_v1 = vpack.c.bf16 %v12487_v45, %v12486_v7  ;;  %v12500_v45 = vld [vmem:[#allocation4 + $0x120] sm:$0xff]  ;;  %v13005_v23 = vld [vmem:[#allocation4 + $0x4c] sm:$0xff] }
 0x471   : > { %v26195_v58 = vpack.c.bf16 %v12489_v39, %v12488_v56  ;;  %v5639_v39 = vld [vmem:[#allocation5 + $0x79] sm:$0xff]  ;;  %v5640_v7 = vld [vmem:[#allocation5 + $0x81] sm:$0xff]  ;;  %v26245_v56 = vpack.c.bf16 %v12501_v6, %v12500_v45  ;;  %v5646_v6 = vld [vmem:[#allocation5 + $0xc9] sm:$0xff] }
 0x472   : > { %v5645_v34 = vld [vmem:[#allocation5 + $0xc1] sm:$0xff] }
 0x473   : > { %v5648_v45 = vld [vmem:[#allocation5 + $0xe1] sm:$0xff] }
 0x475   : > { %21476 = vmatmul.mubr.msk.bf16.gmra.mrb[36].mxu0 %vm575_vm1, %v26181_v29 }
 0x476   : > { %21479 = vmatprep.mubr.msk.bf16.mxu0 %vm575_vm1, %v26183_v50 }
 0x477   : > { %20642 = vmatmul.mubr.msk.bf16.gmra.mrb[148].mxu1 %vm631_vm4, %v25966_v49  ;;  %v12491_v49 = vld [vmem:[#allocation4 + $0xb0] sm:$0xff] }
 0x478   : > { %20645 = vmatprep.mubr.msk.bf16.mxu1 %vm631_vm4, %v25974_v48  ;;  %v12493_v48 = vld [vmem:[#allocation4 + $0xc8] sm:$0xff]  ;;  %v26205_v37 = vpack.c.bf16 %v12491_v49, %v12490_v42  ;;  %v26249_v49 = vpack.c.bf16 %v5638_v18, %v5637_v38  ;;  %v12503_v42 = vld [vmem:[#allocation4 + $0x140] sm:$0xff] }
 0x479   : > { %v26207_v13 = vpack.c.bf16 %v12493_v48, %v12492_v31  ;;  %v26253_v48 = vpack.c.bf16 %v5640_v7, %v5639_v39  ;;  %v5641_v31 = vld [vmem:[#allocation5 + $0x91] sm:$0xff]  ;;  %v5647_v18 = vld [vmem:[#allocation5 + $0xd9] sm:$0xff]  ;;  %v26279_v39 = vpack.c.bf16 %v5646_v6, %v5645_v34 }
 0x47a   : > { %v26281_v7 = vpack.c.bf16 %v5648_v45, %v5647_v18  ;;  %v13007_v18 = vld [vmem:[#allocation4 + $0x64] sm:$0xff]  ;;  %v13008_v45 = vld [vmem:[#allocation4 + $0x6c] sm:$0xff] }
 0x47d   : > { %21480 = vmatmul.mubr.msk.bf16.gmra.mrb[40].mxu0 %vm575_vm1, %v26193_v1 }
 0x47e   : > { %21483 = vmatprep.mubr.msk.bf16.mxu0 %vm575_vm1, %v26195_v58 }
 0x47f   : > { %20646 = vmatmul.mubr.msk.bf16.gmra.mrb[152].mxu1 %vm631_vm4, %v25976_v5  ;;  %v5663_v5 = vpack.c.bf16 %v5632_v46, %v5631_v52  ;;  %v5642_v52 = vld [vmem:[#allocation5 + $0x99] sm:$0xff]  ;;  %v26259_v46 = vpack.c.bf16 %v12503_v42, %v12502_v11 }
 0x480   : > { %20649 = vmatprep.mubr.msk.bf16.mxu1 %vm631_vm4, %v25984_v10  ;;  %v12495_v10 = vld [vmem:[#allocation4 + $0xe0] sm:$0xff]  ;;  %v26265_v20 = vpack.c.bf16 %v5642_v52, %v5641_v31  ;;  %v13003_v31 = vld [vmem:[#allocation4 + $0x34] sm:$0xff] }
 0x481   : > { %v26218_v27 = vpack.c.bf16 %v12495_v10, %v12494_v25  ;;  %v5643_v10 = vld [vmem:[#allocation5 + $0xa9] sm:$0xff]  ;;  %v13001_v42 = vld [vmem:[#allocation4 + $0x1c] sm:$0xff] }
 0x482   : > { %v26269_v2 = vpack.c.bf16 %v5644_v60, %v5643_v10  ;;  %v13004_v52 = vld [vmem:[#allocation4 + $0x3c] sm:$0xff]  ;;  %v5651_v60 = vld [vmem:[#allocation5 + $0x109] sm:$0xff] }
 0x483   : > { %v5650_v10 = vld [vmem:[#allocation5 + $0xf9] sm:$0xff]  ;;  %v26302_v6 = vpack.c.bf16 %v5652_v44, %v5651_v60 }
 0x484   : > { %v13009_v44 = vld [vmem:[#allocation4 + $0x7c] sm:$0xff] }
 0x485   : > { %21484 = vmatmul.mubr.msk.bf16.gmra.mrb[44].mxu0 %vm575_vm1, %v26205_v37 }
 0x486   : > { %21487 = vmatprep.mubr.msk.bf16.mxu0 %vm575_vm1, %v26207_v13 }
 0x487   : > { %20650 = vmatmul.mubr.msk.bf16.gmra.mrb[156].mxu1 %vm631_vm4, %v26211_v53 }
 0x488   : > { %20655 = vmatprep.mubr.msk.bf16.mxu1 %vm631_vm4, %v5663_v5  ;;  %v12504_v5 = vld [vmem:[#allocation4 + $0x150] sm:$0xff] }
 0x489   : > { %v26261_v25 = vpack.c.bf16 %v12505_v8, %v12504_v5  ;;  %v13002_v8 = vld [vmem:[#allocation4 + $0x24] sm:$0xff]  ;;  %v5649_v5 = vld [vmem:[#allocation5 + $0xf1] sm:$0xff] }
 0x48a   : > { %v13032_v11 = vpack.c.bf16 %v13002_v8, %v13001_v42  ;;  %v26298_v34 = vpack.c.bf16 %v5650_v10, %v5649_v5  ;;  %v5653_v42 = vld [vmem:[#allocation5 + $0x121] sm:$0xff]  ;;  %v5654_v8 = vld [vmem:[#allocation5 + $0x129] sm:$0xff]  ;;  %v26312_v5 = vpack.c.bf16 %v13008_v45, %v13007_v18  ;;  %v5657_v18 = vld [vmem:[#allocation5 + $0x151] sm:$0xff] }
 0x48b   : > { %v26316_v10 = vpack.c.bf16 %v5654_v8, %v5653_v42  ;;  %v5658_v45 = vld [vmem:[#allocation5 + $0x159] sm:$0xff]  ;;  %v5659_v42 = vld [vmem:[#allocation5 + $0x169] sm:$0xff]  ;;  %v5660_v8 = vld [vmem:[#allocation5 + $0x171] sm:$0xff] }
 0x48d   : > { %21488 = vmatmul.mubr.msk.bf16.gmra.mrb[48].mxu0 %vm575_vm1, %v26218_v27 }
 0x48e   : > { %21491 = vmatprep.mubr.msk.bf16.mxu0 %vm575_vm1, %v26220_v41 }
 0x48f   : > { %20656 = vmatmul.mubr.msk.bf16.vlgmr.msra.gmra.mrb[128].mxu1 %vm631_vm4, %v26224_v3 }
 0x490   : > { %20659 = vmatprep.mubr.msk.bf16.mxu1 %vm631_vm4, %v26230_v63  ;;  %20688 = vmatpush3.bf16.msra.mxu1 %v6024_v36  ;;  %v12506_v36 = vld [vmem:[#allocation4 + $0x168] sm:$0xff] }
 0x491   : > { %23730 = vmatprep.subr.msk.bf16.mxu1 %vm1980_vm3, %v26235_v51  ;;  %v26275_v38 = vpack.c.bf16 %v12507_v33, %v12506_v36  ;;  %v26290_v33 = vpack.c.bf16 %v13004_v52, %v13003_v31  ;;  %v26295_v36 = vld [vmem:[%s28082_s14 + $0x10] sm:$0xf]  ;;  %v5655_v31 = vld [vmem:[#allocation5 + $0x139] sm:$0xff]  ;;  %v5656_v52 = vld [vmem:[#allocation5 + $0x141] sm:$0xff] }
 0x492   : > { %v26320_v60 = vpack.c.bf16 %v5656_v52, %v5655_v31  ;;  %v26332_v31 = vpack.c.bf16 %v5658_v45, %v5657_v18  ;;  %v26336_v52 = vpack.c.bf16 %v5660_v8, %v5659_v42  ;;  %v5925_v18 = vld [vmem:[#allocation5 + $0x1a] sm:$0xff]  ;;  %v5926_v45 = vld [vmem:[#allocation5 + $0x22] sm:$0xff]  ;;  %v26348_v42 = vpack.c.bf16 %v5662_v32, %v5661_v26  ;;  %v5930_v32 = vld [vmem:[#allocation5 + $0x52] sm:$0xff] }
 0x493   : > { %v5957_v8 = vpack.c.bf16 %v5926_v45, %v5925_v18  ;;  %v26357_v26 = vpack.c.bf16 %v13020_v59, %v13019_v62  ;;  %v6319_v45 = vsel %vm1980_vm3, %v26235_v51, 0  ;;  %v13021_v59 = vld [vmem:[#allocation4 + $0x10c] sm:$0xff]  ;;  %v13022_v62 = vld [vmem:[#allocation4 + $0x114] sm:$0xff]  ;;  %v5931_v51 = vld [vmem:[#allocation5 + $0x62] sm:$0xff] }
 0x495   : > { %21492 = vmatmul.mubr.msk.bf16.gmra.mrb[52].mxu0 %vm575_vm1, %v26243_v43  ;;  %28164 = vst [vmem:[#allocation19_spill] sm:$0xff] %v26357_v26 }
 0x496   : > { %21495 = vmatprep.mubr.msk.bf16.mxu0 %vm575_vm1, %v26245_v56 }
 0x497   : > { %20660 = vmatmul.mubr.msk.bf16.gmra.mrb[132].mxu1 %vm631_vm4, %v26249_v49 }
 0x498   : > { %20663 = vmatprep.mubr.msk.bf16.mxu1 %vm631_vm4, %v26253_v48 }
 0x49d   : > { %21496 = vmatmul.mubr.msk.bf16.gmra.mrb[56].mxu0 %vm575_vm1, %v26259_v46 }
 0x49e   : > { %21499 = vmatprep.mubr.msk.bf16.mxu0 %vm575_vm1, %v26261_v25 }
 0x49f   : > { %20664 = vmatmul.mubr.msk.bf16.gmra.mrb[136].mxu1 %vm631_vm4, %v26265_v20 }
 0x4a0   : > { %20667 = vmatprep.mubr.msk.bf16.mxu1 %vm631_vm4, %v26269_v2 }
 0x4a5   : > { %21500 = vmatmul.mubr.msk.bf16.gmra.mrb[60].mxu0 %vm575_vm1, %v26275_v38 }
 0x4a6   : > { %21505 = vmatprep.mubr.msk.bf16.mxu0 %vm575_vm1, %v13031_v15  ;;  %v13006_v15 = vld [vmem:[#allocation4 + $0x54] sm:$0xff] }
 0x4a7   : > { %20668 = vmatmul.mubr.msk.bf16.gmra.mrb[140].mxu1 %vm631_vm4, %v26279_v39 }
 0x4a8   : > { %20671 = vmatprep.mubr.msk.bf16.mxu1 %vm631_vm4, %v26281_v7 }
 0x4ad   : > { %21506 = vmatmul.mubr.msk.bf16.vlgmr.msra.gmra.mrb[32].mxu0 %vm575_vm1, %v13032_v11  ;;  %v26310_v11 = vpack.c.bf16 %v13006_v15, %v13005_v23  ;;  %v13011_v23 = vld [vmem:[#allocation4 + $0x94] sm:$0xff]  ;;  %v13012_v15 = vld [vmem:[#allocation4 + $0x9c] sm:$0xff] }
 0x4ae   : > { %21509 = vmatprep.mubr.msk.bf16.mxu0 %vm575_vm1, %v26290_v33  ;;  %21538 = vmatpush3.bf16.msra.mxu0 %v13392_v4  ;;  %v13010_v4 = vld [vmem:[#allocation4 + $0x84] sm:$0xff]  ;;  %v26328_v35 = vpack.c.bf16 %v13012_v15, %v13011_v23  ;;  %v13016_v15 = vld [vmem:[#allocation4 + $0xcc] sm:$0xff] }
 0x4af   : > { %20672 = vmatmul.mubr.msk.bf16.gmra.mrb[144].mxu1 %vm631_vm4, %v26298_v34  ;;  %23755 = vmatprep.subr.msk.bf16.mxu0 %vm10040_vm6, %v26295_v36  ;;  %v26326_v19 = vpack.c.bf16 %v13010_v4, %v13009_v44  ;;  %v13013_v44 = vld [vmem:[#allocation4 + $0xac] sm:$0xff]  ;;  %v13014_v4 = vld [vmem:[#allocation4 + $0xb4] sm:$0xff]  ;;  %v13015_v23 = vld [vmem:[#allocation4 + $0xc4] sm:$0xff] }
 0x4b0   : > { %20675 = vmatprep.mubr.msk.bf16.mxu1 %vm631_vm4, %v26302_v6  ;;  %v26342_v30 = vpack.c.bf16 %v13014_v4, %v13013_v44  ;;  %v26344_v55 = vpack.c.bf16 %v13016_v15, %v13015_v23  ;;  %v13017_v44 = vld [vmem:[#allocation4 + $0xdc] sm:$0xff]  ;;  %v13018_v4 = vld [vmem:[#allocation4 + $0xe4] sm:$0xff]  ;;  %v5927_v23 = vld [vmem:[#allocation5 + $0x32] sm:$0xff] }
 0x4b1   : > { %v5928_v15 = vld [vmem:[#allocation5 + $0x3a] sm:$0xff]  ;;  %v26355_v40 = vpack.c.bf16 %v13018_v4, %v13017_v44  ;;  %v26368_v44 = vld [vmem:[%s28077_s9 + $0xe] sm:$0x3]  ;;  %v13023_v4 = vld [vmem:[#allocation4 + $0x124] sm:$0xff] }
 0x4b2   : > { %v5958_v18 = vpack.c.bf16 %v5928_v15, %v5927_v23  ;;  %v13024_v23 = vld [vmem:[#allocation4 + $0x12c] sm:$0xff] }
 0x4b3   : > { %v5932_v15 = vld [vmem:[#allocation5 + $0x6a] sm:$0xff]  ;;  %v26376_v28 = vpack.c.bf16 %v13024_v23, %v13023_v4  ;;  %v5935_v23 = vld [vmem:[#allocation5 + $0x92] sm:$0xff] }
 0x4b5   : > { %21510 = vmatmul.mubr.msk.bf16.gmra.mrb[36].mxu0 %vm575_vm1, %v26310_v11 }
 0x4b6   : > { %21513 = vmatprep.mubr.msk.bf16.mxu0 %vm575_vm1, %v26312_v5 }
 0x4b7   : > { %20676 = vmatmul.mubr.msk.bf16.gmra.mrb[148].mxu1 %vm631_vm4, %v26316_v10 }
 0x4b8   : > { %20679 = vmatprep.mubr.msk.bf16.mxu1 %vm631_vm4, %v26320_v60 }
 0x4bd   : > { %21514 = vmatmul.mubr.msk.bf16.gmra.mrb[40].mxu0 %vm575_vm1, %v26326_v19 }
 0x4be   : > { %21517 = vmatprep.mubr.msk.bf16.mxu0 %vm575_vm1, %v26328_v35 }
 0x4bf   : > { %20680 = vmatmul.mubr.msk.bf16.gmra.mrb[152].mxu1 %vm631_vm4, %v26332_v31 }
 0x4c0   : > { %20683 = vmatprep.mubr.msk.bf16.mxu1 %vm631_vm4, %v26336_v52 }
 0x4c5   : > { %21518 = vmatmul.mubr.msk.bf16.gmra.mrb[44].mxu0 %vm575_vm1, %v26342_v30 }
 0x4c6   : > { %21521 = vmatprep.mubr.msk.bf16.mxu0 %vm575_vm1, %v26344_v55 }
 0x4c7   : > { %20684 = vmatmul.mubr.msk.bf16.gmra.mrb[156].mxu1 %vm631_vm4, %v26348_v42 }
 0x4c8   : > { %20689 = vmatprep.mubr.msk.bf16.mxu1 %vm631_vm4, %v5957_v8  ;;  %v5959_v8 = vpack.c.bf16 %v5930_v32, %v5929_v22  ;;  %v26374_v22 = vpack.c.bf16 %v13022_v62, %v13021_v59  ;;  %v5933_v32 = vld [vmem:[#allocation5 + $0x7a] sm:$0xff]  ;;  %v26384_v59 = vpop.f32.mrb[28].mxu0 }
 0x4c9   : > { %v13027_v62 = vld [vmem:[#allocation4 + $0x154] sm:$0xff]  ;;  %v26386_v4 = vpop.f32.mrb[29].mxu0 }
 0x4ca   : > { %28165 = vst [vmem:[#allocation21_spill] sm:$0xff] %v26374_v22 }
 0x4cd   : > { %21522 = vmatmul.mubr.msk.bf16.gmra.mrb[48].mxu0 %vm575_vm1, %v26355_v40 }
 0x4ce   : > { %21525 = vmatprep.mubr.msk.bf16.mxu0 %vm575_vm1, %v26357_v26  ;;  %v5936_v26 = vld [vmem:[#allocation5 + $0x9a] sm:$0xff] }
 0x4cf   : > { %20690 = vmatmul.mubr.msk.bf16.vlgmr.msra.gmra.mrb[128].mxu1 %vm631_vm4, %v5958_v18  ;;  %v5960_v18 = vpack.c.bf16 %v5932_v15, %v5931_v51  ;;  %v26390_v51 = vpack.c.bf16 %v13028_v12, %v13027_v62  ;;  %v26394_v15 = vpop.f32.mrb[30].mxu0  ;;  %v5939_v12 = vld [vmem:[#allocation5 + $0xc2] sm:$0xff]  ;;  %v26417_v62 = vld [vmem:[%s28082_s14 + $0x14] sm:$0xf] }
 0x4d0   : > { %20693 = vmatprep.mubr.msk.bf16.mxu1 %vm631_vm4, %v5959_v8  ;;  %20722 = vmatpush3.bf16.msra.mxu1 %v6319_v45  ;;  %v5961_v45 = vpack.c.bf16 %v5934_v21, %v5933_v32  ;;  %v13025_v8 = vld [vmem:[#allocation4 + $0x13c] sm:$0xff]  ;;  %v5962_v21 = vpack.c.bf16 %v5936_v26, %v5935_v23  ;;  %v26399_v32 = vpop.f32.mrb[31].mxu0  ;;  %v6230_v23 = vld [vmem:[#allocation5 + $0xa8] sm:$0xff] }
 0x4d1   : > { %23731 = vmatprep.subr.msk.bf16.mxu1 %vm1980_vm3, %v26368_v44 }
 0x4d5   : > { %21526 = vmatmul.mubr.msk.bf16.gmra.mrb[52].mxu0 %vm575_vm1, %v26374_v22  ;;  %v26388_v22 = vpack.c.bf16 %v13026_v24, %v13025_v8  ;;  %v13029_v24 = vld [vmem:[#allocation4 + $0x16c] sm:$0xff] }
 0x4d6   : > { %21529 = vmatprep.mubr.msk.bf16.mxu0 %vm575_vm1, %v26376_v28 }
 0x4d7   : > { %20694 = vmatmul.mubr.msk.bf16.gmra.mrb[132].mxu1 %vm631_vm4, %v5960_v18  ;;  %v13030_v18 = vld [vmem:[#allocation4 + $0x174] sm:$0xff] }
 0x4d8   : > { %20697 = vmatprep.mubr.msk.bf16.mxu1 %vm631_vm4, %v5961_v45  ;;  %v5940_v45 = vld [vmem:[#allocation5 + $0xca] sm:$0xff]  ;;  %v26403_v8 = vpack.c.bf16 %v13030_v18, %v13029_v24  ;;  %v13321_v24 = vld [vmem:[#allocation4 + $0x180] sm:$0xff] }
 0x4d9   : > { %v5964_v26 = vpack.c.bf16 %v5940_v45, %v5939_v12  ;;  %v6232_v18 = vld [vmem:[#allocation5 + $0xc0] sm:$0xff]  ;;  %v6233_v12 = vld [vmem:[#allocation5 + $0xc8] sm:$0xff] }
 0x4dd   : > { %21530 = vmatmul.mubr.msk.bf16.gmra.mrb[56].mxu0 %vm575_vm1, %v26388_v22 }
 0x4de   : > { %21533 = vmatprep.mubr.msk.bf16.mxu0 %vm575_vm1, %v26390_v51 }
 0x4df   : > { %20698 = vmatmul.mubr.msk.bf16.gmra.mrb[136].mxu1 %vm631_vm4, %v5962_v21  ;;  %v6231_v21 = vld [vmem:[#allocation5 + $0xb0] sm:$0xff] }
 0x4e0   : > { %20701 = vmatprep.mubr.msk.bf16.mxu1 %vm631_vm4, %v26020_v16  ;;  %v13686_v16 = vsel %vm10040_vm6, %v26295_v36, 0  ;;  %v6229_v36 = vld [vmem:[#allocation5 + $0x98] sm:$0xff] }
 0x4e5   : > { %21534 = vmatmul.mubr.msk.bf16.gmra.mrb[60].mxu0 %vm575_vm1, %v26403_v8 }
 0x4e6   : > { %21539 = vmatprep.mubr.msk.bf16.mxu0 %vm575_vm1, %v26165_v17  ;;  %v6221_v17 = vld [vmem:[#allocation5 + $0x38] sm:$0xff] }
 0x4e7   : > { %20702 = vmatmul.mubr.msk.bf16.gmra.mrb[140].mxu1 %vm631_vm4, %v5964_v26  ;;  %v13324_v26 = vld [vmem:[#allocation4 + $0x1a0] sm:$0xff] }
 0x4e8   : > { %20705 = vmatprep.mubr.msk.bf16.mxu1 %vm631_vm4, %v26040_v47  ;;  %v5955_v47 = vld [vmem:[#allocation5 + $0x182] sm:$0xff] }
 0x4ed   : > { %21540 = vmatmul.mubr.msk.bf16.vlgmr.msra.gmra.mrb[32].mxu0 %vm575_vm1, %v26181_v29  ;;  %v6223_v29 = vld [vmem:[#allocation5 + $0x50] sm:$0xff] }
 0x4ee   : > { %21543 = vmatprep.mubr.msk.bf16.mxu0 %vm575_vm1, %v26183_v50  ;;  %21572 = vmatpush3.bf16.msra.mxu0 %v13686_v16  ;;  %v6224_v50 = vld [vmem:[#allocation5 + $0x60] sm:$0xff] }
 0x4ef   : > { %20706 = vmatmul.mubr.msk.bf16.gmra.mrb[144].mxu1 %vm631_vm4, %v26043_v0  ;;  %23756 = vmatprep.subr.msk.bf16.mxu0 %vm10040_vm6, %v26417_v62  ;;  %v5956_v0 = vld [vmem:[#allocation5 + $0x18a] sm:$0xff]  ;;  %v13588_v16 = vld [vmem:[#allocation4 + $0x3a] sm:$0xff] }
 0x4f0   : > { %20709 = vmatprep.mubr.msk.bf16.mxu1 %vm631_vm4, %v26058_v57  ;;  %v6220_v57 = vld [vmem:[#allocation5 + $0x30] sm:$0xff] }
 0x4f5   : > { %21544 = vmatmul.mubr.msk.bf16.gmra.mrb[36].mxu0 %vm575_vm1, %v26193_v1 }
 0x4f6   : > { %21547 = vmatprep.mubr.msk.bf16.mxu0 %vm575_vm1, %v26195_v58  ;;  %v6613_v58 = vsel %vm1980_vm3, %v26368_v44, 0 }
 0x4f7   : > { %20710 = vmatmul.mubr.msk.bf16.gmra.mrb[148].mxu1 %vm631_vm4, %v26061_v61  ;;  %v5972_v61 = vpack.c.bf16 %v5956_v0, %v5955_v47  ;;  %v13323_v47 = vld [vmem:[#allocation4 + $0x198] sm:$0xff] }
 0x4f8   : > { %20713 = vmatprep.mubr.msk.bf16.mxu1 %vm631_vm4, %v26076_v9  ;;  %v6252_v9 = vpack.c.bf16 %v6221_v17, %v6220_v57  ;;  %v6234_v0 = vld [vmem:[#allocation5 + $0xd8] sm:$0xff]  ;;  %v6235_v57 = vld [vmem:[#allocation5 + $0xe0] sm:$0xff]  ;;  %v26473_v17 = vpack.c.bf16 %v13324_v26, %v13323_v47  ;;  %v6244_v47 = vld [vmem:[#allocation5 + $0x150] sm:$0xff] }
 0x4fd   : > { %21548 = vmatmul.mubr.msk.bf16.gmra.mrb[40].mxu0 %vm575_vm1, %v26205_v37 }
 0x4fe   : > { %21551 = vmatprep.mubr.msk.bf16.mxu0 %vm575_vm1, %v26207_v13  ;;  %v6226_v13 = vld [vmem:[#allocation5 + $0x78] sm:$0xff] }
 0x4ff   : > { %20714 = vmatmul.mubr.msk.bf16.gmra.mrb[152].mxu1 %vm631_vm4, %v26079_v14  ;;  %v6222_v14 = vld [vmem:[#allocation5 + $0x48] sm:$0xff] }
 0x500   : > { %20717 = vmatprep.mubr.msk.bf16.mxu1 %vm631_vm4, %v26094_v54  ;;  %v6225_v54 = vld [vmem:[#allocation5 + $0x68] sm:$0xff]  ;;  %v6253_v1 = vpack.c.bf16 %v6223_v29, %v6222_v14  ;;  %v6237_v14 = vld [vmem:[#allocation5 + $0xf8] sm:$0xff]  ;;  %v6259_v29 = vpack.c.bf16 %v6235_v57, %v6234_v0 }
 0x501   : > { %v6254_v37 = vpack.c.bf16 %v6225_v54, %v6224_v50  ;;  %v13590_v54 = vld [vmem:[#allocation4 + $0x52] sm:$0xff] }
 0x502   : > { %v6245_v0 = vld [vmem:[#allocation5 + $0x158] sm:$0xff] }
 0x505   : > { %21552 = vmatmul.mubr.msk.bf16.gmra.mrb[44].mxu0 %vm575_vm1, %v26218_v27  ;;  %v6227_v27 = vld [vmem:[#allocation5 + $0x80] sm:$0xff] }
 0x506   : > { %21555 = vmatprep.mubr.msk.bf16.mxu0 %vm575_vm1, %v26220_v41  ;;  %v6228_v41 = vld [vmem:[#allocation5 + $0x90] sm:$0xff] }
 0x507   : > { %20718 = vmatmul.mubr.msk.bf16.gmra.mrb[156].mxu1 %vm631_vm4, %v5972_v61  ;;  %v6256_v44 = vpack.c.bf16 %v6229_v36, %v6228_v41  ;;  %v13587_v61 = vld [vmem:[#allocation4 + $0x32] sm:$0xff]  ;;  %v13591_v41 = vld [vmem:[#allocation4 + $0x62] sm:$0xff] }
 0x508   : > { %20723 = vmatprep.mubr.msk.bf16.mxu1 %vm631_vm4, %v6252_v9  ;;  %v6236_v9 = vld [vmem:[#allocation5 + $0xf0] sm:$0xff]  ;;  %v6240_v36 = vld [vmem:[#allocation5 + $0x120] sm:$0xff] }
 0x509   : > { %v6260_v50 = vpack.c.bf16 %v6237_v14, %v6236_v9  ;;  %v6264_v9 = vpack.c.bf16 %v6245_v0, %v6244_v47  ;;  %v13598_v14 = vld [vmem:[#allocation4 + $0xb2] sm:$0xff]  ;;  %v13612_v0 = vld [vmem:[#allocation4 + $0x15a] sm:$0xff] }
 0x50d   : > { %21556 = vmatmul.mubr.msk.bf16.gmra.mrb[48].mxu0 %vm575_vm1, %v26243_v43  ;;  %v6255_v43 = vpack.c.bf16 %v6227_v27, %v6226_v13  ;;  %v6239_v13 = vld [vmem:[#allocation5 + $0x110] sm:$0xff] }
 0x50e   : > { %21559 = vmatprep.mubr.msk.bf16.mxu0 %vm575_vm1, %v26245_v56  ;;  %v13322_v56 = vld [vmem:[#allocation4 + $0x188] sm:$0xff] }
 0x50f   : > { %20724 = vmatmul.mubr.msk.bf16.vlgmr.msra.gmra.mrb[128].mxu1 %vm631_vm4, %v6253_v1  ;;  %v26465_v45 = vpack.c.bf16 %v13322_v56, %v13321_v24  ;;  %v13592_v1 = vld [vmem:[#allocation4 + $0x6a] sm:$0xff] }
 0x510   : > { %20727 = vmatprep.mubr.msk.bf16.mxu1 %vm631_vm4, %v6254_v37  ;;  %20756 = vmatpush3.bf16.msra.mxu1 %v6613_v58  ;;  %v13589_v58 = vld [vmem:[#allocation4 + $0x4a] sm:$0xff]  ;;  %v26482_v56 = vpack.c.bf16 %v13592_v1, %v13591_v41  ;;  %v6250_v41 = vld [vmem:[#allocation5 + $0x198] sm:$0xff] }
 0x511   : > { %v6238_v37 = vld [vmem:[#allocation5 + $0x108] sm:$0xff]  ;;  %v13620_v27 = vpack.c.bf16 %v13590_v54, %v13589_v58  ;;  %v6247_v54 = vld [vmem:[#allocation5 + $0x170] sm:$0xff] }
 0x512   : > { %v13599_v58 = vld [vmem:[#allocation4 + $0xc2] sm:$0xff] }
 0x515   : > { %21560 = vmatmul.mubr.msk.bf16.gmra.mrb[52].mxu0 %vm575_vm1, %v26259_v46  ;;  %v6257_v46 = vpack.c.bf16 %v6231_v21, %v6230_v23  ;;  %v26487_v23 = vld [vmem:[%s28082_s14 + $0x18] sm:$0xf]  ;;  %v6261_v21 = vpack.c.bf16 %v6239_v13, %v6238_v37 }
 0x516   : > { %21563 = vmatprep.mubr.msk.bf16.mxu0 %vm575_vm1, %v26261_v25  ;;  %v6258_v25 = vpack.c.bf16 %v6233_v12, %v6232_v18  ;;  %v13596_v18 = vld [vmem:[#allocation4 + $0x9a] sm:$0xff] }
 0x517   : > { %20728 = vmatmul.mubr.msk.bf16.gmra.mrb[132].mxu1 %vm631_vm4, %v6255_v43  ;;  %v6241_v43 = vld [vmem:[#allocation5 + $0x128] sm:$0xff]  ;;  %v13593_v12 = vld [vmem:[#allocation4 + $0x7a] sm:$0xff] }
 0x518   : > { %20731 = vmatprep.mubr.msk.bf16.mxu1 %vm631_vm4, %v6256_v44  ;;  %v13980_v44 = vsel %vm10040_vm6, %v26417_v62, 0  ;;  %v6262_v24 = vpack.c.bf16 %v6241_v43, %v6240_v36  ;;  %v13594_v62 = vld [vmem:[#allocation4 + $0x82] sm:$0xff]  ;;  %v13604_v43 = vld [vmem:[#allocation4 + $0xfa] sm:$0xff] }
 0x519   : > { %v26496_v26 = vpack.c.bf16 %v13594_v62, %v13593_v12  ;;  %v6251_v36 = vld [vmem:[#allocation5 + $0x1a0] sm:$0xff]  ;;  %v13608_v12 = vld [vmem:[#allocation4 + $0x12a] sm:$0xff] }
 0x51a   : > { %v6267_v62 = vpack.c.bf16 %v6251_v36, %v6250_v41 }
 0x51d   : > { %21564 = vmatmul.mubr.msk.bf16.gmra.mrb[56].mxu0 %vm575_vm1, %v26275_v38  ;;  %v13619_v38 = vpack.c.bf16 %v13588_v16, %v13587_v61  ;;  %v13595_v16 = vld [vmem:[#allocation4 + $0x92] sm:$0xff] }
 0x51e   : > { %21567 = vmatprep.mubr.msk.bf16.mxu0 %vm575_vm1, %v26465_v45  ;;  %v26498_v57 = vpack.c.bf16 %v13596_v18, %v13595_v16  ;;  %v13607_v16 = vld [vmem:[#allocation4 + $0x122] sm:$0xff] }
 0x51f   : > { %20732 = vmatmul.mubr.msk.bf16.gmra.mrb[136].mxu1 %vm631_vm4, %v6257_v46  ;;  %v6242_v46 = vld [vmem:[#allocation5 + $0x138] sm:$0xff]  ;;  %v26530_v47 = vpack.c.bf16 %v13608_v12, %v13607_v16  ;;  %v14184_v12 = vld [vmem:[#allocation4 + $0xc0] sm:$0xff] }
 0x520   : > { %20735 = vmatprep.mubr.msk.bf16.mxu1 %vm631_vm4, %v6258_v25  ;;  %v6243_v25 = vld [vmem:[#allocation5 + $0x140] sm:$0xff] }
 0x521   : > { %v6263_v61 = vpack.c.bf16 %v6243_v25, %v6242_v46  ;;  %v13605_v46 = vld [vmem:[#allocation4 + $0x10a] sm:$0xff]  ;;  %v14187_v16 = vld [vmem:[#allocation4 + $0xe0] sm:$0xff] }
 0x525   : > { %21568 = vmatmul.mubr.msk.bf16.gmra.mrb[60].mxu0 %vm575_vm1, %v26473_v17 }
 0x526   : > { %21573 = vmatprep.mubr.msk.bf16.mxu0 %vm575_vm1, %v13619_v38  ;;  %v13600_v38 = vld [vmem:[#allocation4 + $0xca] sm:$0xff] }
 0x527   : > { %20736 = vmatmul.mubr.msk.bf16.gmra.mrb[140].mxu1 %vm631_vm4, %v6259_v29  ;;  %v13597_v29 = vld [vmem:[#allocation4 + $0xaa] sm:$0xff]  ;;  %v26508_v37 = vpack.c.bf16 %v13600_v38, %v13599_v58 }
 0x528   : > { %20739 = vmatprep.mubr.msk.bf16.mxu1 %vm631_vm4, %v6260_v50  ;;  %v6246_v50 = vld [vmem:[#allocation5 + $0x168] sm:$0xff]  ;;  %v26506_v1 = vpack.c.bf16 %v13598_v14, %v13597_v29  ;;  %v13611_v14 = vld [vmem:[#allocation4 + $0x152] sm:$0xff] }
 0x529   : > { %v6265_v13 = vpack.c.bf16 %v6247_v54, %v6246_v50  ;;  %v26542_v38 = vpack.c.bf16 %v13612_v0, %v13611_v14  ;;  %v13613_v29 = vld [vmem:[#allocation4 + $0x16a] sm:$0xff]  ;;  %v13615_v54 = vld [vmem:[#allocation4 + $0x182] sm:$0xff]  ;;  %v14186_v0 = vld [vmem:[#allocation4 + $0xd8] sm:$0xff] }
 0x52a   : > { %v14188_v14 = vld [vmem:[#allocation4 + $0xf0] sm:$0xff] }
 0x52d   : > { %21574 = vmatmul.mubr.msk.bf16.vlgmr.msra.gmra.mrb[32].mxu0 %vm575_vm1, %v13620_v27  ;;  %v13602_v27 = vld [vmem:[#allocation4 + $0xe2] sm:$0xff] }
 0x52e   : > { %21577 = vmatprep.mubr.msk.bf16.mxu0 %vm575_vm1, %v26482_v56  ;;  %21606 = vmatpush3.bf16.msra.mxu0 %v13980_v44  ;;  %v13601_v44 = vld [vmem:[#allocation4 + $0xda] sm:$0xff] }
 0x52f   : > { %20740 = vmatmul.mubr.msk.bf16.gmra.mrb[144].mxu1 %vm631_vm4, %v6261_v21  ;;  %23757 = vmatprep.subr.msk.bf16.mxu0 %vm10040_vm6, %v26487_v23  ;;  %v26517_v21 = vpack.c.bf16 %v13602_v27, %v13601_v44  ;;  %v14180_v27 = vld [vmem:[#allocation4 + $0x90] sm:$0xff] }
 0x530   : > { %20743 = vmatprep.mubr.msk.bf16.mxu1 %vm631_vm4, %v6262_v24  ;;  %v13603_v24 = vld [vmem:[#allocation4 + $0xf2] sm:$0xff] }
 0x531   : > { %v26519_v18 = vpack.c.bf16 %v13604_v43, %v13603_v24  ;;  %v18918_v43 = vld [vmem:[%s28082_s14 + $0x20] sm:$0xf]  ;;  %v14183_v44 = vld [vmem:[#allocation4 + $0xb0] sm:$0xff]  ;;  %v14185_v24 = vld [vmem:[#allocation4 + $0xc8] sm:$0xff] }
 0x535   : > { %21578 = vmatmul.mubr.msk.bf16.gmra.mrb[36].mxu0 %vm575_vm1, %v26496_v26 }
 0x536   : > { %21581 = vmatprep.mubr.msk.bf16.mxu0 %vm575_vm1, %v26498_v57 }
 0x537   : > { %20744 = vmatmul.mubr.msk.bf16.gmra.mrb[148].mxu1 %vm631_vm4, %v6263_v61  ;;  %v13609_v61 = vld [vmem:[#allocation4 + $0x13a] sm:$0xff] }
 0x538   : > { %20747 = vmatprep.mubr.msk.bf16.mxu1 %vm631_vm4, %v6264_v9 }
 0x53d   : > { %21582 = vmatmul.mubr.msk.bf16.gmra.mrb[40].mxu0 %vm575_vm1, %v26506_v1 }
 0x53e   : > { %21585 = vmatprep.mubr.msk.bf16.mxu0 %vm575_vm1, %v26508_v37 }
 0x53f   : > { %20748 = vmatmul.mubr.msk.bf16.gmra.mrb[152].mxu1 %vm631_vm4, %v6265_v13 }
 0x540   : > { %20751 = vmatprep.mubr.msk.bf16.mxu1 %vm631_vm4, %v26211_v53  ;;  %v13606_v53 = vld [vmem:[#allocation4 + $0x112] sm:$0xff] }
 0x541   : > { %v26528_v25 = vpack.c.bf16 %v13606_v53, %v13605_v46  ;;  %v14212_v46 = vpack.c.bf16 %v14185_v24, %v14184_v12 }
 0x545   : > { %21586 = vmatmul.mubr.msk.bf16.gmra.mrb[44].mxu0 %vm575_vm1, %v26517_v21 }
 0x546   : > { %21589 = vmatprep.mubr.msk.bf16.mxu0 %vm575_vm1, %v26519_v18 }
 0x547   : > { %20752 = vmatmul.mubr.msk.bf16.gmra.mrb[156].mxu1 %vm631_vm4, %v6267_v62  ;;  %v14182_v62 = vld [vmem:[#allocation4 + $0xa8] sm:$0xff] }
 0x548   : > { %20757 = vmatprep.mubr.msk.bf16.mxu1 %vm631_vm4, %v26224_v3  ;;  %v13610_v3 = vld [vmem:[#allocation4 + $0x142] sm:$0xff]  ;;  %v14211_v53 = vpack.c.bf16 %v14183_v44, %v14182_v62 }
 0x549   : > { %v26540_v9 = vpack.c.bf16 %v13610_v3, %v13609_v61  ;;  %v14189_v3 = vld [vmem:[#allocation4 + $0xf8] sm:$0xff]  ;;  %v14213_v61 = vpack.c.bf16 %v14187_v16, %v14186_v0 }
 0x54d   : > { %21590 = vmatmul.mubr.msk.bf16.gmra.mrb[48].mxu0 %vm575_vm1, %v26528_v25 }
 0x54e   : > { %21593 = vmatprep.mubr.msk.bf16.mxu0 %vm575_vm1, %v26530_v47 }
 0x54f   : > { %20758 = vmatmul.mubr.msk.bf16.vlgmr.msra.gmra.mrb[128].mxu1 %vm631_vm4, %v26230_v63  ;;  %v13614_v63 = vld [vmem:[#allocation4 + $0x172] sm:$0xff] }
 0x550   : > { %20761 = vmatprep.mubr.msk.bf16.mxu1 %vm631_vm4, %v26249_v49  ;;  %v13616_v49 = vld [vmem:[#allocation4 + $0x18a] sm:$0xff]  ;;  %v26552_v50 = vpack.c.bf16 %v13614_v63, %v13613_v29  ;;  %v14214_v63 = vpack.c.bf16 %v14189_v3, %v14188_v14 }
 0x551   : > { %v26554_v58 = vpack.c.bf16 %v13616_v49, %v13615_v54  ;;  %v26757_v54 = vld [vmem:[%s28079_s11] sm:$0x7]  ;;  %v14767_v14 = vld [vmem:[#allocation4 + $0x84] sm:$0xff] }
 0x555   : > { %21594 = vmatmul.mubr.msk.bf16.gmra.mrb[52].mxu0 %vm575_vm1, %v26540_v9 }
 0x556   : > { %21597 = vmatprep.mubr.msk.bf16.mxu0 %vm575_vm1, %v26542_v38 }
 0x557   : > { %20762 = vmatmul.mubr.msk.bf16.gmra.mrb[132].mxu1 %vm631_vm4, %v26253_v48  ;;  %v13618_v48 = vld [vmem:[#allocation4 + $0x1a2] sm:$0xff] }
 0x558   : > { %20765 = vmatprep.mubr.msk.bf16.mxu1 %vm631_vm4, %v26265_v20  ;;  %v13617_v20 = vld [vmem:[#allocation4 + $0x19a] sm:$0xff] }
 0x559   : > { %v26564_v13 = vpack.c.bf16 %v13618_v48, %v13617_v20  ;;  %v14191_v20 = vld [vmem:[#allocation4 + $0x110] sm:$0xff] }
 0x55d   : > { %21598 = vmatmul.mubr.msk.bf16.gmra.mrb[56].mxu0 %vm575_vm1, %v26552_v50 }
 0x55e   : > { %21601 = vmatprep.mubr.msk.bf16.mxu0 %vm575_vm1, %v26554_v58 }
 0x55f   : > { %20766 = vmatmul.mubr.msk.bf16.gmra.mrb[136].mxu1 %vm631_vm4, %v26269_v2  ;;  %v14275_v2 = vsel %vm10040_vm6, %v26487_v23, 0 }
 0x560   : > { %20769 = vmatprep.mubr.msk.bf16.mxu1 %vm631_vm4, %v26279_v39  ;;  %v26579_v39 = vld [vmem:[%s28082_s14 + $0x1c] sm:$0xf] }
 0x561   : > { %v14569_v41 = vsel %vm10040_vm6, %v26579_v39, 0 }
 0x565   : > { %21602 = vmatmul.mubr.msk.bf16.gmra.mrb[60].mxu0 %vm575_vm1, %v26564_v13 }
 0x566   : > { %21607 = vmatprep.mubr.msk.bf16.mxu0 %vm575_vm1, %v26290_v33 }
 0x567   : > { %20770 = vmatmul.mubr.msk.bf16.gmra.mrb[140].mxu1 %vm631_vm4, %v26281_v7  ;;  %v18478_v7 = vld [vmem:[%s28079_s11 + $0x4] sm:$0x7] }
 0x568   : > { %20773 = vmatprep.mubr.msk.bf16.mxu1 %vm631_vm4, %v26298_v34  ;;  %23733 = vmatprep.subr.msk.bf16.mxu1 %vm7353_vm8, %v18478_v7  ;;  %v7355_v33 = vsel %vm7353_vm8, %v18478_v7, 0 }
 0x569   : > { %20824 = vmatpush3.bf16.msra.mxu1 %v7355_v33  ;;  %v14192_v33 = vld [vmem:[#allocation4 + $0x120] sm:$0xff] }
 0x56a   : > { %23734 = vmatprep.subr.msk.bf16.mxu1 %vm7353_vm8, %v26757_v54 }
 0x56d   : > { %21608 = vmatmul.mubr.msk.bf16.vlgmr.msra.gmra.mrb[32].mxu0 %vm575_vm1, %v26310_v11  ;;  %v13910_v11 = vld [vmem:[#allocation4 + $0x18c] sm:$0xff] }
 0x56e   : > { %21611 = vmatprep.mubr.msk.bf16.mxu0 %vm575_vm1, %v26312_v5  ;;  %21640 = vmatpush3.bf16.msra.mxu0 %v14275_v2  ;;  %v28168_v5 = vmov 0.0   ;;  %v14193_v2 = vld [vmem:[#allocation4 + $0x128] sm:$0xff] }
 0x56f   : > { %20774 = vmatmul.mubr.msk.bf16.gmra.mrb[144].mxu1 %vm631_vm4, %v26302_v6  ;;  %23758 = vmatprep.subr.msk.bf16.mxu0 %vm10040_vm6, %v26579_v39  ;;  %v28166_v6 = vld [vmem:[#allocation19_spill] sm:$0xff]  ;;  %810 = vst.msk [vmem:[#allocation6 + $0x30] sm:$0xff] %vm802_vm9, %v28168_v5  ;;  %811 = vst.msk [vmem:[#allocation6 + $0x38] sm:$0xff] %vm802_vm9, %v28168_v5 }
 0x570   : > { %20777 = vmatprep.mubr.msk.bf16.mxu1 %vm631_vm4, %v26316_v10  ;;  %803 = vst.msk [vmem:[#allocation6] sm:$0xff] %vm802_vm9, %v28168_v5  ;;  %804 = vst.msk [vmem:[#allocation6 + $0x8] sm:$0xff] %vm802_vm9, %v28168_v5  ;;  %v13912_v10 = vld [vmem:[#allocation4 + $0x1a4] sm:$0xff] }
 0x571   : > { %807 = vst.msk [vmem:[#allocation6 + $0x18] sm:$0xff] %vm802_vm9, %v28168_v5  ;;  %808 = vst.msk [vmem:[#allocation6 + $0x20] sm:$0xff] %vm802_vm9, %v28168_v5  ;;  %v14190_v39 = vld [vmem:[#allocation4 + $0x108] sm:$0xff] }
 0x572   : > { %813 = vst.msk [vmem:[#allocation6 + $0x48] sm:$0xff] %vm802_vm9, %v28168_v5  ;;  %814 = vst.msk [vmem:[#allocation6 + $0x50] sm:$0xff] %vm802_vm9, %v28168_v5  ;;  %v14215_v7 = vpack.c.bf16 %v14191_v20, %v14190_v39 }
 0x573   : > { %816 = vst.msk [vmem:[#allocation6 + $0x60] sm:$0xff] %vm802_vm9, %v28168_v5  ;;  %817 = vst.msk [vmem:[#allocation6 + $0x68] sm:$0xff] %vm802_vm9, %v28168_v5 }
 0x574   : > { %819 = vst.msk [vmem:[#allocation6 + $0x78] sm:$0xff] %vm802_vm9, %v28168_v5  ;;  %820 = vst.msk [vmem:[#allocation6 + $0x80] sm:$0xff] %vm802_vm9, %v28168_v5 }
 0x575   : > { %21612 = vmatmul.mubr.msk.bf16.gmra.mrb[36].mxu0 %vm575_vm1, %v26326_v19  ;;  %v6545_v19 = vld [vmem:[#allocation5 + $0x1a1] sm:$0xff]  ;;  %822 = vst.msk [vmem:[#allocation6 + $0x90] sm:$0xff] %vm802_vm9, %v28168_v5  ;;  %823 = vst.msk [vmem:[#allocation6 + $0x98] sm:$0xff] %vm802_vm9, %v28168_v5 }
 0x576   : > { %21615 = vmatprep.mubr.msk.bf16.mxu0 %vm575_vm1, %v26328_v35  ;;  %v6544_v35 = vld [vmem:[#allocation5 + $0x199] sm:$0xff]  ;;  %825 = vst.msk [vmem:[#allocation6 + $0xa8] sm:$0xff] %vm802_vm9, %v28168_v5  ;;  %826 = vst.msk [vmem:[#allocation6 + $0xb0] sm:$0xff] %vm802_vm9, %v28168_v5 }
 0x577   : > { %20778 = vmatmul.mubr.msk.bf16.gmra.mrb[148].mxu1 %vm631_vm4, %v26320_v60  ;;  %v6561_v34 = vpack.c.bf16 %v6545_v19, %v6544_v35  ;;  %828 = vst.msk [vmem:[#allocation6 + $0xc0] sm:$0xff] %vm802_vm9, %v28168_v5  ;;  %829 = vst.msk [vmem:[#allocation6 + $0xc8] sm:$0xff] %vm802_vm9, %v28168_v5  ;;  %v14177_v60 = vld [vmem:[#allocation4 + $0x68] sm:$0xff]  ;;  %v7255_v49 = vld [vmem:[#allocation6 + $0x1] sm:$0xff]  ;;  %v14216_v35 = vpack.c.bf16 %v14193_v2, %v14192_v33 }
 0x578   : > { %20781 = vmatprep.mubr.msk.bf16.mxu1 %vm631_vm4, %v26332_v31  ;;  %831 = vst.msk [vmem:[#allocation6 + $0xd8] sm:$0xff] %vm802_vm9, %v28168_v5  ;;  %832 = vst.msk [vmem:[#allocation6 + $0xe0] sm:$0xff] %vm802_vm9, %v28168_v5  ;;  %v14195_v19 = vld [vmem:[#allocation4 + $0x140] sm:$0xff]  ;;  %v28173_v2 = vld [vmem:[#allocation23_spill] sm:$0xff] }
 0x579   : > { %834 = vst.msk [vmem:[#allocation6 + $0xf0] sm:$0xff] %vm802_vm9, %v28168_v5  ;;  %835 = vst.msk [vmem:[#allocation6 + $0xf8] sm:$0xff] %vm802_vm9, %v28168_v5 }
 0x57a   : > { %837 = vst.msk [vmem:[#allocation6 + $0x108] sm:$0xff] %vm802_vm9, %v28168_v5  ;;  %838 = vst.msk [vmem:[#allocation6 + $0x110] sm:$0xff] %vm802_vm9, %v28168_v5 }
 0x57b   : > { %840 = vst.msk [vmem:[#allocation6 + $0x120] sm:$0xff] %vm802_vm9, %v28168_v5  ;;  %841 = vst.msk [vmem:[#allocation6 + $0x128] sm:$0xff] %vm802_vm9, %v28168_v5 }
 0x57c   : > { %843 = vst.msk [vmem:[#allocation6 + $0x138] sm:$0xff] %vm802_vm9, %v28168_v5  ;;  %844 = vst.msk [vmem:[#allocation6 + $0x140] sm:$0xff] %vm802_vm9, %v28168_v5 }
 0x57d   : > { %21616 = vmatmul.mubr.msk.bf16.gmra.mrb[40].mxu0 %vm575_vm1, %v26342_v30  ;;  %v28167_v30 = vld [vmem:[#allocation21_spill] sm:$0xff]  ;;  %846 = vst.msk [vmem:[#allocation6 + $0x150] sm:$0xff] %vm802_vm9, %v28168_v5  ;;  %847 = vst.msk [vmem:[#allocation6 + $0x158] sm:$0xff] %vm802_vm9, %v28168_v5 }
 0x57e   : > { %21619 = vmatprep.mubr.msk.bf16.mxu0 %vm575_vm1, %v26344_v55  ;;  %v13909_v55 = vld [vmem:[#allocation4 + $0x184] sm:$0xff]  ;;  %849 = vst.msk [vmem:[#allocation6 + $0x168] sm:$0xff] %vm802_vm9, %v28168_v5  ;;  %850 = vst.msk [vmem:[#allocation6 + $0x170] sm:$0xff] %vm802_vm9, %v28168_v5 }
 0x57f   : > { %20782 = vmatmul.mubr.msk.bf16.gmra.mrb[152].mxu1 %vm631_vm4, %v26336_v52  ;;  %852 = vst.msk [vmem:[#allocation6 + $0x180] sm:$0xff] %vm802_vm9, %v28168_v5  ;;  %853 = vst.msk [vmem:[#allocation6 + $0x188] sm:$0xff] %vm802_vm9, %v28168_v5  ;;  %v14176_v52 = vld [vmem:[#allocation4 + $0x60] sm:$0xff] }
 0x580   : > { %20785 = vmatprep.mubr.msk.bf16.mxu1 %vm631_vm4, %v26348_v42  ;;  %855 = vst.msk [vmem:[#allocation6 + $0x198] sm:$0xff] %vm802_vm9, %v28168_v5  ;;  %856 = vst.msk [vmem:[#allocation6 + $0x1a0] sm:$0xff] %vm802_vm9, %v28168_v5  ;;  %v14208_v42 = vpack.c.bf16 %v14177_v60, %v14176_v52  ;;  %v14204_v52 = vld [vmem:[#allocation4 + $0x1b0] sm:$0xff] }
 0x581   : > { %812 = vst.msk [vmem:[#allocation6 + $0x40] sm:$0x3] %vm805_vm10, %v28168_v5  ;;  %806 = vst.msk [vmem:[#allocation6 + $0x10] sm:$0x3] %vm805_vm10, %v28168_v5 }
 0x582   : > { %809 = vst.msk [vmem:[#allocation6 + $0x28] sm:$0x3] %vm805_vm10, %v28168_v5  ;;  %815 = vst.msk [vmem:[#allocation6 + $0x58] sm:$0x3] %vm805_vm10, %v28168_v5 }
 0x583   : > { %818 = vst.msk [vmem:[#allocation6 + $0x70] sm:$0x3] %vm805_vm10, %v28168_v5  ;;  %821 = vst.msk [vmem:[#allocation6 + $0x88] sm:$0x3] %vm805_vm10, %v28168_v5 }
 0x584   : > { %824 = vst.msk [vmem:[#allocation6 + $0xa0] sm:$0x3] %vm805_vm10, %v28168_v5  ;;  %827 = vst.msk [vmem:[#allocation6 + $0xb8] sm:$0x3] %vm805_vm10, %v28168_v5 }
 0x585   : > { %21620 = vmatmul.mubr.msk.bf16.gmra.mrb[44].mxu0 %vm575_vm1, %v26355_v40  ;;  %v26625_v40 = vpack.c.bf16 %v13910_v11, %v13909_v55  ;;  %830 = vst.msk [vmem:[#allocation6 + $0xd0] sm:$0x3] %vm805_vm10, %v28168_v5  ;;  %833 = vst.msk [vmem:[#allocation6 + $0xe8] sm:$0x3] %vm805_vm10, %v28168_v5  ;;  %v14196_v55 = vld [vmem:[#allocation4 + $0x150] sm:$0xff] }
 0x586   : > { %21623 = vmatprep.mubr.msk.bf16.mxu0 %vm575_vm1, %v28166_v6  ;;  %836 = vst.msk [vmem:[#allocation6 + $0x100] sm:$0x3] %vm805_vm10, %v28168_v5  ;;  %839 = vst.msk [vmem:[#allocation6 + $0x118] sm:$0x3] %vm805_vm10, %v28168_v5  ;;  %v14194_v6 = vld [vmem:[#allocation4 + $0x138] sm:$0xff] }
 0x587   : > { %20786 = vmatmul.mubr.msk.bf16.gmra.mrb[156].mxu1 %vm631_vm4, %v6561_v34  ;;  %842 = vst.msk [vmem:[#allocation6 + $0x130] sm:$0x3] %vm805_vm10, %v28168_v5  ;;  %845 = vst.msk [vmem:[#allocation6 + $0x148] sm:$0x3] %vm805_vm10, %v28168_v5  ;;  %v14197_v34 = vld [vmem:[#allocation4 + $0x158] sm:$0xff] }
 0x588   : > { %848 = vst.msk [vmem:[#allocation6 + $0x160] sm:$0x3] %vm805_vm10, %v28168_v5  ;;  %851 = vst.msk [vmem:[#allocation6 + $0x178] sm:$0x3] %vm805_vm10, %v28168_v5  ;;  %v7256_v29 = vld [vmem:[#allocation6 + $0x9] sm:$0xff]  ;;  %v14218_v11 = vpack.c.bf16 %v14197_v34, %v14196_v55 }
 0x589   : > { %854 = vst.msk [vmem:[#allocation6 + $0x190] sm:$0x3] %vm805_vm10, %v28168_v5  ;;  %857 = vst.msk [vmem:[#allocation6 + $0x1a8] sm:$0x3] %vm805_vm10, %v28168_v5  ;;  %v7287_v48 = vpack.c.bf16 %v7256_v29, %v7255_v49  ;;  %v14768_v49 = vld [vmem:[#allocation4 + $0x94] sm:$0xff]  ;;  %v14769_v29 = vld [vmem:[#allocation4 + $0x9c] sm:$0xff] }
 0x58a   : > { %v28175_v55 = vld [vmem:[#allocation25_spill] sm:$0xff]  ;;  %873 = vst.msk [vmem:[#allocation7 + $0x70] sm:$0x3f] %vm860_vm11, %v28168_v5  ;;  %861 = vst.msk [vmem:[#allocation7 + $0x10] sm:$0x3f] %vm860_vm11, %v28168_v5 }
 0x58b   : > { %20825 = vmatprep.mubr.msk.bf16.mxu1 %vm802_vm9, %v7287_v48  ;;  %864 = vst.msk [vmem:[#allocation7 + $0x28] sm:$0x3f] %vm860_vm11, %v28168_v5  ;;  %867 = vst.msk [vmem:[#allocation7 + $0x40] sm:$0x3f] %vm860_vm11, %v28168_v5 }
 0x58c   : > { %870 = vst.msk [vmem:[#allocation7 + $0x58] sm:$0x3f] %vm860_vm11, %v28168_v5  ;;  %876 = vst.msk [vmem:[#allocation7 + $0x88] sm:$0x3f] %vm860_vm11, %v28168_v5 }
 0x58d   : > { %21624 = vmatmul.mubr.msk.bf16.gmra.mrb[48].mxu0 %vm575_vm1, %v28167_v30  ;;  %v14217_v30 = vpack.c.bf16 %v14195_v19, %v14194_v6  ;;  %v14798_v6 = vpack.c.bf16 %v14769_v29, %v14768_v49  ;;  %v14774_v29 = vld [vmem:[#allocation4 + $0xdc] sm:$0xff]  ;;  %879 = vst.msk [vmem:[#allocation7 + $0xa0] sm:$0x3f] %vm860_vm11, %v28168_v5  ;;  %882 = vst.msk [vmem:[#allocation7 + $0xb8] sm:$0x3f] %vm860_vm11, %v28168_v5 }
 0x58e   : > { %21627 = vmatprep.mubr.msk.bf16.mxu0 %vm575_vm1, %v26376_v28  ;;  %v13911_v28 = vld [vmem:[#allocation4 + $0x19c] sm:$0xff]  ;;  %885 = vst.msk [vmem:[#allocation7 + $0xd0] sm:$0x3f] %vm860_vm11, %v28168_v5  ;;  %888 = vst.msk [vmem:[#allocation7 + $0xe8] sm:$0x3f] %vm860_vm11, %v28168_v5 }
 0x58f   : > { %v26703_v31 = vpack.c.bf16 %v13912_v10, %v13911_v28  ;;  %v14199_v28 = vld [vmem:[#allocation4 + $0x170] sm:$0xff]  ;;  %v14198_v10 = vld [vmem:[#allocation4 + $0x168] sm:$0xff]  ;;  %891 = vst.msk [vmem:[#allocation7 + $0x100] sm:$0x3f] %vm860_vm11, %v28168_v5  ;;  %894 = vst.msk [vmem:[#allocation7 + $0x118] sm:$0x3f] %vm860_vm11, %v28168_v5 }
 0x590   : > { %v14219_v60 = vpack.c.bf16 %v14199_v28, %v14198_v10  ;;  %897 = vst.msk [vmem:[#allocation7 + $0x130] sm:$0x3f] %vm860_vm11, %v28168_v5  ;;  %900 = vst.msk [vmem:[#allocation7 + $0x148] sm:$0x3f] %vm860_vm11, %v28168_v5 }
 0x591   : > { %903 = vst.msk [vmem:[#allocation7 + $0x160] sm:$0x3f] %vm860_vm11, %v28168_v5  ;;  %906 = vst.msk [vmem:[#allocation7 + $0x178] sm:$0x3f] %vm860_vm11, %v28168_v5 }
 0x592   : > { %909 = vst.msk [vmem:[#allocation7 + $0x190] sm:$0x3f] %vm860_vm11, %v28168_v5  ;;  %912 = vst.msk [vmem:[#allocation7 + $0x1a8] sm:$0x3f] %vm860_vm11, %v28168_v5 }
 0x593   : > { %915 = vst.msk [vmem:[#allocation7 + $0x1c0] sm:$0x3f] %vm860_vm11, %v28168_v5  ;;  %918 = vst.msk [vmem:[#allocation7 + $0x1d8] sm:$0x3f] %vm860_vm11, %v28168_v5 }
 0x594   : > { %921 = vst.msk [vmem:[#allocation7 + $0x1f0] sm:$0x3f] %vm860_vm11, %v28168_v5  ;;  %924 = vst.msk [vmem:[#allocation7 + $0x208] sm:$0x3f] %vm860_vm11, %v28168_v5 }
 0x595   : > { %21628 = vmatmul.mubr.msk.bf16.gmra.mrb[52].mxu0 %vm575_vm1, %v26388_v22  ;;  %v14179_v22 = vld [vmem:[#allocation4 + $0x80] sm:$0xff] }
 0x596   : > { %21631 = vmatprep.mubr.msk.bf16.mxu0 %vm575_vm1, %v26390_v51  ;;  %v14181_v51 = vld [vmem:[#allocation4 + $0x98] sm:$0xff] }
 0x597   : > { %v14210_v36 = vpack.c.bf16 %v14181_v51, %v14180_v27  ;;  %v14206_v51 = vld [vmem:[#allocation4 + $0x1c8] sm:$0xff]  ;;  %v14863_v27 = vsel %vm10040_vm6, %v18918_v43, 0 }
 0x59d   : > { %21632 = vmatmul.mubr.msk.bf16.gmra.mrb[56].mxu0 %vm575_vm1, %v26403_v8  ;;  %v14178_v8 = vld [vmem:[#allocation4 + $0x78] sm:$0xff] }
 0x59e   : > { %21635 = vmatprep.mubr.msk.bf16.mxu0 %vm575_vm1, %v26625_v40  ;;  %v14209_v23 = vpack.c.bf16 %v14179_v22, %v14178_v8  ;;  %v14207_v8 = vld [vmem:[#allocation4 + $0x1d0] sm:$0xff] }
 0x5a5   : > { %21636 = vmatmul.mubr.msk.bf16.gmra.mrb[60].mxu0 %vm575_vm1, %v26703_v31 }
 0x5a6   : > { %21641 = vmatprep.mubr.msk.bf16.mxu0 %vm575_vm1, %v14208_v42  ;;  %v14205_v42 = vld [vmem:[#allocation4 + $0x1b8] sm:$0xff] }
 0x5a7   : > { %v14222_v22 = vpack.c.bf16 %v14205_v42, %v14204_v52 }
 0x5ad   : > { %21642 = vmatmul.mubr.msk.bf16.vlgmr.msra.gmra.mrb[32].mxu0 %vm575_vm1, %v14209_v23  ;;  %v14223_v23 = vpack.c.bf16 %v14207_v8, %v14206_v51 }
 0x5ae   : > { %21645 = vmatprep.mubr.msk.bf16.mxu0 %vm575_vm1, %v14210_v36  ;;  %21674 = vmatpush3.bf16.msra.mxu0 %v14569_v41 }
 0x5af   : > { %23759 = vmatprep.subr.msk.bf16.mxu0 %vm10040_vm6, %v18918_v43  ;;  %v28171_v43 = vld [vmem:[#allocation18_spill] sm:$0xff] }
 0x5b5   : > { %21646 = vmatmul.mubr.msk.bf16.gmra.mrb[36].mxu0 %vm575_vm1, %v14211_v53  ;;  %v28172_v53 = vld [vmem:[#allocation20_spill] sm:$0xff] }
 0x5b6   : > { %21649 = vmatprep.mubr.msk.bf16.mxu0 %vm575_vm1, %v14212_v46 }
 0x5bd   : > { %21650 = vmatmul.mubr.msk.bf16.gmra.mrb[40].mxu0 %vm575_vm1, %v14213_v61  ;;  %v14766_v61 = vld [vmem:[#allocation4 + $0x7c] sm:$0xff] }
 0x5be   : > { %21653 = vmatprep.mubr.msk.bf16.mxu0 %vm575_vm1, %v14214_v63  ;;  %v14797_v33 = vpack.c.bf16 %v14767_v14, %v14766_v61 }
 0x5c5   : > { %21654 = vmatmul.mubr.msk.bf16.gmra.mrb[44].mxu0 %vm575_vm1, %v14215_v7 }
 0x5c6   : > { %21657 = vmatprep.mubr.msk.bf16.mxu0 %vm575_vm1, %v14216_v35  ;;  %v28174_v35 = vld [vmem:[#allocation24_spill] sm:$0xff] }
 0x5cd   : > { %21658 = vmatmul.mubr.msk.bf16.gmra.mrb[48].mxu0 %vm575_vm1, %v14217_v30 }
 0x5ce   : > { %21661 = vmatprep.mubr.msk.bf16.mxu0 %vm575_vm1, %v14218_v11 }
 0x5d5   : > { %21662 = vmatmul.mubr.msk.bf16.gmra.mrb[52].mxu0 %vm575_vm1, %v14219_v60  ;;  %v28176_v60 = vld [vmem:[#allocation28_spill] sm:$0xff] }
 0x5d6   : > { %21665 = vmatprep.mubr.msk.bf16.mxu0 %vm575_vm1, %v26465_v45  ;;  %v14498_v45 = vld [vmem:[#allocation4 + $0x1b2] sm:$0xff] }
 0x5dd   : > { %21666 = vmatmul.mubr.msk.bf16.gmra.mrb[56].mxu0 %vm575_vm1, %v26473_v17  ;;  %v14499_v17 = vld [vmem:[#allocation4 + $0x1ba] sm:$0xff] }
 0x5de   : > { %21669 = vmatprep.mubr.msk.bf16.mxu0 %vm575_vm1, %v14222_v22 }
 0x5e5   : > { %21670 = vmatmul.mubr.msk.bf16.gmra.mrb[60].mxu0 %vm575_vm1, %v14223_v23  ;;  %v14770_v23 = vld [vmem:[#allocation4 + $0xac] sm:$0xff] }
 0x5e6   : > { %21675 = vmatprep.mubr.msk.bf16.mxu0 %vm575_vm1, %v26482_v56  ;;  %v14516_v56 = vpack.c.bf16 %v14499_v17, %v14498_v45  ;;  %v14772_v17 = vld [vmem:[#allocation4 + $0xc4] sm:$0xff] }
 0x5ed   : > { %21676 = vmatmul.mubr.msk.bf16.vlgmr.msra.gmra.mrb[32].mxu0 %vm575_vm1, %v26496_v26  ;;  %v14500_v26 = vld [vmem:[#allocation4 + $0x1ca] sm:$0xff] }
 0x5ee   : > { %21679 = vmatprep.mubr.msk.bf16.mxu0 %vm575_vm1, %v26498_v57  ;;  %21708 = vmatpush3.bf16.msra.mxu0 %v14863_v27  ;;  %v14501_v57 = vld [vmem:[#allocation4 + $0x1d2] sm:$0xff] }
 0x5ef   : > { %v14771_v27 = vld [vmem:[#allocation4 + $0xb4] sm:$0xff] }
 0x5f5   : > { %21680 = vmatmul.mubr.msk.bf16.gmra.mrb[36].mxu0 %vm575_vm1, %v26506_v1  ;;  %v14517_v1 = vpack.c.bf16 %v14501_v57, %v14500_v26 }
 0x5f6   : > { %21683 = vmatprep.mubr.msk.bf16.mxu0 %vm575_vm1, %v26508_v37  ;;  %v14764_v37 = vld [vmem:[#allocation4 + $0x64] sm:$0xff] }
 0x5fd   : > { %21684 = vmatmul.mubr.msk.bf16.gmra.mrb[40].mxu0 %vm575_vm1, %v26517_v21  ;;  %v14765_v21 = vld [vmem:[#allocation4 + $0x6c] sm:$0xff] }
 0x5fe   : > { %21687 = vmatprep.mubr.msk.bf16.mxu0 %vm575_vm1, %v26519_v18 }
 0x605   : > { %21688 = vmatmul.mubr.msk.bf16.gmra.mrb[44].mxu0 %vm575_vm1, %v26528_v25  ;;  %v26808_v25 = vld [vmem:[%s28078_s10] ss:$0 sm:$0xff] }
 0x606   : > { %21691 = vmatprep.mubr.msk.bf16.mxu0 %vm575_vm1, %v26530_v47  ;;  %v28169_v47 = vld [vmem:[#allocation16_spill] sm:$0xff] }
 0x60d   : > { %21692 = vmatmul.mubr.msk.bf16.gmra.mrb[48].mxu0 %vm575_vm1, %v26540_v9 }
 0x60e   : > { %21695 = vmatprep.mubr.msk.bf16.mxu0 %vm575_vm1, %v26542_v38 }
 0x615   : > { %21696 = vmatmul.mubr.msk.bf16.gmra.mrb[52].mxu0 %vm575_vm1, %v26552_v50  ;;  %v28170_v50 = vld [vmem:[#allocation17_spill] sm:$0xff] }
 0x616   : > { %21699 = vmatprep.mubr.msk.bf16.mxu0 %vm575_vm1, %v26554_v58 }
 0x61d   : > { %21700 = vmatmul.mubr.msk.bf16.gmra.mrb[56].mxu0 %vm575_vm1, %v26564_v13  ;;  %v14796_v13 = vpack.c.bf16 %v14765_v21, %v14764_v37  ;;  %v28177_v37 = vld [vmem:[#allocation31_spill] sm:$0xff] }
 0x61e   : > { %21703 = vmatprep.mubr.msk.bf16.mxu0 %vm575_vm1, %v14516_v56  ;;  %v14773_v56 = vld [vmem:[#allocation4 + $0xcc] sm:$0xff] }
 0x622   : > { %v20759_v18 = vpop.f32.mrb[128].mxu1 }
 0x623   : > { %v22083_v9 = vadd.f32 %v28169_v47, %v20759_v18  ;;  %v6649_v38 = vpop.f32.mrb[129].mxu1  ;;  %v14799_v47 = vpack.c.bf16 %v14771_v27, %v14770_v23 }
 0x624   : > { %v22084_v58 = vadd.f32 %v28170_v50, %v6649_v38  ;;  %v20760_v41 = vpop.f32.mrb[130].mxu1  ;;  %v28178_v50 = vld [vmem:[#allocation32_spill] sm:$0xff] }
 0x625   : > { %v7111_v36 = vadd.f32 %v22083_v9, %v26808_v25  ;;  %v22085_v44 = vadd.f32 %v28171_v43, %v20760_v41  ;;  %v6652_v24 = vpop.f32.mrb[131].mxu1  ;;  %21704 = vmatmul.mubr.msk.bf16.gmra.mrb[60].mxu0 %vm575_vm1, %v14517_v1 }
 0x626   : > { %v7109_v62 = vadd.f32 %v22084_v58, %v26808_v25  ;;  %v22086_v12 = vadd.f32 %v28172_v53, %v6652_v24  ;;  %21709 = vmatprep.mubr.msk.bf16.mxu0 %vm575_vm1, %v14796_v13 }
 0x627   : > { %v7143_v46 = vmax.f32 %v7111_v36, 0.0  ;;  %v7112_v16 = vadd.f32 %v22085_v44, %v26808_v25  ;;  %v14800_v36 = vpack.c.bf16 %v14773_v56, %v14772_v17  ;;  %v7567_v44 = vsel %vm7353_vm8, %v26757_v54, 0  ;;  %v28184_v56 = vld [vmem:[#allocation39_spill] sm:$0xff] }
 0x628   : > { %v7141_v3 = vmax.f32 %v7109_v62, 0.0  ;;  %v7110_v0 = vadd.f32 %v22086_v12, %v26808_v25  ;;  %v28179_v62 = vld [vmem:[#allocation33_spill] sm:$0xff] }
 0x629   : > { %7176 = vst.msk [vmem:[#allocation6 + $0x31] sm:$0xff] %vm802_vm9, %v7143_v46  ;;  %v7144_v63 = vmax.f32 %v7112_v16, 0.0  ;;  %v26852_v16 = vld [vmem:[%s28079_s11 + $0x8] sm:$0x7] }
 0x62a   : > { %7174 = vst.msk [vmem:[#allocation6 + $0x19] sm:$0xff] %vm802_vm9, %v7141_v3  ;;  %v7142_v48 = vmax.f32 %v7110_v0, 0.0  ;;  %v20763_v20 = vpop.f32.mrb[132].mxu1  ;;  %v28180_v0 = vld [vmem:[#allocation34_spill] sm:$0xff] }
 0x62b   : > { %7177 = vst.msk [vmem:[#allocation6 + $0x39] sm:$0xff] %vm802_vm9, %v7144_v63  ;;  %v22087_v39 = vadd.f32 %v28173_v2, %v20763_v20  ;;  %v6665_v7 = vpop.f32.mrb[133].mxu1  ;;  %v14776_v2 = vld [vmem:[#allocation4 + $0xf4] sm:$0xff] }
 0x62c   : > { %7175 = vst.msk [vmem:[#allocation6 + $0x21] sm:$0xff] %vm802_vm9, %v7142_v48  ;;  %v22088_v19 = vadd.f32 %v28174_v35, %v6665_v7  ;;  %v20764_v34 = vpop.f32.mrb[134].mxu1  ;;  %v14775_v48 = vld [vmem:[#allocation4 + $0xe4] sm:$0xff] }
 0x62d   : > { %v7115_v30 = vadd.f32 %v22087_v39, %v26808_v25  ;;  %v22089_v11 = vadd.f32 %v28175_v55, %v20764_v34  ;;  %v6668_v28 = vpop.f32.mrb[135].mxu1  ;;  %21710 = vmatmul.mubr.msk.bf16.vlgmr.msra.gmra.mrb[32].mxu0 %vm575_vm1, %v14797_v33  ;;  %v14777_v39 = vld [vmem:[#allocation4 + $0xfc] sm:$0xff] }
 0x62e   : > { %v7113_v10 = vadd.f32 %v22088_v19, %v26808_v25  ;;  %v22090_v52 = vadd.f32 %v28176_v60, %v6668_v28  ;;  %21713 = vmatprep.mubr.msk.bf16.mxu0 %vm575_vm1, %v14798_v6  ;;  %v28181_v19 = vld [vmem:[#allocation36_spill] sm:$0xff]  ;;  %v28182_v28 = vld [vmem:[#allocation37_spill] sm:$0xff] }
 0x62f   : > { %v7147_v42 = vmax.f32 %v7115_v30, 0.0  ;;  %v7116_v22 = vadd.f32 %v22089_v11, %v26808_v25  ;;  %v14801_v30 = vpack.c.bf16 %v14775_v48, %v14774_v29  ;;  %v28187_v29 = vld [vmem:[#allocation42_spill] sm:$0xff] }
 0x630   : > { %v7145_v51 = vmax.f32 %v7113_v10, 0.0  ;;  %v7114_v8 = vadd.f32 %v22090_v52, %v26808_v25  ;;  %v7259_v43 = vld [vmem:[#allocation6 + $0x31] sm:$0xff] }
 0x631   : > { %7180 = vst.msk [vmem:[#allocation6 + $0x61] sm:$0xff] %vm802_vm9, %v7147_v42  ;;  %v7148_v45 = vmax.f32 %v7116_v22, 0.0  ;;  %v7257_v9 = vld [vmem:[#allocation6 + $0x19] sm:$0xff]  ;;  %v14802_v42 = vpack.c.bf16 %v14777_v39, %v14776_v2 }
 0x632   : > { %7178 = vst.msk [vmem:[#allocation6 + $0x49] sm:$0xff] %vm802_vm9, %v7145_v51  ;;  %v7146_v26 = vmax.f32 %v7114_v8, 0.0  ;;  %v20767_v57 = vpop.f32.mrb[136].mxu1  ;;  %v7260_v1 = vld [vmem:[#allocation6 + $0x39] sm:$0xff]  ;;  %v28183_v8 = vld [vmem:[#allocation38_spill] sm:$0xff] }
 0x633   : > { %7181 = vst.msk [vmem:[#allocation6 + $0x69] sm:$0xff] %vm802_vm9, %v7148_v45  ;;  %v22091_v21 = vadd.f32 %v28177_v37, %v20767_v57  ;;  %v6681_v18 = vpop.f32.mrb[137].mxu1  ;;  %v7258_v38 = vld [vmem:[#allocation6 + $0x21] sm:$0xff]  ;;  %v26847_v46 = vpack.c.bf16 %v7260_v1, %v7259_v43 }
 0x634   : > { %7179 = vst.msk [vmem:[#allocation6 + $0x51] sm:$0xff] %vm802_vm9, %v7146_v26  ;;  %v22092_v58 = vadd.f32 %v28178_v50, %v6681_v18  ;;  %v20768_v41 = vpop.f32.mrb[138].mxu1  ;;  %v26840_v13 = vpack.c.bf16 %v7258_v38, %v7257_v9  ;;  %v14778_v18 = vld [vmem:[#allocation4 + $0x10c] sm:$0xff]  ;;  %v14780_v38 = vld [vmem:[#allocation4 + $0x124] sm:$0xff] }
 0x635   : > { %v7119_v24 = vadd.f32 %v22091_v21, %v26808_v25  ;;  %v22093_v53 = vadd.f32 %v28179_v62, %v20768_v41  ;;  %v6684_v12 = vpop.f32.mrb[139].mxu1  ;;  %21714 = vmatmul.mubr.msk.bf16.gmra.mrb[36].mxu0 %vm575_vm1, %v14799_v47  ;;  %v14779_v47 = vld [vmem:[#allocation4 + $0x114] sm:$0xff]  ;;  %v14781_v50 = vld [vmem:[#allocation4 + $0x12c] sm:$0xff] }
 0x636   : > { %v7117_v3 = vadd.f32 %v22092_v58, %v26808_v25  ;;  %v22094_v61 = vadd.f32 %v28180_v0, %v6684_v12  ;;  %20826 = vmatmul.mubr.msk.bf16.vlgmr.msra.gmra.mrb[160].mxu1 %vm802_vm9, %v26840_v13  ;;  %21717 = vmatprep.mubr.msk.bf16.mxu0 %vm575_vm1, %v14800_v36  ;;  %v28185_v43 = vld [vmem:[#allocation40_spill] sm:$0xff]  ;;  %v14803_v62 = vpack.c.bf16 %v14779_v47, %v14778_v18 }
 0x637   : > { %v7151_v54 = vmax.f32 %v7119_v24, 0.0  ;;  %v7120_v14 = vadd.f32 %v22093_v53, %v26808_v25  ;;  %20829 = vmatprep.mubr.msk.bf16.mxu1 %vm802_vm9, %v26847_v46  ;;  %20858 = vmatpush3.bf16.msra.mxu1 %v7567_v44 }
 0x638   : > { %v7149_v63 = vmax.f32 %v7117_v3, 0.0  ;;  %v7118_v49 = vadd.f32 %v22094_v61, %v26808_v25  ;;  %23735 = vmatprep.subr.msk.bf16.mxu1 %vm7353_vm8, %v26852_v16  ;;  %v7263_v22 = vld [vmem:[#allocation6 + $0x61] sm:$0xff] }
 0x639   : > { %7184 = vst.msk [vmem:[#allocation6 + $0x91] sm:$0xff] %vm802_vm9, %v7151_v54  ;;  %v7152_v20 = vmax.f32 %v7120_v14, 0.0  ;;  %v7261_v55 = vld [vmem:[#allocation6 + $0x49] sm:$0xff]  ;;  %v14804_v14 = vpack.c.bf16 %v14781_v50, %v14780_v38 }
 0x63a   : > { %7182 = vst.msk [vmem:[#allocation6 + $0x79] sm:$0xff] %vm802_vm9, %v7149_v63  ;;  %v7150_v7 = vmax.f32 %v7118_v49, 0.0  ;;  %v20771_v33 = vpop.f32.mrb[140].mxu1  ;;  %v7264_v35 = vld [vmem:[#allocation6 + $0x69] sm:$0xff] }
 0x63b   : > { %7185 = vst.msk [vmem:[#allocation6 + $0x99] sm:$0xff] %vm802_vm9, %v7152_v20  ;;  %v22095_v34 = vadd.f32 %v28181_v19, %v20771_v33  ;;  %v6697_v6 = vpop.f32.mrb[141].mxu1  ;;  %v7262_v11 = vld [vmem:[#allocation6 + $0x51] sm:$0xff]  ;;  %v26876_v45 = vpack.c.bf16 %v7264_v35, %v7263_v22  ;;  %v28186_v3 = vld [vmem:[#allocation41_spill] sm:$0xff] }
 0x63c   : > { %7183 = vst.msk [vmem:[#allocation6 + $0x81] sm:$0xff] %vm802_vm9, %v7150_v7  ;;  %v22096_v10 = vadd.f32 %v28182_v28, %v6697_v6  ;;  %v20772_v60 = vpop.f32.mrb[142].mxu1  ;;  %v26871_v52 = vpack.c.bf16 %v7262_v11, %v7261_v55  ;;  %v28188_v7 = vld [vmem:[#allocation43_spill] sm:$0xff]  ;;  %v14784_v28 = vld [vmem:[#allocation4 + $0x154] sm:$0xff] }
 0x63d   : > { %v7123_v51 = vadd.f32 %v22095_v34, %v26808_v25  ;;  %v22097_v23 = vadd.f32 %v28183_v8, %v20772_v60  ;;  %v6700_v27 = vpop.f32.mrb[143].mxu1  ;;  %21718 = vmatmul.mubr.msk.bf16.gmra.mrb[40].mxu0 %vm575_vm1, %v14801_v30  ;;  %v14782_v30 = vld [vmem:[#allocation4 + $0x13c] sm:$0xff]  ;;  %v14783_v55 = vld [vmem:[#allocation4 + $0x144] sm:$0xff] }
 0x63e   : > { %v7121_v17 = vadd.f32 %v22096_v10, %v26808_v25  ;;  %v22098_v26 = vadd.f32 %v28184_v56, %v6700_v27  ;;  %20830 = vmatmul.mubr.msk.bf16.gmra.mrb[164].mxu1 %vm802_vm9, %v26871_v52  ;;  %21721 = vmatprep.mubr.msk.bf16.mxu0 %vm575_vm1, %v14802_v42  ;;  %v14785_v10 = vld [vmem:[#allocation4 + $0x15c] sm:$0xff]  ;;  %v14805_v27 = vpack.c.bf16 %v14783_v55, %v14782_v30 }
 0x63f   : > { %v7155_v57 = vmax.f32 %v7123_v51, 0.0  ;;  %v7124_v1 = vadd.f32 %v22097_v23, %v26808_v25  ;;  %20833 = vmatprep.mubr.msk.bf16.mxu1 %vm802_vm9, %v26876_v45  ;;  %v28189_v51 = vld [vmem:[#allocation44_spill] sm:$0xff]  ;;  %v28195_v55 = vld [vmem:[#allocation50_spill] sm:$0xff] }
 0x640   : > { %v7153_v37 = vmax.f32 %v7121_v17, 0.0  ;;  %v7122_v21 = vadd.f32 %v22098_v26, %v26808_v25  ;;  %v7267_v63 = vld [vmem:[#allocation6 + $0x91] sm:$0xff]  ;;  %v28190_v26 = vld [vmem:[#allocation45_spill] sm:$0xff] }
 0x641   : > { %7188 = vst.msk [vmem:[#allocation6 + $0xc1] sm:$0xff] %vm802_vm9, %v7155_v57  ;;  %v7156_v9 = vmax.f32 %v7124_v1, 0.0  ;;  %v7265_v53 = vld [vmem:[#allocation6 + $0x79] sm:$0xff] }
 0x642   : > { %7186 = vst.msk [vmem:[#allocation6 + $0xa9] sm:$0xff] %vm802_vm9, %v7153_v37  ;;  %v7154_v58 = vmax.f32 %v7122_v21, 0.0  ;;  %v20775_v41 = vpop.f32.mrb[144].mxu1  ;;  %v7268_v36 = vld [vmem:[#allocation6 + $0x99] sm:$0xff]  ;;  %v14806_v21 = vpack.c.bf16 %v14785_v10, %v14784_v28 }
 0x643   : > { %7189 = vst.msk [vmem:[#allocation6 + $0xc9] sm:$0xff] %vm802_vm9, %v7156_v9  ;;  %v22099_v44 = vadd.f32 %v28185_v43, %v20775_v41  ;;  %v6713_v24 = vpop.f32.mrb[145].mxu1  ;;  %v7266_v12 = vld [vmem:[#allocation6 + $0x81] sm:$0xff]  ;;  %v26898_v2 = vpack.c.bf16 %v7268_v36, %v7267_v63  ;;  %v28191_v9 = vld [vmem:[#allocation46_spill] sm:$0xff]  ;;  %v28192_v36 = vld [vmem:[#allocation47_spill] sm:$0xff] }
 0x644   : > { %7187 = vst.msk [vmem:[#allocation6 + $0xb1] sm:$0xff] %vm802_vm9, %v7154_v58  ;;  %v22100_v0 = vadd.f32 %v28186_v3, %v6713_v24  ;;  %v20776_v61 = vpop.f32.mrb[146].mxu1  ;;  %v26893_v54 = vpack.c.bf16 %v7266_v12, %v7265_v53  ;;  %v14786_v12 = vld [vmem:[#allocation4 + $0x16c] sm:$0xff]  ;;  %v14787_v3 = vld [vmem:[#allocation4 + $0x174] sm:$0xff] }
 0x645   : > { %v7127_v49 = vadd.f32 %v22099_v44, %v26808_v25  ;;  %v22101_v48 = vadd.f32 %v28187_v29, %v20776_v61  ;;  %v6716_v20 = vpop.f32.mrb[147].mxu1  ;;  %21722 = vmatmul.mubr.msk.bf16.gmra.mrb[44].mxu0 %vm575_vm1, %v14803_v62 }
 0x646   : > { %v7125_v39 = vadd.f32 %v22100_v0, %v26808_v25  ;;  %v22102_v33 = vadd.f32 %v28188_v7, %v6716_v20  ;;  %20834 = vmatmul.mubr.msk.bf16.gmra.mrb[168].mxu1 %vm802_vm9, %v26893_v54  ;;  %21725 = vmatprep.mubr.msk.bf16.mxu0 %vm575_vm1, %v14804_v14  ;;  %v14807_v20 = vpack.c.bf16 %v14787_v3, %v14786_v12 }
 0x647   : > { %v7159_v35 = vmax.f32 %v7127_v49, 0.0  ;;  %v7128_v19 = vadd.f32 %v22101_v48, %v26808_v25  ;;  %20837 = vmatprep.mubr.msk.bf16.mxu1 %vm802_vm9, %v26898_v2  ;;  %v28193_v49 = vld [vmem:[#allocation48_spill] sm:$0xff] }
 0x648   : > { %v7157_v34 = vmax.f32 %v7125_v39, 0.0  ;;  %v7126_v6 = vadd.f32 %v22102_v33, %v26808_v25  ;;  %v7271_v18 = vld [vmem:[#allocation6 + $0xc1] sm:$0xff] }
 0x649   : > { %7192 = vst.msk [vmem:[#allocation6 + $0xf1] sm:$0xff] %vm802_vm9, %v7159_v35  ;;  %v7160_v11 = vmax.f32 %v7128_v19, 0.0  ;;  %v7269_v17 = vld [vmem:[#allocation6 + $0xa9] sm:$0xff] }
 0x64a   : > { %7190 = vst.msk [vmem:[#allocation6 + $0xd9] sm:$0xff] %vm802_vm9, %v7157_v34  ;;  %v7158_v60 = vmax.f32 %v7126_v6, 0.0  ;;  %v20779_v42 = vpop.f32.mrb[148].mxu1  ;;  %v7272_v22 = vld [vmem:[#allocation6 + $0xc9] sm:$0xff] }
 0x64b   : > { %7193 = vst.msk [vmem:[#allocation6 + $0xf9] sm:$0xff] %vm802_vm9, %v7160_v11  ;;  %v22103_v8 = vadd.f32 %v28189_v51, %v20779_v42  ;;  %v6729_v23 = vpop.f32.mrb[149].mxu1  ;;  %v7270_v56 = vld [vmem:[#allocation6 + $0xb1] sm:$0xff]  ;;  %v26920_v58 = vpack.c.bf16 %v7272_v22, %v7271_v18  ;;  %v28194_v33 = vld [vmem:[#allocation49_spill] sm:$0xff] }
 0x64c   : > { %7191 = vst.msk [vmem:[#allocation6 + $0xe1] sm:$0xff] %vm802_vm9, %v7158_v60  ;;  %v22104_v57 = vadd.f32 %v28190_v26, %v6729_v23  ;;  %v20780_v1 = vpop.f32.mrb[150].mxu1  ;;  %v26915_v37 = vpack.c.bf16 %v7270_v56, %v7269_v17  ;;  %v28196_v42 = vld [vmem:[#allocation51_spill] sm:$0xff] }
 0x64d   : > { %v7131_v47 = vadd.f32 %v22103_v8, %v26808_v25  ;;  %v22105_v38 = vadd.f32 %v28191_v9, %v20780_v1  ;;  %v6732_v50 = vpop.f32.mrb[151].mxu1  ;;  %21726 = vmatmul.mubr.msk.bf16.gmra.mrb[48].mxu0 %vm575_vm1, %v14805_v27 }
 0x64e   : > { %v7129_v41 = vadd.f32 %v22104_v57, %v26808_v25  ;;  %v22106_v43 = vadd.f32 %v28192_v36, %v6732_v50  ;;  %20838 = vmatmul.mubr.msk.bf16.gmra.mrb[172].mxu1 %vm802_vm9, %v26915_v37  ;;  %21729 = vmatprep.mubr.msk.bf16.mxu0 %vm575_vm1, %v14806_v21 }
 0x64f   : > { %v7163_v44 = vmax.f32 %v7131_v47, 0.0  ;;  %v7132_v24 = vadd.f32 %v22105_v38, %v26808_v25  ;;  %20841 = vmatprep.mubr.msk.bf16.mxu1 %vm802_vm9, %v26920_v58 }
 0x650   : > { %v7161_v62 = vmax.f32 %v7129_v41, 0.0  ;;  %v7130_v53 = vadd.f32 %v22106_v43, %v26808_v25  ;;  %v7275_v6 = vld [vmem:[#allocation6 + $0xf1] sm:$0xff] }
 0x651   : > { %7196 = vst.msk [vmem:[#allocation6 + $0x121] sm:$0xff] %vm802_vm9, %v7163_v44  ;;  %v7164_v0 = vmax.f32 %v7132_v24, 0.0  ;;  %v7273_v39 = vld [vmem:[#allocation6 + $0xd9] sm:$0xff] }
 0x652   : > { %7194 = vst.msk [vmem:[#allocation6 + $0x109] sm:$0xff] %vm802_vm9, %v7161_v62  ;;  %v7162_v61 = vmax.f32 %v7130_v53, 0.0  ;;  %v20783_v14 = vpop.f32.mrb[152].mxu1  ;;  %v7276_v63 = vld [vmem:[#allocation6 + $0xf9] sm:$0xff] }
 0x653   : > { %7197 = vst.msk [vmem:[#allocation6 + $0x129] sm:$0xff] %vm802_vm9, %v7164_v0  ;;  %v22107_v29 = vadd.f32 %v28193_v49, %v20783_v14  ;;  %v6745_v48 = vpop.f32.mrb[153].mxu1  ;;  %v7274_v7 = vld [vmem:[#allocation6 + $0xe1] sm:$0xff]  ;;  %v26942_v10 = vpack.c.bf16 %v7276_v63, %v7275_v6  ;;  %v7210_v6 = vld [vmem:[#allocation6 + $0x30] sm:$0xff] }
 0x654   : > { %7195 = vst.msk [vmem:[#allocation6 + $0x111] sm:$0xff] %vm802_vm9, %v7162_v61  ;;  %v22108_v35 = vadd.f32 %v28194_v33, %v6745_v48  ;;  %v20784_v19 = vpop.f32.mrb[154].mxu1  ;;  %v26937_v34 = vpack.c.bf16 %v7274_v7, %v7273_v39  ;;  %v7207_v49 = vld [vmem:[#allocation6 + $0x8] sm:$0xff]  ;;  %v7209_v7 = vld [vmem:[#allocation6 + $0x20] sm:$0xff]  ;;  %v7211_v33 = vld [vmem:[#allocation6 + $0x38] sm:$0xff] }
 0x655   : > { %v7135_v30 = vadd.f32 %v22107_v29, %v26808_v25  ;;  %v22109_v11 = vadd.f32 %v28195_v55, %v20784_v19  ;;  %v6748_v28 = vpop.f32.mrb[155].mxu1  ;;  %21730 = vmatmul.mubr.msk.bf16.gmra.mrb[52].mxu0 %vm575_vm1, %v14807_v20  ;;  %v26997_v55 = vpack.c.bf16 %v7211_v33, %v7210_v6  ;;  %v7733_v6 = vld [vmem:[#allocation6 + $0x22] sm:$0xff] }
 0x656   : > { %v7133_v60 = vadd.f32 %v22108_v35, %v26808_v25  ;;  %v22110_v22 = vadd.f32 %v28196_v42, %v6748_v28  ;;  %20842 = vmatmul.mubr.msk.bf16.gmra.mrb[176].mxu1 %vm802_vm9, %v26937_v34  ;;  %21733 = vmatprep.mubr.msk.bf16.mxu0 %vm575_vm1, %v26625_v40  ;;  %v7208_v35 = vld [vmem:[#allocation6 + $0x18] sm:$0xff]  ;;  %v7213_v28 = vld [vmem:[#allocation6 + $0x50] sm:$0xff] }
 0x657   : > { %v7167_v51 = vmax.f32 %v7135_v30, 0.0  ;;  %v7136_v8 = vadd.f32 %v22109_v11, %v26808_v25  ;;  %20845 = vmatprep.mubr.msk.bf16.mxu1 %vm802_vm9, %v26942_v10  ;;  %v26993_v19 = vpack.c.bf16 %v7209_v7, %v7208_v35  ;;  %v7829_v30 = vsel %vm7353_vm8, %v26852_v16, 0  ;;  %v27002_v11 = vld [vmem:[%s28079_s11 + $0xc] sm:$0x7]  ;;  %v7212_v16 = vld [vmem:[#allocation6 + $0x48] sm:$0xff] }
 0x658   : > { %v7165_v23 = vmax.f32 %v7133_v60, 0.0  ;;  %v7134_v27 = vadd.f32 %v22110_v22, %v26808_v25  ;;  %v7279_v50 = vld [vmem:[#allocation6 + $0x121] sm:$0xff]  ;;  %v27010_v42 = vpack.c.bf16 %v7213_v28, %v7212_v16  ;;  %v8123_v16 = vsel %vm7353_vm8, %v27002_v11, 0 }
 0x659   : > { %7200 = vst.msk [vmem:[#allocation6 + $0x151] sm:$0xff] %vm802_vm9, %v7167_v51  ;;  %v7168_v17 = vmax.f32 %v7136_v8, 0.0  ;;  %v7277_v21 = vld [vmem:[#allocation6 + $0x109] sm:$0xff]  ;;  %v7214_v22 = vld [vmem:[#allocation6 + $0x60] sm:$0xff] }
 0x65a   : > { %7198 = vst.msk [vmem:[#allocation6 + $0x139] sm:$0xff] %vm802_vm9, %v7165_v23  ;;  %v7166_v56 = vmax.f32 %v7134_v27, 0.0  ;;  %v20787_v26 = vpop.f32.mrb[156].mxu1  ;;  %v7280_v57 = vld [vmem:[#allocation6 + $0x129] sm:$0xff]  ;;  %v7217_v8 = vld [vmem:[#allocation6 + $0x80] sm:$0xff]  ;;  %v7219_v23 = vld [vmem:[#allocation6 + $0x98] sm:$0xff] }
 0x65b   : > { %7201 = vst.msk [vmem:[#allocation6 + $0x159] sm:$0xff] %vm802_vm9, %v7168_v17  ;;  %v22111_v40 = vadd.f32 %v26384_v59, %v20787_v26  ;;  %v6761_v1 = vpop.f32.mrb[157].mxu1  ;;  %v7278_v18 = vld [vmem:[#allocation6 + $0x111] sm:$0xff]  ;;  %v26966_v59 = vpack.c.bf16 %v7280_v57, %v7279_v50  ;;  %v7215_v60 = vld [vmem:[#allocation6 + $0x68] sm:$0xff]  ;;  %v7732_v35 = vld [vmem:[#allocation6 + $0x1a] sm:$0xff] }
 0x65c   : > { %7199 = vst.msk [vmem:[#allocation6 + $0x141] sm:$0xff] %vm802_vm9, %v7166_v56  ;;  %v22112_v47 = vadd.f32 %v26386_v4, %v6761_v1  ;;  %v20788_v9 = vpop.f32.mrb[158].mxu1  ;;  %v26960_v38 = vpack.c.bf16 %v7278_v18, %v7277_v21  ;;  %v27012_v51 = vpack.c.bf16 %v7215_v60, %v7214_v22  ;;  %v7216_v27 = vld [vmem:[#allocation6 + $0x78] sm:$0xff]  ;;  %v7218_v56 = vld [vmem:[#allocation6 + $0x90] sm:$0xff]  ;;  %v7220_v1 = vld [vmem:[#allocation6 + $0xa8] sm:$0xff]  ;;  %v27063_v60 = vpack.c.bf16 %v7733_v6, %v7732_v35 }
 0x65d   : > { %v7139_v41 = vadd.f32 %v22111_v40, %v26808_v25  ;;  %v22113_v36 = vadd.f32 %v26394_v15, %v20788_v9  ;;  %v6764_v43 = vpop.f32.mrb[159].mxu1  ;;  %21734 = vmatmul.mubr.msk.bf16.gmra.mrb[56].mxu0 %vm575_vm1, %v26703_v31  ;;  %v27018_v17 = vpack.c.bf16 %v7217_v8, %v7216_v27  ;;  %v27020_v26 = vpack.c.bf16 %v7219_v23, %v7218_v56  ;;  %v7221_v57 = vld [vmem:[#allocation6 + $0xb0] sm:$0xff]  ;;  %v7223_v40 = vld [vmem:[#allocation6 + $0xc8] sm:$0xff]  ;;  %v7222_v18 = vld [vmem:[#allocation6 + $0xc0] sm:$0xff] }
 0x65e   : > { %v7137_v44 = vadd.f32 %v22112_v47, %v26808_v25  ;;  %v22114_v24 = vadd.f32 %v26399_v32, %v6764_v43  ;;  %20846 = vmatmul.mubr.msk.bf16.gmra.mrb[180].mxu1 %vm802_vm9, %v26960_v38  ;;  %v27026_v21 = vpack.c.bf16 %v7221_v57, %v7220_v1  ;;  %v27028_v47 = vpack.c.bf16 %v7223_v40, %v7222_v18  ;;  %v7225_v9 = vld [vmem:[#allocation6 + $0xe0] sm:$0xff]  ;;  %v7227_v50 = vld [vmem:[#allocation6 + $0xf8] sm:$0xff]  ;;  %v7226_v43 = vld [vmem:[#allocation6 + $0xf0] sm:$0xff] }
 0x65f   : > { %v7171_v4 = vmax.f32 %v7139_v41, 0.0  ;;  %v7140_v62 = vadd.f32 %v22113_v36, %v26808_v25  ;;  %20849 = vmatprep.mubr.msk.bf16.mxu1 %vm802_vm9, %v26966_v59  ;;  %v7224_v41 = vld [vmem:[#allocation6 + $0xd8] sm:$0xff]  ;;  %v18545_v8 = vld [vmem:[%s28079_s11 + $0x10] sm:$0x7]  ;;  %v7736_v23 = vld [vmem:[#allocation6 + $0x4a] sm:$0xff] }
 0x660   : > { %v7169_v15 = vmax.f32 %v7137_v44, 0.0  ;;  %v7138_v53 = vadd.f32 %v22114_v24, %v26808_v25  ;;  %v7283_v14 = vld [vmem:[#allocation6 + $0x151] sm:$0xff]  ;;  %v7206_v25 = vld [vmem:[#allocation6] sm:$0xff]  ;;  %v27034_v36 = vpack.c.bf16 %v7225_v9, %v7224_v41  ;;  %v27036_v44 = vpack.c.bf16 %v7227_v50, %v7226_v43 }
 0x661   : > { %7204 = vst.msk [vmem:[#allocation6 + $0x181] sm:$0xff] %vm802_vm9, %v7171_v4  ;;  %v7172_v31 = vmax.f32 %v7140_v62, 0.0  ;;  %v7281_v32 = vld [vmem:[#allocation6 + $0x139] sm:$0xff]  ;;  %v7238_v20 = vpack.c.bf16 %v7207_v49, %v7206_v25  ;;  %v7229_v24 = vld [vmem:[#allocation6 + $0x110] sm:$0xff]  ;;  %v7231_v4 = vld [vmem:[#allocation6 + $0x128] sm:$0xff] }
 0x662   : > { %7202 = vst.msk [vmem:[#allocation6 + $0x169] sm:$0xff] %vm802_vm9, %v7169_v15  ;;  %v7170_v12 = vmax.f32 %v7138_v53, 0.0  ;;  %v7284_v3 = vld [vmem:[#allocation6 + $0x159] sm:$0xff]  ;;  %v7228_v62 = vld [vmem:[#allocation6 + $0x108] sm:$0xff] }
 0x663   : > { %7205 = vst.msk [vmem:[#allocation6 + $0x189] sm:$0xff] %vm802_vm9, %v7172_v31  ;;  %v7282_v0 = vld [vmem:[#allocation6 + $0x141] sm:$0xff]  ;;  %v26982_v63 = vpack.c.bf16 %v7284_v3, %v7283_v14  ;;  %v27042_v15 = vpack.c.bf16 %v7229_v24, %v7228_v62  ;;  %v7235_v3 = vld [vmem:[#allocation6 + $0x158] sm:$0xff]  ;;  %v7234_v14 = vld [vmem:[#allocation6 + $0x150] sm:$0xff] }
 0x664   : > { %7203 = vst.msk [vmem:[#allocation6 + $0x171] sm:$0xff] %vm802_vm9, %v7170_v12  ;;  %v26980_v61 = vpack.c.bf16 %v7282_v0, %v7281_v32  ;;  %v7230_v53 = vld [vmem:[#allocation6 + $0x120] sm:$0xff]  ;;  %v7232_v32 = vld [vmem:[#allocation6 + $0x138] sm:$0xff]  ;;  %v27052_v25 = vpack.c.bf16 %v7235_v3, %v7234_v14  ;;  %v7739_v57 = vld [vmem:[#allocation6 + $0x6a] sm:$0xff] }
 0x665   : > { %v27044_v31 = vpack.c.bf16 %v7231_v4, %v7230_v53  ;;  %v7233_v12 = vld [vmem:[#allocation6 + $0x140] sm:$0xff]  ;;  %v7737_v27 = vld [vmem:[#allocation6 + $0x52] sm:$0xff]  ;;  %v7744_v24 = vld [vmem:[#allocation6 + $0xaa] sm:$0xff] }
 0x666   : > { %20850 = vmatmul.mubr.msk.bf16.gmra.mrb[184].mxu1 %vm802_vm9, %v26980_v61  ;;  %v27050_v0 = vpack.c.bf16 %v7233_v12, %v7232_v32  ;;  %v7730_v49 = vld [vmem:[#allocation6 + $0x2] sm:$0xff]  ;;  %v7735_v28 = vld [vmem:[#allocation6 + $0x3a] sm:$0xff]  ;;  %v7742_v9 = vld [vmem:[#allocation6 + $0x92] sm:$0xff] }
 0x667   : > { %20853 = vmatprep.mubr.msk.bf16.mxu1 %vm802_vm9, %v26982_v63  ;;  %v7738_v56 = vld [vmem:[#allocation6 + $0x62] sm:$0xff]  ;;  %v7740_v1 = vld [vmem:[#allocation6 + $0x7a] sm:$0xff]  ;;  %v7745_v4 = vld [vmem:[#allocation6 + $0xb2] sm:$0xff] }
 0x668   : > { %v27079_v40 = vpack.c.bf16 %v7739_v57, %v7738_v56  ;;  %v7741_v18 = vld [vmem:[#allocation6 + $0x82] sm:$0xff]  ;;  %v7743_v50 = vld [vmem:[#allocation6 + $0x9a] sm:$0xff]  ;;  %v7747_v53 = vld [vmem:[#allocation6 + $0xca] sm:$0xff]  ;;  %v27093_v12 = vpack.c.bf16 %v7745_v4, %v7744_v24  ;;  %v8417_v4 = vsel %vm7353_vm8, %v18545_v8, 0 }
 0x669   : > { %v7285_v29 = vld [vmem:[#allocation6 + $0x169] sm:$0xff]  ;;  %v27085_v41 = vpack.c.bf16 %v7741_v18, %v7740_v1  ;;  %v27087_v43 = vpack.c.bf16 %v7743_v50, %v7742_v9  ;;  %v7748_v32 = vld [vmem:[#allocation6 + $0xda] sm:$0xff]  ;;  %v7753_v35 = vld [vmem:[#allocation6 + $0x112] sm:$0xff] }
 0x66a   : > { %v7746_v62 = vld [vmem:[#allocation6 + $0xc2] sm:$0xff]  ;;  %v7758_v56 = vld [vmem:[#allocation6 + $0x152] sm:$0xff]  ;;  %v7759_v57 = vld [vmem:[#allocation6 + $0x15a] sm:$0xff] }
 0x66b   : > { %v7286_v48 = vld [vmem:[#allocation6 + $0x171] sm:$0xff]  ;;  %v27095_v3 = vpack.c.bf16 %v7747_v53, %v7746_v62  ;;  %v7749_v14 = vld [vmem:[#allocation6 + $0xe2] sm:$0xff]  ;;  %v27119_v18 = vpack.c.bf16 %v7759_v57, %v7758_v56 }
 0x66c   : > { %v26988_v39 = vpack.c.bf16 %v7286_v48, %v7285_v29  ;;  %v7731_v29 = vld [vmem:[#allocation6 + $0xa] sm:$0xff]  ;;  %v7754_v6 = vld [vmem:[#allocation6 + $0x122] sm:$0xff]  ;;  %v7761_v50 = vld [vmem:[#allocation6 + $0x172] sm:$0xff] }
 0x66d   : > { %v7237_v48 = vld [vmem:[#allocation6 + $0x170] sm:$0xff]  ;;  %v7762_v7 = vpack.c.bf16 %v7731_v29, %v7730_v49  ;;  %v7751_v29 = vld [vmem:[#allocation6 + $0xfa] sm:$0xff]  ;;  %v18562_v62 = vld [vmem:[%s28079_s11 + $0x14] sm:$0x7] }
 0x66e   : > { %20854 = vmatmul.mubr.msk.bf16.gmra.mrb[188].mxu1 %vm802_vm9, %v26988_v39  ;;  %v7750_v49 = vld [vmem:[#allocation6 + $0xf2] sm:$0xff]  ;;  %v7760_v9 = vld [vmem:[#allocation6 + $0x16a] sm:$0xff] }
 0x66f   : > { %20859 = vmatprep.mubr.msk.bf16.mxu1 %vm802_vm9, %v7238_v20  ;;  %v7236_v20 = vld [vmem:[#allocation6 + $0x168] sm:$0xff]  ;;  %v27125_v24 = vpack.c.bf16 %v7761_v50, %v7760_v9  ;;  %v9212_v56 = vld [vmem:[#allocation6 + $0xb1] sm:$0xff] }
 0x670   : > { %v27058_v33 = vpack.c.bf16 %v7237_v48, %v7236_v20  ;;  %v27101_v48 = vpack.c.bf16 %v7749_v14, %v7748_v32  ;;  %v27103_v20 = vpack.c.bf16 %v7751_v29, %v7750_v49  ;;  %v8711_v32 = vsel %vm7353_vm8, %v18562_v62, 0  ;;  %v18579_v14 = vld [vmem:[%s28079_s11 + $0x18] sm:$0x7]  ;;  %v18613_v49 = vld [vmem:[%s28079_s11 + $0x20] sm:$0x7] }
 0x671   : > { %v9214_v57 = vld [vmem:[#allocation6 + $0xc9] sm:$0xff] }
 0x672   : > { %v9211_v9 = vld [vmem:[#allocation6 + $0xa9] sm:$0xff] }
 0x673   : > { %v9238_v50 = vpack.c.bf16 %v9212_v56, %v9211_v9 }
 0x676   : > { %20860 = vmatmul.mubr.msk.bf16.vlgmr.msra.gmra.mrb[160].mxu1 %vm802_vm9, %v26993_v19 }
 0x677   : > { %20863 = vmatprep.mubr.msk.bf16.mxu1 %vm802_vm9, %v26997_v55  ;;  %20892 = vmatpush3.bf16.msra.mxu1 %v7829_v30  ;;  %v7734_v30 = vld [vmem:[#allocation6 + $0x32] sm:$0xff] }
 0x678   : > { %23736 = vmatprep.subr.msk.bf16.mxu1 %vm7353_vm8, %v27002_v11  ;;  %v27067_v22 = vpack.c.bf16 %v7735_v28, %v7734_v30  ;;  %v27077_v11 = vpack.c.bf16 %v7737_v27, %v7736_v23  ;;  %v7755_v30 = vld [vmem:[#allocation6 + $0x12a] sm:$0xff]  ;;  %v7756_v23 = vld [vmem:[#allocation6 + $0x13a] sm:$0xff]  ;;  %v7757_v27 = vld [vmem:[#allocation6 + $0x142] sm:$0xff] }
 0x679   : > { %v27117_v1 = vpack.c.bf16 %v7757_v27, %v7756_v23  ;;  %v9209_v23 = vld [vmem:[#allocation6 + $0x91] sm:$0xff] }
 0x67e   : > { %20864 = vmatmul.mubr.msk.bf16.gmra.mrb[164].mxu1 %vm802_vm9, %v27010_v42 }
 0x67f   : > { %20867 = vmatprep.mubr.msk.bf16.mxu1 %vm802_vm9, %v27012_v51 }
 0x686   : > { %20868 = vmatmul.mubr.msk.bf16.gmra.mrb[168].mxu1 %vm802_vm9, %v27018_v17 }
 0x687   : > { %20871 = vmatprep.mubr.msk.bf16.mxu1 %vm802_vm9, %v27020_v26 }
 0x68e   : > { %20872 = vmatmul.mubr.msk.bf16.gmra.mrb[172].mxu1 %vm802_vm9, %v27026_v21 }
 0x68f   : > { %20875 = vmatprep.mubr.msk.bf16.mxu1 %vm802_vm9, %v27028_v47 }
 0x696   : > { %20876 = vmatmul.mubr.msk.bf16.gmra.mrb[176].mxu1 %vm802_vm9, %v27034_v36 }
 0x697   : > { %20879 = vmatprep.mubr.msk.bf16.mxu1 %vm802_vm9, %v27036_v44 }
 0x69e   : > { %20880 = vmatmul.mubr.msk.bf16.gmra.mrb[180].mxu1 %vm802_vm9, %v27042_v15 }
 0x69f   : > { %20883 = vmatprep.mubr.msk.bf16.mxu1 %vm802_vm9, %v27044_v31 }
 0x6a6   : > { %20884 = vmatmul.mubr.msk.bf16.gmra.mrb[184].mxu1 %vm802_vm9, %v27050_v0 }
 0x6a7   : > { %20887 = vmatprep.mubr.msk.bf16.mxu1 %vm802_vm9, %v27052_v25 }
 0x6ae   : > { %20888 = vmatmul.mubr.msk.bf16.gmra.mrb[188].mxu1 %vm802_vm9, %v27058_v33 }
 0x6af   : > { %20893 = vmatprep.mubr.msk.bf16.mxu1 %vm802_vm9, %v7762_v7  ;;  %v7752_v7 = vld [vmem:[#allocation6 + $0x10a] sm:$0xff] }
 0x6b0   : > { %v27109_v28 = vpack.c.bf16 %v7753_v35, %v7752_v7  ;;  %v9208_v7 = vld [vmem:[#allocation6 + $0x81] sm:$0xff]  ;;  %v9210_v35 = vld [vmem:[#allocation6 + $0x99] sm:$0xff] }
 0x6b1   : > { %v9237_v27 = vpack.c.bf16 %v9210_v35, %v9209_v23 }
 0x6b6   : > { %20894 = vmatmul.mubr.msk.bf16.vlgmr.msra.gmra.mrb[160].mxu1 %vm802_vm9, %v27063_v60 }
 0x6b7   : > { %20897 = vmatprep.mubr.msk.bf16.mxu1 %vm802_vm9, %v27067_v22  ;;  %20926 = vmatpush3.bf16.msra.mxu1 %v8123_v16  ;;  %v27111_v16 = vpack.c.bf16 %v7755_v30, %v7754_v6  ;;  %v9207_v6 = vld [vmem:[#allocation6 + $0x79] sm:$0xff] }
 0x6b8   : > { %23737 = vmatprep.subr.msk.bf16.mxu1 %vm7353_vm8, %v18545_v8  ;;  %v8054_v8 = vld [vmem:[#allocation6 + $0x180] sm:$0xff]  ;;  %v9236_v30 = vpack.c.bf16 %v9208_v7, %v9207_v6 }
 0x6be   : > { %20898 = vmatmul.mubr.msk.bf16.gmra.mrb[164].mxu1 %vm802_vm9, %v27077_v11 }
 0x6bf   : > { %20901 = vmatprep.mubr.msk.bf16.mxu1 %vm802_vm9, %v27079_v40 }
 0x6c6   : > { %20902 = vmatmul.mubr.msk.bf16.gmra.mrb[168].mxu1 %vm802_vm9, %v27085_v41 }
 0x6c7   : > { %20905 = vmatprep.mubr.msk.bf16.mxu1 %vm802_vm9, %v27087_v43 }
 0x6ce   : > { %20906 = vmatmul.mubr.msk.bf16.gmra.mrb[172].mxu1 %vm802_vm9, %v27093_v12 }
 0x6cf   : > { %20909 = vmatprep.mubr.msk.bf16.mxu1 %vm802_vm9, %v27095_v3 }
 0x6d6   : > { %20910 = vmatmul.mubr.msk.bf16.gmra.mrb[176].mxu1 %vm802_vm9, %v27101_v48 }
 0x6d7   : > { %20913 = vmatprep.mubr.msk.bf16.mxu1 %vm802_vm9, %v27103_v20 }
 0x6de   : > { %20914 = vmatmul.mubr.msk.bf16.gmra.mrb[180].mxu1 %vm802_vm9, %v27109_v28 }
 0x6df   : > { %20917 = vmatprep.mubr.msk.bf16.mxu1 %vm802_vm9, %v27111_v16 }
 0x6e6   : > { %20918 = vmatmul.mubr.msk.bf16.gmra.mrb[184].mxu1 %vm802_vm9, %v27117_v1 }
 0x6e7   : > { %20921 = vmatprep.mubr.msk.bf16.mxu1 %vm802_vm9, %v27119_v18 }
 0x6ee   : > { %20922 = vmatmul.mubr.msk.bf16.gmra.mrb[188].mxu1 %vm802_vm9, %v27125_v24 }
 0x6ef   : > { %20927 = vmatprep.mubr.msk.bf16.mxu1 %vm802_vm9, %v26993_v19  ;;  %v8055_v19 = vld [vmem:[#allocation6 + $0x188] sm:$0xff] }
 0x6f0   : > { %v27164_v53 = vpack.c.bf16 %v8055_v19, %v8054_v8  ;;  %v27400_v8 = vld [vmem:[%s28083_s15 + $0x8] sm:$0xf] }
 0x6f6   : > { %20928 = vmatmul.mubr.msk.bf16.vlgmr.msra.gmra.mrb[160].mxu1 %vm802_vm9, %v26997_v55 }
 0x6f7   : > { %20931 = vmatprep.mubr.msk.bf16.mxu1 %vm802_vm9, %v27010_v42  ;;  %20960 = vmatpush3.bf16.msra.mxu1 %v8417_v4  ;;  %v9213_v4 = vld [vmem:[#allocation6 + $0xc1] sm:$0xff] }
 0x6f8   : > { %23738 = vmatprep.subr.msk.bf16.mxu1 %vm7353_vm8, %v18562_v62  ;;  %v9239_v62 = vpack.c.bf16 %v9214_v57, %v9213_v4 }
 0x6fe   : > { %20932 = vmatmul.mubr.msk.bf16.gmra.mrb[164].mxu1 %vm802_vm9, %v27012_v51 }
 0x6ff   : > { %20935 = vmatprep.mubr.msk.bf16.mxu1 %vm802_vm9, %v27018_v17 }
 0x706   : > { %20936 = vmatmul.mubr.msk.bf16.gmra.mrb[168].mxu1 %vm802_vm9, %v27020_v26 }
 0x707   : > { %20939 = vmatprep.mubr.msk.bf16.mxu1 %vm802_vm9, %v27026_v21 }
 0x70e   : > { %20940 = vmatmul.mubr.msk.bf16.gmra.mrb[172].mxu1 %vm802_vm9, %v27028_v47 }
 0x70f   : > { %20943 = vmatprep.mubr.msk.bf16.mxu1 %vm802_vm9, %v27034_v36 }
 0x716   : > { %20944 = vmatmul.mubr.msk.bf16.gmra.mrb[176].mxu1 %vm802_vm9, %v27036_v44 }
 0x717   : > { %20947 = vmatprep.mubr.msk.bf16.mxu1 %vm802_vm9, %v27042_v15 }
 0x71e   : > { %20948 = vmatmul.mubr.msk.bf16.gmra.mrb[180].mxu1 %vm802_vm9, %v27044_v31 }
 0x71f   : > { %20951 = vmatprep.mubr.msk.bf16.mxu1 %vm802_vm9, %v27050_v0 }
 0x726   : > { %20952 = vmatmul.mubr.msk.bf16.gmra.mrb[184].mxu1 %vm802_vm9, %v27052_v25 }
 0x727   : > { %20955 = vmatprep.mubr.msk.bf16.mxu1 %vm802_vm9, %v27058_v33 }
 0x72e   : > { %20956 = vmatmul.mubr.msk.bf16.gmra.mrb[188].mxu1 %vm802_vm9, %v27164_v53 }
 0x72f   : > { %20961 = vmatprep.mubr.msk.bf16.mxu1 %vm802_vm9, %v26840_v13  ;;  %v8349_v13 = vld [vmem:[#allocation6 + $0x189] sm:$0xff] }
 0x736   : > { %20962 = vmatmul.mubr.msk.bf16.vlgmr.msra.gmra.mrb[160].mxu1 %vm802_vm9, %v26847_v46  ;;  %v8348_v46 = vld [vmem:[#allocation6 + $0x181] sm:$0xff] }
 0x737   : > { %20965 = vmatprep.mubr.msk.bf16.mxu1 %vm802_vm9, %v26871_v52  ;;  %20994 = vmatpush3.bf16.msra.mxu1 %v8711_v32  ;;  %v27203_v52 = vpack.c.bf16 %v8349_v13, %v8348_v46 }
 0x738   : > { %23739 = vmatprep.subr.msk.bf16.mxu1 %vm7353_vm8, %v18579_v14 }
 0x73e   : > { %20966 = vmatmul.mubr.msk.bf16.gmra.mrb[164].mxu1 %vm802_vm9, %v26876_v45  ;;  %v9006_v45 = vsel %vm7353_vm8, %v18579_v14, 0 }
 0x73f   : > { %20969 = vmatprep.mubr.msk.bf16.mxu1 %vm802_vm9, %v26893_v54  ;;  %v18596_v54 = vld [vmem:[%s28079_s11 + $0x1c] sm:$0x7] }
 0x746   : > { %20970 = vmatmul.mubr.msk.bf16.gmra.mrb[168].mxu1 %vm802_vm9, %v26898_v2  ;;  %v8642_v2 = vld [vmem:[#allocation6 + $0x182] sm:$0xff] }
 0x747   : > { %20973 = vmatprep.mubr.msk.bf16.mxu1 %vm802_vm9, %v26915_v37  ;;  %v8643_v37 = vld [vmem:[#allocation6 + $0x18a] sm:$0xff] }
 0x74e   : > { %20974 = vmatmul.mubr.msk.bf16.gmra.mrb[172].mxu1 %vm802_vm9, %v26920_v58  ;;  %v27242_v58 = vpack.c.bf16 %v8643_v37, %v8642_v2 }
 0x74f   : > { %20977 = vmatprep.mubr.msk.bf16.mxu1 %vm802_vm9, %v26937_v34 }
 0x756   : > { %20978 = vmatmul.mubr.msk.bf16.gmra.mrb[176].mxu1 %vm802_vm9, %v26942_v10 }
 0x757   : > { %20981 = vmatprep.mubr.msk.bf16.mxu1 %vm802_vm9, %v26960_v38 }
 0x75e   : > { %20982 = vmatmul.mubr.msk.bf16.gmra.mrb[180].mxu1 %vm802_vm9, %v26966_v59 }
 0x75f   : > { %20985 = vmatprep.mubr.msk.bf16.mxu1 %vm802_vm9, %v26980_v61 }
 0x766   : > { %20986 = vmatmul.mubr.msk.bf16.gmra.mrb[184].mxu1 %vm802_vm9, %v26982_v63 }
 0x767   : > { %20989 = vmatprep.mubr.msk.bf16.mxu1 %vm802_vm9, %v26988_v39 }
 0x76e   : > { %20990 = vmatmul.mubr.msk.bf16.gmra.mrb[188].mxu1 %vm802_vm9, %v27203_v52 }
 0x76f   : > { %20995 = vmatprep.mubr.msk.bf16.mxu1 %vm802_vm9, %v27063_v60  ;;  %v9300_v60 = vsel %vm7353_vm8, %v18596_v54, 0 }
 0x776   : > { %20996 = vmatmul.mubr.msk.bf16.vlgmr.msra.gmra.mrb[160].mxu1 %vm802_vm9, %v27067_v22 }
 0x777   : > { %20999 = vmatprep.mubr.msk.bf16.mxu1 %vm802_vm9, %v27077_v11  ;;  %21028 = vmatpush3.bf16.msra.mxu1 %v9006_v45 }
 0x778   : > { %23740 = vmatprep.subr.msk.bf16.mxu1 %vm7353_vm8, %v18596_v54 }
 0x77e   : > { %21000 = vmatmul.mubr.msk.bf16.gmra.mrb[164].mxu1 %vm802_vm9, %v27079_v40 }
 0x77f   : > { %21003 = vmatprep.mubr.msk.bf16.mxu1 %vm802_vm9, %v27085_v41 }
 0x786   : > { %21004 = vmatmul.mubr.msk.bf16.gmra.mrb[168].mxu1 %vm802_vm9, %v27087_v43 }
 0x787   : > { %21007 = vmatprep.mubr.msk.bf16.mxu1 %vm802_vm9, %v27093_v12 }
 0x78e   : > { %21008 = vmatmul.mubr.msk.bf16.gmra.mrb[172].mxu1 %vm802_vm9, %v27095_v3 }
 0x78f   : > { %21011 = vmatprep.mubr.msk.bf16.mxu1 %vm802_vm9, %v27101_v48 }
 0x796   : > { %21012 = vmatmul.mubr.msk.bf16.gmra.mrb[176].mxu1 %vm802_vm9, %v27103_v20 }
 0x797   : > { %21015 = vmatprep.mubr.msk.bf16.mxu1 %vm802_vm9, %v27109_v28 }
 0x79e   : > { %21016 = vmatmul.mubr.msk.bf16.gmra.mrb[180].mxu1 %vm802_vm9, %v27111_v16 }
 0x79f   : > { %21019 = vmatprep.mubr.msk.bf16.mxu1 %vm802_vm9, %v27117_v1 }
 0x7a6   : > { %21020 = vmatmul.mubr.msk.bf16.gmra.mrb[184].mxu1 %vm802_vm9, %v27119_v18 }
 0x7a7   : > { %21023 = vmatprep.mubr.msk.bf16.mxu1 %vm802_vm9, %v27125_v24 }
 0x7ae   : > { %21024 = vmatmul.mubr.msk.bf16.gmra.mrb[188].mxu1 %vm802_vm9, %v27242_v58 }
 0x7af   : > { %21029 = vmatprep.mubr.msk.bf16.mxu1 %vm802_vm9, %v26997_v55  ;;  %v8937_v55 = vld [vmem:[#allocation6 + $0x198] sm:$0xff] }
 0x7b6   : > { %21030 = vmatmul.mubr.msk.bf16.vlgmr.msra.gmra.mrb[160].mxu1 %vm802_vm9, %v27010_v42  ;;  %v8938_v42 = vld [vmem:[#allocation6 + $0x1a0] sm:$0xff] }
 0x7b7   : > { %21033 = vmatprep.mubr.msk.bf16.mxu1 %vm802_vm9, %v27012_v51  ;;  %21062 = vmatpush3.bf16.msra.mxu1 %v9300_v60  ;;  %v8954_v51 = vpack.c.bf16 %v8938_v42, %v8937_v55 }
 0x7b8   : > { %23741 = vmatprep.subr.msk.bf16.mxu1 %vm7353_vm8, %v18613_v49 }
 0x7be   : > { %21034 = vmatmul.mubr.msk.bf16.gmra.mrb[164].mxu1 %vm802_vm9, %v27018_v17  ;;  %v9202_v17 = vld [vmem:[#allocation6 + $0x39] sm:$0xff] }
 0x7bf   : > { %21037 = vmatprep.mubr.msk.bf16.mxu1 %vm802_vm9, %v27020_v26  ;;  %v9201_v26 = vld [vmem:[#allocation6 + $0x31] sm:$0xff] }
 0x7c6   : > { %21038 = vmatmul.mubr.msk.bf16.gmra.mrb[168].mxu1 %vm802_vm9, %v27026_v21  ;;  %v9233_v21 = vpack.c.bf16 %v9202_v17, %v9201_v26 }
 0x7c7   : > { %21041 = vmatprep.mubr.msk.bf16.mxu1 %vm802_vm9, %v27028_v47  ;;  %v18935_v47 = vld [vmem:[%s28083_s15 + $0x4] sm:$0xf] }
 0x7c8   : > { %23760 = vmatprep.subr.msk.bf16.mxu0 %vm10040_vm6, %v18935_v47 }
 0x7ce   : > { %21042 = vmatmul.mubr.msk.bf16.gmra.mrb[172].mxu1 %vm802_vm9, %v27034_v36  ;;  %v15238_v36 = vsel %vm10040_vm6, %v18935_v47, 0 }
 0x7cf   : > { %21045 = vmatprep.mubr.msk.bf16.mxu1 %vm802_vm9, %v27036_v44  ;;  %21742 = vmatpush3.bf16.msra.mxu0 %v15238_v36  ;;  %v9204_v44 = vld [vmem:[#allocation6 + $0x51] sm:$0xff] }
 0x7d6   : > { %21046 = vmatmul.mubr.msk.bf16.gmra.mrb[176].mxu1 %vm802_vm9, %v27042_v15  ;;  %v9206_v15 = vld [vmem:[#allocation6 + $0x69] sm:$0xff] }
 0x7d7   : > { %21049 = vmatprep.mubr.msk.bf16.mxu1 %vm802_vm9, %v27044_v31  ;;  %v9203_v31 = vld [vmem:[#allocation6 + $0x49] sm:$0xff] }
 0x7de   : > { %21050 = vmatmul.mubr.msk.bf16.gmra.mrb[180].mxu1 %vm802_vm9, %v27050_v0  ;;  %v9234_v0 = vpack.c.bf16 %v9204_v44, %v9203_v31 }
 0x7df   : > { %21053 = vmatprep.mubr.msk.bf16.mxu1 %vm802_vm9, %v27052_v25  ;;  %v9205_v25 = vld [vmem:[#allocation6 + $0x61] sm:$0xff] }
 0x7e0   : > { %v9235_v29 = vpack.c.bf16 %v9206_v15, %v9205_v25 }
 0x7e6   : > { %21054 = vmatmul.mubr.msk.bf16.gmra.mrb[184].mxu1 %vm802_vm9, %v27058_v33  ;;  %v9594_v33 = vsel %vm7353_vm8, %v18613_v49, 0 }
 0x7e7   : > { %21057 = vmatprep.mubr.msk.bf16.mxu1 %vm802_vm9, %v27164_v53  ;;  %v27407_v53 = vld [vmem:[%s28080_s12] ss:$0 sm:$0xff] }
 0x7ee   : > { %21058 = vmatmul.mubr.msk.bf16.gmra.mrb[188].mxu1 %vm802_vm9, %v8954_v51 }
 0x7ef   : > { %21063 = vmatprep.mubr.msk.bf16.mxu1 %vm802_vm9, %v9233_v21 }
 0x7f6   : > { %21064 = vmatmul.mubr.msk.bf16.vlgmr.msra.gmra.mrb[160].mxu1 %vm802_vm9, %v9234_v0 }
 0x7f7   : > { %21067 = vmatprep.mubr.msk.bf16.mxu1 %vm802_vm9, %v9235_v29  ;;  %21096 = vmatpush3.bf16.msra.mxu1 %v9594_v33 }
 0x7fe   : > { %21068 = vmatmul.mubr.msk.bf16.gmra.mrb[164].mxu1 %vm802_vm9, %v9236_v30 }
 0x7ff   : > { %21071 = vmatprep.mubr.msk.bf16.mxu1 %vm802_vm9, %v9237_v27 }
 0x806   : > { %21072 = vmatmul.mubr.msk.bf16.gmra.mrb[168].mxu1 %vm802_vm9, %v9238_v50 }
 0x807   : > { %21075 = vmatprep.mubr.msk.bf16.mxu1 %vm802_vm9, %v9239_v62 }
 0x80e   : > { %21076 = vmatmul.mubr.msk.bf16.gmra.mrb[172].mxu1 %vm802_vm9, %v26937_v34  ;;  %v9231_v34 = vld [vmem:[#allocation6 + $0x199] sm:$0xff] }
 0x80f   : > { %21079 = vmatprep.mubr.msk.bf16.mxu1 %vm802_vm9, %v26942_v10  ;;  %v9232_v10 = vld [vmem:[#allocation6 + $0x1a1] sm:$0xff] }
 0x810   : > { %v9248_v19 = vpack.c.bf16 %v9232_v10, %v9231_v34 }
 0x816   : > { %21080 = vmatmul.mubr.msk.bf16.gmra.mrb[176].mxu1 %vm802_vm9, %v26960_v38  ;;  %v9525_v38 = vld [vmem:[#allocation6 + $0x19a] sm:$0xff] }
 0x817   : > { %21083 = vmatprep.mubr.msk.bf16.mxu1 %vm802_vm9, %v26966_v59  ;;  %v9526_v59 = vld [vmem:[#allocation6 + $0x1a2] sm:$0xff] }
 0x81e   : > { %21084 = vmatmul.mubr.msk.bf16.gmra.mrb[180].mxu1 %vm802_vm9, %v26980_v61  ;;  %v9542_v61 = vpack.c.bf16 %v9526_v59, %v9525_v38 }
 0x81f   : > { %21087 = vmatprep.mubr.msk.bf16.mxu1 %vm802_vm9, %v26982_v63  ;;  %v14792_v63 = vld [vmem:[#allocation4 + $0x1b4] sm:$0xff] }
 0x826   : > { %21088 = vmatmul.mubr.msk.bf16.gmra.mrb[184].mxu1 %vm802_vm9, %v26988_v39  ;;  %v14793_v39 = vld [vmem:[#allocation4 + $0x1bc] sm:$0xff] }
 0x827   : > { %21091 = vmatprep.mubr.msk.bf16.mxu1 %vm802_vm9, %v27203_v52 }
 0x82e   : > { %21092 = vmatmul.mubr.msk.bf16.gmra.mrb[188].mxu1 %vm802_vm9, %v9248_v19 }
 0x82f   : > { %21097 = vmatprep.mubr.msk.bf16.mxu1 %vm802_vm9, %v27067_v22  ;;  %v14810_v22 = vpack.c.bf16 %v14793_v39, %v14792_v63 }
 0x831   : > { %21737 = vmatprep.mubr.msk.bf16.mxu0 %vm575_vm1, %v14810_v22 }
 0x836   : > { %21098 = vmatmul.mubr.msk.bf16.vlgmr.msra.gmra.mrb[160].mxu1 %vm802_vm9, %v27077_v11  ;;  %v14794_v11 = vld [vmem:[#allocation4 + $0x1cc] sm:$0xff] }
 0x837   : > { %21101 = vmatprep.mubr.msk.bf16.mxu1 %vm802_vm9, %v27079_v40  ;;  %v14795_v40 = vld [vmem:[#allocation4 + $0x1d4] sm:$0xff] }
 0x83e   : > { %21102 = vmatmul.mubr.msk.bf16.gmra.mrb[164].mxu1 %vm802_vm9, %v27085_v41  ;;  %v14811_v41 = vpack.c.bf16 %v14795_v40, %v14794_v11 }
 0x83f   : > { %21105 = vmatprep.mubr.msk.bf16.mxu1 %vm802_vm9, %v27087_v43  ;;  %v15139_v43 = vld [vmem:[#allocation7 + $0x3] sm:$0xff] }
 0x840   : > { %21738 = vmatmul.mubr.msk.bf16.gmra.mrb[60].mxu0 %vm575_vm1, %v14811_v41 }
 0x846   : > { %21106 = vmatmul.mubr.msk.bf16.gmra.mrb[168].mxu1 %vm802_vm9, %v27093_v12  ;;  %v15140_v12 = vld [vmem:[#allocation7 + $0xb] sm:$0xff] }
 0x847   : > { %21109 = vmatprep.mubr.msk.bf16.mxu1 %vm802_vm9, %v27095_v3  ;;  %v15171_v3 = vpack.c.bf16 %v15140_v12, %v15139_v43 }
 0x849   : > { %21743 = vmatprep.mubr.msk.bf16.mxu0 %vm575_vm1, %v15171_v3 }
 0x84e   : > { %21110 = vmatmul.mubr.msk.bf16.gmra.mrb[172].mxu1 %vm802_vm9, %v27101_v48  ;;  %v15141_v48 = vld [vmem:[#allocation7 + $0x1b] sm:$0xff] }
 0x84f   : > { %21113 = vmatprep.mubr.msk.bf16.mxu1 %vm802_vm9, %v27103_v20  ;;  %v15142_v20 = vld [vmem:[#allocation7 + $0x23] sm:$0xff] }
 0x856   : > { %21114 = vmatmul.mubr.msk.bf16.gmra.mrb[176].mxu1 %vm802_vm9, %v27109_v28  ;;  %v15138_v28 = vld [vmem:[%s28083_s15] sm:$0xf] }
 0x857   : > { %21117 = vmatprep.mubr.msk.bf16.mxu1 %vm802_vm9, %v27111_v16  ;;  %v15172_v16 = vpack.c.bf16 %v15142_v20, %v15141_v48  ;;  %23761 = vmatprep.subr.msk.bf16.mxu0 %vm10040_vm6, %v15138_v28  ;;  %v15450_v5 = vsel %vm10040_vm6, %v15138_v28, 0 }
 0x859   : > { %21744 = vmatmul.mubr.msk.bf16.vlgmr.msra.gmra.mrb[32].mxu0 %vm575_vm1, %v15172_v16 }
 0x85a   : > { %21776 = vmatpush3.bf16.msra.mxu0 %v15450_v5 }
 0x85b   : > { %23762 = vmatprep.subr.msk.bf16.mxu0 %vm10040_vm6, %v27400_v8 }
 0x85e   : > { %21118 = vmatmul.mubr.msk.bf16.gmra.mrb[180].mxu1 %vm802_vm9, %v27117_v1  ;;  %v15143_v1 = vld [vmem:[#allocation7 + $0x33] sm:$0xff] }
 0x85f   : > { %21121 = vmatprep.mubr.msk.bf16.mxu1 %vm802_vm9, %v27119_v18  ;;  %v15144_v18 = vld [vmem:[#allocation7 + $0x3b] sm:$0xff] }
 0x866   : > { %21122 = vmatmul.mubr.msk.bf16.gmra.mrb[184].mxu1 %vm802_vm9, %v27125_v24  ;;  %v15173_v24 = vpack.c.bf16 %v15144_v18, %v15143_v1 }
 0x867   : > { %21125 = vmatprep.mubr.msk.bf16.mxu1 %vm802_vm9, %v27242_v58 }
 0x868   : > { %21747 = vmatprep.mubr.msk.bf16.mxu0 %vm575_vm1, %v15173_v24 }
 0x86e   : > { %21126 = vmatmul.mubr.msk.bf16.gmra.mrb[188].mxu1 %vm802_vm9, %v9542_v61 }
 0x909   : > { %v21099_v32 = vpop.f32.mrb[160].mxu1 }
 0x90a   : > { %v9798_v14 = vadd.f32 %v21099_v32, %v27407_v53  ;;  %v9630_v13 = vpop.f32.mrb[161].mxu1 }
 0x90b   : > { %v9796_v46 = vadd.f32 %v27407_v53, %v9630_v13  ;;  %v21100_v52 = vpop.f32.mrb[162].mxu1 }
 0x90c   : > { %v9830_v45 = vmax.f32 %v9798_v14, 0.0  ;;  %v9799_v54 = vadd.f32 %v21100_v52, %v27407_v53  ;;  %v9633_v2 = vpop.f32.mrb[163].mxu1 }
 0x90d   : > { %v9828_v37 = vmax.f32 %v9796_v46, 0.0  ;;  %v9797_v58 = vadd.f32 %v27407_v53, %v9633_v2 }
 0x90e   : > { %9863 = vst.msk [vmem:[#allocation7 + $0x63] sm:$0xff] %vm575_vm1, %v9830_v45  ;;  %v9831_v60 = vmax.f32 %v9799_v54, 0.0 }
 0x90f   : > { %9861 = vst.msk [vmem:[#allocation7 + $0x4b] sm:$0xff] %vm575_vm1, %v9828_v37  ;;  %v9829_v49 = vmax.f32 %v9797_v58, 0.0 }
 0x910   : > { %9864 = vst.msk [vmem:[#allocation7 + $0x6b] sm:$0xff] %vm575_vm1, %v9831_v60 }
 0x911   : > { %9862 = vst.msk [vmem:[#allocation7 + $0x53] sm:$0xff] %vm575_vm1, %v9829_v49  ;;  %v21103_v55 = vpop.f32.mrb[164].mxu1 }
 0x912   : > { %v9802_v42 = vadd.f32 %v21103_v55, %v27407_v53  ;;  %v9646_v51 = vpop.f32.mrb[165].mxu1 }
 0x913   : > { %v9800_v17 = vadd.f32 %v27407_v53, %v9646_v51  ;;  %v21104_v26 = vpop.f32.mrb[166].mxu1 }
 0x914   : > { %v9834_v21 = vmax.f32 %v9802_v42, 0.0  ;;  %v9803_v47 = vadd.f32 %v21104_v26, %v27407_v53  ;;  %v9649_v36 = vpop.f32.mrb[167].mxu1 }
 0x915   : > { %v9832_v44 = vmax.f32 %v9800_v17, 0.0  ;;  %v9801_v15 = vadd.f32 %v27407_v53, %v9649_v36  ;;  %v15147_v6 = vld [vmem:[#allocation7 + $0x63] sm:$0xff] }
 0x916   : > { %9867 = vst.msk [vmem:[#allocation7 + $0x93] sm:$0xff] %vm575_vm1, %v9834_v21  ;;  %v9835_v31 = vmax.f32 %v9803_v47, 0.0  ;;  %v15145_v33 = vld [vmem:[#allocation7 + $0x4b] sm:$0xff] }
 0x917   : > { %9865 = vst.msk [vmem:[#allocation7 + $0x7b] sm:$0xff] %vm575_vm1, %v9832_v44  ;;  %v9833_v0 = vmax.f32 %v9801_v15, 0.0  ;;  %v15148_v25 = vld [vmem:[#allocation7 + $0x6b] sm:$0xff] }
 0x918   : > { %9868 = vst.msk [vmem:[#allocation7 + $0x9b] sm:$0xff] %vm575_vm1, %v9835_v31  ;;  %v15146_v29 = vld [vmem:[#allocation7 + $0x53] sm:$0xff]  ;;  %v27428_v27 = vpack.c.bf16 %v15148_v25, %v15147_v6 }
 0x919   : > { %9866 = vst.msk [vmem:[#allocation7 + $0x83] sm:$0xff] %vm575_vm1, %v9833_v0  ;;  %v21107_v7 = vpop.f32.mrb[168].mxu1  ;;  %v27425_v35 = vpack.c.bf16 %v15146_v29, %v15145_v33 }
 0x91a   : > { %v9806_v30 = vadd.f32 %v21107_v7, %v27407_v53  ;;  %v9662_v23 = vpop.f32.mrb[169].mxu1 }
 0x91b   : > { %v9804_v56 = vadd.f32 %v27407_v53, %v9662_v23  ;;  %v21108_v57 = vpop.f32.mrb[170].mxu1  ;;  %21748 = vmatmul.mubr.msk.bf16.gmra.mrb[36].mxu0 %vm575_vm1, %v27425_v35 }
 0x91c   : > { %v9838_v9 = vmax.f32 %v9806_v30, 0.0  ;;  %v9807_v50 = vadd.f32 %v21108_v57, %v27407_v53  ;;  %v9665_v4 = vpop.f32.mrb[171].mxu1  ;;  %21751 = vmatprep.mubr.msk.bf16.mxu0 %vm575_vm1, %v27428_v27 }
 0x91d   : > { %v9836_v62 = vmax.f32 %v9804_v56, 0.0  ;;  %v9805_v34 = vadd.f32 %v27407_v53, %v9665_v4  ;;  %v15151_v22 = vld [vmem:[#allocation7 + $0x93] sm:$0xff] }
 0x91e   : > { %9871 = vst.msk [vmem:[#allocation7 + $0xc3] sm:$0xff] %vm575_vm1, %v9838_v9  ;;  %v9839_v10 = vmax.f32 %v9807_v50, 0.0  ;;  %v15149_v59 = vld [vmem:[#allocation7 + $0x7b] sm:$0xff] }
 0x91f   : > { %9869 = vst.msk [vmem:[#allocation7 + $0xab] sm:$0xff] %vm575_vm1, %v9836_v62  ;;  %v9837_v19 = vmax.f32 %v9805_v34, 0.0  ;;  %v15152_v38 = vld [vmem:[#allocation7 + $0x9b] sm:$0xff] }
 0x920   : > { %9872 = vst.msk [vmem:[#allocation7 + $0xcb] sm:$0xff] %vm575_vm1, %v9839_v10  ;;  %v15150_v61 = vld [vmem:[#allocation7 + $0x83] sm:$0xff]  ;;  %v27444_v41 = vpack.c.bf16 %v15152_v38, %v15151_v22 }
 0x921   : > { %9870 = vst.msk [vmem:[#allocation7 + $0xb3] sm:$0xff] %vm575_vm1, %v9837_v19  ;;  %v21111_v63 = vpop.f32.mrb[172].mxu1  ;;  %v27441_v39 = vpack.c.bf16 %v15150_v61, %v15149_v59 }
 0x922   : > { %v9810_v11 = vadd.f32 %v21111_v63, %v27407_v53  ;;  %v9678_v40 = vpop.f32.mrb[173].mxu1 }
 0x923   : > { %v9808_v43 = vadd.f32 %v27407_v53, %v9678_v40  ;;  %v21112_v12 = vpop.f32.mrb[174].mxu1  ;;  %21752 = vmatmul.mubr.msk.bf16.gmra.mrb[40].mxu0 %vm575_vm1, %v27441_v39 }
 0x924   : > { %v9842_v3 = vmax.f32 %v9810_v11, 0.0  ;;  %v9811_v48 = vadd.f32 %v21112_v12, %v27407_v53  ;;  %v9681_v20 = vpop.f32.mrb[175].mxu1  ;;  %21755 = vmatprep.mubr.msk.bf16.mxu0 %vm575_vm1, %v27444_v41 }
 0x925   : > { %v9840_v28 = vmax.f32 %v9808_v43, 0.0  ;;  %v9809_v16 = vadd.f32 %v27407_v53, %v9681_v20  ;;  %v15155_v46 = vld [vmem:[#allocation7 + $0xc3] sm:$0xff] }
 0x926   : > { %9875 = vst.msk [vmem:[#allocation7 + $0xf3] sm:$0xff] %vm575_vm1, %v9842_v3  ;;  %v9843_v5 = vmax.f32 %v9811_v48, 0.0  ;;  %v15153_v24 = vld [vmem:[#allocation7 + $0xab] sm:$0xff] }
 0x927   : > { %9873 = vst.msk [vmem:[#allocation7 + $0xdb] sm:$0xff] %vm575_vm1, %v9840_v28  ;;  %v9841_v1 = vmax.f32 %v9809_v16, 0.0  ;;  %v15156_v18 = vld [vmem:[#allocation7 + $0xcb] sm:$0xff] }
 0x928   : > { %9876 = vst.msk [vmem:[#allocation7 + $0xfb] sm:$0xff] %vm575_vm1, %v9843_v5  ;;  %v15154_v32 = vld [vmem:[#allocation7 + $0xb3] sm:$0xff]  ;;  %v27460_v54 = vpack.c.bf16 %v15156_v18, %v15155_v46 }
 0x929   : > { %9874 = vst.msk [vmem:[#allocation7 + $0xe3] sm:$0xff] %vm575_vm1, %v9841_v1  ;;  %v21115_v14 = vpop.f32.mrb[176].mxu1  ;;  %v27457_v13 = vpack.c.bf16 %v15154_v32, %v15153_v24 }
 0x92a   : > { %v9814_v52 = vadd.f32 %v21115_v14, %v27407_v53  ;;  %v9694_v45 = vpop.f32.mrb[177].mxu1 }
 0x92b   : > { %v9812_v2 = vadd.f32 %v27407_v53, %v9694_v45  ;;  %v21116_v37 = vpop.f32.mrb[178].mxu1  ;;  %21756 = vmatmul.mubr.msk.bf16.gmra.mrb[44].mxu0 %vm575_vm1, %v27457_v13 }
 0x92c   : > { %v9846_v58 = vmax.f32 %v9814_v52, 0.0  ;;  %v9815_v60 = vadd.f32 %v21116_v37, %v27407_v53  ;;  %v9697_v49 = vpop.f32.mrb[179].mxu1  ;;  %21759 = vmatprep.mubr.msk.bf16.mxu0 %vm575_vm1, %v27460_v54 }
 0x92d   : > { %v9844_v55 = vmax.f32 %v9812_v2, 0.0  ;;  %v9813_v42 = vadd.f32 %v27407_v53, %v9697_v49  ;;  %v15159_v15 = vld [vmem:[#allocation7 + $0xf3] sm:$0xff] }
 0x92e   : > { %9879 = vst.msk [vmem:[#allocation7 + $0x123] sm:$0xff] %vm575_vm1, %v9846_v58  ;;  %v9847_v51 = vmax.f32 %v9815_v60, 0.0  ;;  %v15157_v21 = vld [vmem:[#allocation7 + $0xdb] sm:$0xff] }
 0x92f   : > { %9877 = vst.msk [vmem:[#allocation7 + $0x10b] sm:$0xff] %vm575_vm1, %v9844_v55  ;;  %v9845_v17 = vmax.f32 %v9813_v42, 0.0  ;;  %v15160_v26 = vld [vmem:[#allocation7 + $0xfb] sm:$0xff]  ;;  %v15091_v42 = vld [vmem:[#allocation7 + $0x8] sm:$0xff] }
 0x930   : > { %9880 = vst.msk [vmem:[#allocation7 + $0x12b] sm:$0xff] %vm575_vm1, %v9847_v51  ;;  %v15158_v47 = vld [vmem:[#allocation7 + $0xe3] sm:$0xff]  ;;  %v27476_v25 = vpack.c.bf16 %v15160_v26, %v15159_v15 }
 0x931   : > { %9878 = vst.msk [vmem:[#allocation7 + $0x113] sm:$0xff] %vm575_vm1, %v9845_v17  ;;  %v21119_v36 = vpop.f32.mrb[180].mxu1  ;;  %v27473_v44 = vpack.c.bf16 %v15158_v47, %v15157_v21  ;;  %v15090_v55 = vld [vmem:[#allocation7] sm:$0xff] }
 0x932   : > { %v9818_v31 = vadd.f32 %v21119_v36, %v27407_v53  ;;  %v9710_v0 = vpop.f32.mrb[181].mxu1  ;;  %v15122_v47 = vpack.c.bf16 %v15091_v42, %v15090_v55  ;;  %v15093_v15 = vld [vmem:[#allocation7 + $0x20] sm:$0xff]  ;;  %v15614_v42 = vld [vmem:[#allocation7 + $0xe] sm:$0xff] }
 0x933   : > { %v9816_v33 = vadd.f32 %v27407_v53, %v9710_v0  ;;  %v21120_v29 = vpop.f32.mrb[182].mxu1  ;;  %21760 = vmatmul.mubr.msk.bf16.gmra.mrb[48].mxu0 %vm575_vm1, %v27473_v44  ;;  %v15095_v0 = vld [vmem:[#allocation7 + $0x38] sm:$0xff]  ;;  %v15613_v55 = vld [vmem:[#allocation7 + $0x6] sm:$0xff] }
 0x934   : > { %v9850_v7 = vmax.f32 %v9818_v31, 0.0  ;;  %v9819_v6 = vadd.f32 %v21120_v29, %v27407_v53  ;;  %v9713_v30 = vpop.f32.mrb[183].mxu1  ;;  %21763 = vmatprep.mubr.msk.bf16.mxu0 %vm575_vm1, %v27476_v25  ;;  %v15094_v31 = vld [vmem:[#allocation7 + $0x30] sm:$0xff] }
 0x935   : > { %v9848_v23 = vmax.f32 %v9816_v33, 0.0  ;;  %v9817_v56 = vadd.f32 %v27407_v53, %v9713_v30  ;;  %v15163_v19 = vld [vmem:[#allocation7 + $0x123] sm:$0xff]  ;;  %v15124_v29 = vpack.c.bf16 %v15095_v0, %v15094_v31  ;;  %v15097_v30 = vld [vmem:[#allocation7 + $0x50] sm:$0xff] }
 0x936   : > { %9883 = vst.msk [vmem:[#allocation7 + $0x153] sm:$0xff] %vm575_vm1, %v9850_v7  ;;  %v9851_v57 = vmax.f32 %v9819_v6, 0.0  ;;  %v15161_v4 = vld [vmem:[#allocation7 + $0x10b] sm:$0xff]  ;;  %v15712_v7 = vsel %vm10040_vm6, %v27400_v8, 0  ;;  %v15618_v31 = vld [vmem:[#allocation7 + $0x3e] sm:$0xff] }
 0x937   : > { %9881 = vst.msk [vmem:[#allocation7 + $0x13b] sm:$0xff] %vm575_vm1, %v9848_v23  ;;  %v9849_v9 = vmax.f32 %v9817_v56, 0.0  ;;  %v15164_v50 = vld [vmem:[#allocation7 + $0x12b] sm:$0xff] }
 0x938   : > { %9884 = vst.msk [vmem:[#allocation7 + $0x15b] sm:$0xff] %vm575_vm1, %v9851_v57  ;;  %v15162_v62 = vld [vmem:[#allocation7 + $0x113] sm:$0xff]  ;;  %v27492_v61 = vpack.c.bf16 %v15164_v50, %v15163_v19  ;;  %v27531_v6 = vld [vmem:[%s28083_s15 + $0xc] sm:$0xf]  ;;  %v15101_v50 = vld [vmem:[#allocation7 + $0x80] sm:$0xff] }
 0x939   : > { %9882 = vst.msk [vmem:[#allocation7 + $0x143] sm:$0xff] %vm575_vm1, %v9849_v9  ;;  %v21123_v34 = vpop.f32.mrb[184].mxu1  ;;  %v27489_v10 = vpack.c.bf16 %v15162_v62, %v15161_v4  ;;  %v15099_v23 = vld [vmem:[#allocation7 + $0x68] sm:$0xff]  ;;  %v15098_v9 = vld [vmem:[#allocation7 + $0x60] sm:$0xff]  ;;  %v15103_v4 = vld [vmem:[#allocation7 + $0x98] sm:$0xff] }
 0x93a   : > { %v9822_v38 = vadd.f32 %v21123_v34, %v27407_v53  ;;  %v9726_v59 = vpop.f32.mrb[185].mxu1  ;;  %v15096_v56 = vld [vmem:[#allocation7 + $0x48] sm:$0xff]  ;;  %v27539_v8 = vpack.c.bf16 %v15099_v23, %v15098_v9  ;;  %v15100_v62 = vld [vmem:[#allocation7 + $0x78] sm:$0xff]  ;;  %v15102_v19 = vld [vmem:[#allocation7 + $0x90] sm:$0xff] }
 0x93b   : > { %v9820_v63 = vadd.f32 %v27407_v53, %v9726_v59  ;;  %v21124_v22 = vpop.f32.mrb[186].mxu1  ;;  %21764 = vmatmul.mubr.msk.bf16.gmra.mrb[52].mxu0 %vm575_vm1, %v27489_v10  ;;  %v27537_v57 = vpack.c.bf16 %v15097_v30, %v15096_v56  ;;  %v27545_v34 = vpack.c.bf16 %v15101_v50, %v15100_v62  ;;  %v15105_v59 = vld [vmem:[#allocation7 + $0xb0] sm:$0xff]  ;;  %v15621_v56 = vld [vmem:[#allocation7 + $0x66] sm:$0xff] }
 0x93c   : > { %v9854_v11 = vmax.f32 %v9822_v38, 0.0  ;;  %v9823_v40 = vadd.f32 %v21124_v22, %v27407_v53  ;;  %v9729_v43 = vpop.f32.mrb[187].mxu1  ;;  %21767 = vmatprep.mubr.msk.bf16.mxu0 %vm575_vm1, %v27492_v61  ;;  %v27547_v38 = vpack.c.bf16 %v15103_v4, %v15102_v19  ;;  %v15104_v22 = vld [vmem:[#allocation7 + $0xa8] sm:$0xff]  ;;  %v15620_v23 = vld [vmem:[#allocation7 + $0x56] sm:$0xff] }
 0x93d   : > { %v9852_v12 = vmax.f32 %v9820_v63, 0.0  ;;  %v9821_v3 = vadd.f32 %v27407_v53, %v9729_v43  ;;  %v15167_v24 = vld [vmem:[#allocation7 + $0x153] sm:$0xff]  ;;  %v15107_v63 = vld [vmem:[#allocation7 + $0xc8] sm:$0xff] }
 0x93e   : > { %9887 = vst.msk [vmem:[#allocation7 + $0x183] sm:$0xff] %vm575_vm1, %v9854_v11  ;;  %v9855_v48 = vmax.f32 %v9823_v40, 0.0  ;;  %v15165_v16 = vld [vmem:[#allocation7 + $0x13b] sm:$0xff]  ;;  %v27553_v11 = vpack.c.bf16 %v15105_v59, %v15104_v22  ;;  %v15619_v30 = vld [vmem:[#allocation7 + $0x4e] sm:$0xff]  ;;  %v15624_v62 = vld [vmem:[#allocation7 + $0x86] sm:$0xff] }
 0x93f   : > { %9885 = vst.msk [vmem:[#allocation7 + $0x16b] sm:$0xff] %vm575_vm1, %v9852_v12  ;;  %v9853_v20 = vmax.f32 %v9821_v3, 0.0  ;;  %v15168_v28 = vld [vmem:[#allocation7 + $0x15b] sm:$0xff]  ;;  %v15622_v9 = vld [vmem:[#allocation7 + $0x6e] sm:$0xff]  ;;  %v27598_v50 = vpack.c.bf16 %v15620_v23, %v15619_v30 }
 0x940   : > { %9888 = vst.msk [vmem:[#allocation7 + $0x18b] sm:$0xff] %vm575_vm1, %v9855_v48  ;;  %v15166_v5 = vld [vmem:[#allocation7 + $0x143] sm:$0xff]  ;;  %v27508_v46 = vpack.c.bf16 %v15168_v28, %v15167_v24  ;;  %v15111_v3 = vld [vmem:[#allocation7 + $0xf8] sm:$0xff]  ;;  %v15110_v28 = vld [vmem:[#allocation7 + $0xf0] sm:$0xff]  ;;  %v27600_v4 = vpack.c.bf16 %v15622_v9, %v15621_v56 }
 0x941   : > { %9886 = vst.msk [vmem:[#allocation7 + $0x173] sm:$0xff] %vm575_vm1, %v9853_v20  ;;  %v21127_v1 = vpop.f32.mrb[188].mxu1  ;;  %v27505_v18 = vpack.c.bf16 %v15166_v5, %v15165_v16  ;;  %v15106_v40 = vld [vmem:[#allocation7 + $0xc0] sm:$0xff]  ;;  %v15108_v48 = vld [vmem:[#allocation7 + $0xd8] sm:$0xff]  ;;  %v27563_v16 = vpack.c.bf16 %v15111_v3, %v15110_v28  ;;  %v15113_v5 = vld [vmem:[#allocation7 + $0x110] sm:$0xff] }
 0x942   : > { %v9826_v32 = vadd.f32 %v21127_v1, %v27407_v53  ;;  %v9742_v14 = vpop.f32.mrb[189].mxu1  ;;  %v27555_v43 = vpack.c.bf16 %v15107_v63, %v15106_v40  ;;  %v15109_v12 = vld [vmem:[#allocation7 + $0xe0] sm:$0xff]  ;;  %v15115_v1 = vld [vmem:[#allocation7 + $0x128] sm:$0xff]  ;;  %v15625_v19 = vld [vmem:[#allocation7 + $0x96] sm:$0xff] }
 0x943   : > { %v9824_v52 = vadd.f32 %v27407_v53, %v9742_v14  ;;  %v21128_v45 = vpop.f32.mrb[190].mxu1  ;;  %21768 = vmatmul.mubr.msk.bf16.gmra.mrb[56].mxu0 %vm575_vm1, %v27505_v18  ;;  %v27561_v20 = vpack.c.bf16 %v15109_v12, %v15108_v48  ;;  %v15112_v24 = vld [vmem:[#allocation7 + $0x108] sm:$0xff]  ;;  %v15114_v14 = vld [vmem:[#allocation7 + $0x120] sm:$0xff]  ;;  %v15628_v12 = vld [vmem:[#allocation7 + $0xb6] sm:$0xff] }
 0x944   : > { %v9858_v2 = vmax.f32 %v9826_v32, 0.0  ;;  %v9827_v37 = vadd.f32 %v21128_v45, %v27407_v53  ;;  %v9745_v58 = vpop.f32.mrb[191].mxu1  ;;  %21771 = vmatprep.mubr.msk.bf16.mxu0 %vm575_vm1, %v27508_v46  ;;  %v27569_v32 = vpack.c.bf16 %v15113_v5, %v15112_v24  ;;  %v15117_v45 = vld [vmem:[#allocation7 + $0x140] sm:$0xff]  ;;  %v15627_v40 = vld [vmem:[#allocation7 + $0xae] sm:$0xff] }
 0x945   : > { %v9856_v60 = vmax.f32 %v9824_v52, 0.0  ;;  %v9825_v49 = vadd.f32 %v27407_v53, %v9745_v58  ;;  %v15092_v53 = vld [vmem:[#allocation7 + $0x18] sm:$0xff]  ;;  %v27571_v52 = vpack.c.bf16 %v15115_v1, %v15114_v14  ;;  %v15629_v3 = vld [vmem:[#allocation7 + $0xc6] sm:$0xff]  ;;  %v15630_v48 = vld [vmem:[#allocation7 + $0xce] sm:$0xff]  ;;  %v27614_v28 = vpack.c.bf16 %v15628_v12, %v15627_v40 }
 0x946   : > { %9891 = vst.msk [vmem:[#allocation7 + $0x1b3] sm:$0xff] %vm575_vm1, %v9858_v2  ;;  %v9859_v51 = vmax.f32 %v9827_v37, 0.0  ;;  %v15169_v26 = vld [vmem:[#allocation7 + $0x16b] sm:$0xff]  ;;  %v15123_v33 = vpack.c.bf16 %v15093_v15, %v15092_v53  ;;  %v15119_v2 = vld [vmem:[#allocation7 + $0x158] sm:$0xff]  ;;  %v27616_v5 = vpack.c.bf16 %v15630_v48, %v15629_v3  ;;  %v19019_v9 = vld [vmem:[%s28083_s15 + $0x14] sm:$0xf] }
 0x947   : > { %9889 = vst.msk [vmem:[#allocation7 + $0x19b] sm:$0xff] %vm575_vm1, %v9856_v60  ;;  %v9857_v17 = vmax.f32 %v9825_v49, 0.0  ;;  %v15116_v37 = vld [vmem:[#allocation7 + $0x138] sm:$0xff]  ;;  %v15118_v60 = vld [vmem:[#allocation7 + $0x150] sm:$0xff]  ;;  %v15616_v53 = vld [vmem:[#allocation7 + $0x26] sm:$0xff]  ;;  %v16594_v12 = vsel %vm10040_vm6, %v19019_v9, 0 }
 0x948   : > { %9892 = vst.msk [vmem:[#allocation7 + $0x1bb] sm:$0xff] %vm575_vm1, %v9859_v51  ;;  %v15170_v21 = vld [vmem:[#allocation7 + $0x173] sm:$0xff]  ;;  %v27577_v58 = vpack.c.bf16 %v15117_v45, %v15116_v37  ;;  %v27579_v49 = vpack.c.bf16 %v15119_v2, %v15118_v60  ;;  %v15626_v59 = vld [vmem:[#allocation7 + $0x9e] sm:$0xff]  ;;  %v15632_v24 = vld [vmem:[#allocation7 + $0xe6] sm:$0xff] }
 0x949   : > { %9890 = vst.msk [vmem:[#allocation7 + $0x1a3] sm:$0xff] %vm575_vm1, %v9857_v17  ;;  %v27521_v36 = vpack.c.bf16 %v15170_v21, %v15169_v26  ;;  %v15121_v51 = vld [vmem:[#allocation7 + $0x170] sm:$0xff]  ;;  %v15120_v17 = vld [vmem:[#allocation7 + $0x168] sm:$0xff]  ;;  %v15645_v26 = vpack.c.bf16 %v15614_v42, %v15613_v55  ;;  %v27608_v22 = vpack.c.bf16 %v15626_v59, %v15625_v19  ;;  %v15631_v1 = vld [vmem:[#allocation7 + $0xde] sm:$0xff] }
 0x94a   : > { %v27585_v21 = vpack.c.bf16 %v15121_v51, %v15120_v17  ;;  %v15617_v15 = vld [vmem:[#allocation7 + $0x36] sm:$0xff]  ;;  %v15634_v45 = vld [vmem:[#allocation7 + $0xfe] sm:$0xff]  ;;  %v27622_v2 = vpack.c.bf16 %v15632_v24, %v15631_v1  ;;  %v15635_v60 = vld [vmem:[#allocation7 + $0x10e] sm:$0xff] }
 0x94b   : > { %21772 = vmatmul.mubr.msk.bf16.gmra.mrb[60].mxu0 %vm575_vm1, %v27521_v36  ;;  %v15633_v14 = vld [vmem:[#allocation7 + $0xf6] sm:$0xff]  ;;  %v15637_v42 = vld [vmem:[#allocation7 + $0x126] sm:$0xff]  ;;  %v15638_v51 = vld [vmem:[#allocation7 + $0x12e] sm:$0xff] }
 0x94c   : > { %21777 = vmatprep.mubr.msk.bf16.mxu0 %vm575_vm1, %v15122_v47  ;;  %v15615_v47 = vld [vmem:[#allocation7 + $0x1e] sm:$0xff]  ;;  %v27624_v37 = vpack.c.bf16 %v15634_v45, %v15633_v14  ;;  %v15636_v55 = vld [vmem:[#allocation7 + $0x116] sm:$0xff] }
 0x94d   : > { %v15646_v0 = vpack.c.bf16 %v15616_v53, %v15615_v47  ;;  %v27630_v17 = vpack.c.bf16 %v15636_v55, %v15635_v60  ;;  %v15639_v47 = vld [vmem:[#allocation7 + $0x13e] sm:$0xff]  ;;  %v15640_v53 = vld [vmem:[#allocation7 + $0x146] sm:$0xff]  ;;  %v15644_v30 = vld [vmem:[#allocation7 + $0x176] sm:$0xff] }
 0x94e   : > { %v15937_v59 = vld [vmem:[#allocation7 + $0x1b0] sm:$0xff]  ;;  %v19036_v3 = vld [vmem:[%s28083_s15 + $0x18] sm:$0xf] }
 0x94f   : > { %v15938_v19 = vld [vmem:[#allocation7 + $0x1b8] sm:$0xff]  ;;  %v16889_v55 = vsel %vm10040_vm6, %v19036_v3, 0 }
 0x950   : > { %v27689_v40 = vpack.c.bf16 %v15938_v19, %v15937_v59  ;;  %v16229_v1 = vld [vmem:[#allocation7 + $0x19b] sm:$0xff]  ;;  %v16231_v45 = vld [vmem:[#allocation7 + $0x1b3] sm:$0xff] }
 0x951   : > { %v16232_v14 = vld [vmem:[#allocation7 + $0x1bb] sm:$0xff] }
 0x952   : > { %v27732_v60 = vpack.c.bf16 %v16232_v14, %v16231_v45  ;;  %v23842_v19 = vld [vmem:[%s24076_s25 + $0x38] sm:$0xff]   ;;  %v23843_v59 = vld [vmem:[%s24076_s25 + $0x40] sm:$0xff]  }
 0x953   : > { %21778 = vmatmul.mubr.msk.bf16.vlgmr.msra.gmra.mrb[32].mxu0 %vm575_vm1, %v15123_v33  ;;  %v15647_v33 = vpack.c.bf16 %v15618_v31, %v15617_v15  ;;  %v15641_v15 = vld [vmem:[#allocation7 + $0x156] sm:$0xff]  ;;  %v15642_v31 = vld [vmem:[#allocation7 + $0x15e] sm:$0xff] }
 0x954   : > { %21810 = vmatpush3.bf16.msra.mxu0 %v15712_v7  ;;  %21781 = vmatprep.mubr.msk.bf16.mxu0 %vm575_vm1, %v15124_v29  ;;  %v16006_v29 = vsel %vm10040_vm6, %v27531_v6, 0  ;;  %v19002_v7 = vld [vmem:[%s28083_s15 + $0x10] sm:$0xf] }
 0x955   : > { %23763 = vmatprep.subr.msk.bf16.mxu0 %vm10040_vm6, %v27531_v6  ;;  %v15623_v6 = vld [vmem:[#allocation7 + $0x7e] sm:$0xff]  ;;  %v16300_v56 = vsel %vm10040_vm6, %v19002_v7, 0 }
 0x956   : > { %v27606_v63 = vpack.c.bf16 %v15624_v62, %v15623_v6  ;;  %v15935_v6 = vld [vmem:[#allocation7 + $0x198] sm:$0xff] }
 0x95b   : > { %21782 = vmatmul.mubr.msk.bf16.gmra.mrb[36].mxu0 %vm575_vm1, %v27537_v57 }
 0x95c   : > { %21785 = vmatprep.mubr.msk.bf16.mxu0 %vm575_vm1, %v27539_v8 }
 0x963   : > { %21786 = vmatmul.mubr.msk.bf16.gmra.mrb[40].mxu0 %vm575_vm1, %v27545_v34 }
 0x964   : > { %21789 = vmatprep.mubr.msk.bf16.mxu0 %vm575_vm1, %v27547_v38 }
 0x96b   : > { %21790 = vmatmul.mubr.msk.bf16.gmra.mrb[44].mxu0 %vm575_vm1, %v27553_v11 }
 0x96c   : > { %21793 = vmatprep.mubr.msk.bf16.mxu0 %vm575_vm1, %v27555_v43 }
 0x973   : > { %21794 = vmatmul.mubr.msk.bf16.gmra.mrb[48].mxu0 %vm575_vm1, %v27561_v20 }
 0x974   : > { %21797 = vmatprep.mubr.msk.bf16.mxu0 %vm575_vm1, %v27563_v16 }
 0x97b   : > { %21798 = vmatmul.mubr.msk.bf16.gmra.mrb[52].mxu0 %vm575_vm1, %v27569_v32 }
 0x97c   : > { %21801 = vmatprep.mubr.msk.bf16.mxu0 %vm575_vm1, %v27571_v52 }
 0x983   : > { %21802 = vmatmul.mubr.msk.bf16.gmra.mrb[56].mxu0 %vm575_vm1, %v27577_v58 }
 0x984   : > { %21805 = vmatprep.mubr.msk.bf16.mxu0 %vm575_vm1, %v27579_v49 }
 0x98b   : > { %21806 = vmatmul.mubr.msk.bf16.gmra.mrb[60].mxu0 %vm575_vm1, %v27585_v21 }
 0x98c   : > { %21811 = vmatprep.mubr.msk.bf16.mxu0 %vm575_vm1, %v15645_v26  ;;  %v27632_v26 = vpack.c.bf16 %v15638_v51, %v15637_v42  ;;  %v19053_v42 = vld [vmem:[%s28083_s15 + $0x1c] sm:$0xf]  ;;  %v16524_v51 = vld [vmem:[#allocation7 + $0x1a6] sm:$0xff] }
 0x993   : > { %21812 = vmatmul.mubr.msk.bf16.vlgmr.msra.gmra.mrb[32].mxu0 %vm575_vm1, %v15646_v0  ;;  %v27638_v0 = vpack.c.bf16 %v15640_v53, %v15639_v47 }
 0x994   : > { %21844 = vmatpush3.bf16.msra.mxu0 %v16006_v29  ;;  %21815 = vmatprep.mubr.msk.bf16.mxu0 %vm575_vm1, %v15647_v33  ;;  %v27640_v33 = vpack.c.bf16 %v15642_v31, %v15641_v15  ;;  %v15643_v29 = vld [vmem:[#allocation7 + $0x16e] sm:$0xff]  ;;  %v16525_v15 = vld [vmem:[#allocation7 + $0x1b6] sm:$0xff]  ;;  %v16526_v31 = vld [vmem:[#allocation7 + $0x1be] sm:$0xff] }
 0x995   : > { %23764 = vmatprep.subr.msk.bf16.mxu0 %vm10040_vm6, %v19002_v7  ;;  %v27646_v23 = vpack.c.bf16 %v15644_v30, %v15643_v29  ;;  %v27775_v29 = vpack.c.bf16 %v16526_v31, %v16525_v15  ;;  %v17183_v30 = vsel %vm10040_vm6, %v19053_v42, 0 }
 0x99b   : > { %21816 = vmatmul.mubr.msk.bf16.gmra.mrb[36].mxu0 %vm575_vm1, %v27598_v50 }
 0x99c   : > { %21819 = vmatprep.mubr.msk.bf16.mxu0 %vm575_vm1, %v27600_v4 }
 0x9a3   : > { %21820 = vmatmul.mubr.msk.bf16.gmra.mrb[40].mxu0 %vm575_vm1, %v27606_v63 }
 0x9a4   : > { %21823 = vmatprep.mubr.msk.bf16.mxu0 %vm575_vm1, %v27608_v22 }
 0x9ab   : > { %21824 = vmatmul.mubr.msk.bf16.gmra.mrb[44].mxu0 %vm575_vm1, %v27614_v28 }
 0x9ac   : > { %21827 = vmatprep.mubr.msk.bf16.mxu0 %vm575_vm1, %v27616_v5 }
 0x9b3   : > { %21828 = vmatmul.mubr.msk.bf16.gmra.mrb[48].mxu0 %vm575_vm1, %v27622_v2 }
 0x9b4   : > { %21831 = vmatprep.mubr.msk.bf16.mxu0 %vm575_vm1, %v27624_v37 }
 0x9bb   : > { %21832 = vmatmul.mubr.msk.bf16.gmra.mrb[52].mxu0 %vm575_vm1, %v27630_v17 }
 0x9bc   : > { %21835 = vmatprep.mubr.msk.bf16.mxu0 %vm575_vm1, %v27632_v26 }
 0x9c3   : > { %21836 = vmatmul.mubr.msk.bf16.gmra.mrb[56].mxu0 %vm575_vm1, %v27638_v0 }
 0x9c4   : > { %21839 = vmatprep.mubr.msk.bf16.mxu0 %vm575_vm1, %v27640_v33 }
 0x9cb   : > { %21840 = vmatmul.mubr.msk.bf16.gmra.mrb[60].mxu0 %vm575_vm1, %v27646_v23 }
 0x9cc   : > { %21845 = vmatprep.mubr.msk.bf16.mxu0 %vm575_vm1, %v27537_v57  ;;  %v15934_v57 = vld [vmem:[#allocation7 + $0x188] sm:$0xff] }
 0x9d3   : > { %21846 = vmatmul.mubr.msk.bf16.vlgmr.msra.gmra.mrb[32].mxu0 %vm575_vm1, %v27539_v8  ;;  %v15936_v8 = vld [vmem:[#allocation7 + $0x1a0] sm:$0xff] }
 0x9d4   : > { %21849 = vmatprep.mubr.msk.bf16.mxu0 %vm575_vm1, %v27545_v34  ;;  %21878 = vmatpush3.bf16.msra.mxu0 %v16300_v56  ;;  %v15933_v34 = vld [vmem:[#allocation7 + $0x180] sm:$0xff]  ;;  %v27683_v62 = vpack.c.bf16 %v15936_v8, %v15935_v6  ;;  %v23837_v8 = vld [vmem:[%s24076_s25 + $0x10] sm:$0xff]   ;;  %v23840_v6 = vld [vmem:[%s24076_s25 + $0x28] sm:$0xff]  }
 0x9d5   : > { %23765 = vmatprep.subr.msk.bf16.mxu0 %vm10040_vm6, %v19019_v9  ;;  %v27681_v7 = vpack.c.bf16 %v15934_v57, %v15933_v34  ;;  %v19070_v56 = vld [vmem:[%s28083_s15 + $0x20] sm:$0xf]  ;;  %v23836_v57 = vld [vmem:[%s24076_s25 + $0x8] sm:$0xff]   ;;  %v23838_v34 = vld [vmem:[%s24076_s25 + $0x18] sm:$0xff]  }
 0x9d6   : > { %v23833_v9 = vld [vmem:[%s28084_s16] sm:$0xff]  }
 0x9db   : > { %21850 = vmatmul.mubr.msk.bf16.gmra.mrb[36].mxu0 %vm575_vm1, %v27547_v38 }
 0x9dc   : > { %21853 = vmatprep.mubr.msk.bf16.mxu0 %vm575_vm1, %v27553_v11 }
 0x9e3   : > { %21854 = vmatmul.mubr.msk.bf16.gmra.mrb[40].mxu0 %vm575_vm1, %v27555_v43 }
 0x9e4   : > { %21857 = vmatprep.mubr.msk.bf16.mxu0 %vm575_vm1, %v27561_v20 }
 0x9eb   : > { %21858 = vmatmul.mubr.msk.bf16.gmra.mrb[44].mxu0 %vm575_vm1, %v27563_v16 }
 0x9ec   : > { %21861 = vmatprep.mubr.msk.bf16.mxu0 %vm575_vm1, %v27569_v32 }
 0x9f3   : > { %21862 = vmatmul.mubr.msk.bf16.gmra.mrb[48].mxu0 %vm575_vm1, %v27571_v52 }
 0x9f4   : > { %21865 = vmatprep.mubr.msk.bf16.mxu0 %vm575_vm1, %v27577_v58 }
 0x9fb   : > { %21866 = vmatmul.mubr.msk.bf16.gmra.mrb[52].mxu0 %vm575_vm1, %v27579_v49 }
 0x9fc   : > { %21869 = vmatprep.mubr.msk.bf16.mxu0 %vm575_vm1, %v27585_v21 }
 0xa03   : > { %21870 = vmatmul.mubr.msk.bf16.gmra.mrb[56].mxu0 %vm575_vm1, %v27681_v7 }
 0xa04   : > { %21873 = vmatprep.mubr.msk.bf16.mxu0 %vm575_vm1, %v27683_v62 }
 0xa0b   : > { %21874 = vmatmul.mubr.msk.bf16.gmra.mrb[60].mxu0 %vm575_vm1, %v27689_v40 }
 0xa0c   : > { %21879 = vmatprep.mubr.msk.bf16.mxu0 %vm575_vm1, %v27425_v35  ;;  %v16228_v35 = vld [vmem:[#allocation7 + $0x18b] sm:$0xff] }
 0xa13   : > { %21880 = vmatmul.mubr.msk.bf16.vlgmr.msra.gmra.mrb[32].mxu0 %vm575_vm1, %v27428_v27  ;;  %v16230_v27 = vld [vmem:[#allocation7 + $0x1a3] sm:$0xff] }
 0xa14   : > { %21883 = vmatprep.mubr.msk.bf16.mxu0 %vm575_vm1, %v27441_v39  ;;  %21912 = vmatpush3.bf16.msra.mxu0 %v16594_v12  ;;  %v16227_v39 = vld [vmem:[#allocation7 + $0x183] sm:$0xff]  ;;  %v27726_v24 = vpack.c.bf16 %v16230_v27, %v16229_v1  ;;  %v23845_v12 = vld [vmem:[%s24076_s25 + $0x50] sm:$0xff]   ;;  %v27914_v1 = vld [vmem:[%s28085_s17] ss:$0 sm:$0xff] }
 0xa15   : > { %23766 = vmatprep.subr.msk.bf16.mxu0 %vm10040_vm6, %v19036_v3  ;;  %v27724_v48 = vpack.c.bf16 %v16228_v35, %v16227_v39  ;;  %v23846_v3 = vld [vmem:[%s24076_s25 + $0x58] sm:$0xff]   ;;  %v23847_v35 = vld [vmem:[%s24076_s25 + $0x60] sm:$0xff]   ;;  %v23848_v27 = vld [vmem:[%s24076_s25 + $0x68] sm:$0xff]  }
 0xa16   : > { %v23849_v39 = vld [vmem:[%s24076_s25 + $0x70] sm:$0xff]  }
 0xa1b   : > { %21884 = vmatmul.mubr.msk.bf16.gmra.mrb[36].mxu0 %vm575_vm1, %v27444_v41 }
 0xa1c   : > { %21887 = vmatprep.mubr.msk.bf16.mxu0 %vm575_vm1, %v27457_v13 }
 0xa23   : > { %21888 = vmatmul.mubr.msk.bf16.gmra.mrb[40].mxu0 %vm575_vm1, %v27460_v54 }
 0xa24   : > { %21891 = vmatprep.mubr.msk.bf16.mxu0 %vm575_vm1, %v27473_v44 }
 0xa2b   : > { %21892 = vmatmul.mubr.msk.bf16.gmra.mrb[44].mxu0 %vm575_vm1, %v27476_v25 }
 0xa2c   : > { %21895 = vmatprep.mubr.msk.bf16.mxu0 %vm575_vm1, %v27489_v10 }
 0xa33   : > { %21896 = vmatmul.mubr.msk.bf16.gmra.mrb[48].mxu0 %vm575_vm1, %v27492_v61 }
 0xa34   : > { %21899 = vmatprep.mubr.msk.bf16.mxu0 %vm575_vm1, %v27505_v18 }
 0xa3b   : > { %21900 = vmatmul.mubr.msk.bf16.gmra.mrb[52].mxu0 %vm575_vm1, %v27508_v46 }
 0xa3c   : > { %21903 = vmatprep.mubr.msk.bf16.mxu0 %vm575_vm1, %v27521_v36 }
 0xa43   : > { %21904 = vmatmul.mubr.msk.bf16.gmra.mrb[56].mxu0 %vm575_vm1, %v27724_v48 }
 0xa44   : > { %21907 = vmatprep.mubr.msk.bf16.mxu0 %vm575_vm1, %v27726_v24 }
 0xa4b   : > { %21908 = vmatmul.mubr.msk.bf16.gmra.mrb[60].mxu0 %vm575_vm1, %v27732_v60 }
 0xa4c   : > { %21913 = vmatprep.mubr.msk.bf16.mxu0 %vm575_vm1, %v27598_v50  ;;  %v16521_v50 = vld [vmem:[#allocation7 + $0x186] sm:$0xff] }
 0xa53   : > { %21914 = vmatmul.mubr.msk.bf16.vlgmr.msra.gmra.mrb[32].mxu0 %vm575_vm1, %v27600_v4  ;;  %v16522_v4 = vld [vmem:[#allocation7 + $0x18e] sm:$0xff] }
 0xa54   : > { %21917 = vmatprep.mubr.msk.bf16.mxu0 %vm575_vm1, %v27606_v63  ;;  %21946 = vmatpush3.bf16.msra.mxu0 %v16889_v55  ;;  %v16523_v63 = vld [vmem:[#allocation7 + $0x19e] sm:$0xff]  ;;  %v27767_v47 = vpack.c.bf16 %v16522_v4, %v16521_v50 }
 0xa55   : > { %23767 = vmatprep.subr.msk.bf16.mxu0 %vm10040_vm6, %v19053_v42  ;;  %v27769_v53 = vpack.c.bf16 %v16524_v51, %v16523_v63 }
 0xa5b   : > { %21918 = vmatmul.mubr.msk.bf16.gmra.mrb[36].mxu0 %vm575_vm1, %v27608_v22 }
 0xa5c   : > { %21921 = vmatprep.mubr.msk.bf16.mxu0 %vm575_vm1, %v27614_v28 }
 0xa63   : > { %21922 = vmatmul.mubr.msk.bf16.gmra.mrb[40].mxu0 %vm575_vm1, %v27616_v5 }
 0xa64   : > { %21925 = vmatprep.mubr.msk.bf16.mxu0 %vm575_vm1, %v27622_v2 }
 0xa6b   : > { %21926 = vmatmul.mubr.msk.bf16.gmra.mrb[44].mxu0 %vm575_vm1, %v27624_v37 }
 0xa6c   : > { %21929 = vmatprep.mubr.msk.bf16.mxu0 %vm575_vm1, %v27630_v17 }
 0xa73   : > { %21930 = vmatmul.mubr.msk.bf16.gmra.mrb[48].mxu0 %vm575_vm1, %v27632_v26 }
 0xa74   : > { %21933 = vmatprep.mubr.msk.bf16.mxu0 %vm575_vm1, %v27638_v0 }
 0xa7b   : > { %21934 = vmatmul.mubr.msk.bf16.gmra.mrb[52].mxu0 %vm575_vm1, %v27640_v33 }
 0xa7c   : > { %21937 = vmatprep.mubr.msk.bf16.mxu0 %vm575_vm1, %v27646_v23 }
 0xa83   : > { %21938 = vmatmul.mubr.msk.bf16.gmra.mrb[56].mxu0 %vm575_vm1, %v27767_v47 }
 0xa84   : > { %21941 = vmatprep.mubr.msk.bf16.mxu0 %vm575_vm1, %v27769_v53 }
 0xa8b   : > { %21942 = vmatmul.mubr.msk.bf16.gmra.mrb[60].mxu0 %vm575_vm1, %v27775_v29 }
 0xa8c   : > { %21947 = vmatprep.mubr.msk.bf16.mxu0 %vm575_vm1, %v27547_v38  ;;  %v16816_v38 = vld [vmem:[#allocation7 + $0x1c8] sm:$0xff] }
 0xa93   : > { %21948 = vmatmul.mubr.msk.bf16.vlgmr.msra.gmra.mrb[32].mxu0 %vm575_vm1, %v27553_v11  ;;  %v16817_v11 = vld [vmem:[#allocation7 + $0x1d0] sm:$0xff] }
 0xa94   : > { %21951 = vmatprep.mubr.msk.bf16.mxu0 %vm575_vm1, %v27555_v43  ;;  %21980 = vmatpush3.bf16.msra.mxu0 %v17183_v30  ;;  %v16818_v43 = vld [vmem:[#allocation7 + $0x1e0] sm:$0xff] }
 0xa95   : > { %23768 = vmatprep.subr.msk.bf16.mxu0 %vm10040_vm6, %v19070_v56 }
 0xa9b   : > { %21952 = vmatmul.mubr.msk.bf16.gmra.mrb[36].mxu0 %vm575_vm1, %v27561_v20  ;;  %v16819_v20 = vld [vmem:[#allocation7 + $0x1e8] sm:$0xff] }
 0xa9c   : > { %21955 = vmatprep.mubr.msk.bf16.mxu0 %vm575_vm1, %v27563_v16  ;;  %v16835_v16 = vpack.c.bf16 %v16817_v11, %v16816_v38 }
 0xaa3   : > { %21956 = vmatmul.mubr.msk.bf16.gmra.mrb[40].mxu0 %vm575_vm1, %v27569_v32  ;;  %v16836_v32 = vpack.c.bf16 %v16819_v20, %v16818_v43 }
 0xaa4   : > { %21959 = vmatprep.mubr.msk.bf16.mxu0 %vm575_vm1, %v27571_v52  ;;  %v16820_v52 = vld [vmem:[#allocation7 + $0x1f8] sm:$0xff] }
 0xaab   : > { %21960 = vmatmul.mubr.msk.bf16.gmra.mrb[44].mxu0 %vm575_vm1, %v27577_v58  ;;  %v16821_v58 = vld [vmem:[#allocation7 + $0x200] sm:$0xff] }
 0xaac   : > { %21963 = vmatprep.mubr.msk.bf16.mxu0 %vm575_vm1, %v27579_v49  ;;  %v16837_v49 = vpack.c.bf16 %v16821_v58, %v16820_v52 }
 0xab3   : > { %21964 = vmatmul.mubr.msk.bf16.gmra.mrb[48].mxu0 %vm575_vm1, %v27585_v21  ;;  %v17477_v21 = vsel %vm10040_vm6, %v19070_v56, 0 }
 0xab4   : > { %21967 = vmatprep.mubr.msk.bf16.mxu0 %vm575_vm1, %v27681_v7  ;;  %v23839_v7 = vld [vmem:[%s24076_s25 + $0x20] sm:$0xff]  }
 0xabb   : > { %21968 = vmatmul.mubr.msk.bf16.gmra.mrb[52].mxu0 %vm575_vm1, %v27683_v62  ;;  %v23841_v62 = vld [vmem:[%s24076_s25 + $0x30] sm:$0xff]  }
 0xabc   : > { %21971 = vmatprep.mubr.msk.bf16.mxu0 %vm575_vm1, %v27689_v40  ;;  %v23844_v40 = vld [vmem:[%s24076_s25 + $0x48] sm:$0xff]  }
 0xac3   : > { %21972 = vmatmul.mubr.msk.bf16.gmra.mrb[56].mxu0 %vm575_vm1, %v16835_v16 }
 0xac4   : > { %21975 = vmatprep.mubr.msk.bf16.mxu0 %vm575_vm1, %v16836_v32 }
 0xacb   : > { %21976 = vmatmul.mubr.msk.bf16.gmra.mrb[60].mxu0 %vm575_vm1, %v16837_v49 }
 0xacc   : > { %21981 = vmatprep.mubr.msk.bf16.mxu0 %vm575_vm1, %v27444_v41  ;;  %v17110_v41 = vld [vmem:[#allocation7 + $0x1cb] sm:$0xff] }
 0xad3   : > { %21982 = vmatmul.mubr.msk.bf16.vlgmr.msra.gmra.mrb[32].mxu0 %vm575_vm1, %v27457_v13  ;;  %v17111_v13 = vld [vmem:[#allocation7 + $0x1d3] sm:$0xff] }
 0xad4   : > { %21985 = vmatprep.mubr.msk.bf16.mxu0 %vm575_vm1, %v27460_v54  ;;  %22014 = vmatpush3.bf16.msra.mxu0 %v17477_v21  ;;  %v17112_v54 = vld [vmem:[#allocation7 + $0x1e3] sm:$0xff] }
 0xad5   : > { %22047 = vmatprep.subr.bf16.mxu0 %v23833_v9 }
 0xadb   : > { %21986 = vmatmul.mubr.msk.bf16.gmra.mrb[36].mxu0 %vm575_vm1, %v27473_v44  ;;  %v17113_v44 = vld [vmem:[#allocation7 + $0x1eb] sm:$0xff] }
 0xadc   : > { %21989 = vmatprep.mubr.msk.bf16.mxu0 %vm575_vm1, %v27476_v25  ;;  %v17129_v25 = vpack.c.bf16 %v17111_v13, %v17110_v41 }
 0xae3   : > { %21990 = vmatmul.mubr.msk.bf16.gmra.mrb[40].mxu0 %vm575_vm1, %v27489_v10  ;;  %v17130_v10 = vpack.c.bf16 %v17113_v44, %v17112_v54 }
 0xae4   : > { %21993 = vmatprep.mubr.msk.bf16.mxu0 %vm575_vm1, %v27492_v61  ;;  %v17114_v61 = vld [vmem:[#allocation7 + $0x1fb] sm:$0xff] }
 0xaeb   : > { %21994 = vmatmul.mubr.msk.bf16.gmra.mrb[44].mxu0 %vm575_vm1, %v27505_v18  ;;  %v17115_v18 = vld [vmem:[#allocation7 + $0x203] sm:$0xff] }
 0xaec   : > { %21997 = vmatprep.mubr.msk.bf16.mxu0 %vm575_vm1, %v27508_v46  ;;  %v17131_v46 = vpack.c.bf16 %v17115_v18, %v17114_v61 }
 0xaf3   : > { %21998 = vmatmul.mubr.msk.bf16.gmra.mrb[48].mxu0 %vm575_vm1, %v27521_v36  ;;  %v23834_v36 = vld [vmem:[%s28084_s16 + $0x8] sm:$0xff]  }
 0xaf4   : > { %22001 = vmatprep.mubr.msk.bf16.mxu0 %vm575_vm1, %v27724_v48  ;;  %v23850_v48 = vld [vmem:[%s24076_s25 + $0x78] sm:$0xff]  }
 0xafb   : > { %22002 = vmatmul.mubr.msk.bf16.gmra.mrb[52].mxu0 %vm575_vm1, %v27726_v24 }
 0xafc   : > { %22005 = vmatprep.mubr.msk.bf16.mxu0 %vm575_vm1, %v27732_v60 }
 0xb03   : > { %22006 = vmatmul.mubr.msk.bf16.gmra.mrb[56].mxu0 %vm575_vm1, %v17129_v25 }
 0xb04   : > { %22009 = vmatprep.mubr.msk.bf16.mxu0 %vm575_vm1, %v17130_v10 }
 0xb0b   : > { %22010 = vmatmul.mubr.msk.bf16.gmra.mrb[60].mxu0 %vm575_vm1, %v17131_v46 }
 0xb0c   : > { %22015 = vmatprep.mubr.msk.bf16.mxu0 %vm575_vm1, %v27608_v22  ;;  %v17404_v22 = vld [vmem:[#allocation7 + $0x1ce] sm:$0xff] }
 0xb13   : > { %22016 = vmatmul.mubr.msk.bf16.vlgmr.msra.gmra.mrb[32].mxu0 %vm575_vm1, %v27614_v28  ;;  %v17405_v28 = vld [vmem:[#allocation7 + $0x1d6] sm:$0xff] }
 0xb14   : > { %22019 = vmatprep.mubr.msk.bf16.mxu0 %vm575_vm1, %v27616_v5  ;;  %22048 = vmatpush3.bf16.msra.mxu0 %v23833_v9  ;;  %v17406_v5 = vld [vmem:[#allocation7 + $0x1e6] sm:$0xff] }
 0xb15   : > { %22049 = vmatprep.subr.bf16.mxu0 %v23834_v36 }
 0xb18   : > { %22050 = vmatpush3.bf16.msra.mxu0 %v23834_v36 }
 0xb1b   : > { %22020 = vmatmul.mubr.msk.bf16.gmra.mrb[36].mxu0 %vm575_vm1, %v27622_v2  ;;  %v17407_v2 = vld [vmem:[#allocation7 + $0x1ee] sm:$0xff] }
 0xb1c   : > { %22023 = vmatprep.mubr.msk.bf16.mxu0 %vm575_vm1, %v27624_v37  ;;  %v17423_v37 = vpack.c.bf16 %v17405_v28, %v17404_v22 }
 0xb23   : > { %22024 = vmatmul.mubr.msk.bf16.gmra.mrb[40].mxu0 %vm575_vm1, %v27630_v17  ;;  %v17424_v17 = vpack.c.bf16 %v17407_v2, %v17406_v5 }
 0xb24   : > { %22027 = vmatprep.mubr.msk.bf16.mxu0 %vm575_vm1, %v27632_v26  ;;  %v17408_v26 = vld [vmem:[#allocation7 + $0x1fe] sm:$0xff] }
 0xb2b   : > { %22028 = vmatmul.mubr.msk.bf16.gmra.mrb[44].mxu0 %vm575_vm1, %v27638_v0  ;;  %v17409_v0 = vld [vmem:[#allocation7 + $0x206] sm:$0xff] }
 0xb2c   : > { %22031 = vmatprep.mubr.msk.bf16.mxu0 %vm575_vm1, %v27640_v33  ;;  %v17425_v33 = vpack.c.bf16 %v17409_v0, %v17408_v26 }
 0xb33   : > { %22032 = vmatmul.mubr.msk.bf16.gmra.mrb[48].mxu0 %vm575_vm1, %v27646_v23  ;;  %v23835_v23 = vld [vmem:[%s24076_s25] sm:$0xff]   ;;  %s27922_s25 = scalar_lea.vmem [#allocation8], %s18096_s24  ;;  %s23855_s24 = sshll.u32 %s23916_s21, 4  ;;  %s23856_s24 = int_to_ptr.vmem [resolvable:$false] %s23855_s24 }
 0xb34   : > { %22035 = vmatprep.mubr.msk.bf16.mxu0 %vm575_vm1, %v27767_v47  ;;  %s18030_s20 = sshll.u32 %s27922_s25, 4  ;;  %s23857_s19 = scalar_lea.vmem %s23856_s24, 8192  ;;  %s28017_s20 = int_to_ptr.vmem [resolvable:$true] %s18030_s20 }
 0xb35   : > { %s23851_s23 = scalar_lea.vmem %s28017_s20, 4096  ;;  %p23858_p0 = scmp.lt.s32.totalorder %s28017_s20, %s23856_s24 }
 0xb36   : > { %p23852_p11 = scmp.ne.s32.totalorder %s28017_s20, %s23851_s23  ;;  %p23859_p1 = scmp.lt.s32.totalorder %s23857_s19, %s23851_s23 }
 0xb38   : > { %p23853_p12 = pnand %p23852_p11, %p24052_p5  ;;  %p23860_p2 = por %p23859_p1, %p23858_p0 }
 0xb3a   : > { %p23854_p13 = pneg %p23853_p12 }
 0xb3b   : > { %22036 = vmatmul.mubr.msk.bf16.gmra.mrb[52].mxu0 %vm575_vm1, %v27769_v53 }
 0xb3c   : > { %22039 = vmatprep.mubr.msk.bf16.mxu0 %vm575_vm1, %v27775_v29  ;;  %p23861_p3 = pnand %p23860_p2, %p23854_p13 }
 0xb43   : > { %22040 = vmatmul.mubr.msk.bf16.gmra.mrb[56].mxu0 %vm575_vm1, %v17423_v37 }
 0xb44   : > { %22043 = vmatprep.mubr.msk.bf16.mxu0 %vm575_vm1, %v17424_v17 }
 0xb4b   : > { %22044 = vmatmul.mubr.msk.bf16.gmra.mrb[60].mxu0 %vm575_vm1, %v17425_v33 }
 0xb4c   : > { %22051 = vmatprep.mubr.msk.bf16.mxu0 %vm1060_vm0, %v23835_v23 }
 0xb53   : > { %22052 = vmatmul.mubr.msk.bf16.vlgmr.msra.gmra.mrb[32].mxu0 %vm1060_vm0, %v23836_v57 }
 0xb54   : > { %22055 = vmatprep.mubr.msk.bf16.mxu0 %vm1060_vm0, %v23837_v8 }
 0xb5b   : > { %22056 = vmatmul.mubr.msk.bf16.gmra.mrb[36].mxu0 %vm1060_vm0, %v23838_v34 }
 0xb5c   : > { %22059 = vmatprep.mubr.msk.bf16.mxu0 %vm1060_vm0, %v23839_v7 }
 0xb63   : > { %22060 = vmatmul.mubr.msk.bf16.gmra.mrb[40].mxu0 %vm1060_vm0, %v23840_v6 }
 0xb64   : > { %22063 = vmatprep.mubr.msk.bf16.mxu0 %vm1060_vm0, %v23841_v62 }
 0xb6b   : > { %22064 = vmatmul.mubr.msk.bf16.gmra.mrb[44].mxu0 %vm1060_vm0, %v23842_v19 }
 0xb6c   : > { %22067 = vmatprep.mubr.msk.bf16.mxu0 %vm1060_vm0, %v23843_v59 }
 0xb73   : > { %22068 = vmatmul.mubr.msk.bf16.gmra.mrb[48].mxu0 %vm1060_vm0, %v23844_v40 }
 0xb74   : > { %22071 = vmatprep.mubr.msk.bf16.mxu0 %vm1060_vm0, %v23845_v12 }
 0xb7b   : > { %22072 = vmatmul.mubr.msk.bf16.gmra.mrb[52].mxu0 %vm1060_vm0, %v23846_v3 }
 0xb7c   : > { %22075 = vmatprep.mubr.msk.bf16.mxu0 %vm1060_vm0, %v23847_v35 }
 0xb83   : > { %22076 = vmatmul.mubr.msk.bf16.gmra.mrb[56].mxu0 %vm1060_vm0, %v23848_v27 }
 0xb84   : > { %22079 = vmatprep.mubr.msk.bf16.mxu0 %vm1060_vm0, %v23849_v39 }
 0xb8b   : > { %22080 = vmatmul.mubr.msk.bf16.gmra.mrb[60].mxu0 %vm1060_vm0, %v23850_v48 }
 0xc26   : > { %v22053_v24 = vpop.f32.mrb[32].mxu0 }
 0xc27   : > { %v17922_v14 = vadd.f32 %v22053_v24, %v27914_v1  ;;  %v17754_v45 = vpop.f32.mrb[33].mxu0 }
 0xc28   : > { %v17920_v60 = vadd.f32 %v27914_v1, %v17754_v45  ;;  %v22054_v55 = vpop.f32.mrb[34].mxu0 }
 0xc29   : > { %v17954_v42 = vmax.f32 %v17922_v14, 0.0  ;;  %v17923_v50 = vadd.f32 %v22054_v55, %v27914_v1  ;;  %v17757_v4 = vpop.f32.mrb[35].mxu0 }
 0xc2a   : > { %v17952_v63 = vmax.f32 %v17920_v60, 0.0  ;;  %v17921_v51 = vadd.f32 %v27914_v1, %v17757_v4 }
 0xc2b   : > { %17986 = vst.msk [vmem:[%s27922_s25 + $0x10] sm:$0xff] %vm1060_vm0, %v17954_v42  ;;  %v17955_v47 = vmax.f32 %v17923_v50, 0.0 }
 0xc2c   : > { %17984 = vst.msk [vmem:[%s27922_s25] sm:$0xff] %vm1060_vm0, %v17952_v63  ;;  %v17953_v53 = vmax.f32 %v17921_v51, 0.0 }
 0xc2d   : > { %17987 = vst.msk [vmem:[%s27922_s25 + $0x18] sm:$0xff] %vm1060_vm0, %v17955_v47 }
 0xc2e   : > { %17985 = vst.msk [vmem:[%s27922_s25 + $0x8] sm:$0xff] %vm1060_vm0, %v17953_v53  ;;  %v22057_v15 = vpop.f32.mrb[36].mxu0 }
 0xc2f   : > { %v17926_v31 = vadd.f32 %v22057_v15, %v27914_v1  ;;  %v17770_v29 = vpop.f32.mrb[37].mxu0 }
 0xc30   : > { %v17924_v30 = vadd.f32 %v27914_v1, %v17770_v29  ;;  %v22058_v56 = vpop.f32.mrb[38].mxu0 }
 0xc31   : > { %v17958_v38 = vmax.f32 %v17926_v31, 0.0  ;;  %v17927_v11 = vadd.f32 %v22058_v56, %v27914_v1  ;;  %v17773_v43 = vpop.f32.mrb[39].mxu0 }
 0xc32   : > { %v17956_v20 = vmax.f32 %v17924_v30, 0.0  ;;  %v17925_v16 = vadd.f32 %v27914_v1, %v17773_v43 }
 0xc33   : > { %17990 = vst.msk [vmem:[%s27922_s25 + $0x30] sm:$0xff] %vm1060_vm0, %v17958_v38  ;;  %v17959_v32 = vmax.f32 %v17927_v11, 0.0 }
 0xc34   : > { %17988 = vst.msk [vmem:[%s27922_s25 + $0x20] sm:$0xff] %vm1060_vm0, %v17956_v20  ;;  %v17957_v52 = vmax.f32 %v17925_v16, 0.0 }
 0xc35   : > { %17991 = vst.msk [vmem:[%s27922_s25 + $0x38] sm:$0xff] %vm1060_vm0, %v17959_v32 }
 0xc36   : > { %17989 = vst.msk [vmem:[%s27922_s25 + $0x28] sm:$0xff] %vm1060_vm0, %v17957_v52  ;;  %v22061_v58 = vpop.f32.mrb[40].mxu0 }
 0xc37   : > { %v17930_v49 = vadd.f32 %v22061_v58, %v27914_v1  ;;  %v17786_v21 = vpop.f32.mrb[41].mxu0 }
 0xc38   : > { %v17928_v9 = vadd.f32 %v27914_v1, %v17786_v21  ;;  %v22062_v41 = vpop.f32.mrb[42].mxu0 }
 0xc39   : > { %v17962_v13 = vmax.f32 %v17930_v49, 0.0  ;;  %v17931_v54 = vadd.f32 %v22062_v41, %v27914_v1  ;;  %v17789_v44 = vpop.f32.mrb[43].mxu0 }
 0xc3a   : > { %v17960_v25 = vmax.f32 %v17928_v9, 0.0  ;;  %v17929_v10 = vadd.f32 %v27914_v1, %v17789_v44 }
 0xc3b   : > { %17994 = vst.msk [vmem:[%s27922_s25 + $0x50] sm:$0xff] %vm1060_vm0, %v17962_v13  ;;  %v17963_v61 = vmax.f32 %v17931_v54, 0.0 }
 0xc3c   : > { %17992 = vst.msk [vmem:[%s27922_s25 + $0x40] sm:$0xff] %vm1060_vm0, %v17960_v25  ;;  %v17961_v18 = vmax.f32 %v17929_v10, 0.0 }
 0xc3d   : > { %17995 = vst.msk [vmem:[%s27922_s25 + $0x58] sm:$0xff] %vm1060_vm0, %v17963_v61 }
 0xc3e   : > { %17993 = vst.msk [vmem:[%s27922_s25 + $0x48] sm:$0xff] %vm1060_vm0, %v17961_v18  ;;  %v22065_v46 = vpop.f32.mrb[44].mxu0 }
 0xc3f   : > { %v17934_v36 = vadd.f32 %v22065_v46, %v27914_v1  ;;  %v17802_v22 = vpop.f32.mrb[45].mxu0 }
 0xc40   : > { %v17932_v28 = vadd.f32 %v27914_v1, %v17802_v22  ;;  %v22066_v5 = vpop.f32.mrb[46].mxu0 }
 0xc41   : > { %v17966_v2 = vmax.f32 %v17934_v36, 0.0  ;;  %v17935_v37 = vadd.f32 %v22066_v5, %v27914_v1  ;;  %v17805_v17 = vpop.f32.mrb[47].mxu0 }
 0xc42   : > { %v17964_v26 = vmax.f32 %v17932_v28, 0.0  ;;  %v17933_v0 = vadd.f32 %v27914_v1, %v17805_v17 }
 0xc43   : > { %17998 = vst.msk [vmem:[%s27922_s25 + $0x70] sm:$0xff] %vm1060_vm0, %v17966_v2  ;;  %v17967_v33 = vmax.f32 %v17935_v37, 0.0 }
 0xc44   : > { %17996 = vst.msk [vmem:[%s27922_s25 + $0x60] sm:$0xff] %vm1060_vm0, %v17964_v26  ;;  %v17965_v23 = vmax.f32 %v17933_v0, 0.0 }
 0xc45   : > { %17999 = vst.msk [vmem:[%s27922_s25 + $0x78] sm:$0xff] %vm1060_vm0, %v17967_v33 }
 0xc46   : > { %17997 = vst.msk [vmem:[%s27922_s25 + $0x68] sm:$0xff] %vm1060_vm0, %v17965_v23  ;;  %v22069_v57 = vpop.f32.mrb[48].mxu0 }
 0xc47   : > { %v17938_v8 = vadd.f32 %v22069_v57, %v27914_v1  ;;  %v17818_v34 = vpop.f32.mrb[49].mxu0 }
 0xc48   : > { %v17936_v7 = vadd.f32 %v27914_v1, %v17818_v34  ;;  %v22070_v6 = vpop.f32.mrb[50].mxu0 }
 0xc49   : > { %v17970_v62 = vmax.f32 %v17938_v8, 0.0  ;;  %v17939_v19 = vadd.f32 %v22070_v6, %v27914_v1  ;;  %v17821_v59 = vpop.f32.mrb[51].mxu0 }
 0xc4a   : > { %v17968_v40 = vmax.f32 %v17936_v7, 0.0  ;;  %v17937_v12 = vadd.f32 %v27914_v1, %v17821_v59 }
 0xc4b   : > { %18002 = vst.msk [vmem:[%s27922_s25 + $0x90] sm:$0xff] %vm1060_vm0, %v17970_v62  ;;  %v17971_v3 = vmax.f32 %v17939_v19, 0.0 }
 0xc4c   : > { %18000 = vst.msk [vmem:[%s27922_s25 + $0x80] sm:$0xff] %vm1060_vm0, %v17968_v40  ;;  %v17969_v35 = vmax.f32 %v17937_v12, 0.0 }
 0xc4d   : > { %18003 = vst.msk [vmem:[%s27922_s25 + $0x98] sm:$0xff] %vm1060_vm0, %v17971_v3 }
 0xc4e   : > { %18001 = vst.msk [vmem:[%s27922_s25 + $0x88] sm:$0xff] %vm1060_vm0, %v17969_v35  ;;  %v22073_v27 = vpop.f32.mrb[52].mxu0 }
 0xc4f   : > { %v17942_v39 = vadd.f32 %v22073_v27, %v27914_v1  ;;  %v17834_v48 = vpop.f32.mrb[53].mxu0 }
 0xc50   : > { %v17940_v24 = vadd.f32 %v27914_v1, %v17834_v48  ;;  %v22074_v14 = vpop.f32.mrb[54].mxu0 }
 0xc51   : > { %v17974_v45 = vmax.f32 %v17942_v39, 0.0  ;;  %v17943_v60 = vadd.f32 %v22074_v14, %v27914_v1  ;;  %v17837_v55 = vpop.f32.mrb[55].mxu0 }
 0xc52   : > { %v17972_v42 = vmax.f32 %v17940_v24, 0.0  ;;  %v17941_v50 = vadd.f32 %v27914_v1, %v17837_v55 }
 0xc53   : > { %18006 = vst.msk [vmem:[%s27922_s25 + $0xb0] sm:$0xff] %vm1060_vm0, %v17974_v45  ;;  %v17975_v4 = vmax.f32 %v17943_v60, 0.0 }
 0xc54   : > { %18004 = vst.msk [vmem:[%s27922_s25 + $0xa0] sm:$0xff] %vm1060_vm0, %v17972_v42  ;;  %v17973_v63 = vmax.f32 %v17941_v50, 0.0 }
 0xc55   : > { %18007 = vst.msk [vmem:[%s27922_s25 + $0xb8] sm:$0xff] %vm1060_vm0, %v17975_v4 }
 0xc56   : > { %18005 = vst.msk [vmem:[%s27922_s25 + $0xa8] sm:$0xff] %vm1060_vm0, %v17973_v63  ;;  %v22077_v51 = vpop.f32.mrb[56].mxu0 }
 0xc57   : > { %v17946_v47 = vadd.f32 %v22077_v51, %v27914_v1  ;;  %v17850_v53 = vpop.f32.mrb[57].mxu0 }
 0xc58   : > { %v17944_v15 = vadd.f32 %v27914_v1, %v17850_v53  ;;  %v22078_v31 = vpop.f32.mrb[58].mxu0 }
 0xc59   : > { %v17978_v29 = vmax.f32 %v17946_v47, 0.0  ;;  %v17947_v30 = vadd.f32 %v22078_v31, %v27914_v1  ;;  %v17853_v56 = vpop.f32.mrb[59].mxu0 }
 0xc5a   : > { %v17976_v38 = vmax.f32 %v17944_v15, 0.0  ;;  %v17945_v11 = vadd.f32 %v27914_v1, %v17853_v56 }
 0xc5b   : > { %18010 = vst.msk [vmem:[%s27922_s25 + $0xd0] sm:$0xff] %vm1060_vm0, %v17978_v29  ;;  %v17979_v43 = vmax.f32 %v17947_v30, 0.0 }
 0xc5c   : > { %18008 = vst.msk [vmem:[%s27922_s25 + $0xc0] sm:$0xff] %vm1060_vm0, %v17976_v38  ;;  %v17977_v20 = vmax.f32 %v17945_v11, 0.0 }
 0xc5d   : > { %18011 = vst.msk [vmem:[%s27922_s25 + $0xd8] sm:$0xff] %vm1060_vm0, %v17979_v43 }
 0xc5e   : > { %18009 = vst.msk [vmem:[%s27922_s25 + $0xc8] sm:$0xff] %vm1060_vm0, %v17977_v20  ;;  %v22081_v16 = vpop.f32.mrb[60].mxu0 }
 0xc5f   : > { %v17950_v32 = vadd.f32 %v22081_v16, %v27914_v1  ;;  %v17866_v52 = vpop.f32.mrb[61].mxu0 }
 0xc60   : > { %v17948_v58 = vadd.f32 %v27914_v1, %v17866_v52  ;;  %v22082_v49 = vpop.f32.mrb[62].mxu0 }
 0xc61   : > { %v17982_v21 = vmax.f32 %v17950_v32, 0.0  ;;  %v17951_v9 = vadd.f32 %v22082_v49, %v27914_v1  ;;  %v17869_v41 = vpop.f32.mrb[63].mxu0 }
 0xc62   : > { %v17980_v13 = vmax.f32 %v17948_v58, 0.0  ;;  %v17949_v54 = vadd.f32 %v27914_v1, %v17869_v41 }
 0xc63   : > { %18014 = vst.msk [vmem:[%s27922_s25 + $0xf0] sm:$0xff] %vm1060_vm0, %v17982_v21  ;;  %v17983_v44 = vmax.f32 %v17951_v9, 0.0 }
 0xc64   : > { %18012 = vst.msk [vmem:[%s27922_s25 + $0xe0] sm:$0xff] %vm1060_vm0, %v17980_v13  ;;  %v17981_v25 = vmax.f32 %v17949_v54, 0.0 }
 0xc65   : > { %18015 = vst.msk [vmem:[%s27922_s25 + $0xf8] sm:$0xff] %vm1060_vm0, %v17983_v44 }
 0xc66   : > { %18013 = vst.msk [vmem:[%s27922_s25 + $0xe8] sm:$0xff] %vm1060_vm0, %v17981_v25 }
 0xc67   : > { %23864 = shalt.err (!%p23861_p3)
}
 0xc68   : > { %s23865_s22 = scalar_lea.hbm %s28015_s1, 4096  ;;  %s23869_s29 = scalar_lea.hbm %s28086_s18, 8192 }
 0xc69   : > { %p23866_p4 = scmp.ne.s32.totalorder %s28015_s1, %s23865_s22  ;;  %p23870_p9 = scmp.lt.u32.totalorder %s28015_s1, %s28086_s18 }
 0xc6a   : > { %p23871_p10 = scmp.lt.u32.totalorder %s23869_s29, %s23865_s22  ;;  %p23873_p12 = scmp.lt.u32.totalorder %s23865_s22, %s28015_s1 }
 0xc6b   : > { %p23867_p7 = pnand %p23866_p4, %p24052_p5 }
 0xc6c   : > { %p23872_p11 = por %p23871_p10, %p23870_p9 }
 0xc6d   : > { %p23868_p8 = pneg %p23867_p7 }
 0xc6e   : > { %p23874_p13 = por %p23873_p12, %p23872_p11 }
 0xc70   : > { %p23875_p0 = pnand %p23874_p13, %p23868_p8 }
 0xc72   : > { %23878 = shalt.err (!%p23875_p0)
}
 0xc73   : > { %s23917_s23 = smov 128   ;;  %s23918_s19 = smov 8  }
 0xc74   : > { %23769 = dma.vmem_to_hbm [thread:$0]  (%p24052_p5), %s28017_s20, 4096, %s28015_s1, %s28027_s0, %s23917_s23, %s23917_s23, %s23918_s19  }
 0xc75 PF: > { %s28197_s25 = sld [smem:[#allocation11_spill]]  ;;  %p23775_p1 = scmp.ge.s32.totalorder %s23913_s30, 2 }
 0xc77   : > { %p23772_p2 = pnand %p23775_p1, %p24056_p6 }
 0xc7b   : > { %s18045_s21 = sand.u32 1, %s28197_s25  }
 0xc7c   : > { %s18046_s22 = scalar_lea.sflag [#allocation9], %s18045_s21 }
 0xc7d   : > { %23896 = dma.done.wait (!%p23772_p2), %s18046_s22, 4096  }
 0xc7e   : > { %23898 = vsyncadd (!%p23772_p2), %s18046_s22, 4294963200  ;;  %s28199_s30 = sld [smem:[#allocation13_spill]]  ;;  %s28200_s29 = sld [smem:[#allocation12_spill]] }
 0xc7f   : > { %s28201_s24 = sld [smem:[#allocation14_spill]]  ;;  %s28202_s27 = smov %s23905_s28 }
 0xc84   : > { %p28_p3 = scmp.ge.s32.totalorder %s28199_s30, 4   ;;  %s28203_s28 = smov %s28200_s29 }
 0xc85   : > { %s28204_s29 = smov %s28201_s24 }
 0xc86   :  { %30 = sbr.rel (!%p28_p3) target bundleno = 7 (0x7), region = 187 }
 0xc8d   :  { %18051 = vsyncpa [#allocation9], 1 }
 0xc8e   :  { %18053 = vsyncpa [#allocation9 + $0x1], 1 }

</bundles_post_ra>
